<compile_context>
chip_gen: v5e
topology: v5e:2x2
jax: 0.10.0
libtpu: 0.0.40
codegen_flags: <defaults>
</compile_context>

<pallas_src>
import functools

import jax
import jax.numpy as jnp
from jax.experimental import pallas as pl
from jax.experimental.pallas import tpu as pltpu


# ----------------------------------------------------------------------------
# In-kernel helpers
# ----------------------------------------------------------------------------
def _lstm_step(xg, h, c, whh_ref, H):
    """One LSTM cell update (PyTorch gate order i, f, g, o).

    xg:      [B, 4H] f32 precomputed input projection (x @ W_ih + b_ih + b_hh)
    h, c:    [B, H]  f32 recurrent state
    whh_ref: [H, 4H] bf16 Ref.  ONE fused MXU dot per step; the [B, 4H] result is
             sliced at 128-aligned lane offsets for the four gates (no lane shifts).
    """
    f32 = jnp.float32
    gates = xg + jnp.dot(h.astype(jnp.bfloat16), whh_ref[...],
                         preferred_element_type=f32)              # [B, 4H]
    i = jax.nn.sigmoid(gates[:, 0 * H:1 * H])
    f = jax.nn.sigmoid(gates[:, 1 * H:2 * H])
    g = jnp.tanh(gates[:, 2 * H:3 * H])
    o = jax.nn.sigmoid(gates[:, 3 * H:4 * H])
    c_new = f * c + i * g
    h_new = o * jnp.tanh(c_new)
    return h_new, c_new


# ----------------------------------------------------------------------------
# Fused forward kernel
# ----------------------------------------------------------------------------
def _skill_prior_fused_kernel(*refs, n_prior_hidden):
    """Fused SkillPriorMdl forward.

    Ref layout (in order):
      inputs : enc_in_tm [T*B, S+A] (time-major, [state|action] pre-concatenated),
               s0 [B, S], eps [B, z]
               encoder (5): w_ih, w_hh, b, w_head (mu|ls), b_head
               prior   (2*n_prior_hidden): (w, b) per Linear+ReLU block
               prior head (2): w_head (mu|ls), b_head
               decoder (6): w_ih_s, w_ih_z, w_hh, b, w_fc, b_fc
      outputs: q [B,2z], q_hat [B,2z], z [B,z], recon_tm [T,B,A]
      scratch: gx [T*B, 4He] f32
    """
    idx = 0
    enc_in_ref, s0_ref, eps_ref = refs[idx:idx + 3]; idx += 3
    e_wih, e_whh, e_b, e_whead, e_bhead = refs[idx:idx + 5]; idx += 5
    prior_wb = refs[idx:idx + 2 * n_prior_hidden]; idx += 2 * n_prior_hidden
    p_whead, p_bhead = refs[idx:idx + 2]; idx += 2
    d_wih_s, d_wih_z, d_whh, d_b, d_wfc, d_bfc = refs[idx:idx + 6]; idx += 6
    q_ref, qhat_ref, z_ref, recon_ref = refs[idx:idx + 4]; idx += 4
    gx_ref = refs[idx]

    f32 = jnp.float32
    bf16 = jnp.bfloat16

    T, B, _ = recon_ref.shape
    Z = eps_ref.shape[1]
    He = e_whh.shape[0]
    Hd = d_whh.shape[0]

    # ---- encoder: hoisted input projection (one matmul for all timesteps) ----
    gx_ref[...] = (jnp.dot(enc_in_ref[...].astype(bf16), e_wih[...],
                           preferred_element_type=f32) + e_b[...])   # [T*B, 4He]

    # ---- encoder recurrence: one fused h @ W_hh dot + gate math per step -----
    h = jnp.zeros((B, He), f32)
    c = jnp.zeros((B, He), f32)
    for t in range(T):
        xg = gx_ref[pl.ds(t * B, B), :]      # static, tile-aligned for B % 8 == 0
        h, c = _lstm_step(xg, h, c, e_whh, He)

    # Column-fused head: one dot produces [mu | log_sigma].
    q2 = jnp.dot(h.astype(bf16), e_whead[...],
                 preferred_element_type=f32) + e_bhead[...]           # [B, 2Z]
    q_ref[...] = q2

    # ---- reparameterized sample: z = mu + exp(log_sigma) * eps ---------------
    q_mu = q2[:, :Z]
    q_ls = q2[:, Z:2 * Z]
    z = q_mu + jnp.exp(q_ls) * eps_ref[...]   # NOTE: unclamped, matches reference
    z_ref[...] = z

    # ---- learned prior MLP q_hat(z | s_0) -------------------------------------
    hp = s0_ref[...]
    for l in range(n_prior_hidden):
        w = prior_wb[2 * l]
        bias = prior_wb[2 * l + 1]
        hp = jnp.maximum(
            jnp.dot(hp.astype(bf16), w[...], preferred_element_type=f32) + bias[...],
            0.0)
    qhat_ref[...] = (jnp.dot(hp.astype(bf16), p_whead[...],
                             preferred_element_type=f32) + p_bhead[...])  # [B, 2Z]

    # ---- decoder: time-invariant input projection computed ONCE ---------------
    xg_dec = (
        jnp.dot(s0_ref[...].astype(bf16), d_wih_s[...], preferred_element_type=f32)
        + jnp.dot(z.astype(bf16), d_wih_z[...], preferred_element_type=f32)
        + d_b[...])                                                   # [B, 4Hd]

    wfc = d_wfc[...]                         # [Hd, A] bf16, tiny -> keep in vregs
    bfc = d_bfc[...]
    h = jnp.zeros((B, Hd), f32)
    c = jnp.zeros((B, Hd), f32)
    for t in range(T):
        h, c = _lstm_step(xg_dec, h, c, d_whh, Hd)
        # Per-step output FC (N=A) hides under the recurrence latency; store is a
        # tile-aligned leading-axis write to the time-major output.
        recon_ref[t] = (jnp.dot(h.astype(bf16), wfc,
                                preferred_element_type=f32) + bfc)


# ----------------------------------------------------------------------------
# SkillPriorMdl (forward only) with deterministic synthetic parameters
# ----------------------------------------------------------------------------
class SkillPriorMdlPallas:
    def __init__(self, key,
                 action_dim=2, state_dim=15, z_size=10, skill_len=9,
                 lstm_hidden_enc=128, lstm_hidden_dec=128,
                 prior_hidden=128, prior_layers=6):
        self.action_dim = action_dim
        self.state_dim = state_dim
        self.z_size = z_size
        self.skill_len = skill_len
        self.n_rollout_steps = skill_len
        self.lstm_hidden_enc = lstm_hidden_enc
        self.lstm_hidden_dec = lstm_hidden_dec

        keys = iter(jax.random.split(key, 64))

        def init(shape, fan_in, dtype=jnp.float32):
            w = jax.random.normal(next(keys), shape, dtype=jnp.float32)
            return (w / jnp.sqrt(jnp.float32(fan_in))).astype(dtype)

        WD = jnp.bfloat16  # matmul-operand (weight) dtype; accumulation stays f32

        # Encoder LSTM: input = [state | action] (pre-concatenated in the wrapper),
        # hidden = He; fc head column-fused into [mu | log_sigma].
        enc_in = state_dim + action_dim
        He = lstm_hidden_enc
        self.enc_params = (
            init((enc_in, 4 * He), enc_in, WD),       # W_ih
            init((He, 4 * He), He, WD),               # W_hh
            init((1, 4 * He), He),                    # b = b_ih + b_hh (f32)
            init((He, 2 * z_size), He, WD),           # fc -> [mu | log_sigma]
            init((1, 2 * z_size), He),
        )

        # Prior MLP: Linear(S,128)+ReLU, 6x(Linear(128,128)+ReLU), Linear(128,2z)
        # with the last Linear kept column-fused as [mu | log_sigma].
        self.n_prior_hidden = prior_layers + 1
        prior_wb = []
        din = state_dim
        for _ in range(self.n_prior_hidden):
            prior_wb.append(init((din, prior_hidden), din, WD))
            prior_wb.append(init((1, prior_hidden), din))
            din = prior_hidden
        self.prior_wb = tuple(prior_wb)
        self.prior_head = (
            init((prior_hidden, 2 * z_size), prior_hidden, WD),   # -> [mu | log_sigma]
            init((1, 2 * z_size), prior_hidden),
        )

        # Decoder LSTM: input = [s_0 | z] (row-split W_ih since z is produced
        # in-kernel), hidden = Hd, fc -> action_dim.
        dec_in = state_dim + z_size
        Hd = lstm_hidden_dec
        self.dec_params = (
            init((state_dim, 4 * Hd), dec_in, WD),    # W_ih rows (cond s_0 part)
            init((z_size, 4 * Hd), dec_in, WD),       # W_ih rows (z part)
            init((Hd, 4 * Hd), Hd, WD),               # W_hh
            init((1, 4 * Hd), Hd),                    # b (f32)
            init((Hd, action_dim), Hd, WD),           # output fc
            init((1, action_dim), Hd),
        )

    def forward(self, states, actions, key):
        """states: [B, skill_len+1, state_dim]; actions: [B, skill_len, action_dim]."""
        B, T, A = actions.shape
        S, Z = self.state_dim, self.z_size
        eps = jax.random.normal(key, (B, Z), dtype=jnp.float32)

        s0 = states[:, 0, :]                                           # [B, S]
        # Time-major flatten + [state | action] concat in the wrapper: pure layout
        # plumbing that XLA folds into the HBM->VMEM DMA (no in-kernel relayout).
        enc_in_tm = jnp.transpose(
            jnp.concatenate([states[:, :T, :], actions], axis=-1),
            (1, 0, 2)).reshape(T * B, S + A)                           # [T*B, S+A]

        inputs = ((enc_in_tm, s0, eps) + self.enc_params + self.prior_wb
                  + self.prior_head + self.dec_params)
        vmem = pl.BlockSpec(memory_space=pltpu.MemorySpace.VMEM)
        out_shape = (
            jax.ShapeDtypeStruct((B, 2 * Z), jnp.float32),   # q  (mu | log_sigma)
            jax.ShapeDtypeStruct((B, 2 * Z), jnp.float32),   # q_hat (mu | log_sigma)
            jax.ShapeDtypeStruct((B, Z), jnp.float32),       # z
            jax.ShapeDtypeStruct((T, B, A), jnp.float32),    # reconstruction (time-major)
        )
        kern = functools.partial(_skill_prior_fused_kernel,
                                 n_prior_hidden=self.n_prior_hidden)
        q2, qhat2, z, recon_tm = pl.pallas_call(
            kern,
            out_shape=out_shape,
            in_specs=[vmem] * len(inputs),
            out_specs=(vmem,) * len(out_shape),
            scratch_shapes=[
                pltpu.VMEM((T * B, 4 * self.lstm_hidden_enc), jnp.float32),  # enc x-proj
            ],
        )(*inputs)

        q_mu, q_log_sigma = q2[:, :Z], q2[:, Z:]
        q_hat_mu, q_hat_log_sigma = qhat2[:, :Z], qhat2[:, Z:]
        recon = jnp.transpose(recon_tm, (1, 0, 2))            # [B, T, A]

        # Fixed unit-Gaussian prior (trivial glue).
        p_mu = jnp.zeros_like(q_mu)
        p_log_sigma = jnp.zeros_like(q_log_sigma)

        # TODO(synk): loss()/KL-beta dual-gradient optimizer, save/load and
        # val_mode() are training/IO-time utilities, not part of forward().
        return dict(
            q=(q_mu, q_log_sigma),
            p=(p_mu, p_log_sigma),
            q_hat=(q_hat_mu, q_hat_log_sigma),
            z=z,
            z_q=z,
            reconstruction=recon,
        )


if __name__ == "__main__":
    key = jax.random.PRNGKey(0)
    k_model, k_states, k_actions, k_sample = jax.random.split(key, 4)

    # B=8 fills a full sublane tile -> per-step LSTM cost is amortized (review's
    # biggest lever) and all in-kernel slices/stores stay tile-aligned.
    B, SKILL_LEN, STATE_DIM, ACTION_DIM, Z_SIZE = 8, 9, 15, 2, 10

    model = SkillPriorMdlPallas(k_model,
                                action_dim=ACTION_DIM, state_dim=STATE_DIM,
                                z_size=Z_SIZE, skill_len=SKILL_LEN)

    states = jax.random.normal(k_states, (B, SKILL_LEN + 1, STATE_DIM),
                               dtype=jnp.float32)
    actions = jax.random.normal(k_actions, (B, SKILL_LEN, ACTION_DIM),
                                dtype=jnp.float32)

    fwd = jax.jit(model.forward)
    out = jax.block_until_ready(fwd(states, actions, k_sample))

    assert out["q"][0].shape == (B, Z_SIZE)
    assert out["q"][1].shape == (B, Z_SIZE)
    assert out["q_hat"][0].shape == (B, Z_SIZE)
    assert out["q_hat"][1].shape == (B, Z_SIZE)
    assert out["z"].shape == (B, Z_SIZE)
    assert out["reconstruction"].shape == (B, SKILL_LEN, ACTION_DIM)
    finite_checks = [out["q"][0], out["q"][1], out["q_hat"][0], out["q_hat"][1],
                     out["z"], out["reconstruction"]]
    assert all(bool(jnp.all(jnp.isfinite(v))) for v in finite_checks)

    print("KERNEL_OK")
</pallas_src>

<mosaic_0001>
module attributes {stable_mosaic.version = 11 : i64} {
  func.func @_skill_prior_fused_kernel(%arg0: memref<72x17xf32, #tpu.memory_space<vmem>>, %arg1: memref<8x15xf32, #tpu.memory_space<vmem>>, %arg2: memref<8x10xf32, #tpu.memory_space<vmem>>, %arg3: memref<17x512xbf16, #tpu.memory_space<vmem>>, %arg4: memref<128x512xbf16, #tpu.memory_space<vmem>>, %arg5: memref<1x512xf32, #tpu.memory_space<vmem>>, %arg6: memref<128x20xbf16, #tpu.memory_space<vmem>>, %arg7: memref<1x20xf32, #tpu.memory_space<vmem>>, %arg8: memref<15x128xbf16, #tpu.memory_space<vmem>>, %arg9: memref<1x128xf32, #tpu.memory_space<vmem>>, %arg10: memref<128x128xbf16, #tpu.memory_space<vmem>>, %arg11: memref<1x128xf32, #tpu.memory_space<vmem>>, %arg12: memref<128x128xbf16, #tpu.memory_space<vmem>>, %arg13: memref<1x128xf32, #tpu.memory_space<vmem>>, %arg14: memref<128x128xbf16, #tpu.memory_space<vmem>>, %arg15: memref<1x128xf32, #tpu.memory_space<vmem>>, %arg16: memref<128x128xbf16, #tpu.memory_space<vmem>>, %arg17: memref<1x128xf32, #tpu.memory_space<vmem>>, %arg18: memref<128x128xbf16, #tpu.memory_space<vmem>>, %arg19: memref<1x128xf32, #tpu.memory_space<vmem>>, %arg20: memref<128x128xbf16, #tpu.memory_space<vmem>>, %arg21: memref<1x128xf32, #tpu.memory_space<vmem>>, %arg22: memref<128x20xbf16, #tpu.memory_space<vmem>>, %arg23: memref<1x20xf32, #tpu.memory_space<vmem>>, %arg24: memref<15x512xbf16, #tpu.memory_space<vmem>>, %arg25: memref<10x512xbf16, #tpu.memory_space<vmem>>, %arg26: memref<128x512xbf16, #tpu.memory_space<vmem>>, %arg27: memref<1x512xf32, #tpu.memory_space<vmem>>, %arg28: memref<128x2xbf16, #tpu.memory_space<vmem>>, %arg29: memref<1x2xf32, #tpu.memory_space<vmem>>, %arg30: memref<8x20xf32, #tpu.memory_space<vmem>>, %arg31: memref<8x20xf32, #tpu.memory_space<vmem>>, %arg32: memref<8x10xf32, #tpu.memory_space<vmem>>, %arg33: memref<9x8x2xf32, #tpu.memory_space<vmem>>, %arg34: memref<72x512xf32, #tpu.memory_space<vmem>>) attributes {dimension_semantics = [], scalar_prefetch = 0 : i64, scratch_operands = 1 : i64, tpu.core_type = #tpu.core_type<tc>} {
    %c0 = arith.constant 0 : index
    %c0_0 = arith.constant 0 : index
    %0 = vector.load %arg0[%c0, %c0_0] : memref<72x17xf32, #tpu.memory_space<vmem>>, vector<72x17xf32>
    %1 = arith.truncf %0 : vector<72x17xf32> to vector<72x17xbf16>
    %c0_1 = arith.constant 0 : index
    %c0_2 = arith.constant 0 : index
    %2 = vector.load %arg3[%c0_1, %c0_2] : memref<17x512xbf16, #tpu.memory_space<vmem>>, vector<17x512xbf16>
    %cst = arith.constant dense<0.000000e+00> : vector<72x512xf32>
    %3 = tpu.matmul %1, %2, %cst {dimension_numbers = #tpu.dot_dimension_numbers<[1], [0], [0], [1], [0, 0, 1, 1], [], []>} : vector<72x17xbf16>, vector<17x512xbf16>, vector<72x512xf32> -> vector<72x512xf32>
    %c0_3 = arith.constant 0 : index
    %c0_4 = arith.constant 0 : index
    %4 = vector.load %arg5[%c0_3, %c0_4] : memref<1x512xf32, #tpu.memory_space<vmem>>, vector<1x512xf32>
    %5 = vector.broadcast %4 : vector<1x512xf32> to vector<72x512xf32>
    %6 = arith.addf %3, %5 : vector<72x512xf32>
    %c0_5 = arith.constant 0 : index
    %c0_6 = arith.constant 0 : index
    %7 = vector.load %arg34[%c0_5, %c0_6] : memref<72x512xf32, #tpu.memory_space<vmem>>, vector<72x512xf32>
    tpu.vector_store %arg34[%c0_5, %c0_6], %6 {strides = array<i32>} : memref<72x512xf32, #tpu.memory_space<vmem>>, vector<72x512xf32>,
    %cst_7 = arith.constant 0.000000e+00 : f32
    %8 = vector.broadcast %cst_7 : f32 to vector<8x128xf32>
    %cst_8 = arith.constant 0.000000e+00 : f32
    %9 = vector.broadcast %cst_8 : f32 to vector<8x128xf32>
    %c0_9 = arith.constant 0 : index
    %c0_10 = arith.constant 0 : index
    %10 = vector.load %arg34[%c0_9, %c0_10] : memref<72x512xf32, #tpu.memory_space<vmem>>, vector<8x512xf32>
    %11 = arith.truncf %8 : vector<8x128xf32> to vector<8x128xbf16>
    %c0_11 = arith.constant 0 : index
    %c0_12 = arith.constant 0 : index
    %12 = vector.load %arg4[%c0_11, %c0_12] : memref<128x512xbf16, #tpu.memory_space<vmem>>, vector<128x512xbf16>
    %cst_13 = arith.constant dense<0.000000e+00> : vector<8x512xf32>
    %13 = tpu.matmul %11, %12, %cst_13 {dimension_numbers = #tpu.dot_dimension_numbers<[1], [0], [0], [1], [0, 0, 1, 1], [], []>} : vector<8x128xbf16>, vector<128x512xbf16>, vector<8x512xf32> -> vector<8x512xf32>
    %14 = arith.addf %10, %13 : vector<8x512xf32>
    %15 = vector.extract_strided_slice %14 {offsets = [0, 0], sizes = [8, 128], strides = [1, 1]} : vector<8x512xf32> to vector<8x128xf32>
    %16 = arith.negf %15 : vector<8x128xf32>
    %17 = math.exp %16 : vector<8x128xf32>
    %cst_14 = arith.constant 1.000000e+00 : f32
    %18 = vector.broadcast %cst_14 : f32 to vector<8x128xf32>
    %19 = arith.addf %18, %17 : vector<8x128xf32>
    %20 = arith.divf %18, %19 : vector<8x128xf32>
    %21 = vector.extract_strided_slice %14 {offsets = [0, 128], sizes = [8, 128], strides = [1, 1]} : vector<8x512xf32> to vector<8x128xf32>
    %22 = arith.negf %21 : vector<8x128xf32>
    %23 = math.exp %22 : vector<8x128xf32>
    %cst_15 = arith.constant 1.000000e+00 : f32
    %24 = vector.broadcast %cst_15 : f32 to vector<8x128xf32>
    %25 = arith.addf %24, %23 : vector<8x128xf32>
    %26 = arith.divf %24, %25 : vector<8x128xf32>
    %27 = vector.extract_strided_slice %14 {offsets = [0, 256], sizes = [8, 128], strides = [1, 1]} : vector<8x512xf32> to vector<8x128xf32>
    %28 = math.tanh %27 : vector<8x128xf32>
    %29 = vector.extract_strided_slice %14 {offsets = [0, 384], sizes = [8, 128], strides = [1, 1]} : vector<8x512xf32> to vector<8x128xf32>
    %30 = arith.negf %29 : vector<8x128xf32>
    %31 = math.exp %30 : vector<8x128xf32>
    %cst_16 = arith.constant 1.000000e+00 : f32
    %32 = vector.broadcast %cst_16 : f32 to vector<8x128xf32>
    %33 = arith.addf %32, %31 : vector<8x128xf32>
    %34 = arith.divf %32, %33 : vector<8x128xf32>
    %35 = arith.mulf %26, %9 : vector<8x128xf32>
    %36 = arith.mulf %20, %28 : vector<8x128xf32>
    %37 = arith.addf %35, %36 : vector<8x128xf32>
    %38 = math.tanh %37 : vector<8x128xf32>
    %39 = arith.mulf %34, %38 : vector<8x128xf32>
    %c8 = arith.constant 8 : index
    %c0_17 = arith.constant 0 : index
    %40 = vector.load %arg34[%c8, %c0_17] : memref<72x512xf32, #tpu.memory_space<vmem>>, vector<8x512xf32>
    %41 = arith.truncf %39 : vector<8x128xf32> to vector<8x128xbf16>
    %c0_18 = arith.constant 0 : index
    %c0_19 = arith.constant 0 : index
    %42 = vector.load %arg4[%c0_18, %c0_19] : memref<128x512xbf16, #tpu.memory_space<vmem>>, vector<128x512xbf16>
    %cst_20 = arith.constant dense<0.000000e+00> : vector<8x512xf32>
    %43 = tpu.matmul %41, %42, %cst_20 {dimension_numbers = #tpu.dot_dimension_numbers<[1], [0], [0], [1], [0, 0, 1, 1], [], []>} : vector<8x128xbf16>, vector<128x512xbf16>, vector<8x512xf32> -> vector<8x512xf32>
    %44 = arith.addf %40, %43 : vector<8x512xf32>
    %45 = vector.extract_strided_slice %44 {offsets = [0, 0], sizes = [8, 128], strides = [1, 1]} : vector<8x512xf32> to vector<8x128xf32>
    %46 = arith.negf %45 : vector<8x128xf32>
    %47 = math.exp %46 : vector<8x128xf32>
    %cst_21 = arith.constant 1.000000e+00 : f32
    %48 = vector.broadcast %cst_21 : f32 to vector<8x128xf32>
    %49 = arith.addf %48, %47 : vector<8x128xf32>
    %50 = arith.divf %48, %49 : vector<8x128xf32>
    %51 = vector.extract_strided_slice %44 {offsets = [0, 128], sizes = [8, 128], strides = [1, 1]} : vector<8x512xf32> to vector<8x128xf32>
    %52 = arith.negf %51 : vector<8x128xf32>
    %53 = math.exp %52 : vector<8x128xf32>
    %cst_22 = arith.constant 1.000000e+00 : f32
    %54 = vector.broadcast %cst_22 : f32 to vector<8x128xf32>
    %55 = arith.addf %54, %53 : vector<8x128xf32>
    %56 = arith.divf %54, %55 : vector<8x128xf32>
    %57 = vector.extract_strided_slice %44 {offsets = [0, 256], sizes = [8, 128], strides = [1, 1]} : vector<8x512xf32> to vector<8x128xf32>
    %58 = math.tanh %57 : vector<8x128xf32>
    %59 = vector.extract_strided_slice %44 {offsets = [0, 384], sizes = [8, 128], strides = [1, 1]} : vector<8x512xf32> to vector<8x128xf32>
    %60 = arith.negf %59 : vector<8x128xf32>
    %61 = math.exp %60 : vector<8x128xf32>
    %cst_23 = arith.constant 1.000000e+00 : f32
    %62 = vector.broadcast %cst_23 : f32 to vector<8x128xf32>
    %63 = arith.addf %62, %61 : vector<8x128xf32>
    %64 = arith.divf %62, %63 : vector<8x128xf32>
    %65 = arith.mulf %56, %37 : vector<8x128xf32>
    %66 = arith.mulf %50, %58 : vector<8x128xf32>
    %67 = arith.addf %65, %66 : vector<8x128xf32>
    %68 = math.tanh %67 : vector<8x128xf32>
    %69 = arith.mulf %64, %68 : vector<8x128xf32>
    %c16 = arith.constant 16 : index
    %c0_24 = arith.constant 0 : index
    %70 = vector.load %arg34[%c16, %c0_24] : memref<72x512xf32, #tpu.memory_space<vmem>>, vector<8x512xf32>
    %71 = arith.truncf %69 : vector<8x128xf32> to vector<8x128xbf16>
    %c0_25 = arith.constant 0 : index
    %c0_26 = arith.constant 0 : index
    %72 = vector.load %arg4[%c0_25, %c0_26] : memref<128x512xbf16, #tpu.memory_space<vmem>>, vector<128x512xbf16>
    %cst_27 = arith.constant dense<0.000000e+00> : vector<8x512xf32>
    %73 = tpu.matmul %71, %72, %cst_27 {dimension_numbers = #tpu.dot_dimension_numbers<[1], [0], [0], [1], [0, 0, 1, 1], [], []>} : vector<8x128xbf16>, vector<128x512xbf16>, vector<8x512xf32> -> vector<8x512xf32>
    %74 = arith.addf %70, %73 : vector<8x512xf32>
    %75 = vector.extract_strided_slice %74 {offsets = [0, 0], sizes = [8, 128], strides = [1, 1]} : vector<8x512xf32> to vector<8x128xf32>
    %76 = arith.negf %75 : vector<8x128xf32>
    %77 = math.exp %76 : vector<8x128xf32>
    %cst_28 = arith.constant 1.000000e+00 : f32
    %78 = vector.broadcast %cst_28 : f32 to vector<8x128xf32>
    %79 = arith.addf %78, %77 : vector<8x128xf32>
    %80 = arith.divf %78, %79 : vector<8x128xf32>
    %81 = vector.extract_strided_slice %74 {offsets = [0, 128], sizes = [8, 128], strides = [1, 1]} : vector<8x512xf32> to vector<8x128xf32>
    %82 = arith.negf %81 : vector<8x128xf32>
    %83 = math.exp %82 : vector<8x128xf32>
    %cst_29 = arith.constant 1.000000e+00 : f32
    %84 = vector.broadcast %cst_29 : f32 to vector<8x128xf32>
    %85 = arith.addf %84, %83 : vector<8x128xf32>
    %86 = arith.divf %84, %85 : vector<8x128xf32>
    %87 = vector.extract_strided_slice %74 {offsets = [0, 256], sizes = [8, 128], strides = [1, 1]} : vector<8x512xf32> to vector<8x128xf32>
    %88 = math.tanh %87 : vector<8x128xf32>
    %89 = vector.extract_strided_slice %74 {offsets = [0, 384], sizes = [8, 128], strides = [1, 1]} : vector<8x512xf32> to vector<8x128xf32>
    %90 = arith.negf %89 : vector<8x128xf32>
    %91 = math.exp %90 : vector<8x128xf32>
    %cst_30 = arith.constant 1.000000e+00 : f32
    %92 = vector.broadcast %cst_30 : f32 to vector<8x128xf32>
    %93 = arith.addf %92, %91 : vector<8x128xf32>
    %94 = arith.divf %92, %93 : vector<8x128xf32>
    %95 = arith.mulf %86, %67 : vector<8x128xf32>
    %96 = arith.mulf %80, %88 : vector<8x128xf32>
    %97 = arith.addf %95, %96 : vector<8x128xf32>
    %98 = math.tanh %97 : vector<8x128xf32>
    %99 = arith.mulf %94, %98 : vector<8x128xf32>
    %c24 = arith.constant 24 : index
    %c0_31 = arith.constant 0 : index
    %100 = vector.load %arg34[%c24, %c0_31] : memref<72x512xf32, #tpu.memory_space<vmem>>, vector<8x512xf32>
    %101 = arith.truncf %99 : vector<8x128xf32> to vector<8x128xbf16>
    %c0_32 = arith.constant 0 : index
    %c0_33 = arith.constant 0 : index
    %102 = vector.load %arg4[%c0_32, %c0_33] : memref<128x512xbf16, #tpu.memory_space<vmem>>, vector<128x512xbf16>
    %cst_34 = arith.constant dense<0.000000e+00> : vector<8x512xf32>
    %103 = tpu.matmul %101, %102, %cst_34 {dimension_numbers = #tpu.dot_dimension_numbers<[1], [0], [0], [1], [0, 0, 1, 1], [], []>} : vector<8x128xbf16>, vector<128x512xbf16>, vector<8x512xf32> -> vector<8x512xf32>
    %104 = arith.addf %100, %103 : vector<8x512xf32>
    %105 = vector.extract_strided_slice %104 {offsets = [0, 0], sizes = [8, 128], strides = [1, 1]} : vector<8x512xf32> to vector<8x128xf32>
    %106 = arith.negf %105 : vector<8x128xf32>
    %107 = math.exp %106 : vector<8x128xf32>
    %cst_35 = arith.constant 1.000000e+00 : f32
    %108 = vector.broadcast %cst_35 : f32 to vector<8x128xf32>
    %109 = arith.addf %108, %107 : vector<8x128xf32>
    %110 = arith.divf %108, %109 : vector<8x128xf32>
    %111 = vector.extract_strided_slice %104 {offsets = [0, 128], sizes = [8, 128], strides = [1, 1]} : vector<8x512xf32> to vector<8x128xf32>
    %112 = arith.negf %111 : vector<8x128xf32>
    %113 = math.exp %112 : vector<8x128xf32>
    %cst_36 = arith.constant 1.000000e+00 : f32
    %114 = vector.broadcast %cst_36 : f32 to vector<8x128xf32>
    %115 = arith.addf %114, %113 : vector<8x128xf32>
    %116 = arith.divf %114, %115 : vector<8x128xf32>
    %117 = vector.extract_strided_slice %104 {offsets = [0, 256], sizes = [8, 128], strides = [1, 1]} : vector<8x512xf32> to vector<8x128xf32>
    %118 = math.tanh %117 : vector<8x128xf32>
    %119 = vector.extract_strided_slice %104 {offsets = [0, 384], sizes = [8, 128], strides = [1, 1]} : vector<8x512xf32> to vector<8x128xf32>
    %120 = arith.negf %119 : vector<8x128xf32>
    %121 = math.exp %120 : vector<8x128xf32>
    %cst_37 = arith.constant 1.000000e+00 : f32
    %122 = vector.broadcast %cst_37 : f32 to vector<8x128xf32>
    %123 = arith.addf %122, %121 : vector<8x128xf32>
    %124 = arith.divf %122, %123 : vector<8x128xf32>
    %125 = arith.mulf %116, %97 : vector<8x128xf32>
    %126 = arith.mulf %110, %118 : vector<8x128xf32>
    %127 = arith.addf %125, %126 : vector<8x128xf32>
    %128 = math.tanh %127 : vector<8x128xf32>
    %129 = arith.mulf %124, %128 : vector<8x128xf32>
    %c32 = arith.constant 32 : index
    %c0_38 = arith.constant 0 : index
    %130 = vector.load %arg34[%c32, %c0_38] : memref<72x512xf32, #tpu.memory_space<vmem>>, vector<8x512xf32>
    %131 = arith.truncf %129 : vector<8x128xf32> to vector<8x128xbf16>
    %c0_39 = arith.constant 0 : index
    %c0_40 = arith.constant 0 : index
    %132 = vector.load %arg4[%c0_39, %c0_40] : memref<128x512xbf16, #tpu.memory_space<vmem>>, vector<128x512xbf16>
    %cst_41 = arith.constant dense<0.000000e+00> : vector<8x512xf32>
    %133 = tpu.matmul %131, %132, %cst_41 {dimension_numbers = #tpu.dot_dimension_numbers<[1], [0], [0], [1], [0, 0, 1, 1], [], []>} : vector<8x128xbf16>, vector<128x512xbf16>, vector<8x512xf32> -> vector<8x512xf32>
    %134 = arith.addf %130, %133 : vector<8x512xf32>
    %135 = vector.extract_strided_slice %134 {offsets = [0, 0], sizes = [8, 128], strides = [1, 1]} : vector<8x512xf32> to vector<8x128xf32>
    %136 = arith.negf %135 : vector<8x128xf32>
    %137 = math.exp %136 : vector<8x128xf32>
    %cst_42 = arith.constant 1.000000e+00 : f32
    %138 = vector.broadcast %cst_42 : f32 to vector<8x128xf32>
    %139 = arith.addf %138, %137 : vector<8x128xf32>
    %140 = arith.divf %138, %139 : vector<8x128xf32>
    %141 = vector.extract_strided_slice %134 {offsets = [0, 128], sizes = [8, 128], strides = [1, 1]} : vector<8x512xf32> to vector<8x128xf32>
    %142 = arith.negf %141 : vector<8x128xf32>
    %143 = math.exp %142 : vector<8x128xf32>
    %cst_43 = arith.constant 1.000000e+00 : f32
    %144 = vector.broadcast %cst_43 : f32 to vector<8x128xf32>
    %145 = arith.addf %144, %143 : vector<8x128xf32>
    %146 = arith.divf %144, %145 : vector<8x128xf32>
    %147 = vector.extract_strided_slice %134 {offsets = [0, 256], sizes = [8, 128], strides = [1, 1]} : vector<8x512xf32> to vector<8x128xf32>
    %148 = math.tanh %147 : vector<8x128xf32>
    %149 = vector.extract_strided_slice %134 {offsets = [0, 384], sizes = [8, 128], strides = [1, 1]} : vector<8x512xf32> to vector<8x128xf32>
    %150 = arith.negf %149 : vector<8x128xf32>
    %151 = math.exp %150 : vector<8x128xf32>
    %cst_44 = arith.constant 1.000000e+00 : f32
    %152 = vector.broadcast %cst_44 : f32 to vector<8x128xf32>
    %153 = arith.addf %152, %151 : vector<8x128xf32>
    %154 = arith.divf %152, %153 : vector<8x128xf32>
    %155 = arith.mulf %146, %127 : vector<8x128xf32>
    %156 = arith.mulf %140, %148 : vector<8x128xf32>
    %157 = arith.addf %155, %156 : vector<8x128xf32>
    %158 = math.tanh %157 : vector<8x128xf32>
    %159 = arith.mulf %154, %158 : vector<8x128xf32>
    %c40 = arith.constant 40 : index
    %c0_45 = arith.constant 0 : index
    %160 = vector.load %arg34[%c40, %c0_45] : memref<72x512xf32, #tpu.memory_space<vmem>>, vector<8x512xf32>
    %161 = arith.truncf %159 : vector<8x128xf32> to vector<8x128xbf16>
    %c0_46 = arith.constant 0 : index
    %c0_47 = arith.constant 0 : index
    %162 = vector.load %arg4[%c0_46, %c0_47] : memref<128x512xbf16, #tpu.memory_space<vmem>>, vector<128x512xbf16>
    %cst_48 = arith.constant dense<0.000000e+00> : vector<8x512xf32>
    %163 = tpu.matmul %161, %162, %cst_48 {dimension_numbers = #tpu.dot_dimension_numbers<[1], [0], [0], [1], [0, 0, 1, 1], [], []>} : vector<8x128xbf16>, vector<128x512xbf16>, vector<8x512xf32> -> vector<8x512xf32>
    %164 = arith.addf %160, %163 : vector<8x512xf32>
    %165 = vector.extract_strided_slice %164 {offsets = [0, 0], sizes = [8, 128], strides = [1, 1]} : vector<8x512xf32> to vector<8x128xf32>
    %166 = arith.negf %165 : vector<8x128xf32>
    %167 = math.exp %166 : vector<8x128xf32>
    %cst_49 = arith.constant 1.000000e+00 : f32
    %168 = vector.broadcast %cst_49 : f32 to vector<8x128xf32>
    %169 = arith.addf %168, %167 : vector<8x128xf32>
    %170 = arith.divf %168, %169 : vector<8x128xf32>
    %171 = vector.extract_strided_slice %164 {offsets = [0, 128], sizes = [8, 128], strides = [1, 1]} : vector<8x512xf32> to vector<8x128xf32>
    %172 = arith.negf %171 : vector<8x128xf32>
    %173 = math.exp %172 : vector<8x128xf32>
    %cst_50 = arith.constant 1.000000e+00 : f32
    %174 = vector.broadcast %cst_50 : f32 to vector<8x128xf32>
    %175 = arith.addf %174, %173 : vector<8x128xf32>
    %176 = arith.divf %174, %175 : vector<8x128xf32>
    %177 = vector.extract_strided_slice %164 {offsets = [0, 256], sizes = [8, 128], strides = [1, 1]} : vector<8x512xf32> to vector<8x128xf32>
    %178 = math.tanh %177 : vector<8x128xf32>
    %179 = vector.extract_strided_slice %164 {offsets = [0, 384], sizes = [8, 128], strides = [1, 1]} : vector<8x512xf32> to vector<8x128xf32>
    %180 = arith.negf %179 : vector<8x128xf32>
    %181 = math.exp %180 : vector<8x128xf32>
    %cst_51 = arith.constant 1.000000e+00 : f32
    %182 = vector.broadcast %cst_51 : f32 to vector<8x128xf32>
    %183 = arith.addf %182, %181 : vector<8x128xf32>
    %184 = arith.divf %182, %183 : vector<8x128xf32>
    %185 = arith.mulf %176, %157 : vector<8x128xf32>
    %186 = arith.mulf %170, %178 : vector<8x128xf32>
    %187 = arith.addf %185, %186 : vector<8x128xf32>
    %188 = math.tanh %187 : vector<8x128xf32>
    %189 = arith.mulf %184, %188 : vector<8x128xf32>
    %c48 = arith.constant 48 : index
    %c0_52 = arith.constant 0 : index
    %190 = vector.load %arg34[%c48, %c0_52] : memref<72x512xf32, #tpu.memory_space<vmem>>, vector<8x512xf32>
    %191 = arith.truncf %189 : vector<8x128xf32> to vector<8x128xbf16>
    %c0_53 = arith.constant 0 : index
    %c0_54 = arith.constant 0 : index
    %192 = vector.load %arg4[%c0_53, %c0_54] : memref<128x512xbf16, #tpu.memory_space<vmem>>, vector<128x512xbf16>
    %cst_55 = arith.constant dense<0.000000e+00> : vector<8x512xf32>
    %193 = tpu.matmul %191, %192, %cst_55 {dimension_numbers = #tpu.dot_dimension_numbers<[1], [0], [0], [1], [0, 0, 1, 1], [], []>} : vector<8x128xbf16>, vector<128x512xbf16>, vector<8x512xf32> -> vector<8x512xf32>
    %194 = arith.addf %190, %193 : vector<8x512xf32>
    %195 = vector.extract_strided_slice %194 {offsets = [0, 0], sizes = [8, 128], strides = [1, 1]} : vector<8x512xf32> to vector<8x128xf32>
    %196 = arith.negf %195 : vector<8x128xf32>
    %197 = math.exp %196 : vector<8x128xf32>
    %cst_56 = arith.constant 1.000000e+00 : f32
    %198 = vector.broadcast %cst_56 : f32 to vector<8x128xf32>
    %199 = arith.addf %198, %197 : vector<8x128xf32>
    %200 = arith.divf %198, %199 : vector<8x128xf32>
    %201 = vector.extract_strided_slice %194 {offsets = [0, 128], sizes = [8, 128], strides = [1, 1]} : vector<8x512xf32> to vector<8x128xf32>
    %202 = arith.negf %201 : vector<8x128xf32>
    %203 = math.exp %202 : vector<8x128xf32>
    %cst_57 = arith.constant 1.000000e+00 : f32
    %204 = vector.broadcast %cst_57 : f32 to vector<8x128xf32>
    %205 = arith.addf %204, %203 : vector<8x128xf32>
    %206 = arith.divf %204, %205 : vector<8x128xf32>
    %207 = vector.extract_strided_slice %194 {offsets = [0, 256], sizes = [8, 128], strides = [1, 1]} : vector<8x512xf32> to vector<8x128xf32>
    %208 = math.tanh %207 : vector<8x128xf32>
    %209 = vector.extract_strided_slice %194 {offsets = [0, 384], sizes = [8, 128], strides = [1, 1]} : vector<8x512xf32> to vector<8x128xf32>
    %210 = arith.negf %209 : vector<8x128xf32>
    %211 = math.exp %210 : vector<8x128xf32>
    %cst_58 = arith.constant 1.000000e+00 : f32
    %212 = vector.broadcast %cst_58 : f32 to vector<8x128xf32>
    %213 = arith.addf %212, %211 : vector<8x128xf32>
    %214 = arith.divf %212, %213 : vector<8x128xf32>
    %215 = arith.mulf %206, %187 : vector<8x128xf32>
    %216 = arith.mulf %200, %208 : vector<8x128xf32>
    %217 = arith.addf %215, %216 : vector<8x128xf32>
    %218 = math.tanh %217 : vector<8x128xf32>
    %219 = arith.mulf %214, %218 : vector<8x128xf32>
    %c56 = arith.constant 56 : index
    %c0_59 = arith.constant 0 : index
    %220 = vector.load %arg34[%c56, %c0_59] : memref<72x512xf32, #tpu.memory_space<vmem>>, vector<8x512xf32>
    %221 = arith.truncf %219 : vector<8x128xf32> to vector<8x128xbf16>
    %c0_60 = arith.constant 0 : index
    %c0_61 = arith.constant 0 : index
    %222 = vector.load %arg4[%c0_60, %c0_61] : memref<128x512xbf16, #tpu.memory_space<vmem>>, vector<128x512xbf16>
    %cst_62 = arith.constant dense<0.000000e+00> : vector<8x512xf32>
    %223 = tpu.matmul %221, %222, %cst_62 {dimension_numbers = #tpu.dot_dimension_numbers<[1], [0], [0], [1], [0, 0, 1, 1], [], []>} : vector<8x128xbf16>, vector<128x512xbf16>, vector<8x512xf32> -> vector<8x512xf32>
    %224 = arith.addf %220, %223 : vector<8x512xf32>
    %225 = vector.extract_strided_slice %224 {offsets = [0, 0], sizes = [8, 128], strides = [1, 1]} : vector<8x512xf32> to vector<8x128xf32>
    %226 = arith.negf %225 : vector<8x128xf32>
    %227 = math.exp %226 : vector<8x128xf32>
    %cst_63 = arith.constant 1.000000e+00 : f32
    %228 = vector.broadcast %cst_63 : f32 to vector<8x128xf32>
    %229 = arith.addf %228, %227 : vector<8x128xf32>
    %230 = arith.divf %228, %229 : vector<8x128xf32>
    %231 = vector.extract_strided_slice %224 {offsets = [0, 128], sizes = [8, 128], strides = [1, 1]} : vector<8x512xf32> to vector<8x128xf32>
    %232 = arith.negf %231 : vector<8x128xf32>
    %233 = math.exp %232 : vector<8x128xf32>
    %cst_64 = arith.constant 1.000000e+00 : f32
    %234 = vector.broadcast %cst_64 : f32 to vector<8x128xf32>
    %235 = arith.addf %234, %233 : vector<8x128xf32>
    %236 = arith.divf %234, %235 : vector<8x128xf32>
    %237 = vector.extract_strided_slice %224 {offsets = [0, 256], sizes = [8, 128], strides = [1, 1]} : vector<8x512xf32> to vector<8x128xf32>
    %238 = math.tanh %237 : vector<8x128xf32>
    %239 = vector.extract_strided_slice %224 {offsets = [0, 384], sizes = [8, 128], strides = [1, 1]} : vector<8x512xf32> to vector<8x128xf32>
    %240 = arith.negf %239 : vector<8x128xf32>
    %241 = math.exp %240 : vector<8x128xf32>
    %cst_65 = arith.constant 1.000000e+00 : f32
    %242 = vector.broadcast %cst_65 : f32 to vector<8x128xf32>
    %243 = arith.addf %242, %241 : vector<8x128xf32>
    %244 = arith.divf %242, %243 : vector<8x128xf32>
    %245 = arith.mulf %236, %217 : vector<8x128xf32>
    %246 = arith.mulf %230, %238 : vector<8x128xf32>
    %247 = arith.addf %245, %246 : vector<8x128xf32>
    %248 = math.tanh %247 : vector<8x128xf32>
    %249 = arith.mulf %244, %248 : vector<8x128xf32>
    %c64 = arith.constant 64 : index
    %c0_66 = arith.constant 0 : index
    %250 = vector.load %arg34[%c64, %c0_66] : memref<72x512xf32, #tpu.memory_space<vmem>>, vector<8x512xf32>
    %251 = arith.truncf %249 : vector<8x128xf32> to vector<8x128xbf16>
    %c0_67 = arith.constant 0 : index
    %c0_68 = arith.constant 0 : index
    %252 = vector.load %arg4[%c0_67, %c0_68] : memref<128x512xbf16, #tpu.memory_space<vmem>>, vector<128x512xbf16>
    %cst_69 = arith.constant dense<0.000000e+00> : vector<8x512xf32>
    %253 = tpu.matmul %251, %252, %cst_69 {dimension_numbers = #tpu.dot_dimension_numbers<[1], [0], [0], [1], [0, 0, 1, 1], [], []>} : vector<8x128xbf16>, vector<128x512xbf16>, vector<8x512xf32> -> vector<8x512xf32>
    %254 = arith.addf %250, %253 : vector<8x512xf32>
    %255 = vector.extract_strided_slice %254 {offsets = [0, 0], sizes = [8, 128], strides = [1, 1]} : vector<8x512xf32> to vector<8x128xf32>
    %256 = arith.negf %255 : vector<8x128xf32>
    %257 = math.exp %256 : vector<8x128xf32>
    %cst_70 = arith.constant 1.000000e+00 : f32
    %258 = vector.broadcast %cst_70 : f32 to vector<8x128xf32>
    %259 = arith.addf %258, %257 : vector<8x128xf32>
    %260 = arith.divf %258, %259 : vector<8x128xf32>
    %261 = vector.extract_strided_slice %254 {offsets = [0, 128], sizes = [8, 128], strides = [1, 1]} : vector<8x512xf32> to vector<8x128xf32>
    %262 = arith.negf %261 : vector<8x128xf32>
    %263 = math.exp %262 : vector<8x128xf32>
    %cst_71 = arith.constant 1.000000e+00 : f32
    %264 = vector.broadcast %cst_71 : f32 to vector<8x128xf32>
    %265 = arith.addf %264, %263 : vector<8x128xf32>
    %266 = arith.divf %264, %265 : vector<8x128xf32>
    %267 = vector.extract_strided_slice %254 {offsets = [0, 256], sizes = [8, 128], strides = [1, 1]} : vector<8x512xf32> to vector<8x128xf32>
    %268 = math.tanh %267 : vector<8x128xf32>
    %269 = vector.extract_strided_slice %254 {offsets = [0, 384], sizes = [8, 128], strides = [1, 1]} : vector<8x512xf32> to vector<8x128xf32>
    %270 = arith.negf %269 : vector<8x128xf32>
    %271 = math.exp %270 : vector<8x128xf32>
    %cst_72 = arith.constant 1.000000e+00 : f32
    %272 = vector.broadcast %cst_72 : f32 to vector<8x128xf32>
    %273 = arith.addf %272, %271 : vector<8x128xf32>
    %274 = arith.divf %272, %273 : vector<8x128xf32>
    %275 = arith.mulf %266, %247 : vector<8x128xf32>
    %276 = arith.mulf %260, %268 : vector<8x128xf32>
    %277 = arith.addf %275, %276 : vector<8x128xf32>
    %278 = math.tanh %277 : vector<8x128xf32>
    %279 = arith.mulf %274, %278 : vector<8x128xf32>
    %280 = arith.truncf %279 : vector<8x128xf32> to vector<8x128xbf16>
    %c0_73 = arith.constant 0 : index
    %c0_74 = arith.constant 0 : index
    %281 = vector.load %arg6[%c0_73, %c0_74] : memref<128x20xbf16, #tpu.memory_space<vmem>>, vector<128x20xbf16>
    %cst_75 = arith.constant dense<0.000000e+00> : vector<8x20xf32>
    %282 = tpu.matmul %280, %281, %cst_75 {dimension_numbers = #tpu.dot_dimension_numbers<[1], [0], [0], [1], [0, 0, 1, 1], [], []>} : vector<8x128xbf16>, vector<128x20xbf16>, vector<8x20xf32> -> vector<8x20xf32>
    %c0_76 = arith.constant 0 : index
    %c0_77 = arith.constant 0 : index
    %283 = vector.load %arg7[%c0_76, %c0_77] : memref<1x20xf32, #tpu.memory_space<vmem>>, vector<1x20xf32>
    %284 = vector.broadcast %283 : vector<1x20xf32> to vector<8x20xf32>
    %285 = arith.addf %282, %284 : vector<8x20xf32>
    %c0_78 = arith.constant 0 : index
    %c0_79 = arith.constant 0 : index
    %286 = vector.load %arg30[%c0_78, %c0_79] : memref<8x20xf32, #tpu.memory_space<vmem>>, vector<8x20xf32>
    tpu.vector_store %arg30[%c0_78, %c0_79], %285 {strides = array<i32>} : memref<8x20xf32, #tpu.memory_space<vmem>>, vector<8x20xf32>,
    %287 = vector.extract_strided_slice %285 {offsets = [0, 0], sizes = [8, 10], strides = [1, 1]} : vector<8x20xf32> to vector<8x10xf32>
    %288 = vector.extract_strided_slice %285 {offsets = [0, 10], sizes = [8, 10], strides = [1, 1]} : vector<8x20xf32> to vector<8x10xf32>
    %289 = math.exp %288 : vector<8x10xf32>
    %c0_80 = arith.constant 0 : index
    %c0_81 = arith.constant 0 : index
    %290 = vector.load %arg2[%c0_80, %c0_81] : memref<8x10xf32, #tpu.memory_space<vmem>>, vector<8x10xf32>
    %291 = arith.mulf %289, %290 : vector<8x10xf32>
    %292 = arith.addf %287, %291 : vector<8x10xf32>
    %c0_82 = arith.constant 0 : index
    %c0_83 = arith.constant 0 : index
    %293 = vector.load %arg32[%c0_82, %c0_83] : memref<8x10xf32, #tpu.memory_space<vmem>>, vector<8x10xf32>
    tpu.vector_store %arg32[%c0_82, %c0_83], %292 {strides = array<i32>} : memref<8x10xf32, #tpu.memory_space<vmem>>, vector<8x10xf32>,
    %c0_84 = arith.constant 0 : index
    %c0_85 = arith.constant 0 : index
    %294 = vector.load %arg1[%c0_84, %c0_85] : memref<8x15xf32, #tpu.memory_space<vmem>>, vector<8x15xf32>
    %295 = arith.truncf %294 : vector<8x15xf32> to vector<8x15xbf16>
    %c0_86 = arith.constant 0 : index
    %c0_87 = arith.constant 0 : index
    %296 = vector.load %arg8[%c0_86, %c0_87] : memref<15x128xbf16, #tpu.memory_space<vmem>>, vector<15x128xbf16>
    %cst_88 = arith.constant dense<0.000000e+00> : vector<8x128xf32>
    %297 = tpu.matmul %295, %296, %cst_88 {dimension_numbers = #tpu.dot_dimension_numbers<[1], [0], [0], [1], [0, 0, 1, 1], [], []>} : vector<8x15xbf16>, vector<15x128xbf16>, vector<8x128xf32> -> vector<8x128xf32>
    %c0_89 = arith.constant 0 : index
    %c0_90 = arith.constant 0 : index
    %298 = vector.load %arg9[%c0_89, %c0_90] : memref<1x128xf32, #tpu.memory_space<vmem>>, vector<1x128xf32>
    %299 = vector.broadcast %298 : vector<1x128xf32> to vector<8x128xf32>
    %300 = arith.addf %297, %299 : vector<8x128xf32>
    %cst_91 = arith.constant 0.000000e+00 : f32
    %301 = vector.broadcast %cst_91 : f32 to vector<8x128xf32>
    %302 = arith.maximumf %300, %301 : vector<8x128xf32>
    %303 = arith.truncf %302 : vector<8x128xf32> to vector<8x128xbf16>
    %c0_92 = arith.constant 0 : index
    %c0_93 = arith.constant 0 : index
    %304 = vector.load %arg10[%c0_92, %c0_93] : memref<128x128xbf16, #tpu.memory_space<vmem>>, vector<128x128xbf16>
    %cst_94 = arith.constant dense<0.000000e+00> : vector<8x128xf32>
    %305 = tpu.matmul %303, %304, %cst_94 {dimension_numbers = #tpu.dot_dimension_numbers<[1], [0], [0], [1], [0, 0, 1, 1], [], []>} : vector<8x128xbf16>, vector<128x128xbf16>, vector<8x128xf32> -> vector<8x128xf32>
    %c0_95 = arith.constant 0 : index
    %c0_96 = arith.constant 0 : index
    %306 = vector.load %arg11[%c0_95, %c0_96] : memref<1x128xf32, #tpu.memory_space<vmem>>, vector<1x128xf32>
    %307 = vector.broadcast %306 : vector<1x128xf32> to vector<8x128xf32>
    %308 = arith.addf %305, %307 : vector<8x128xf32>
    %cst_97 = arith.constant 0.000000e+00 : f32
    %309 = vector.broadcast %cst_97 : f32 to vector<8x128xf32>
    %310 = arith.maximumf %308, %309 : vector<8x128xf32>
    %311 = arith.truncf %310 : vector<8x128xf32> to vector<8x128xbf16>
    %c0_98 = arith.constant 0 : index
    %c0_99 = arith.constant 0 : index
    %312 = vector.load %arg12[%c0_98, %c0_99] : memref<128x128xbf16, #tpu.memory_space<vmem>>, vector<128x128xbf16>
    %cst_100 = arith.constant dense<0.000000e+00> : vector<8x128xf32>
    %313 = tpu.matmul %311, %312, %cst_100 {dimension_numbers = #tpu.dot_dimension_numbers<[1], [0], [0], [1], [0, 0, 1, 1], [], []>} : vector<8x128xbf16>, vector<128x128xbf16>, vector<8x128xf32> -> vector<8x128xf32>
    %c0_101 = arith.constant 0 : index
    %c0_102 = arith.constant 0 : index
    %314 = vector.load %arg13[%c0_101, %c0_102] : memref<1x128xf32, #tpu.memory_space<vmem>>, vector<1x128xf32>
    %315 = vector.broadcast %314 : vector<1x128xf32> to vector<8x128xf32>
    %316 = arith.addf %313, %315 : vector<8x128xf32>
    %cst_103 = arith.constant 0.000000e+00 : f32
    %317 = vector.broadcast %cst_103 : f32 to vector<8x128xf32>
    %318 = arith.maximumf %316, %317 : vector<8x128xf32>
    %319 = arith.truncf %318 : vector<8x128xf32> to vector<8x128xbf16>
    %c0_104 = arith.constant 0 : index
    %c0_105 = arith.constant 0 : index
    %320 = vector.load %arg14[%c0_104, %c0_105] : memref<128x128xbf16, #tpu.memory_space<vmem>>, vector<128x128xbf16>
    %cst_106 = arith.constant dense<0.000000e+00> : vector<8x128xf32>
    %321 = tpu.matmul %319, %320, %cst_106 {dimension_numbers = #tpu.dot_dimension_numbers<[1], [0], [0], [1], [0, 0, 1, 1], [], []>} : vector<8x128xbf16>, vector<128x128xbf16>, vector<8x128xf32> -> vector<8x128xf32>
    %c0_107 = arith.constant 0 : index
    %c0_108 = arith.constant 0 : index
    %322 = vector.load %arg15[%c0_107, %c0_108] : memref<1x128xf32, #tpu.memory_space<vmem>>, vector<1x128xf32>
    %323 = vector.broadcast %322 : vector<1x128xf32> to vector<8x128xf32>
    %324 = arith.addf %321, %323 : vector<8x128xf32>
    %cst_109 = arith.constant 0.000000e+00 : f32
    %325 = vector.broadcast %cst_109 : f32 to vector<8x128xf32>
    %326 = arith.maximumf %324, %325 : vector<8x128xf32>
    %327 = arith.truncf %326 : vector<8x128xf32> to vector<8x128xbf16>
    %c0_110 = arith.constant 0 : index
    %c0_111 = arith.constant 0 : index
    %328 = vector.load %arg16[%c0_110, %c0_111] : memref<128x128xbf16, #tpu.memory_space<vmem>>, vector<128x128xbf16>
    %cst_112 = arith.constant dense<0.000000e+00> : vector<8x128xf32>
    %329 = tpu.matmul %327, %328, %cst_112 {dimension_numbers = #tpu.dot_dimension_numbers<[1], [0], [0], [1], [0, 0, 1, 1], [], []>} : vector<8x128xbf16>, vector<128x128xbf16>, vector<8x128xf32> -> vector<8x128xf32>
    %c0_113 = arith.constant 0 : index
    %c0_114 = arith.constant 0 : index
    %330 = vector.load %arg17[%c0_113, %c0_114] : memref<1x128xf32, #tpu.memory_space<vmem>>, vector<1x128xf32>
    %331 = vector.broadcast %330 : vector<1x128xf32> to vector<8x128xf32>
    %332 = arith.addf %329, %331 : vector<8x128xf32>
    %cst_115 = arith.constant 0.000000e+00 : f32
    %333 = vector.broadcast %cst_115 : f32 to vector<8x128xf32>
    %334 = arith.maximumf %332, %333 : vector<8x128xf32>
    %335 = arith.truncf %334 : vector<8x128xf32> to vector<8x128xbf16>
    %c0_116 = arith.constant 0 : index
    %c0_117 = arith.constant 0 : index
    %336 = vector.load %arg18[%c0_116, %c0_117] : memref<128x128xbf16, #tpu.memory_space<vmem>>, vector<128x128xbf16>
    %cst_118 = arith.constant dense<0.000000e+00> : vector<8x128xf32>
    %337 = tpu.matmul %335, %336, %cst_118 {dimension_numbers = #tpu.dot_dimension_numbers<[1], [0], [0], [1], [0, 0, 1, 1], [], []>} : vector<8x128xbf16>, vector<128x128xbf16>, vector<8x128xf32> -> vector<8x128xf32>
    %c0_119 = arith.constant 0 : index
    %c0_120 = arith.constant 0 : index
    %338 = vector.load %arg19[%c0_119, %c0_120] : memref<1x128xf32, #tpu.memory_space<vmem>>, vector<1x128xf32>
    %339 = vector.broadcast %338 : vector<1x128xf32> to vector<8x128xf32>
    %340 = arith.addf %337, %339 : vector<8x128xf32>
    %cst_121 = arith.constant 0.000000e+00 : f32
    %341 = vector.broadcast %cst_121 : f32 to vector<8x128xf32>
    %342 = arith.maximumf %340, %341 : vector<8x128xf32>
    %343 = arith.truncf %342 : vector<8x128xf32> to vector<8x128xbf16>
    %c0_122 = arith.constant 0 : index
    %c0_123 = arith.constant 0 : index
    %344 = vector.load %arg20[%c0_122, %c0_123] : memref<128x128xbf16, #tpu.memory_space<vmem>>, vector<128x128xbf16>
    %cst_124 = arith.constant dense<0.000000e+00> : vector<8x128xf32>
    %345 = tpu.matmul %343, %344, %cst_124 {dimension_numbers = #tpu.dot_dimension_numbers<[1], [0], [0], [1], [0, 0, 1, 1], [], []>} : vector<8x128xbf16>, vector<128x128xbf16>, vector<8x128xf32> -> vector<8x128xf32>
    %c0_125 = arith.constant 0 : index
    %c0_126 = arith.constant 0 : index
    %346 = vector.load %arg21[%c0_125, %c0_126] : memref<1x128xf32, #tpu.memory_space<vmem>>, vector<1x128xf32>
    %347 = vector.broadcast %346 : vector<1x128xf32> to vector<8x128xf32>
    %348 = arith.addf %345, %347 : vector<8x128xf32>
    %cst_127 = arith.constant 0.000000e+00 : f32
    %349 = vector.broadcast %cst_127 : f32 to vector<8x128xf32>
    %350 = arith.maximumf %348, %349 : vector<8x128xf32>
    %351 = arith.truncf %350 : vector<8x128xf32> to vector<8x128xbf16>
    %c0_128 = arith.constant 0 : index
    %c0_129 = arith.constant 0 : index
    %352 = vector.load %arg22[%c0_128, %c0_129] : memref<128x20xbf16, #tpu.memory_space<vmem>>, vector<128x20xbf16>
    %cst_130 = arith.constant dense<0.000000e+00> : vector<8x20xf32>
    %353 = tpu.matmul %351, %352, %cst_130 {dimension_numbers = #tpu.dot_dimension_numbers<[1], [0], [0], [1], [0, 0, 1, 1], [], []>} : vector<8x128xbf16>, vector<128x20xbf16>, vector<8x20xf32> -> vector<8x20xf32>
    %c0_131 = arith.constant 0 : index
    %c0_132 = arith.constant 0 : index
    %354 = vector.load %arg23[%c0_131, %c0_132] : memref<1x20xf32, #tpu.memory_space<vmem>>, vector<1x20xf32>
    %355 = vector.broadcast %354 : vector<1x20xf32> to vector<8x20xf32>
    %356 = arith.addf %353, %355 : vector<8x20xf32>
    %c0_133 = arith.constant 0 : index
    %c0_134 = arith.constant 0 : index
    %357 = vector.load %arg31[%c0_133, %c0_134] : memref<8x20xf32, #tpu.memory_space<vmem>>, vector<8x20xf32>
    tpu.vector_store %arg31[%c0_133, %c0_134], %356 {strides = array<i32>} : memref<8x20xf32, #tpu.memory_space<vmem>>, vector<8x20xf32>,
    %c0_135 = arith.constant 0 : index
    %c0_136 = arith.constant 0 : index
    %358 = vector.load %arg1[%c0_135, %c0_136] : memref<8x15xf32, #tpu.memory_space<vmem>>, vector<8x15xf32>
    %359 = arith.truncf %358 : vector<8x15xf32> to vector<8x15xbf16>
    %c0_137 = arith.constant 0 : index
    %c0_138 = arith.constant 0 : index
    %360 = vector.load %arg24[%c0_137, %c0_138] : memref<15x512xbf16, #tpu.memory_space<vmem>>, vector<15x512xbf16>
    %cst_139 = arith.constant dense<0.000000e+00> : vector<8x512xf32>
    %361 = tpu.matmul %359, %360, %cst_139 {dimension_numbers = #tpu.dot_dimension_numbers<[1], [0], [0], [1], [0, 0, 1, 1], [], []>} : vector<8x15xbf16>, vector<15x512xbf16>, vector<8x512xf32> -> vector<8x512xf32>
    %362 = arith.truncf %292 : vector<8x10xf32> to vector<8x10xbf16>
    %c0_140 = arith.constant 0 : index
    %c0_141 = arith.constant 0 : index
    %363 = vector.load %arg25[%c0_140, %c0_141] : memref<10x512xbf16, #tpu.memory_space<vmem>>, vector<10x512xbf16>
    %cst_142 = arith.constant dense<0.000000e+00> : vector<8x512xf32>
    %364 = tpu.matmul %362, %363, %cst_142 {dimension_numbers = #tpu.dot_dimension_numbers<[1], [0], [0], [1], [0, 0, 1, 1], [], []>} : vector<8x10xbf16>, vector<10x512xbf16>, vector<8x512xf32> -> vector<8x512xf32>
    %365 = arith.addf %361, %364 : vector<8x512xf32>
    %c0_143 = arith.constant 0 : index
    %c0_144 = arith.constant 0 : index
    %366 = vector.load %arg27[%c0_143, %c0_144] : memref<1x512xf32, #tpu.memory_space<vmem>>, vector<1x512xf32>
    %367 = vector.broadcast %366 : vector<1x512xf32> to vector<8x512xf32>
    %368 = arith.addf %365, %367 : vector<8x512xf32>
    %c0_145 = arith.constant 0 : index
    %c0_146 = arith.constant 0 : index
    %369 = vector.load %arg28[%c0_145, %c0_146] : memref<128x2xbf16, #tpu.memory_space<vmem>>, vector<128x2xbf16>
    %c0_147 = arith.constant 0 : index
    %c0_148 = arith.constant 0 : index
    %370 = vector.load %arg29[%c0_147, %c0_148] : memref<1x2xf32, #tpu.memory_space<vmem>>, vector<1x2xf32>
    %cst_149 = arith.constant 0.000000e+00 : f32
    %371 = vector.broadcast %cst_149 : f32 to vector<8x128xf32>
    %cst_150 = arith.constant 0.000000e+00 : f32
    %372 = vector.broadcast %cst_150 : f32 to vector<8x128xf32>
    %373 = arith.truncf %371 : vector<8x128xf32> to vector<8x128xbf16>
    %c0_151 = arith.constant 0 : index
    %c0_152 = arith.constant 0 : index
    %374 = vector.load %arg26[%c0_151, %c0_152] : memref<128x512xbf16, #tpu.memory_space<vmem>>, vector<128x512xbf16>
    %cst_153 = arith.constant dense<0.000000e+00> : vector<8x512xf32>
    %375 = tpu.matmul %373, %374, %cst_153 {dimension_numbers = #tpu.dot_dimension_numbers<[1], [0], [0], [1], [0, 0, 1, 1], [], []>} : vector<8x128xbf16>, vector<128x512xbf16>, vector<8x512xf32> -> vector<8x512xf32>
    %376 = arith.addf %368, %375 : vector<8x512xf32>
    %377 = vector.extract_strided_slice %376 {offsets = [0, 0], sizes = [8, 128], strides = [1, 1]} : vector<8x512xf32> to vector<8x128xf32>
    %378 = arith.negf %377 : vector<8x128xf32>
    %379 = math.exp %378 : vector<8x128xf32>
    %cst_154 = arith.constant 1.000000e+00 : f32
    %380 = vector.broadcast %cst_154 : f32 to vector<8x128xf32>
    %381 = arith.addf %380, %379 : vector<8x128xf32>
    %382 = arith.divf %380, %381 : vector<8x128xf32>
    %383 = vector.extract_strided_slice %376 {offsets = [0, 128], sizes = [8, 128], strides = [1, 1]} : vector<8x512xf32> to vector<8x128xf32>
    %384 = arith.negf %383 : vector<8x128xf32>
    %385 = math.exp %384 : vector<8x128xf32>
    %cst_155 = arith.constant 1.000000e+00 : f32
    %386 = vector.broadcast %cst_155 : f32 to vector<8x128xf32>
    %387 = arith.addf %386, %385 : vector<8x128xf32>
    %388 = arith.divf %386, %387 : vector<8x128xf32>
    %389 = vector.extract_strided_slice %376 {offsets = [0, 256], sizes = [8, 128], strides = [1, 1]} : vector<8x512xf32> to vector<8x128xf32>
    %390 = math.tanh %389 : vector<8x128xf32>
    %391 = vector.extract_strided_slice %376 {offsets = [0, 384], sizes = [8, 128], strides = [1, 1]} : vector<8x512xf32> to vector<8x128xf32>
    %392 = arith.negf %391 : vector<8x128xf32>
    %393 = math.exp %392 : vector<8x128xf32>
    %cst_156 = arith.constant 1.000000e+00 : f32
    %394 = vector.broadcast %cst_156 : f32 to vector<8x128xf32>
    %395 = arith.addf %394, %393 : vector<8x128xf32>
    %396 = arith.divf %394, %395 : vector<8x128xf32>
    %397 = arith.mulf %388, %372 : vector<8x128xf32>
    %398 = arith.mulf %382, %390 : vector<8x128xf32>
    %399 = arith.addf %397, %398 : vector<8x128xf32>
    %400 = math.tanh %399 : vector<8x128xf32>
    %401 = arith.mulf %396, %400 : vector<8x128xf32>
    %402 = arith.truncf %401 : vector<8x128xf32> to vector<8x128xbf16>
    %cst_157 = arith.constant dense<0.000000e+00> : vector<8x2xf32>
    %403 = tpu.matmul %402, %369, %cst_157 {dimension_numbers = #tpu.dot_dimension_numbers<[1], [0], [0], [1], [0, 0, 1, 1], [], []>} : vector<8x128xbf16>, vector<128x2xbf16>, vector<8x2xf32> -> vector<8x2xf32>
    %404 = vector.broadcast %370 : vector<1x2xf32> to vector<8x2xf32>
    %405 = arith.addf %403, %404 : vector<8x2xf32>
    %c0_158 = arith.constant 0 : index
    %c0_159 = arith.constant 0 : index
    %c0_160 = arith.constant 0 : index
    %406 = vector.load %arg33[%c0_158, %c0_159, %c0_160] : memref<9x8x2xf32, #tpu.memory_space<vmem>>, vector<1x8x2xf32>
    %407 = vector.shape_cast %406 : vector<1x8x2xf32> to vector<8x2xf32>
    %408 = vector.shape_cast %405 : vector<8x2xf32> to vector<1x8x2xf32>
    tpu.vector_store %arg33[%c0_158, %c0_159, %c0_160], %408 {strides = array<i32>} : memref<9x8x2xf32, #tpu.memory_space<vmem>>, vector<1x8x2xf32>,
    %409 = arith.truncf %401 : vector<8x128xf32> to vector<8x128xbf16>
    %c0_161 = arith.constant 0 : index
    %c0_162 = arith.constant 0 : index
    %410 = vector.load %arg26[%c0_161, %c0_162] : memref<128x512xbf16, #tpu.memory_space<vmem>>, vector<128x512xbf16>
    %cst_163 = arith.constant dense<0.000000e+00> : vector<8x512xf32>
    %411 = tpu.matmul %409, %410, %cst_163 {dimension_numbers = #tpu.dot_dimension_numbers<[1], [0], [0], [1], [0, 0, 1, 1], [], []>} : vector<8x128xbf16>, vector<128x512xbf16>, vector<8x512xf32> -> vector<8x512xf32>
    %412 = arith.addf %368, %411 : vector<8x512xf32>
    %413 = vector.extract_strided_slice %412 {offsets = [0, 0], sizes = [8, 128], strides = [1, 1]} : vector<8x512xf32> to vector<8x128xf32>
    %414 = arith.negf %413 : vector<8x128xf32>
    %415 = math.exp %414 : vector<8x128xf32>
    %cst_164 = arith.constant 1.000000e+00 : f32
    %416 = vector.broadcast %cst_164 : f32 to vector<8x128xf32>
    %417 = arith.addf %416, %415 : vector<8x128xf32>
    %418 = arith.divf %416, %417 : vector<8x128xf32>
    %419 = vector.extract_strided_slice %412 {offsets = [0, 128], sizes = [8, 128], strides = [1, 1]} : vector<8x512xf32> to vector<8x128xf32>
    %420 = arith.negf %419 : vector<8x128xf32>
    %421 = math.exp %420 : vector<8x128xf32>
    %cst_165 = arith.constant 1.000000e+00 : f32
    %422 = vector.broadcast %cst_165 : f32 to vector<8x128xf32>
    %423 = arith.addf %422, %421 : vector<8x128xf32>
    %424 = arith.divf %422, %423 : vector<8x128xf32>
    %425 = vector.extract_strided_slice %412 {offsets = [0, 256], sizes = [8, 128], strides = [1, 1]} : vector<8x512xf32> to vector<8x128xf32>
    %426 = math.tanh %425 : vector<8x128xf32>
    %427 = vector.extract_strided_slice %412 {offsets = [0, 384], sizes = [8, 128], strides = [1, 1]} : vector<8x512xf32> to vector<8x128xf32>
    %428 = arith.negf %427 : vector<8x128xf32>
    %429 = math.exp %428 : vector<8x128xf32>
    %cst_166 = arith.constant 1.000000e+00 : f32
    %430 = vector.broadcast %cst_166 : f32 to vector<8x128xf32>
    %431 = arith.addf %430, %429 : vector<8x128xf32>
    %432 = arith.divf %430, %431 : vector<8x128xf32>
    %433 = arith.mulf %424, %399 : vector<8x128xf32>
    %434 = arith.mulf %418, %426 : vector<8x128xf32>
    %435 = arith.addf %433, %434 : vector<8x128xf32>
    %436 = math.tanh %435 : vector<8x128xf32>
    %437 = arith.mulf %432, %436 : vector<8x128xf32>
    %438 = arith.truncf %437 : vector<8x128xf32> to vector<8x128xbf16>
    %cst_167 = arith.constant dense<0.000000e+00> : vector<8x2xf32>
    %439 = tpu.matmul %438, %369, %cst_167 {dimension_numbers = #tpu.dot_dimension_numbers<[1], [0], [0], [1], [0, 0, 1, 1], [], []>} : vector<8x128xbf16>, vector<128x2xbf16>, vector<8x2xf32> -> vector<8x2xf32>
    %440 = vector.broadcast %370 : vector<1x2xf32> to vector<8x2xf32>
    %441 = arith.addf %439, %440 : vector<8x2xf32>
    %c1 = arith.constant 1 : index
    %c0_168 = arith.constant 0 : index
    %c0_169 = arith.constant 0 : index
    %442 = vector.load %arg33[%c1, %c0_168, %c0_169] : memref<9x8x2xf32, #tpu.memory_space<vmem>>, vector<1x8x2xf32>
    %443 = vector.shape_cast %442 : vector<1x8x2xf32> to vector<8x2xf32>
    %444 = vector.shape_cast %441 : vector<8x2xf32> to vector<1x8x2xf32>
    tpu.vector_store %arg33[%c1, %c0_168, %c0_169], %444 {strides = array<i32>} : memref<9x8x2xf32, #tpu.memory_space<vmem>>, vector<1x8x2xf32>,
    %445 = arith.truncf %437 : vector<8x128xf32> to vector<8x128xbf16>
    %c0_170 = arith.constant 0 : index
    %c0_171 = arith.constant 0 : index
    %446 = vector.load %arg26[%c0_170, %c0_171] : memref<128x512xbf16, #tpu.memory_space<vmem>>, vector<128x512xbf16>
    %cst_172 = arith.constant dense<0.000000e+00> : vector<8x512xf32>
    %447 = tpu.matmul %445, %446, %cst_172 {dimension_numbers = #tpu.dot_dimension_numbers<[1], [0], [0], [1], [0, 0, 1, 1], [], []>} : vector<8x128xbf16>, vector<128x512xbf16>, vector<8x512xf32> -> vector<8x512xf32>
    %448 = arith.addf %368, %447 : vector<8x512xf32>
    %449 = vector.extract_strided_slice %448 {offsets = [0, 0], sizes = [8, 128], strides = [1, 1]} : vector<8x512xf32> to vector<8x128xf32>
    %450 = arith.negf %449 : vector<8x128xf32>
    %451 = math.exp %450 : vector<8x128xf32>
    %cst_173 = arith.constant 1.000000e+00 : f32
    %452 = vector.broadcast %cst_173 : f32 to vector<8x128xf32>
    %453 = arith.addf %452, %451 : vector<8x128xf32>
    %454 = arith.divf %452, %453 : vector<8x128xf32>
    %455 = vector.extract_strided_slice %448 {offsets = [0, 128], sizes = [8, 128], strides = [1, 1]} : vector<8x512xf32> to vector<8x128xf32>
    %456 = arith.negf %455 : vector<8x128xf32>
    %457 = math.exp %456 : vector<8x128xf32>
    %cst_174 = arith.constant 1.000000e+00 : f32
    %458 = vector.broadcast %cst_174 : f32 to vector<8x128xf32>
    %459 = arith.addf %458, %457 : vector<8x128xf32>
    %460 = arith.divf %458, %459 : vector<8x128xf32>
    %461 = vector.extract_strided_slice %448 {offsets = [0, 256], sizes = [8, 128], strides = [1, 1]} : vector<8x512xf32> to vector<8x128xf32>
    %462 = math.tanh %461 : vector<8x128xf32>
    %463 = vector.extract_strided_slice %448 {offsets = [0, 384], sizes = [8, 128], strides = [1, 1]} : vector<8x512xf32> to vector<8x128xf32>
    %464 = arith.negf %463 : vector<8x128xf32>
    %465 = math.exp %464 : vector<8x128xf32>
    %cst_175 = arith.constant 1.000000e+00 : f32
    %466 = vector.broadcast %cst_175 : f32 to vector<8x128xf32>
    %467 = arith.addf %466, %465 : vector<8x128xf32>
    %468 = arith.divf %466, %467 : vector<8x128xf32>
    %469 = arith.mulf %460, %435 : vector<8x128xf32>
    %470 = arith.mulf %454, %462 : vector<8x128xf32>
    %471 = arith.addf %469, %470 : vector<8x128xf32>
    %472 = math.tanh %471 : vector<8x128xf32>
    %473 = arith.mulf %468, %472 : vector<8x128xf32>
    %474 = arith.truncf %473 : vector<8x128xf32> to vector<8x128xbf16>
    %cst_176 = arith.constant dense<0.000000e+00> : vector<8x2xf32>
    %475 = tpu.matmul %474, %369, %cst_176 {dimension_numbers = #tpu.dot_dimension_numbers<[1], [0], [0], [1], [0, 0, 1, 1], [], []>} : vector<8x128xbf16>, vector<128x2xbf16>, vector<8x2xf32> -> vector<8x2xf32>
    %476 = vector.broadcast %370 : vector<1x2xf32> to vector<8x2xf32>
    %477 = arith.addf %475, %476 : vector<8x2xf32>
    %c2 = arith.constant 2 : index
    %c0_177 = arith.constant 0 : index
    %c0_178 = arith.constant 0 : index
    %478 = vector.load %arg33[%c2, %c0_177, %c0_178] : memref<9x8x2xf32, #tpu.memory_space<vmem>>, vector<1x8x2xf32>
    %479 = vector.shape_cast %478 : vector<1x8x2xf32> to vector<8x2xf32>
    %480 = vector.shape_cast %477 : vector<8x2xf32> to vector<1x8x2xf32>
    tpu.vector_store %arg33[%c2, %c0_177, %c0_178], %480 {strides = array<i32>} : memref<9x8x2xf32, #tpu.memory_space<vmem>>, vector<1x8x2xf32>,
    %481 = arith.truncf %473 : vector<8x128xf32> to vector<8x128xbf16>
    %c0_179 = arith.constant 0 : index
    %c0_180 = arith.constant 0 : index
    %482 = vector.load %arg26[%c0_179, %c0_180] : memref<128x512xbf16, #tpu.memory_space<vmem>>, vector<128x512xbf16>
    %cst_181 = arith.constant dense<0.000000e+00> : vector<8x512xf32>
    %483 = tpu.matmul %481, %482, %cst_181 {dimension_numbers = #tpu.dot_dimension_numbers<[1], [0], [0], [1], [0, 0, 1, 1], [], []>} : vector<8x128xbf16>, vector<128x512xbf16>, vector<8x512xf32> -> vector<8x512xf32>
    %484 = arith.addf %368, %483 : vector<8x512xf32>
    %485 = vector.extract_strided_slice %484 {offsets = [0, 0], sizes = [8, 128], strides = [1, 1]} : vector<8x512xf32> to vector<8x128xf32>
    %486 = arith.negf %485 : vector<8x128xf32>
    %487 = math.exp %486 : vector<8x128xf32>
    %cst_182 = arith.constant 1.000000e+00 : f32
    %488 = vector.broadcast %cst_182 : f32 to vector<8x128xf32>
    %489 = arith.addf %488, %487 : vector<8x128xf32>
    %490 = arith.divf %488, %489 : vector<8x128xf32>
    %491 = vector.extract_strided_slice %484 {offsets = [0, 128], sizes = [8, 128], strides = [1, 1]} : vector<8x512xf32> to vector<8x128xf32>
    %492 = arith.negf %491 : vector<8x128xf32>
    %493 = math.exp %492 : vector<8x128xf32>
    %cst_183 = arith.constant 1.000000e+00 : f32
    %494 = vector.broadcast %cst_183 : f32 to vector<8x128xf32>
    %495 = arith.addf %494, %493 : vector<8x128xf32>
    %496 = arith.divf %494, %495 : vector<8x128xf32>
    %497 = vector.extract_strided_slice %484 {offsets = [0, 256], sizes = [8, 128], strides = [1, 1]} : vector<8x512xf32> to vector<8x128xf32>
    %498 = math.tanh %497 : vector<8x128xf32>
    %499 = vector.extract_strided_slice %484 {offsets = [0, 384], sizes = [8, 128], strides = [1, 1]} : vector<8x512xf32> to vector<8x128xf32>
    %500 = arith.negf %499 : vector<8x128xf32>
    %501 = math.exp %500 : vector<8x128xf32>
    %cst_184 = arith.constant 1.000000e+00 : f32
    %502 = vector.broadcast %cst_184 : f32 to vector<8x128xf32>
    %503 = arith.addf %502, %501 : vector<8x128xf32>
    %504 = arith.divf %502, %503 : vector<8x128xf32>
    %505 = arith.mulf %496, %471 : vector<8x128xf32>
    %506 = arith.mulf %490, %498 : vector<8x128xf32>
    %507 = arith.addf %505, %506 : vector<8x128xf32>
    %508 = math.tanh %507 : vector<8x128xf32>
    %509 = arith.mulf %504, %508 : vector<8x128xf32>
    %510 = arith.truncf %509 : vector<8x128xf32> to vector<8x128xbf16>
    %cst_185 = arith.constant dense<0.000000e+00> : vector<8x2xf32>
    %511 = tpu.matmul %510, %369, %cst_185 {dimension_numbers = #tpu.dot_dimension_numbers<[1], [0], [0], [1], [0, 0, 1, 1], [], []>} : vector<8x128xbf16>, vector<128x2xbf16>, vector<8x2xf32> -> vector<8x2xf32>
    %512 = vector.broadcast %370 : vector<1x2xf32> to vector<8x2xf32>
    %513 = arith.addf %511, %512 : vector<8x2xf32>
    %c3 = arith.constant 3 : index
    %c0_186 = arith.constant 0 : index
    %c0_187 = arith.constant 0 : index
    %514 = vector.load %arg33[%c3, %c0_186, %c0_187] : memref<9x8x2xf32, #tpu.memory_space<vmem>>, vector<1x8x2xf32>
    %515 = vector.shape_cast %514 : vector<1x8x2xf32> to vector<8x2xf32>
    %516 = vector.shape_cast %513 : vector<8x2xf32> to vector<1x8x2xf32>
    tpu.vector_store %arg33[%c3, %c0_186, %c0_187], %516 {strides = array<i32>} : memref<9x8x2xf32, #tpu.memory_space<vmem>>, vector<1x8x2xf32>,
    %517 = arith.truncf %509 : vector<8x128xf32> to vector<8x128xbf16>
    %c0_188 = arith.constant 0 : index
    %c0_189 = arith.constant 0 : index
    %518 = vector.load %arg26[%c0_188, %c0_189] : memref<128x512xbf16, #tpu.memory_space<vmem>>, vector<128x512xbf16>
    %cst_190 = arith.constant dense<0.000000e+00> : vector<8x512xf32>
    %519 = tpu.matmul %517, %518, %cst_190 {dimension_numbers = #tpu.dot_dimension_numbers<[1], [0], [0], [1], [0, 0, 1, 1], [], []>} : vector<8x128xbf16>, vector<128x512xbf16>, vector<8x512xf32> -> vector<8x512xf32>
    %520 = arith.addf %368, %519 : vector<8x512xf32>
    %521 = vector.extract_strided_slice %520 {offsets = [0, 0], sizes = [8, 128], strides = [1, 1]} : vector<8x512xf32> to vector<8x128xf32>
    %522 = arith.negf %521 : vector<8x128xf32>
    %523 = math.exp %522 : vector<8x128xf32>
    %cst_191 = arith.constant 1.000000e+00 : f32
    %524 = vector.broadcast %cst_191 : f32 to vector<8x128xf32>
    %525 = arith.addf %524, %523 : vector<8x128xf32>
    %526 = arith.divf %524, %525 : vector<8x128xf32>
    %527 = vector.extract_strided_slice %520 {offsets = [0, 128], sizes = [8, 128], strides = [1, 1]} : vector<8x512xf32> to vector<8x128xf32>
    %528 = arith.negf %527 : vector<8x128xf32>
    %529 = math.exp %528 : vector<8x128xf32>
    %cst_192 = arith.constant 1.000000e+00 : f32
    %530 = vector.broadcast %cst_192 : f32 to vector<8x128xf32>
    %531 = arith.addf %530, %529 : vector<8x128xf32>
    %532 = arith.divf %530, %531 : vector<8x128xf32>
    %533 = vector.extract_strided_slice %520 {offsets = [0, 256], sizes = [8, 128], strides = [1, 1]} : vector<8x512xf32> to vector<8x128xf32>
    %534 = math.tanh %533 : vector<8x128xf32>
    %535 = vector.extract_strided_slice %520 {offsets = [0, 384], sizes = [8, 128], strides = [1, 1]} : vector<8x512xf32> to vector<8x128xf32>
    %536 = arith.negf %535 : vector<8x128xf32>
    %537 = math.exp %536 : vector<8x128xf32>
    %cst_193 = arith.constant 1.000000e+00 : f32
    %538 = vector.broadcast %cst_193 : f32 to vector<8x128xf32>
    %539 = arith.addf %538, %537 : vector<8x128xf32>
    %540 = arith.divf %538, %539 : vector<8x128xf32>
    %541 = arith.mulf %532, %507 : vector<8x128xf32>
    %542 = arith.mulf %526, %534 : vector<8x128xf32>
    %543 = arith.addf %541, %542 : vector<8x128xf32>
    %544 = math.tanh %543 : vector<8x128xf32>
    %545 = arith.mulf %540, %544 : vector<8x128xf32>
    %546 = arith.truncf %545 : vector<8x128xf32> to vector<8x128xbf16>
    %cst_194 = arith.constant dense<0.000000e+00> : vector<8x2xf32>
    %547 = tpu.matmul %546, %369, %cst_194 {dimension_numbers = #tpu.dot_dimension_numbers<[1], [0], [0], [1], [0, 0, 1, 1], [], []>} : vector<8x128xbf16>, vector<128x2xbf16>, vector<8x2xf32> -> vector<8x2xf32>
    %548 = vector.broadcast %370 : vector<1x2xf32> to vector<8x2xf32>
    %549 = arith.addf %547, %548 : vector<8x2xf32>
    %c4 = arith.constant 4 : index
    %c0_195 = arith.constant 0 : index
    %c0_196 = arith.constant 0 : index
    %550 = vector.load %arg33[%c4, %c0_195, %c0_196] : memref<9x8x2xf32, #tpu.memory_space<vmem>>, vector<1x8x2xf32>
    %551 = vector.shape_cast %550 : vector<1x8x2xf32> to vector<8x2xf32>
    %552 = vector.shape_cast %549 : vector<8x2xf32> to vector<1x8x2xf32>
    tpu.vector_store %arg33[%c4, %c0_195, %c0_196], %552 {strides = array<i32>} : memref<9x8x2xf32, #tpu.memory_space<vmem>>, vector<1x8x2xf32>,
    %553 = arith.truncf %545 : vector<8x128xf32> to vector<8x128xbf16>
    %c0_197 = arith.constant 0 : index
    %c0_198 = arith.constant 0 : index
    %554 = vector.load %arg26[%c0_197, %c0_198] : memref<128x512xbf16, #tpu.memory_space<vmem>>, vector<128x512xbf16>
    %cst_199 = arith.constant dense<0.000000e+00> : vector<8x512xf32>
    %555 = tpu.matmul %553, %554, %cst_199 {dimension_numbers = #tpu.dot_dimension_numbers<[1], [0], [0], [1], [0, 0, 1, 1], [], []>} : vector<8x128xbf16>, vector<128x512xbf16>, vector<8x512xf32> -> vector<8x512xf32>
    %556 = arith.addf %368, %555 : vector<8x512xf32>
    %557 = vector.extract_strided_slice %556 {offsets = [0, 0], sizes = [8, 128], strides = [1, 1]} : vector<8x512xf32> to vector<8x128xf32>
    %558 = arith.negf %557 : vector<8x128xf32>
    %559 = math.exp %558 : vector<8x128xf32>
    %cst_200 = arith.constant 1.000000e+00 : f32
    %560 = vector.broadcast %cst_200 : f32 to vector<8x128xf32>
    %561 = arith.addf %560, %559 : vector<8x128xf32>
    %562 = arith.divf %560, %561 : vector<8x128xf32>
    %563 = vector.extract_strided_slice %556 {offsets = [0, 128], sizes = [8, 128], strides = [1, 1]} : vector<8x512xf32> to vector<8x128xf32>
    %564 = arith.negf %563 : vector<8x128xf32>
    %565 = math.exp %564 : vector<8x128xf32>
    %cst_201 = arith.constant 1.000000e+00 : f32
    %566 = vector.broadcast %cst_201 : f32 to vector<8x128xf32>
    %567 = arith.addf %566, %565 : vector<8x128xf32>
    %568 = arith.divf %566, %567 : vector<8x128xf32>
    %569 = vector.extract_strided_slice %556 {offsets = [0, 256], sizes = [8, 128], strides = [1, 1]} : vector<8x512xf32> to vector<8x128xf32>
    %570 = math.tanh %569 : vector<8x128xf32>
    %571 = vector.extract_strided_slice %556 {offsets = [0, 384], sizes = [8, 128], strides = [1, 1]} : vector<8x512xf32> to vector<8x128xf32>
    %572 = arith.negf %571 : vector<8x128xf32>
    %573 = math.exp %572 : vector<8x128xf32>
    %cst_202 = arith.constant 1.000000e+00 : f32
    %574 = vector.broadcast %cst_202 : f32 to vector<8x128xf32>
    %575 = arith.addf %574, %573 : vector<8x128xf32>
    %576 = arith.divf %574, %575 : vector<8x128xf32>
    %577 = arith.mulf %568, %543 : vector<8x128xf32>
    %578 = arith.mulf %562, %570 : vector<8x128xf32>
    %579 = arith.addf %577, %578 : vector<8x128xf32>
    %580 = math.tanh %579 : vector<8x128xf32>
    %581 = arith.mulf %576, %580 : vector<8x128xf32>
    %582 = arith.truncf %581 : vector<8x128xf32> to vector<8x128xbf16>
    %cst_203 = arith.constant dense<0.000000e+00> : vector<8x2xf32>
    %583 = tpu.matmul %582, %369, %cst_203 {dimension_numbers = #tpu.dot_dimension_numbers<[1], [0], [0], [1], [0, 0, 1, 1], [], []>} : vector<8x128xbf16>, vector<128x2xbf16>, vector<8x2xf32> -> vector<8x2xf32>
    %584 = vector.broadcast %370 : vector<1x2xf32> to vector<8x2xf32>
    %585 = arith.addf %583, %584 : vector<8x2xf32>
    %c5 = arith.constant 5 : index
    %c0_204 = arith.constant 0 : index
    %c0_205 = arith.constant 0 : index
    %586 = vector.load %arg33[%c5, %c0_204, %c0_205] : memref<9x8x2xf32, #tpu.memory_space<vmem>>, vector<1x8x2xf32>
    %587 = vector.shape_cast %586 : vector<1x8x2xf32> to vector<8x2xf32>
    %588 = vector.shape_cast %585 : vector<8x2xf32> to vector<1x8x2xf32>
    tpu.vector_store %arg33[%c5, %c0_204, %c0_205], %588 {strides = array<i32>} : memref<9x8x2xf32, #tpu.memory_space<vmem>>, vector<1x8x2xf32>,
    %589 = arith.truncf %581 : vector<8x128xf32> to vector<8x128xbf16>
    %c0_206 = arith.constant 0 : index
    %c0_207 = arith.constant 0 : index
    %590 = vector.load %arg26[%c0_206, %c0_207] : memref<128x512xbf16, #tpu.memory_space<vmem>>, vector<128x512xbf16>
    %cst_208 = arith.constant dense<0.000000e+00> : vector<8x512xf32>
    %591 = tpu.matmul %589, %590, %cst_208 {dimension_numbers = #tpu.dot_dimension_numbers<[1], [0], [0], [1], [0, 0, 1, 1], [], []>} : vector<8x128xbf16>, vector<128x512xbf16>, vector<8x512xf32> -> vector<8x512xf32>
    %592 = arith.addf %368, %591 : vector<8x512xf32>
    %593 = vector.extract_strided_slice %592 {offsets = [0, 0], sizes = [8, 128], strides = [1, 1]} : vector<8x512xf32> to vector<8x128xf32>
    %594 = arith.negf %593 : vector<8x128xf32>
    %595 = math.exp %594 : vector<8x128xf32>
    %cst_209 = arith.constant 1.000000e+00 : f32
    %596 = vector.broadcast %cst_209 : f32 to vector<8x128xf32>
    %597 = arith.addf %596, %595 : vector<8x128xf32>
    %598 = arith.divf %596, %597 : vector<8x128xf32>
    %599 = vector.extract_strided_slice %592 {offsets = [0, 128], sizes = [8, 128], strides = [1, 1]} : vector<8x512xf32> to vector<8x128xf32>
    %600 = arith.negf %599 : vector<8x128xf32>
    %601 = math.exp %600 : vector<8x128xf32>
    %cst_210 = arith.constant 1.000000e+00 : f32
    %602 = vector.broadcast %cst_210 : f32 to vector<8x128xf32>
    %603 = arith.addf %602, %601 : vector<8x128xf32>
    %604 = arith.divf %602, %603 : vector<8x128xf32>
    %605 = vector.extract_strided_slice %592 {offsets = [0, 256], sizes = [8, 128], strides = [1, 1]} : vector<8x512xf32> to vector<8x128xf32>
    %606 = math.tanh %605 : vector<8x128xf32>
    %607 = vector.extract_strided_slice %592 {offsets = [0, 384], sizes = [8, 128], strides = [1, 1]} : vector<8x512xf32> to vector<8x128xf32>
    %608 = arith.negf %607 : vector<8x128xf32>
    %609 = math.exp %608 : vector<8x128xf32>
    %cst_211 = arith.constant 1.000000e+00 : f32
    %610 = vector.broadcast %cst_211 : f32 to vector<8x128xf32>
    %611 = arith.addf %610, %609 : vector<8x128xf32>
    %612 = arith.divf %610, %611 : vector<8x128xf32>
    %613 = arith.mulf %604, %579 : vector<8x128xf32>
    %614 = arith.mulf %598, %606 : vector<8x128xf32>
    %615 = arith.addf %613, %614 : vector<8x128xf32>
    %616 = math.tanh %615 : vector<8x128xf32>
    %617 = arith.mulf %612, %616 : vector<8x128xf32>
    %618 = arith.truncf %617 : vector<8x128xf32> to vector<8x128xbf16>
    %cst_212 = arith.constant dense<0.000000e+00> : vector<8x2xf32>
    %619 = tpu.matmul %618, %369, %cst_212 {dimension_numbers = #tpu.dot_dimension_numbers<[1], [0], [0], [1], [0, 0, 1, 1], [], []>} : vector<8x128xbf16>, vector<128x2xbf16>, vector<8x2xf32> -> vector<8x2xf32>
    %620 = vector.broadcast %370 : vector<1x2xf32> to vector<8x2xf32>
    %621 = arith.addf %619, %620 : vector<8x2xf32>
    %c6 = arith.constant 6 : index
    %c0_213 = arith.constant 0 : index
    %c0_214 = arith.constant 0 : index
    %622 = vector.load %arg33[%c6, %c0_213, %c0_214] : memref<9x8x2xf32, #tpu.memory_space<vmem>>, vector<1x8x2xf32>
    %623 = vector.shape_cast %622 : vector<1x8x2xf32> to vector<8x2xf32>
    %624 = vector.shape_cast %621 : vector<8x2xf32> to vector<1x8x2xf32>
    tpu.vector_store %arg33[%c6, %c0_213, %c0_214], %624 {strides = array<i32>} : memref<9x8x2xf32, #tpu.memory_space<vmem>>, vector<1x8x2xf32>,
    %625 = arith.truncf %617 : vector<8x128xf32> to vector<8x128xbf16>
    %c0_215 = arith.constant 0 : index
    %c0_216 = arith.constant 0 : index
    %626 = vector.load %arg26[%c0_215, %c0_216] : memref<128x512xbf16, #tpu.memory_space<vmem>>, vector<128x512xbf16>
    %cst_217 = arith.constant dense<0.000000e+00> : vector<8x512xf32>
    %627 = tpu.matmul %625, %626, %cst_217 {dimension_numbers = #tpu.dot_dimension_numbers<[1], [0], [0], [1], [0, 0, 1, 1], [], []>} : vector<8x128xbf16>, vector<128x512xbf16>, vector<8x512xf32> -> vector<8x512xf32>
    %628 = arith.addf %368, %627 : vector<8x512xf32>
    %629 = vector.extract_strided_slice %628 {offsets = [0, 0], sizes = [8, 128], strides = [1, 1]} : vector<8x512xf32> to vector<8x128xf32>
    %630 = arith.negf %629 : vector<8x128xf32>
    %631 = math.exp %630 : vector<8x128xf32>
    %cst_218 = arith.constant 1.000000e+00 : f32
    %632 = vector.broadcast %cst_218 : f32 to vector<8x128xf32>
    %633 = arith.addf %632, %631 : vector<8x128xf32>
    %634 = arith.divf %632, %633 : vector<8x128xf32>
    %635 = vector.extract_strided_slice %628 {offsets = [0, 128], sizes = [8, 128], strides = [1, 1]} : vector<8x512xf32> to vector<8x128xf32>
    %636 = arith.negf %635 : vector<8x128xf32>
    %637 = math.exp %636 : vector<8x128xf32>
    %cst_219 = arith.constant 1.000000e+00 : f32
    %638 = vector.broadcast %cst_219 : f32 to vector<8x128xf32>
    %639 = arith.addf %638, %637 : vector<8x128xf32>
    %640 = arith.divf %638, %639 : vector<8x128xf32>
    %641 = vector.extract_strided_slice %628 {offsets = [0, 256], sizes = [8, 128], strides = [1, 1]} : vector<8x512xf32> to vector<8x128xf32>
    %642 = math.tanh %641 : vector<8x128xf32>
    %643 = vector.extract_strided_slice %628 {offsets = [0, 384], sizes = [8, 128], strides = [1, 1]} : vector<8x512xf32> to vector<8x128xf32>
    %644 = arith.negf %643 : vector<8x128xf32>
    %645 = math.exp %644 : vector<8x128xf32>
    %cst_220 = arith.constant 1.000000e+00 : f32
    %646 = vector.broadcast %cst_220 : f32 to vector<8x128xf32>
    %647 = arith.addf %646, %645 : vector<8x128xf32>
    %648 = arith.divf %646, %647 : vector<8x128xf32>
    %649 = arith.mulf %640, %615 : vector<8x128xf32>
    %650 = arith.mulf %634, %642 : vector<8x128xf32>
    %651 = arith.addf %649, %650 : vector<8x128xf32>
    %652 = math.tanh %651 : vector<8x128xf32>
    %653 = arith.mulf %648, %652 : vector<8x128xf32>
    %654 = arith.truncf %653 : vector<8x128xf32> to vector<8x128xbf16>
    %cst_221 = arith.constant dense<0.000000e+00> : vector<8x2xf32>
    %655 = tpu.matmul %654, %369, %cst_221 {dimension_numbers = #tpu.dot_dimension_numbers<[1], [0], [0], [1], [0, 0, 1, 1], [], []>} : vector<8x128xbf16>, vector<128x2xbf16>, vector<8x2xf32> -> vector<8x2xf32>
    %656 = vector.broadcast %370 : vector<1x2xf32> to vector<8x2xf32>
    %657 = arith.addf %655, %656 : vector<8x2xf32>
    %c7 = arith.constant 7 : index
    %c0_222 = arith.constant 0 : index
    %c0_223 = arith.constant 0 : index
    %658 = vector.load %arg33[%c7, %c0_222, %c0_223] : memref<9x8x2xf32, #tpu.memory_space<vmem>>, vector<1x8x2xf32>
    %659 = vector.shape_cast %658 : vector<1x8x2xf32> to vector<8x2xf32>
    %660 = vector.shape_cast %657 : vector<8x2xf32> to vector<1x8x2xf32>
    tpu.vector_store %arg33[%c7, %c0_222, %c0_223], %660 {strides = array<i32>} : memref<9x8x2xf32, #tpu.memory_space<vmem>>, vector<1x8x2xf32>,
    %661 = arith.truncf %653 : vector<8x128xf32> to vector<8x128xbf16>
    %c0_224 = arith.constant 0 : index
    %c0_225 = arith.constant 0 : index
    %662 = vector.load %arg26[%c0_224, %c0_225] : memref<128x512xbf16, #tpu.memory_space<vmem>>, vector<128x512xbf16>
    %cst_226 = arith.constant dense<0.000000e+00> : vector<8x512xf32>
    %663 = tpu.matmul %661, %662, %cst_226 {dimension_numbers = #tpu.dot_dimension_numbers<[1], [0], [0], [1], [0, 0, 1, 1], [], []>} : vector<8x128xbf16>, vector<128x512xbf16>, vector<8x512xf32> -> vector<8x512xf32>
    %664 = arith.addf %368, %663 : vector<8x512xf32>
    %665 = vector.extract_strided_slice %664 {offsets = [0, 0], sizes = [8, 128], strides = [1, 1]} : vector<8x512xf32> to vector<8x128xf32>
    %666 = arith.negf %665 : vector<8x128xf32>
    %667 = math.exp %666 : vector<8x128xf32>
    %cst_227 = arith.constant 1.000000e+00 : f32
    %668 = vector.broadcast %cst_227 : f32 to vector<8x128xf32>
    %669 = arith.addf %668, %667 : vector<8x128xf32>
    %670 = arith.divf %668, %669 : vector<8x128xf32>
    %671 = vector.extract_strided_slice %664 {offsets = [0, 128], sizes = [8, 128], strides = [1, 1]} : vector<8x512xf32> to vector<8x128xf32>
    %672 = arith.negf %671 : vector<8x128xf32>
    %673 = math.exp %672 : vector<8x128xf32>
    %cst_228 = arith.constant 1.000000e+00 : f32
    %674 = vector.broadcast %cst_228 : f32 to vector<8x128xf32>
    %675 = arith.addf %674, %673 : vector<8x128xf32>
    %676 = arith.divf %674, %675 : vector<8x128xf32>
    %677 = vector.extract_strided_slice %664 {offsets = [0, 256], sizes = [8, 128], strides = [1, 1]} : vector<8x512xf32> to vector<8x128xf32>
    %678 = math.tanh %677 : vector<8x128xf32>
    %679 = vector.extract_strided_slice %664 {offsets = [0, 384], sizes = [8, 128], strides = [1, 1]} : vector<8x512xf32> to vector<8x128xf32>
    %680 = arith.negf %679 : vector<8x128xf32>
    %681 = math.exp %680 : vector<8x128xf32>
    %cst_229 = arith.constant 1.000000e+00 : f32
    %682 = vector.broadcast %cst_229 : f32 to vector<8x128xf32>
    %683 = arith.addf %682, %681 : vector<8x128xf32>
    %684 = arith.divf %682, %683 : vector<8x128xf32>
    %685 = arith.mulf %676, %651 : vector<8x128xf32>
    %686 = arith.mulf %670, %678 : vector<8x128xf32>
    %687 = arith.addf %685, %686 : vector<8x128xf32>
    %688 = math.tanh %687 : vector<8x128xf32>
    %689 = arith.mulf %684, %688 : vector<8x128xf32>
    %690 = arith.truncf %689 : vector<8x128xf32> to vector<8x128xbf16>
    %cst_230 = arith.constant dense<0.000000e+00> : vector<8x2xf32>
    %691 = tpu.matmul %690, %369, %cst_230 {dimension_numbers = #tpu.dot_dimension_numbers<[1], [0], [0], [1], [0, 0, 1, 1], [], []>} : vector<8x128xbf16>, vector<128x2xbf16>, vector<8x2xf32> -> vector<8x2xf32>
    %692 = vector.broadcast %370 : vector<1x2xf32> to vector<8x2xf32>
    %693 = arith.addf %691, %692 : vector<8x2xf32>
    %c8_231 = arith.constant 8 : index
    %c0_232 = arith.constant 0 : index
    %c0_233 = arith.constant 0 : index
    %694 = vector.load %arg33[%c8_231, %c0_232, %c0_233] : memref<9x8x2xf32, #tpu.memory_space<vmem>>, vector<1x8x2xf32>
    %695 = vector.shape_cast %694 : vector<1x8x2xf32> to vector<8x2xf32>
    %696 = vector.shape_cast %693 : vector<8x2xf32> to vector<1x8x2xf32>
    tpu.vector_store %arg33[%c8_231, %c0_232, %c0_233], %696 {strides = array<i32>} : memref<9x8x2xf32, #tpu.memory_space<vmem>>, vector<1x8x2xf32>,
    return
  }
}

</mosaic_0001>

<bundles_post_ra>
// kernel: forward.1
= control target key start
LH: loop header
LB: loop body
LE: loop exit
PB: predicated region body
PF: predicated region fallthrough
CT: control target
= control target key end

     0   :  { %s8729_s6 = smov 1   ;;  %s8730_s10 = smov 2   ;;  %s10200_s0 = inlined_call_operand.smem [shape: u32[34], index: -1, kind: input, shape index: {}] }
   0x1   :  { %s8792_s5 = sld [smem:[%s10200_s0]]   ;;  %s8731_s14 = smov 3  }
   0x2   :  { %s8797_s9 = sld [smem:[%s10200_s0 + %s8729_s6]]   ;;  %s8732_s18 = smov 4  }
   0x3   :  { %s8802_s13 = sld [smem:[%s10200_s0 + %s8730_s10]]   ;;  %s8733_s22 = smov 5  }
   0x4   :  { %s8807_s17 = sld [smem:[%s10200_s0 + %s8731_s14]]   ;;  %s8734_s26 = smov 6  }
   0x5   :  { %s8812_s21 = sld [smem:[%s10200_s0 + %s8732_s18]]   ;;  %s8735_s30 = smov 7  }
   0x6   :  { %s8817_s25 = sld [smem:[%s10200_s0 + %s8733_s22]]   ;;  %s8736_s4 = smov 8  }
   0x7   :  { %10211 = sst [smem:[#allocation33_spill]] %s8792_s5  ;;  %s8737_s10 = smov 9  }
   0x8   :  { %10212 = sst [smem:[#allocation34_spill]] %s8797_s9  ;;  %s8738_s15 = smov 10  }
   0x9   :  { %10213 = sst [smem:[#allocation35_spill]] %s8802_s13  ;;  %s8739_s20 = smov 11  }
   0xa   :  { %s8822_s29 = sld [smem:[%s10200_s0 + %s8734_s26]]   ;;  %s8740_s26 = smov 12  }
   0xb   :  { %s8827_s3 = sld [smem:[%s10200_s0 + %s8735_s30]]   ;;  %s8741_s1 = smov 13  }
   0xc   :  { %10214 = sst [smem:[#allocation36_spill]] %s8817_s25  ;;  %s8742_s7 = smov 14  }
   0xd   :  { %s8832_s8 = sld [smem:[%s10200_s0 + %s8736_s4]]   ;;  %s8744_s22 = smov 16  }
   0xe   :  { %s8837_s14 = sld [smem:[%s10200_s0 + %s8737_s10]]   ;;  %s8745_s28 = smov 17  }
   0xf   :  { %s8842_s19 = sld [smem:[%s10200_s0 + %s8738_s15]]   ;;  %s8743_s15 = smov 15  }
  0x10   :  { %10215 = sst [smem:[#allocation37_spill]] %s8822_s29 }
  0x11   :  { %10216 = sst [smem:[#allocation38_spill]] %s8827_s3 }
  0x12   :  { %s8847_s24 = sld [smem:[%s10200_s0 + %s8739_s20]]  }
  0x13   :  { %10217 = sst [smem:[#allocation39_spill]] %s8832_s8 }
  0x14   :  { %10218 = sst [smem:[#allocation40_spill]] %s8837_s14 }
  0x15   :  { %10219 = sst [smem:[#allocation41_spill]] %s8842_s19 }
  0x16   :  { %s8852_s30 = sld [smem:[%s10200_s0 + %s8740_s26]]  }
  0x17   :  { %s8857_s6 = sld [smem:[%s10200_s0 + %s8741_s1]]  }
  0x18   :  { %10220 = sst [smem:[#allocation42_spill]] %s8847_s24 }
  0x19   :  { %s8862_s12 = sld [smem:[%s10200_s0 + %s8742_s7]]   ;;  %s8746_s7 = smov 18  }
  0x1a   :  { %s8867_s20 = sld [smem:[%s10200_s0 + %s8743_s15]]   ;;  %s8747_s15 = smov 19  }
  0x1b   :  { %s8872_s27 = sld [smem:[%s10200_s0 + %s8744_s22]]   ;;  %s8748_s22 = smov 20  }
  0x1c   :  { %10221 = sst [smem:[#allocation43_spill]] %s8852_s30 }
  0x1d   :  { %10222 = sst [smem:[#allocation44_spill]] %s8857_s6 }
  0x1e   :  { %s8877_s4 = sld [smem:[%s10200_s0 + %s8745_s28]]   ;;  %s8749_s28 = smov 21  }
  0x1f   :  { %10223 = sst [smem:[#allocation45_spill]] %s8862_s12 }
  0x20   :  { %10224 = sst [smem:[#allocation46_spill]] %s8867_s20 }
  0x21   :  { %10225 = sst [smem:[#allocation47_spill]] %s8872_s27 }
  0x22   :  { %s8882_s6 = sld [smem:[%s10200_s0 + %s8746_s7]]   ;;  %s8750_s7 = smov 22  }
  0x23   :  { %s8887_s20 = sld [smem:[%s10200_s0 + %s8747_s15]]   ;;  %s8751_s15 = smov 23  }
  0x24   :  { %10226 = sst [smem:[#allocation48_spill]] %s8877_s4 }
  0x25   :  { %s8892_s27 = sld [smem:[%s10200_s0 + %s8748_s22]]   ;;  %s8752_s22 = smov 24  }
  0x26   :  { %s8897_s4 = sld [smem:[%s10200_s0 + %s8749_s28]]   ;;  %s8753_s28 = smov 25  }
  0x27   :  { %s8902_s3 = sld [smem:[%s10200_s0 + %s8750_s7]]   ;;  %s8754_s7 = smov 26  }
  0x28   :  { %s8907_s12 = sld [smem:[%s10200_s0 + %s8751_s15]]   ;;  %s8755_s15 = smov 27  }
  0x29   :  { %s8912_s24 = sld [smem:[%s10200_s0 + %s8752_s22]]   ;;  %s8756_s22 = smov 28  }
  0x2a   :  { %s8917_s30 = sld [smem:[%s10200_s0 + %s8753_s28]]   ;;  %s8757_s28 = smov 29  }
  0x2b   :  { %s8922_s13 = sld [smem:[%s10200_s0 + %s8754_s7]]   ;;  %s8758_s7 = smov 30  }
  0x2c   :  { %s8927_s14 = sld [smem:[%s10200_s0 + %s8755_s15]]   ;;  %s8759_s15 = smov 31  }
  0x2d   :  { %s8932_s29 = sld [smem:[%s10200_s0 + %s8756_s22]]   ;;  %s8760_s22 = smov 32  }
  0x2e   :  { %s8937_s9 = sld [smem:[%s10200_s0 + %s8757_s28]]   ;;  %s8761_s28 = smov 33  }
  0x2f   :  { %s8942_s19 = sld [smem:[%s10200_s0 + %s8758_s7]]  }
  0x30   :  { %s8947_s8 = sld [smem:[%s10200_s0 + %s8759_s15]]  }
  0x31   :  { %s8952_s25 = sld [smem:[%s10200_s0 + %s8760_s22]]  }
  0x32   :  { %s8957_s5 = sld [smem:[%s10200_s0 + %s8761_s28]]  }
  0x33   :  { %73 = vsyncpa [#allocation4], 0 }
  0x34   :  { %74 = vsyncpa [#allocation6], 0 }
  0x35   :  { %75 = vsyncpa [#allocation9], 0 }
  0x36   :  { %76 = vsyncpa [#allocation12], 0 }
  0x37   :  { %77 = vsyncpa [#allocation15], 0 }
  0x38   :  { %78 = vsyncpa [#allocation18], 0 }
  0x39   :  { %79 = vsyncpa [#allocation21], 0 }
  0x3a   :  { %80 = vsyncpa [#allocation24], 0  ;;  %s104_s7 = sshll.u32 %s8812_s21, 4  ;;  %s8762_s10 = smov [#allocation5]   ;;  %s105_s7 = int_to_ptr.hbm [resolvable:$true] %s104_s7 }
  0x3b   :  { %s106_s11 = sshll.u32 %s8762_s10, 4  ;;  %s157_s15 = sshll.u32 %s8887_s20, 4  ;;  %s107_s11 = int_to_ptr.vmem [resolvable:$true] %s106_s11  ;;  %s158_s15 = int_to_ptr.hbm [resolvable:$true] %s157_s15 }
  0x3c   :  { %s8377_s0 = sshra.s32 %s105_s7, 4  ;;  %s8381_s18 = scalar_lea.hbm %s8812_s21, 256  ;;  %s8378_s0 = int_to_ptr.hbm [resolvable:$true] %s8377_s0 }
  0x3d   :  { %s8379_s16 = scalar_lea.hbm %s8378_s0, 256  ;;  %p8382_p1 = scmp.lt.s32.totalorder %s8378_s0, %s8812_s21 }
  0x3e   :  { %p8380_p0 = scmp.ne.s32.totalorder %s8378_s0, %s8379_s16  ;;  %p8383_p2 = scmp.lt.s32.totalorder %s8381_s18, %s8379_s16 }
  0x40   :  { %p8384_p3 = por %p8383_p2, %p8382_p1 }
  0x42   :  { %p8385_p4 = pnand %p8384_p3, %p8380_p0 }
  0x44   :  { %8388 = shalt.err (!%p8385_p4)
}
  0x45   :  { %s8763_s22 = smov 256   ;;  %s8764_s23 = smov 16  }
  0x46   :  { %112 = dma.hbm_to_vmem [thread:$0]  %s105_s7, 4096, %s107_s11, [#allocation6], %s8763_s22, %s8763_s22, %s8764_s23  }
  0x47   :  { %s8765_s26 = smov [#allocation8]   ;;  %s181_s1 = sshll.u32 %s8897_s4, 4  ;;  %s182_s1 = int_to_ptr.hbm [resolvable:$true] %s181_s1 }
  0x48   :  { %s159_s28 = sshll.u32 %s8765_s26, 4  ;;  %s8401_s21 = sshra.s32 %s158_s15, 4  ;;  %s160_s28 = int_to_ptr.vmem [resolvable:$true] %s159_s28  ;;  %s8402_s21 = int_to_ptr.hbm [resolvable:$true] %s8401_s21 }
  0x49   :  { %s8403_s2 = scalar_lea.hbm %s8402_s21, 1  ;;  %s8405_s10 = scalar_lea.hbm %s8887_s20, 1 }
  0x4a   :  { %p8404_p5 = scmp.ne.s32.totalorder %s8402_s21, %s8403_s2  ;;  %p8406_p6 = scmp.lt.s32.totalorder %s8402_s21, %s8887_s20 }
  0x4b   :  { %p8407_p7 = scmp.lt.s32.totalorder %s8405_s10, %s8403_s2 }
  0x4d   :  { %p8408_p8 = por %p8407_p7, %p8406_p6 }
  0x4f   :  { %p8409_p9 = pnand %p8408_p8, %p8404_p5 }
  0x51   :  { %8412 = shalt.err (!%p8409_p9)
}
  0x52   :  { %162 = dma.hbm_to_vmem [thread:$0]  %s158_s15, 16, %s160_s28, [#allocation9]  }
  0x53   :  { %s205_s7 = sshll.u32 %s8907_s12, 4  ;;  %s8766_s11 = smov [#allocation11]   ;;  %s206_s7 = int_to_ptr.hbm [resolvable:$true] %s205_s7 }
  0x54   :  { %s183_s0 = sshll.u32 %s8766_s11, 4  ;;  %s8425_s16 = sshra.s32 %s182_s1, 4  ;;  %s184_s0 = int_to_ptr.vmem [resolvable:$true] %s183_s0  ;;  %s8426_s16 = int_to_ptr.hbm [resolvable:$true] %s8425_s16 }
  0x55   :  { %s8427_s18 = scalar_lea.hbm %s8426_s16, 1  ;;  %s8429_s26 = scalar_lea.hbm %s8897_s4, 1 }
  0x56   :  { %p8428_p10 = scmp.ne.s32.totalorder %s8426_s16, %s8427_s18  ;;  %p8430_p11 = scmp.lt.s32.totalorder %s8426_s16, %s8897_s4 }
  0x57   :  { %p8431_p12 = scmp.lt.s32.totalorder %s8429_s26, %s8427_s18 }
  0x59   :  { %p8432_p13 = por %p8431_p12, %p8430_p11 }
  0x5b   :  { %p8433_p0 = pnand %p8432_p13, %p8428_p10 }
  0x5d   :  { %8436 = shalt.err (!%p8433_p0)
}
  0x5e   :  { %186 = dma.hbm_to_vmem [thread:$0]  %s182_s1, 16, %s184_s0, [#allocation12]  }
  0x5f   :  { %s8767_s20 = smov [#allocation14]   ;;  %s228_s28 = sshll.u32 %s8917_s30, 4  ;;  %s8973_s28 = int_to_ptr.hbm [resolvable:$true] %s228_s28 }
  0x60   :  { %s207_s15 = sshll.u32 %s8767_s20, 4  ;;  %s8449_s21 = sshra.s32 %s206_s7, 4  ;;  %s208_s15 = int_to_ptr.vmem [resolvable:$true] %s207_s15  ;;  %s8450_s21 = int_to_ptr.hbm [resolvable:$true] %s8449_s21 }
  0x61   :  { %s8451_s2 = scalar_lea.hbm %s8450_s21, 1  ;;  %s8453_s10 = scalar_lea.hbm %s8907_s12, 1 }
  0x62   :  { %p8452_p1 = scmp.ne.s32.totalorder %s8450_s21, %s8451_s2  ;;  %p8454_p2 = scmp.lt.s32.totalorder %s8450_s21, %s8907_s12 }
  0x63   :  { %p8455_p3 = scmp.lt.s32.totalorder %s8453_s10, %s8451_s2 }
  0x65   :  { %p8456_p4 = por %p8455_p3, %p8454_p2 }
  0x67   :  { %p8457_p5 = pnand %p8456_p4, %p8452_p1 }
  0x69   :  { %8460 = shalt.err (!%p8457_p5)
}
  0x6a   :  { %210 = dma.hbm_to_vmem [thread:$0]  %s206_s7, 16, %s208_s15, [#allocation15]  }
  0x6b   :  { %s255_s4 = sshll.u32 %s8927_s14, 4  ;;  %s8768_s1 = smov [#allocation17]   ;;  %s256_s4 = int_to_ptr.hbm [resolvable:$true] %s255_s4 }
  0x6c   :  { %s230_s11 = sshll.u32 %s8768_s1, 4  ;;  %s8473_s0 = sshra.s32 %s8973_s28, 4  ;;  %s231_s11 = int_to_ptr.vmem [resolvable:$true] %s230_s11  ;;  %s8474_s0 = int_to_ptr.hbm [resolvable:$true] %s8473_s0 }
  0x6d   :  { %s8475_s16 = scalar_lea.hbm %s8474_s0, 32  ;;  %s8477_s18 = scalar_lea.hbm %s8917_s30, 32 }
  0x6e   :  { %p8476_p6 = scmp.ne.s32.totalorder %s8474_s0, %s8475_s16  ;;  %p8478_p7 = scmp.lt.s32.totalorder %s8474_s0, %s8917_s30 }
  0x6f   :  { %p8479_p8 = scmp.lt.s32.totalorder %s8477_s18, %s8475_s16 }
  0x71   :  { %p8480_p9 = por %p8479_p8, %p8478_p7 }
  0x73   :  { %p8481_p10 = pnand %p8480_p9, %p8476_p6 }
  0x75   :  { %8484 = shalt.err (!%p8481_p10)
}
  0x76   :  { %236 = dma.hbm_to_vmem [thread:$0]  %s8973_s28, 512, %s231_s11, [#allocation18], %s8763_s22, %s8763_s22, %s8764_s23  }
  0x77   :  { %s8769_s12 = smov [#allocation20]   ;;  %s91_s26 = sshll.u32 %s8807_s17, 4  ;;  %s8986_s26 = int_to_ptr.hbm [resolvable:$true] %s91_s26 }
  0x78   :  { %s257_s7 = sshll.u32 %s8769_s12, 4  ;;  %s8497_s20 = sshra.s32 %s256_s4, 4  ;;  %s258_s7 = int_to_ptr.vmem [resolvable:$true] %s257_s7  ;;  %s8498_s20 = int_to_ptr.hbm [resolvable:$true] %s8497_s20 }
  0x79   :  { %s8499_s30 = scalar_lea.hbm %s8498_s20, 4  ;;  %s8501_s15 = scalar_lea.hbm %s8927_s14, 4 }
  0x7a   :  { %p8500_p11 = scmp.ne.s32.totalorder %s8498_s20, %s8499_s30  ;;  %p8502_p12 = scmp.lt.s32.totalorder %s8498_s20, %s8927_s14 }
  0x7b   :  { %p8503_p13 = scmp.lt.s32.totalorder %s8501_s15, %s8499_s30 }
  0x7d   :  { %p8504_p0 = por %p8503_p13, %p8502_p12 }
  0x7f   :  { %p8505_p1 = pnand %p8504_p0, %p8500_p11 }
  0x81   :  { %8508 = shalt.err (!%p8505_p1)
}
  0x82   :  { %260 = dma.hbm_to_vmem [thread:$0]  %s256_s4, 64, %s258_s7, [#allocation21]  }
  0x83   :  { %s143_s28 = sshll.u32 %s8882_s6, 4  ;;  %s8770_s21 = smov [#allocation3]   ;;  %s8991_s28 = int_to_ptr.hbm [resolvable:$true] %s143_s28 }
  0x84   :  { %s93_s2 = sshll.u32 %s8770_s21, 4  ;;  %s8521_s10 = sshra.s32 %s8986_s26, 4  ;;  %s94_s2 = int_to_ptr.vmem [resolvable:$true] %s93_s2  ;;  %s8522_s10 = int_to_ptr.hbm [resolvable:$true] %s8521_s10 }
  0x85   :  { %s8523_s1 = scalar_lea.hbm %s8522_s10, 48  ;;  %s8525_s14 = scalar_lea.hbm %s8807_s17, 48 }
  0x86   :  { %p8524_p2 = scmp.ne.s32.totalorder %s8522_s10, %s8523_s1  ;;  %p8526_p3 = scmp.lt.s32.totalorder %s8522_s10, %s8807_s17 }
  0x87   :  { %p8527_p4 = scmp.lt.s32.totalorder %s8525_s14, %s8523_s1 }
  0x89   :  { %p8528_p5 = por %p8527_p4, %p8526_p3 }
  0x8b   :  { %p8529_p6 = pnand %p8528_p5, %p8524_p2 }
  0x8d   :  { %8532 = shalt.err (!%p8529_p6)
}
  0x8e   :  { %99 = dma.hbm_to_vmem [thread:$0]  %s8986_s26, 768, %s94_s2, [#allocation4], %s8763_s22, %s8763_s22, %s8764_s23  }
  0x8f   :  { %s8771_s4 = smov [#allocation7]   ;;  %s8545_s0 = sshra.s32 %s8991_s28, 4  ;;  %s8546_s0 = int_to_ptr.hbm [resolvable:$true] %s8545_s0 }
  0x90   :  { %s145_s11 = sshll.u32 %s8771_s4, 4  ;;  %s8547_s16 = scalar_lea.hbm %s8546_s0, 64  ;;  %s146_s11 = int_to_ptr.vmem [resolvable:$true] %s145_s11 }
  0x91   :  { %p8548_p7 = scmp.ne.s32.totalorder %s8546_s0, %s8547_s16  ;;  %s8549_s17 = scalar_lea.hbm %s8882_s6, 64 }
  0x92   :  { %p8550_p8 = scmp.lt.s32.totalorder %s8546_s0, %s8882_s6  ;;  %p8551_p9 = scmp.lt.s32.totalorder %s8549_s17, %s8547_s16 }
  0x94   :  { %p8552_p10 = por %p8551_p9, %p8550_p8 }
  0x96   :  { %p8553_p11 = pnand %p8552_p10, %p8548_p7 }
  0x98   :  { %8556 = shalt.err (!%p8553_p11)
}
  0x99   :  { %s8772_s18 = smov 64   ;;  %s8773_s12 = smov 4  }
  0x9a   :  { %151 = dma.hbm_to_vmem [thread:$0]  %s8991_s28, 1024, %s146_s11, [#allocation6], %s8772_s18, %s8772_s18, %s8773_s12  }
  0x9b   :  { %s167_s7 = sshll.u32 %s8892_s27, 4  ;;  %s8774_s26 = smov [#allocation10]   ;;  %s168_s7 = int_to_ptr.hbm [resolvable:$true] %s167_s7 }
  0x9c   :  { %s169_s20 = sshll.u32 %s8774_s26, 4  ;;  %s191_s6 = sshll.u32 %s8902_s3, 4  ;;  %s170_s20 = int_to_ptr.vmem [resolvable:$true] %s169_s20  ;;  %s192_s6 = int_to_ptr.hbm [resolvable:$true] %s191_s6 }
  0x9d   :  { %s8569_s30 = sshra.s32 %s168_s7, 4  ;;  %s8573_s21 = scalar_lea.hbm %s8892_s27, 64  ;;  %s8570_s30 = int_to_ptr.hbm [resolvable:$true] %s8569_s30 }
  0x9e   :  { %s8571_s15 = scalar_lea.hbm %s8570_s30, 64  ;;  %p8574_p13 = scmp.lt.s32.totalorder %s8570_s30, %s8892_s27 }
  0x9f   :  { %p8572_p12 = scmp.ne.s32.totalorder %s8570_s30, %s8571_s15  ;;  %p8575_p0 = scmp.lt.s32.totalorder %s8573_s21, %s8571_s15 }
  0xa1   :  { %p8576_p1 = por %p8575_p0, %p8574_p13 }
  0xa3   :  { %p8577_p2 = pnand %p8576_p1, %p8572_p12 }
  0xa5   :  { %8580 = shalt.err (!%p8577_p2)
}
  0xa6   :  { %175 = dma.hbm_to_vmem [thread:$0]  %s168_s7, 1024, %s170_s20, [#allocation9], %s8772_s18, %s8772_s18, %s8773_s12  }
  0xa7   :  { %s8775_s28 = smov [#allocation13]   ;;  %s215_s10 = sshll.u32 %s8912_s24, 4  ;;  %s9015_s10 = int_to_ptr.hbm [resolvable:$true] %s215_s10 }
  0xa8   :  { %s193_s2 = sshll.u32 %s8775_s28, 4  ;;  %s8593_s1 = sshra.s32 %s192_s6, 4  ;;  %s194_s2 = int_to_ptr.vmem [resolvable:$true] %s193_s2  ;;  %s8594_s1 = int_to_ptr.hbm [resolvable:$true] %s8593_s1 }
  0xa9   :  { %s8595_s27 = scalar_lea.hbm %s8594_s1, 64  ;;  %s8597_s14 = scalar_lea.hbm %s8902_s3, 64 }
  0xaa   :  { %p8596_p3 = scmp.ne.s32.totalorder %s8594_s1, %s8595_s27  ;;  %p8598_p4 = scmp.lt.s32.totalorder %s8594_s1, %s8902_s3 }
  0xab   :  { %p8599_p5 = scmp.lt.s32.totalorder %s8597_s14, %s8595_s27 }
  0xad   :  { %p8600_p6 = por %p8599_p5, %p8598_p4 }
  0xaf   :  { %p8601_p7 = pnand %p8600_p6, %p8596_p3 }
  0xb1   :  { %8604 = shalt.err (!%p8601_p7)
}
  0xb2   :  { %199 = dma.hbm_to_vmem [thread:$0]  %s192_s6, 1024, %s194_s2, [#allocation12], %s8772_s18, %s8772_s18, %s8773_s12  }
  0xb3   :  { %s241_s4 = sshll.u32 %s8922_s13, 4  ;;  %s8776_s11 = smov [#allocation16]   ;;  %s9023_s4 = int_to_ptr.hbm [resolvable:$true] %s241_s4 }
  0xb4   :  { %s217_s0 = sshll.u32 %s8776_s11, 4  ;;  %s8617_s16 = sshra.s32 %s9015_s10, 4  ;;  %s218_s0 = int_to_ptr.vmem [resolvable:$true] %s217_s0  ;;  %s8618_s16 = int_to_ptr.hbm [resolvable:$true] %s8617_s16 }
  0xb5   :  { %s8619_s3 = scalar_lea.hbm %s8618_s16, 32  ;;  %s8621_s17 = scalar_lea.hbm %s8912_s24, 32 }
  0xb6   :  { %p8620_p8 = scmp.ne.s32.totalorder %s8618_s16, %s8619_s3  ;;  %p8622_p9 = scmp.lt.s32.totalorder %s8618_s16, %s8912_s24 }
  0xb7   :  { %p8623_p10 = scmp.lt.s32.totalorder %s8621_s17, %s8619_s3 }
  0xb9   :  { %p8624_p11 = por %p8623_p10, %p8622_p9 }
  0xbb   :  { %p8625_p12 = pnand %p8624_p11, %p8620_p8 }
  0xbd   :  { %8628 = shalt.err (!%p8625_p12)
}
  0xbe   :  { %223 = dma.hbm_to_vmem [thread:$0]  %s9015_s10, 512, %s218_s0, [#allocation15], %s8763_s22, %s8763_s22, %s8764_s23  }
  0xbf   :  { %s8777_s7 = smov [#allocation19]   ;;  %s265_s20 = sshll.u32 %s8932_s29, 4  ;;  %s9033_s20 = int_to_ptr.hbm [resolvable:$true] %s265_s20 }
  0xc0   :  { %s243_s26 = sshll.u32 %s8777_s7, 4  ;;  %s8641_s24 = sshra.s32 %s9023_s4, 4  ;;  %s244_s26 = int_to_ptr.vmem [resolvable:$true] %s243_s26  ;;  %s8642_s24 = int_to_ptr.hbm [resolvable:$true] %s8641_s24 }
  0xc1   :  { %s8643_s6 = scalar_lea.hbm %s8642_s24, 256  ;;  %s8645_s30 = scalar_lea.hbm %s8922_s13, 256 }
  0xc2   :  { %p8644_p13 = scmp.ne.s32.totalorder %s8642_s24, %s8643_s6  ;;  %p8646_p0 = scmp.lt.s32.totalorder %s8642_s24, %s8922_s13 }
  0xc3   :  { %p8647_p1 = scmp.lt.s32.totalorder %s8645_s30, %s8643_s6 }
  0xc5   :  { %p8648_p2 = por %p8647_p1, %p8646_p0 }
  0xc7   :  { %p8649_p3 = pnand %p8648_p2, %p8644_p13 }
  0xc9   :  { %8652 = shalt.err (!%p8649_p3)
}
  0xca   :  { %249 = dma.hbm_to_vmem [thread:$0]  %s9023_s4, 4096, %s244_s26, [#allocation18], %s8763_s22, %s8763_s22, %s8764_s23  }
  0xcb   :  { %s279_s15 = sshll.u32 %s8937_s9, 4  ;;  %s8778_s21 = smov [#allocation22]   ;;  %s280_s15 = int_to_ptr.hbm [resolvable:$true] %s279_s15 }
  0xcc   :  { %s267_s28 = sshll.u32 %s8778_s21, 4  ;;  %s8665_s2 = sshra.s32 %s9033_s20, 4  ;;  %s268_s28 = int_to_ptr.vmem [resolvable:$true] %s267_s28  ;;  %s8666_s2 = int_to_ptr.hbm [resolvable:$true] %s8665_s2 }
  0xcd   :  { %s8667_s13 = scalar_lea.hbm %s8666_s2, 64  ;;  %s8669_s10 = scalar_lea.hbm %s8932_s29, 64 }
  0xce   :  { %p8668_p4 = scmp.ne.s32.totalorder %s8666_s2, %s8667_s13  ;;  %p8670_p5 = scmp.lt.s32.totalorder %s8666_s2, %s8932_s29 }
  0xcf   :  { %p8671_p6 = scmp.lt.s32.totalorder %s8669_s10, %s8667_s13 }
  0xd1   :  { %p8672_p7 = por %p8671_p6, %p8670_p5 }
  0xd3   :  { %p8673_p8 = pnand %p8672_p7, %p8668_p4 }
  0xd5   :  { %8676 = shalt.err (!%p8673_p8)
}
  0xd6   :  { %273 = dma.hbm_to_vmem [thread:$0]  %s9033_s20, 1024, %s268_s28, [#allocation21], %s8772_s18, %s8772_s18, %s8773_s12  }
  0xd7   :  { %s8779_s22 = smov [#allocation23]   ;;  %s8689_s1 = sshra.s32 %s280_s15, 4  ;;  %s8690_s1 = int_to_ptr.hbm [resolvable:$true] %s8689_s1 }
  0xd8   :  { %s281_s23 = sshll.u32 %s8779_s22, 4  ;;  %s8691_s27 = scalar_lea.hbm %s8690_s1, 1  ;;  %s282_s23 = int_to_ptr.vmem [resolvable:$true] %s281_s23 }
  0xd9   :  { %p8692_p9 = scmp.ne.s32.totalorder %s8690_s1, %s8691_s27  ;;  %s8693_s14 = scalar_lea.hbm %s8937_s9, 1 }
  0xda   :  { %p8694_p10 = scmp.lt.s32.totalorder %s8690_s1, %s8937_s9  ;;  %p8695_p11 = scmp.lt.s32.totalorder %s8693_s14, %s8691_s27 }
  0xdc   :  { %p8696_p12 = por %p8695_p11, %p8694_p10 }
  0xde   :  { %p8697_p13 = pnand %p8696_p12, %p8692_p9 }
  0xe0   :  { %8700 = shalt.err (!%p8697_p13)
}
  0xe1   :  { %284 = dma.hbm_to_vmem [thread:$0]  %s280_s15, 16, %s282_s23, [#allocation24]  }
  0xe2   :  { %8713 = dma.done.wait [#allocation4], 768  }
  0xe3   :  { %8714 = vsyncadd [#allocation4], 4294966528 }
  0xe4   :  { %8715 = dma.done.wait [#allocation6], 5120  }
  0xe5   :  { %8716 = vsyncadd [#allocation6], 4294962176 }
  0xe6   :  { %8717 = dma.done.wait [#allocation9], 1040  }
  0xe7   :  { %8718 = vsyncadd [#allocation9], 4294966256 }
  0xe8   :  { %8719 = dma.done.wait [#allocation12], 1040  }
  0xe9   :  { %8720 = vsyncadd [#allocation12], 4294966256 }
  0xea   :  { %8721 = dma.done.wait [#allocation15], 528  }
  0xeb   :  { %8722 = vsyncadd [#allocation15], 4294966768 }
  0xec   :  { %8723 = dma.done.wait [#allocation18], 4608  }
  0xed   :  { %8724 = vsyncadd [#allocation18], 4294962688 }
  0xee   :  { %8725 = dma.done.wait [#allocation21], 1088  }
  0xef   :  { %8726 = vsyncadd [#allocation21], 4294966208 }
  0xf0   :  { %8727 = dma.done.wait [#allocation24], 16  }
  0xf1   :  { %8728 = vsyncadd [#allocation24], 4294967280  ;;  %vm418_vm0 = vcmask 1040384   ;;  %v360_v0 = vld [vmem:[#allocation3 + $0x20] sm:$0x11]  ;;  %v10207_v6 = vmov 0  }
  0xf2   :  { %v361_v1 = vld [vmem:[#allocation3 + $0x28] sm:$0x11]  ;;  %v386_v2 = vunpack.c.l.b16 %v360_v0  ;;  %v387_v3 = vunpack.c.h.b16 %v360_v0  ;;  %v420_v7 = vsel %vm418_vm0, 65535, %v10207_v6  ;;  %v5888_v11 = vld [vmem:[#allocation3] sm:$0xf]  ;;  %s10227_s9 = sld [smem:[#allocation33_spill]] }
  0xf3   :  { %v389_v4 = vunpack.c.h.b16 %v361_v1  ;;  %v388_v5 = vunpack.c.l.b16 %v361_v1  ;;  %v7599_v12 = vld [vmem:[#allocation3 + $0xc] sm:$0xf0]  ;;  %v7597_v13 = vld [vmem:[#allocation3 + $0x4] sm:$0xf]  ;;  %v5890_v14 = vld [vmem:[#allocation3 + $0x10] sm:$0xf0] }
  0xf4   :  { %v394_v8 = vpack.c.b16 %v386_v2, %v386_v2  ;;  %v395_v9 = vpack.c.b16 %v387_v3, %v387_v3  ;;  %v7598_v18 = vld [vmem:[#allocation3 + $0xc] sm:$0xf]  ;;  %v5898_v19 = vld [vmem:[#allocation3 + $0x18] sm:$0xf0]  ;;  %v6036_v21 = vld [vmem:[#allocation5 + $0xe0] sm:$0xf]  ;;  %v5889_v23 = vor.u32 %v7599_v12, %v5888_v11  ;;  %v5893_v24 = vor.u32 %v7597_v13, %v5890_v14 }
  0xf5   :  { %v397_v10 = vpack.c.b16 %v389_v4, %v389_v4  ;;  %v396_v20 = vpack.c.b16 %v388_v5, %v388_v5  ;;  %v7631_v22 = vld [vmem:[#allocation5 + $0xec] sm:$0xf0]  ;;  %vm402_vm1 = vcmask 138240   ;;  %v5901_v28 = vor.u32 %v7598_v18, %v5898_v19  ;;  %v7630_v29 = vld [vmem:[#allocation5 + $0xec] sm:$0xf]  ;;  %s10228_s29 = sld [smem:[#allocation36_spill]] }
  0xf6   :  { %v422_v15 = vand.u32 %v420_v7, %v394_v8  ;;  %v425_v16 = vand.u32 %v420_v7, %v395_v9  ;;  %v6046_v30 = vld [vmem:[#allocation5 + $0xf8] sm:$0xf0]  ;;  %v5896_v31 = vld [vmem:[#allocation3 + $0x8] sm:$0xf]  ;;  %v9056_v33 = vor.u32 %v7631_v22, %v6036_v21  ;;  %v7600_v34 = vld [vmem:[#allocation3 + $0x14] sm:$0xf0] }
  0xf7   :  { %v431_v17 = vand.u32 %v420_v7, %v397_v10  ;;  %v428_v32 = vand.u32 %v420_v7, %v396_v20  ;;  %v7629_v35 = vld [vmem:[#allocation5 + $0xe4] sm:$0xf]  ;;  %v6038_v36 = vld [vmem:[#allocation5 + $0xf0] sm:$0xf0]  ;;  %v6020_v38 = vld [vmem:[#allocation5 + $0xc0] sm:$0xf]  ;;  %v9062_v45 = vor.u32 %v7630_v29, %v6046_v30  ;;  %v5897_v51 = vor.u32 %v7600_v34, %v5896_v31 }
  0xf8   :  { %439 = vmatpush.bf16.msra.mxu0 %v422_v15  ;;  %472 = vmatpush.bf16.msra.mxu1 %v425_v16  ;;  %v342_v25 = vld [vmem:[%s10227_s9] sm:$0xff]  ;;  %v343_v26 = vld [vmem:[%s10227_s9 + $0x8] sm:$0xff]  ;;  %v6044_v40 = vld [vmem:[#allocation5 + $0xe8] sm:$0xf]  ;;  %v9064_v46 = vor.u32 %v7629_v35, %v6038_v36  ;;  %s10286_s18 = sld [smem:[#allocation39_spill]]  ;;  %s8782_s17 = smov 10  }
  0xf9   :  { %v350_v27 = vld [vmem:[%s10227_s9 + $0x40] sm:$0xff]  ;;  %8002 = vmatpush.bf16.msra.mxu2 %v425_v16  ;;  %538 = vmatpush.bf16.msra.mxu3 %v431_v17  ;;  %v9058_v37 = vpack.c.bf16 %v343_v26, %v342_v25  ;;  %v7632_v42 = vld [vmem:[#allocation5 + $0xf4] sm:$0xf0]  ;;  %v7626_v43 = vld [vmem:[#allocation5 + $0xcc] sm:$0xf]  ;;  %s10288_s12 = sld [smem:[#allocation41_spill]] }
  0xfa   :  { %v7627_v39 = vld [vmem:[#allocation5 + $0xcc] sm:$0xf0]  ;;  %v9060_v41 = vpack.c.bf16 %v350_v27, %v350_v27  ;;  %v6030_v44 = vld [vmem:[#allocation5 + $0xd8] sm:$0xf0]  ;;  %v6004_v47 = vld [vmem:[#allocation5 + $0xa0] sm:$0xf]  ;;  %v9073_v53 = vor.u32 %v7632_v42, %v6044_v40 }
  0xfb   :  { %v7623_v48 = vld [vmem:[#allocation5 + $0xac] sm:$0xf0]  ;;  %v7625_v49 = vld [vmem:[#allocation5 + $0xc4] sm:$0xf]  ;;  %v6022_v50 = vld [vmem:[#allocation5 + $0xd0] sm:$0xf0]  ;;  %v9067_v52 = vor.u32 %v7627_v39, %v6020_v38  ;;  %v9080_v56 = vor.u32 %v7626_v43, %v6030_v44 }
  0xfc   :  { %440 = vmatpush.bf16.msra.mxu0 %v5889_v23  ;;  %473 = vmatpush.bf16.msra.mxu1 %v5893_v24  ;;  %v6028_v54 = vld [vmem:[#allocation5 + $0xc8] sm:$0xf]  ;;  %v7628_v55 = vld [vmem:[#allocation5 + $0xd4] sm:$0xf0]  ;;  %v9083_v57 = vor.u32 %v7625_v49, %v6022_v50  ;;  %v7622_v58 = vld [vmem:[#allocation5 + $0xac] sm:$0xf]  ;;  %v9086_v59 = vor.u32 %v7623_v48, %v6004_v47 }
  0xfd   :  { %8003 = vmatpush.bf16.msra.mxu2 %v5893_v24  ;;  %539 = vmatpush.bf16.msra.mxu3 %v5901_v28  ;;  %v6014_v60 = vld [vmem:[#allocation5 + $0xb8] sm:$0xf0]  ;;  %v7621_v61 = vld [vmem:[#allocation5 + $0xa4] sm:$0xf]  ;;  %v6006_v62 = vld [vmem:[#allocation5 + $0xb0] sm:$0xf0]  ;;  %v9089_v63 = vor.u32 %v7628_v55, %v6028_v54 }
  0xfe   :  { %v5988_v0 = vld [vmem:[#allocation5 + $0x80] sm:$0xf]  ;;  %v7619_v1 = vld [vmem:[#allocation5 + $0x8c] sm:$0xf0]  ;;  %v6012_v2 = vld [vmem:[#allocation5 + $0xa8] sm:$0xf]  ;;  %v9093_v7 = vor.u32 %v7622_v58, %v6014_v60  ;;  %v9095_v8 = vor.u32 %v7621_v61, %v6006_v62 }
  0xff   :  { %5902 = vmatmul.msk.bf16.vlgmr.msra.gmra.mxu0 %vm402_vm1, %v9058_v37  ;;  %5907 = vmatmul.msk.bf16.vlgmr.msra.gmra.mxu1 %vm402_vm1, %v9058_v37  ;;  %v7624_v3 = vld [vmem:[#allocation5 + $0xb4] sm:$0xf0]  ;;  %v7618_v4 = vld [vmem:[#allocation5 + $0x8c] sm:$0xf]  ;;  %v5998_v5 = vld [vmem:[#allocation5 + $0x98] sm:$0xf0]  ;;  %v9098_v10 = vor.u32 %v7619_v1, %v5988_v0 }
 0x100   :  { %797 = vmatpush.bf16.msrb.mxu0 %v9056_v33  ;;  %5911 = vmatmul.msk.bf16.vlgmr.msra.gmra.mxu2 %vm402_vm1, %v9060_v41  ;;  %v7617_v9 = vld [vmem:[#allocation5 + $0x84] sm:$0xf]  ;;  %v5990_v11 = vld [vmem:[#allocation5 + $0x90] sm:$0xf0]  ;;  %v9101_v12 = vor.u32 %v7624_v3, %v6012_v2  ;;  %v5972_v13 = vld [vmem:[#allocation5 + $0x60] sm:$0xf]  ;;  %v9107_v17 = vor.u32 %v7618_v4, %v5998_v5 }
 0x101   :  { %505 = vmatpush.bf16.msrb.mxu2 %v428_v32  ;;  %5917 = vmatmul.msk.bf16.vlgmr.msra.gmra.mxu3 %vm402_vm1, %v9058_v37  ;;  %v7615_v14 = vld [vmem:[#allocation5 + $0x6c] sm:$0xf0]  ;;  %v344_v15 = vld [vmem:[%s10227_s9 + $0x10] sm:$0xff]  ;;  %v345_v16 = vld [vmem:[%s10227_s9 + $0x18] sm:$0xff]  ;;  %v9109_v18 = vor.u32 %v7617_v9, %v5990_v11  ;;  %s10289_s4 = sld [smem:[#allocation34_spill]]  ;;  %s8783_s6 = smov 118  }
 0x102   :  { %836 = vmatpush.bf16.msrb.mxu3 %v9062_v45  ;;  %810 = vmatpush.bf16.msrb.mxu1 %v9064_v46  ;;  %v5996_v19 = vld [vmem:[#allocation5 + $0x88] sm:$0xf]  ;;  %v9112_v20 = vor.u32 %v7615_v14, %v5972_v13  ;;  %v7620_v21 = vld [vmem:[#allocation5 + $0x94] sm:$0xf0]  ;;  %v7614_v22 = vld [vmem:[#allocation5 + $0x6c] sm:$0xf]  ;;  %v352_v24 = vpack.c.bf16 %v345_v16, %v344_v15 }
 0x103   :  { %v5982_v23 = vld [vmem:[#allocation5 + $0x78] sm:$0xf0]  ;;  %v9117_v25 = vor.u32 %v7620_v21, %v5996_v19  ;;  %v7613_v27 = vld [vmem:[#allocation5 + $0x64] sm:$0xf]  ;;  %v5974_v28 = vld [vmem:[#allocation5 + $0x70] sm:$0xf0] }
 0x104   :  { %798 = vmatpush.bf16.msrb.mxu0 %v9067_v52  ;;  %v9119_v26 = vor.u32 %v7614_v22, %v5982_v23  ;;  %v9124_v29 = vor.u32 %v7613_v27, %v5974_v28  ;;  %v5956_v30 = vld [vmem:[#allocation5 + $0x40] sm:$0xf]  ;;  %v7611_v31 = vld [vmem:[#allocation5 + $0x4c] sm:$0xf0]  ;;  %v7609_v32 = vld [vmem:[#allocation5 + $0x44] sm:$0xf] }
 0x105   :  { %506 = vmatpush.bf16.msrb.mxu2 %v5897_v51  ;;  %v9131_v34 = vor.u32 %v7611_v31, %v5956_v30  ;;  %v5958_v35 = vld [vmem:[#allocation5 + $0x50] sm:$0xf0]  ;;  %v5980_v36 = vld [vmem:[#allocation5 + $0x68] sm:$0xf]  ;;  %v7616_v38 = vld [vmem:[#allocation5 + $0x74] sm:$0xf0] }
 0x106   :  { %837 = vmatpush.bf16.msrb.mxu3 %v9080_v56  ;;  %811 = vmatpush.bf16.msrb.mxu1 %v9083_v57  ;;  %v9134_v39 = vor.u32 %v7609_v32, %v5958_v35  ;;  %v9136_v40 = vor.u32 %v7616_v38, %v5980_v36  ;;  %v5966_v42 = vld [vmem:[#allocation5 + $0x58] sm:$0xf0]  ;;  %v7605_v43 = vld [vmem:[#allocation5 + $0x24] sm:$0xf]  ;;  %v5942_v47 = vld [vmem:[#allocation5 + $0x30] sm:$0xf0] }
 0x107   :  { %v5940_v48 = vld [vmem:[#allocation5 + $0x20] sm:$0xf]  ;;  %v7607_v49 = vld [vmem:[#allocation5 + $0x2c] sm:$0xf0]  ;;  %v9146_v51 = vor.u32 %v7605_v43, %v5942_v47  ;;  %v7601_v54 = vld [vmem:[#allocation5 + $0x4] sm:$0xf] }
 0x108   :  { %799 = vmatpush.bf16.msrb.mxu0 %v9086_v59  ;;  %v9141_v50 = vor.u32 %v7607_v49, %v5940_v48  ;;  %v5926_v55 = vld [vmem:[#allocation5 + $0x10] sm:$0xf0]  ;;  %v347_v60 = vld [vmem:[%s10227_s9 + $0x28] sm:$0xff]  ;;  %v5964_v0 = vld [vmem:[#allocation5 + $0x48] sm:$0xf]  ;;  %s10290_s11 = sld [smem:[#allocation37_spill]] }
 0x109   :  { %823 = vmatpush.bf16.msra.mxu2 %v9073_v53  ;;  %v346_v58 = vld [vmem:[%s10227_s9 + $0x20] sm:$0xff]  ;;  %v9152_v61 = vor.u32 %v7601_v54, %v5926_v55  ;;  %v7612_v1 = vld [vmem:[#allocation5 + $0x54] sm:$0xf0]  ;;  %v7606_v2 = vld [vmem:[#allocation5 + $0x2c] sm:$0xf]  ;;  %s10293_s0 = sld [smem:[#allocation40_spill]] }
 0x10a   :  { %838 = vmatpush.bf16.msrb.mxu3 %v9093_v7  ;;  %812 = vmatpush.bf16.msrb.mxu1 %v9095_v8  ;;  %v353_v62 = vpack.c.bf16 %v347_v60, %v346_v58  ;;  %v9159_v3 = vor.u32 %v7612_v1, %v5964_v0  ;;  %v5950_v4 = vld [vmem:[#allocation5 + $0x38] sm:$0xf0]  ;;  %v5924_v5 = vld [vmem:[#allocation5] sm:$0xf]  ;;  %v7603_v9 = vld [vmem:[#allocation5 + $0xc] sm:$0xf0] }
 0x10b   :  { %v9162_v11 = vor.u32 %v7606_v2, %v5950_v4  ;;  %v9164_v13 = vor.u32 %v7603_v9, %v5924_v5  ;;  %v5948_v14 = vld [vmem:[#allocation5 + $0x28] sm:$0xf]  ;;  %v7608_v15 = vld [vmem:[#allocation5 + $0x34] sm:$0xf0]  ;;  %v7602_v16 = vld [vmem:[#allocation5 + $0xc] sm:$0xf] }
 0x10c   :  { %800 = vmatpush.bf16.msrb.mxu0 %v9098_v10  ;;  %v9167_v19 = vor.u32 %v7608_v15, %v5948_v14  ;;  %v5934_v21 = vld [vmem:[#allocation5 + $0x18] sm:$0xf0]  ;;  %v348_v23 = vld [vmem:[%s10227_s9 + $0x30] sm:$0xff]  ;;  %v5932_v28 = vld [vmem:[#allocation5 + $0x8] sm:$0xf]  ;;  %s10295_s16 = sld [smem:[#allocation35_spill]] }
 0x10d   :  { %824 = vmatpush.bf16.msra.mxu2 %v9089_v63  ;;  %v9171_v22 = vor.u32 %v7602_v16, %v5934_v21  ;;  %v7604_v30 = vld [vmem:[#allocation5 + $0x14] sm:$0xf0]  ;;  %v362_v35 = vld [vmem:[%s10228_s29] sm:$0xf]  ;;  %s10296_s3 = sld [smem:[#allocation43_spill]] }
 0x10e   :  { %839 = vmatpush.bf16.msrb.mxu3 %v9107_v17  ;;  %813 = vmatpush.bf16.msrb.mxu1 %v9109_v18  ;;  %v9189_v31 = vor.u32 %v7604_v30, %v5932_v28  ;;  %v9261_v36 = vperm.slane %v362_v35, 1  ;;  %v9272_v48 = vperm.slane %v362_v35, 0  ;;  %v9282_v0 = vperm.slane %v362_v35, 3  ;;  %s10298_s7 = sld [smem:[#allocation42_spill]] }
 0x10f   :  { %5903 = vmatmul.msk.bf16.gmra.mxu0 %vm402_vm1, %v352_v24  ;;  %5908 = vmatmul.msk.bf16.gmra.mxu1 %vm402_vm1, %v352_v24  ;;  %s10299_s26 = sld [smem:[#allocation45_spill]] }
 0x110   :  { %801 = vmatpush.bf16.msrb.mxu0 %v9112_v20  ;;  %5912 = vmatmul.msk.bf16.vlgmr.msrb.gmra.mxu2 %vm402_vm1, %v9058_v37  ;;  %v7610_v37 = vld [vmem:[#allocation5 + $0x4c] sm:$0xf]  ;;  %s10300_s20 = sld [smem:[#allocation38_spill]] }
 0x111   :  { %825 = vmatpush.bf16.msra.mxu2 %v9101_v12  ;;  %5918 = vmatmul.msk.bf16.gmra.mxu3 %vm402_vm1, %v352_v24  ;;  %v9139_v44 = vor.u32 %v7610_v37, %v5966_v42  ;;  %s10301_s24 = sld [smem:[#allocation47_spill]] }
 0x112   :  { %840 = vmatpush.bf16.msrb.mxu3 %v9119_v26  ;;  %814 = vmatpush.bf16.msrb.mxu1 %v9124_v29  ;;  %s10302_s30 = sld [smem:[#allocation44_spill]] }
 0x114   :  { %802 = vmatpush.bf16.msrb.mxu0 %v9131_v34 }
 0x115   :  { %826 = vmatpush.bf16.msra.mxu2 %v9117_v25 }
 0x116   :  { %841 = vmatpush.bf16.msrb.mxu3 %v9139_v44  ;;  %815 = vmatpush.bf16.msrb.mxu1 %v9134_v39 }
 0x118   :  { %803 = vmatpush.bf16.msrb.mxu0 %v9141_v50 }
 0x119   :  { %827 = vmatpush.bf16.msra.mxu2 %v9136_v40 }
 0x11a   :  { %816 = vmatpush.bf16.msrb.mxu1 %v9146_v51  ;;  %842 = vmatpush.bf16.msrb.mxu3 %v9162_v11 }
 0x11c   :  { %804 = vmatpush.bf16.msrb.mxu0 %v9164_v13 }
 0x11d   :  { %828 = vmatpush.bf16.msra.mxu2 %v9159_v3 }
 0x11e   :  { %817 = vmatpush.bf16.msrb.mxu1 %v9152_v61  ;;  %843 = vmatpush.bf16.msrb.mxu3 %v9171_v22 }
 0x11f   :  { %5904 = vmatmul.msk.bf16.gmra.mxu0 %vm402_vm1, %v353_v62  ;;  %5909 = vmatmul.msk.bf16.gmra.mxu1 %vm402_vm1, %v353_v62 }
 0x120   :  { %5913 = vmatmul.msk.bf16.gmra.mxu2 %vm402_vm1, %v352_v24  ;;  %921 = vmatpush.bf16.msra.mxu0 %v9056_v33  ;;  %v349_v24 = vld [vmem:[%s10227_s9 + $0x38] sm:$0xff] }
 0x121   :  { %5919 = vmatmul.msk.bf16.gmra.mxu3 %vm402_vm1, %v353_v62  ;;  %829 = vmatpush.bf16.msra.mxu2 %v9167_v19  ;;  %v354_v27 = vpack.c.bf16 %v349_v24, %v348_v23 }
 0x122   :  { %934 = vmatpush.bf16.msra.mxu1 %v9064_v46  ;;  %960 = vmatpush.bf16.msra.mxu3 %v9062_v45 }
 0x124   :  { %922 = vmatpush.bf16.msra.mxu0 %v9067_v52 }
 0x125   :  { %830 = vmatpush.bf16.msra.mxu2 %v9189_v31 }
 0x126   :  { %935 = vmatpush.bf16.msra.mxu1 %v9083_v57  ;;  %961 = vmatpush.bf16.msra.mxu3 %v9080_v56 }
 0x128   :  { %923 = vmatpush.bf16.msra.mxu0 %v9086_v59 }
 0x129   :  { %947 = vmatpush.bf16.msrb.mxu2 %v9073_v53 }
 0x12a   :  { %936 = vmatpush.bf16.msra.mxu1 %v9095_v8  ;;  %962 = vmatpush.bf16.msra.mxu3 %v9093_v7 }
 0x12c   :  { %924 = vmatpush.bf16.msra.mxu0 %v9098_v10 }
 0x12d   :  { %948 = vmatpush.bf16.msrb.mxu2 %v9089_v63 }
 0x12e   :  { %937 = vmatpush.bf16.msra.mxu1 %v9109_v18  ;;  %963 = vmatpush.bf16.msra.mxu3 %v9107_v17 }
 0x12f   :  { %5905 = vmatmul.msk.bf16.gmra.mxu0 %vm402_vm1, %v354_v27  ;;  %5910 = vmatmul.msk.bf16.gmra.mxu1 %vm402_vm1, %v354_v27 }
 0x130   :  { %5914 = vmatmul.msk.bf16.gmra.mxu2 %vm402_vm1, %v353_v62  ;;  %925 = vmatpush.bf16.msra.mxu0 %v9112_v20 }
 0x131   :  { %5920 = vmatmul.msk.bf16.gmra.mxu3 %vm402_vm1, %v354_v27  ;;  %949 = vmatpush.bf16.msrb.mxu2 %v9101_v12 }
 0x132   :  { %938 = vmatpush.bf16.msra.mxu1 %v9124_v29  ;;  %964 = vmatpush.bf16.msra.mxu3 %v9119_v26 }
 0x134   :  { %926 = vmatpush.bf16.msra.mxu0 %v9131_v34 }
 0x135   :  { %950 = vmatpush.bf16.msrb.mxu2 %v9117_v25 }
 0x136   :  { %939 = vmatpush.bf16.msra.mxu1 %v9134_v39  ;;  %965 = vmatpush.bf16.msra.mxu3 %v9139_v44 }
 0x138   :  { %927 = vmatpush.bf16.msra.mxu0 %v9141_v50 }
 0x139   :  { %951 = vmatpush.bf16.msrb.mxu2 %v9136_v40 }
 0x13a   :  { %940 = vmatpush.bf16.msra.mxu1 %v9146_v51  ;;  %966 = vmatpush.bf16.msra.mxu3 %v9162_v11 }
 0x13c   :  { %928 = vmatpush.bf16.msra.mxu0 %v9164_v13 }
 0x13d   :  { %952 = vmatpush.bf16.msrb.mxu2 %v9159_v3 }
 0x13e   :  { %941 = vmatpush.bf16.msra.mxu1 %v9152_v61  ;;  %967 = vmatpush.bf16.msra.mxu3 %v9171_v22 }
 0x13f   :  { %5906 = vmatmul.msk.bf16.gmra.mxu0 %vm402_vm1, %v9060_v41  ;;  %818 = vmatmul.bf16.vlgmr.msrb.gmra.mxu1 %v10207_v6 }
 0x140   :  { %5915 = vmatmul.msk.bf16.gmra.mxu2 %vm402_vm1, %v354_v27  ;;  %v9303_v27 = vperm.slane %v362_v35, 2 }
 0x141   :  { %5921 = vmatmul.msk.bf16.gmra.mxu3 %vm402_vm1, %v9060_v41  ;;  %953 = vmatpush.bf16.msrb.mxu2 %v9167_v19 }
 0x142   :  { %1058 = vmatpush.bf16.msrb.mxu1 %v9064_v46  ;;  %10239 = vst [vmem:[#allocation59_spill] sm:$0xff] %v9303_v27 }
 0x145   :  { %954 = vmatpush.bf16.msrb.mxu2 %v9189_v31 }
 0x146   :  { %1059 = vmatpush.bf16.msrb.mxu1 %v9083_v57 }
 0x14a   :  { %1060 = vmatpush.bf16.msrb.mxu1 %v9095_v8 }
 0x14e   :  { %1061 = vmatpush.bf16.msrb.mxu1 %v9109_v18 }
 0x14f   :  { %805 = vmatmul.bf16.vlgmr.msrb.gmra.mxu0 %v10207_v6 }
 0x150   :  { %5916 = vmatmul.msk.bf16.gmra.mxu2 %vm402_vm1, %v9060_v41  ;;  %1045 = vmatpush.bf16.msrb.mxu0 %v9056_v33 }
 0x151   :  { %844 = vmatmul.bf16.vlgmr.msrb.gmra.mxu3 %v10207_v6 }
 0x152   :  { %1084 = vmatpush.bf16.msrb.mxu3 %v9062_v45  ;;  %1062 = vmatpush.bf16.msrb.mxu1 %v9124_v29 }
 0x154   :  { %1046 = vmatpush.bf16.msrb.mxu0 %v9067_v52 }
 0x156   :  { %1085 = vmatpush.bf16.msrb.mxu3 %v9080_v56  ;;  %1063 = vmatpush.bf16.msrb.mxu1 %v9134_v39 }
 0x158   :  { %1047 = vmatpush.bf16.msrb.mxu0 %v9086_v59 }
 0x15a   :  { %1086 = vmatpush.bf16.msrb.mxu3 %v9093_v7  ;;  %1064 = vmatpush.bf16.msrb.mxu1 %v9146_v51 }
 0x15c   :  { %1048 = vmatpush.bf16.msrb.mxu0 %v9098_v10 }
 0x15e   :  { %1087 = vmatpush.bf16.msrb.mxu3 %v9107_v17  ;;  %1065 = vmatpush.bf16.msrb.mxu1 %v9152_v61 }
 0x160   :  { %831 = vmatmul.bf16.vlgmr.msra.gmra.mxu2 %v10207_v6  ;;  %1049 = vmatpush.bf16.msrb.mxu0 %v9112_v20 }
 0x161   :  { %1071 = vmatpush.bf16.msra.mxu2 %v9073_v53 }
 0x162   :  { %1088 = vmatpush.bf16.msrb.mxu3 %v9119_v26 }
 0x164   :  { %1050 = vmatpush.bf16.msrb.mxu0 %v9131_v34 }
 0x165   :  { %1072 = vmatpush.bf16.msra.mxu2 %v9089_v63 }
 0x166   :  { %1089 = vmatpush.bf16.msrb.mxu3 %v9139_v44 }
 0x168   :  { %1051 = vmatpush.bf16.msrb.mxu0 %v9141_v50 }
 0x169   :  { %1073 = vmatpush.bf16.msra.mxu2 %v9101_v12 }
 0x16a   :  { %1090 = vmatpush.bf16.msrb.mxu3 %v9162_v11 }
 0x16c   :  { %1052 = vmatpush.bf16.msrb.mxu0 %v9164_v13 }
 0x16d   :  { %1074 = vmatpush.bf16.msra.mxu2 %v9117_v25 }
 0x16e   :  { %1091 = vmatpush.bf16.msrb.mxu3 %v9171_v22 }
 0x171   :  { %1075 = vmatpush.bf16.msra.mxu2 %v9136_v40 }
 0x175   :  { %1076 = vmatpush.bf16.msra.mxu2 %v9159_v3 }
 0x179   :  { %1077 = vmatpush.bf16.msra.mxu2 %v9167_v19 }
 0x17c   :  { %v9257_v41 = vpop.f32.mrf.mxu0  ;;  %v475_v32 = vpop.f32.mrf.mxu1 }
 0x17d   :  { %1078 = vmatpush.bf16.msra.mxu2 %v9189_v31 }
 0x183   :  { %v495_v38 = vpop.f32.mrf.mxu2 }
 0x184   :  { %v9263_v37 = vpop.f32.mrf.mxu3  ;;  %v9266_v42 = vadd.f32 %v495_v38, %v9261_v36  ;;  %v9268_v43 = vpop.f32.mrf.mxu0 }
 0x185   :  { %v9270_v47 = vpop.f32.mrf.mxu1 }
 0x186   :  { %10229 = vst [vmem:[#allocation49_spill] sm:$0xff] %v9266_v42 }
 0x18b   :  { %v497_v49 = vpop.f32.mrf.mxu2 }
 0x18c   :  { %v9274_v54 = vpop.f32.mrf.mxu3  ;;  %v447_v55 = vpop.f32.mrf.mxu0 }
 0x18d   :  { %v480_v58 = vpop.f32.mrf.mxu1  ;;  %v9277_v60 = vadd.f32 %v447_v55, %v9272_v48 }
 0x18e   :  { %v9280_v62 = vadd.f32 %v480_v58, %v9261_v36 }
 0x18f   :  { %10230 = vst [vmem:[#allocation50_spill] sm:$0xff] %v9277_v60 }
 0x190   :  { %10231 = vst [vmem:[#allocation51_spill] sm:$0xff] %v9280_v62 }
 0x193   :  { %v9284_v1 = vpop.f32.mrf.mxu2 }
 0x194   :  { %v546_v2 = vpop.f32.mrf.mxu3  ;;  %v9289_v5 = vpop.f32.mrf.mxu0 }
 0x195   :  { %v9287_v4 = vadd.f32 %v546_v2, %v9282_v0  ;;  %10233 = vst [vmem:[#allocation53_spill] sm:$0xff] %v9289_v5  ;;  %v9291_v9 = vpop.f32.mrf.mxu1 }
 0x196   :  { %10234 = vst [vmem:[#allocation54_spill] sm:$0xff] %v9291_v9 }
 0x197   :  { %10232 = vst [vmem:[#allocation52_spill] sm:$0xff] %v9287_v4 }
 0x19b   :  { %v9293_v14 = vpop.f32.mrf.mxu2 }
 0x19c   :  { %10235 = vst [vmem:[#allocation55_spill] sm:$0xff] %v9293_v14  ;;  %v9295_v15 = vpop.f32.mrf.mxu3  ;;  %v452_v16 = vpop.f32.mrf.mxu0 }
 0x19d   :  { %10236 = vst [vmem:[#allocation56_spill] sm:$0xff] %v9295_v15  ;;  %v485_v21 = vpop.f32.mrf.mxu1  ;;  %v9298_v23 = vadd.f32 %v452_v16, %v9272_v48  ;;  %v443_v15 = vadd.f32 %v9257_v41, %v9272_v48 }
 0x19e   :  { %v9301_v24 = vadd.f32 %v485_v21, %v9261_v36 }
 0x19f   :  { %10237 = vst [vmem:[#allocation57_spill] sm:$0xff] %v9298_v23 }
 0x1a0   :  { %10238 = vst [vmem:[#allocation58_spill] sm:$0xff] %v9301_v24 }
 0x1a3   :  { %v513_v28 = vpop.f32.mrf.mxu2 }
 0x1a4   :  { %v551_v30 = vpop.f32.mrf.mxu3  ;;  %v9306_v38 = vadd.f32 %v513_v28, %v9303_v27  ;;  %v9311_v55 = vpop.f32.mrf.mxu0 }
 0x1a5   :  { %v9309_v49 = vadd.f32 %v551_v30, %v9282_v0  ;;  %10242 = vst [vmem:[#allocation62_spill] sm:$0xff] %v9311_v55  ;;  %v9313_v58 = vpop.f32.mrf.mxu1 }
 0x1a6   :  { %10240 = vst [vmem:[#allocation60_spill] sm:$0xff] %v9306_v38 }
 0x1a7   :  { %10241 = vst [vmem:[#allocation61_spill] sm:$0xff] %v9309_v49 }
 0x1a8   :  { %10243 = vst [vmem:[#allocation63_spill] sm:$0xff] %v9313_v58 }
 0x1ab   :  { %v9315_v2 = vpop.f32.mrf.mxu2 }
 0x1ac   :  { %10244 = vst [vmem:[#allocation64_spill] sm:$0xff] %v9315_v2  ;;  %v9317_v16 = vpop.f32.mrf.mxu3  ;;  %v457_v21 = vpop.f32.mrf.mxu0 }
 0x1ad   :  { %10245 = vst [vmem:[#allocation65_spill] sm:$0xff] %v9317_v16  ;;  %v490_v6 = vpop.f32.mrf.mxu1  ;;  %v9320_v35 = vadd.f32 %v457_v21, %v9272_v48  ;;  %v476_v16 = vadd.f32 %v475_v32, %v9261_v36 }
 0x1ae   :  { %v9323_v42 = vadd.f32 %v490_v6, %v9261_v36 }
 0x1af   :  { %10246 = vst [vmem:[#allocation66_spill] sm:$0xff] %v9320_v35 }
 0x1b0   :  { %10247 = vst [vmem:[#allocation67_spill] sm:$0xff] %v9323_v42 }
 0x1b3   :  { %v518_v28 = vpop.f32.mrf.mxu2 }
 0x1b4   :  { %v556_v24 = vpop.f32.mrf.mxu3  ;;  %v9326_v30 = vadd.f32 %v518_v28, %v9303_v27  ;;  %v9331_v58 = vpop.f32.mrf.mxu0 }
 0x1b5   :  { %v9329_v55 = vadd.f32 %v556_v24, %v9282_v0  ;;  %10250 = vst [vmem:[#allocation70_spill] sm:$0xff] %v9331_v58  ;;  %v9333_v49 = vpop.f32.mrf.mxu1 }
 0x1b6   :  { %10248 = vst [vmem:[#allocation68_spill] sm:$0xff] %v9326_v30 }
 0x1b7   :  { %10249 = vst [vmem:[#allocation69_spill] sm:$0xff] %v9329_v55 }
 0x1b8   :  { %10251 = vst [vmem:[#allocation71_spill] sm:$0xff] %v9333_v49 }
 0x1bb   :  { %v9336_v23 = vpop.f32.mrf.mxu2 }
 0x1bc   :  { %10252 = vst [vmem:[#allocation72_spill] sm:$0xff] %v9336_v23  ;;  %v9338_v21 = vpop.f32.mrf.mxu3  ;;  %v462_v6 = vpop.f32.mrf.mxu0 }
 0x1bd   :  { %10253 = vst [vmem:[#allocation73_spill] sm:$0xff] %v9338_v21  ;;  %v819_v42 = vpop.f32.mrf.mxu1  ;;  %v9341_v35 = vadd.f32 %v462_v6, %v9272_v48 }
 0x1be   :  { %v850_v28 = vadd.f32 %v819_v42, %v476_v16 }
 0x1bf   :  { %10254 = vst [vmem:[#allocation74_spill] sm:$0xff] %v9341_v35 }
 0x1c0   :  { %v6051_v30 = vmul.f32 -1.442695, %v850_v28 }
 0x1c2   :  { %8069 = vpow2.f32 %v6051_v30 }
 0x1c3   :  { %v523_v24 = vpop.f32.mrf.mxu2 }
 0x1c4   :  { %v561_v55 = vpop.f32.mrf.mxu3  ;;  %v9344_v58 = vadd.f32 %v523_v24, %v9303_v27  ;;  %v464_v32 = vpop.f32.mrf.mxu0  ;;  %v542_v24 = vadd.f32 %v9263_v37, %v9282_v0 }
 0x1c5   :  { %v9347_v49 = vadd.f32 %v561_v55, %v9282_v0  ;;  %v821_v23 = vpop.f32.mrf.mxu1 }
 0x1c6   :  { %10255 = vst [vmem:[#allocation75_spill] sm:$0xff] %v9344_v58 }
 0x1c7   :  { %10256 = vst [vmem:[#allocation76_spill] sm:$0xff] %v9347_v49 }
 0x1c8   :  { %v8070_v2 = vpop.eup %8069 }
 0x1c9   :  { %v875_v21 = vadd.f32 1.0, %v8070_v2 }
 0x1cb   :  { %v9351_v6 = vpop.f32.mrf.mxu2  ;;  %8071 = vrcp.f32 %v875_v21  ;;  %vm881_vm3 = vweird.f32 %v875_v21 }
 0x1cc   :  { %10257 = vst [vmem:[#allocation77_spill] sm:$0xff] %v9351_v6  ;;  %v563_v42 = vpop.f32.mrf.mxu3  ;;  %v806_v16 = vpop.f32.mrf.mxu0 }
 0x1cd   :  { %v849_v30 = vadd.f32 %v806_v16, %v443_v15 }
 0x1cf   :  { %v6050_v28 = vmul.f32 -1.442695, %v849_v30 }
 0x1d1   :  { %8073 = vpow2.f32 %v6050_v28  ;;  %v8072_v32 = vpop.eup %8071 }
 0x1d2   :  { %v877_v6 = vmul.f32 %v8072_v32, %v875_v21  ;;  %vm882_vm2 = vweird.f32 %v8072_v32 }
 0x1d3   :  { %v528_v55 = vpop.f32.mrf.mxu2  ;;  %vm9360_vm5 = vmor %vm881_vm3, %vm882_vm2 }
 0x1d4   :  { %v845_v49 = vpop.f32.mrf.mxu3  ;;  %v9356_v23 = vadd.f32 %v528_v55, %v9303_v27  ;;  %v808_v35 = vpop.f32.mrf.mxu0  ;;  %v878_v15 = vsub.f32 1.0, %v877_v6  ;;  %v509_v55 = vadd.f32 %v9284_v1, %v9303_v27 }
 0x1d5   :  { %v852_v2 = vadd.f32 %v845_v49, %v542_v24 }
 0x1d6   :  { %10258 = vst [vmem:[#allocation78_spill] sm:$0xff] %v9356_v23  ;;  %v879_v9 = vmul.f32 %v8072_v32, %v878_v15 }
 0x1d7   :  { %v6052_v41 = vmul.f32 -1.442695, %v852_v2  ;;  %v8074_v58 = vpop.eup %8073 }
 0x1d8   :  { %v856_v42 = vadd.f32 1.0, %v8074_v58  ;;  %v880_v24 = vadd.f32 %v8072_v32, %v879_v9  ;;  %v887_v58 = vand.u32 2147483648, %v875_v21 }
 0x1d9   :  { %8075 = vpow2.f32 %v6052_v41 }
 0x1da   :  { %8077 = vrcp.f32 %v856_v42  ;;  %v868_v41 = vand.u32 2147483648, %v856_v42  ;;  %vm862_vm6 = vweird.f32 %v856_v42  ;;  %v884_v1 = vsel %vm9360_vm5, %v8072_v32, %v880_v24 }
 0x1db   :  { %v530_v16 = vpop.f32.mrf.mxu2  ;;  %v888_v9 = vor.u32 1.1754944e-38, %v887_v58 }
 0x1dc   :  { %v847_v30 = vpop.f32.mrf.mxu3  ;;  %v866_v16 = vand.u32 2147483647, %v856_v42 }
 0x1dd   :  { %v885_v30 = vand.u32 2147483647, %v875_v21 }
 0x1de   :  { %vm867_vm8 = vcmp.eq.f32.partialorder %v866_v16, 8.507059e+37 }
 0x1df   :  { %v8076_v28 = vpop.eup %8075  ;;  %vm886_vm9 = vcmp.eq.f32.partialorder %v885_v30, 8.507059e+37 }
 0x1e0   :  { %v895_v37 = vadd.f32 1.0, %v8076_v28  ;;  %v8078_v5 = vpop.eup %8077  ;;  %v889_v4 = vsel %vm886_vm9, %v888_v9, %v884_v1  ;;  %v544_v1 = vadd.f32 %v9274_v54, %v9282_v0 }
 0x1e1   :  { %v858_v38 = vmul.f32 %v8078_v5, %v856_v42  ;;  %vm863_vm4 = vweird.f32 %v8078_v5 }
 0x1e2   :  { %8079 = vrcp.f32 %v895_v37  ;;  %vm864_vm7 = vmor %vm862_vm6, %vm863_vm4  ;;  %v907_v32 = vand.u32 2147483648, %v895_v37  ;;  %vm901_vm11 = vweird.f32 %v895_v37  ;;  %v905_v24 = vand.u32 2147483647, %v895_v37 }
 0x1e3   :  { %v859_v49 = vsub.f32 1.0, %v858_v38  ;;  %v832_v35 = vpop.f32.mrf.mxu2 }
 0x1e4   :  { %v851_v2 = vadd.f32 %v832_v35, %v509_v55  ;;  %v869_v55 = vor.u32 1.1754944e-38, %v868_v41  ;;  %vm906_vm13 = vcmp.eq.f32.partialorder %v905_v24, 8.507059e+37 }
 0x1e5   :  { %v860_v6 = vmul.f32 %v8078_v5, %v859_v49 }
 0x1e6   :  { %8081 = vtanh.f32 %v851_v2  ;;  %v911_v2 = vmul.f32 0.0, %v889_v4  ;;  %v478_v4 = vadd.f32 %v9270_v47, %v9261_v36 }
 0x1e7   :  { %v861_v23 = vadd.f32 %v8078_v5, %v860_v6 }
 0x1e8   :  { %v8080_v28 = vpop.eup %8079 }
 0x1e9   :  { %v897_v38 = vmul.f32 %v8080_v28, %v895_v37  ;;  %v865_v35 = vsel %vm864_vm7, %v8078_v5, %v861_v23  ;;  %vm902_vm10 = vweird.f32 %v8080_v28  ;;  %v908_v23 = vor.u32 1.1754944e-38, %v907_v32 }
 0x1ea   :  { %v870_v21 = vsel %vm867_vm8, %v869_v55, %v865_v35  ;;  %vm903_vm12 = vmor %vm901_vm11, %vm902_vm10 }
 0x1eb   :  { %v898_v49 = vsub.f32 1.0, %v897_v38  ;;  %v834_v62 = vpop.f32.mrf.mxu2 }
 0x1ec   :  { %v8082_v60 = vpop.eup %8081 }
 0x1ed   :  { %v899_v14 = vmul.f32 %v8080_v28, %v898_v49  ;;  %v912_v27 = vmul.f32 %v8082_v60, %v870_v21  ;;  %v445_v60 = vadd.f32 %v9268_v43, %v9272_v48 }
 0x1ef   :  { %v9366_v6 = vadd.f32 %v912_v27, %v911_v2  ;;  %v900_v42 = vadd.f32 %v8080_v28, %v899_v14 }
 0x1f1   :  { %8083 = vtanh.f32 %v9366_v6  ;;  %v904_v5 = vsel %vm903_vm12, %v8080_v28, %v900_v42 }
 0x1f2   :  { %v909_v41 = vsel %vm906_vm13, %v908_v23, %v904_v5  ;;  %v10261_v23 = vld [vmem:[#allocation59_spill] sm:$0xff] }
 0x1f7   :  { %v8084_v58 = vpop.eup %8083 }
 0x1f8   :  { %v915_v62 = vmul.f32 %v8084_v58, %v909_v41  ;;  %v10262_v58 = vld [vmem:[#allocation55_spill] sm:$0xff] }
 0x1f9   :  { %v511_v54 = vadd.f32 %v10262_v58, %v10261_v23 }
 0x1fa   :  { %v920_v16 = vpack.c.bf16 %v915_v62, %v915_v62 }
 0x1fc   :  { %929 = vmatmul.bf16.vlgmr.msra.gmra.mxu0 %v920_v16  ;;  %942 = vmatmul.bf16.vlgmr.msra.gmra.mxu1 %v920_v16 }
 0x1fd   :  { %955 = vmatmul.bf16.vlgmr.msrb.gmra.mxu2 %v920_v16  ;;  %968 = vmatmul.bf16.vlgmr.msra.gmra.mxu3 %v920_v16 }
 0x1fe   :  { %1169 = vmatpush.bf16.msra.mxu0 %v9056_v33  ;;  %1182 = vmatpush.bf16.msra.mxu1 %v9064_v46 }
 0x1ff   :  { %1195 = vmatpush.bf16.msrb.mxu2 %v9073_v53  ;;  %1208 = vmatpush.bf16.msra.mxu3 %v9062_v45 }
 0x202   :  { %1170 = vmatpush.bf16.msra.mxu0 %v9067_v52  ;;  %1183 = vmatpush.bf16.msra.mxu1 %v9083_v57 }
 0x203   :  { %1196 = vmatpush.bf16.msrb.mxu2 %v9089_v63  ;;  %1209 = vmatpush.bf16.msra.mxu3 %v9080_v56 }
 0x206   :  { %1171 = vmatpush.bf16.msra.mxu0 %v9086_v59  ;;  %1184 = vmatpush.bf16.msra.mxu1 %v9095_v8 }
 0x207   :  { %1197 = vmatpush.bf16.msrb.mxu2 %v9101_v12  ;;  %1210 = vmatpush.bf16.msra.mxu3 %v9093_v7 }
 0x20a   :  { %1172 = vmatpush.bf16.msra.mxu0 %v9098_v10  ;;  %1185 = vmatpush.bf16.msra.mxu1 %v9109_v18 }
 0x20b   :  { %1198 = vmatpush.bf16.msrb.mxu2 %v9117_v25  ;;  %1211 = vmatpush.bf16.msra.mxu3 %v9107_v17 }
 0x20e   :  { %1173 = vmatpush.bf16.msra.mxu0 %v9112_v20  ;;  %1186 = vmatpush.bf16.msra.mxu1 %v9124_v29 }
 0x20f   :  { %1199 = vmatpush.bf16.msrb.mxu2 %v9136_v40  ;;  %1212 = vmatpush.bf16.msra.mxu3 %v9119_v26 }
 0x212   :  { %1174 = vmatpush.bf16.msra.mxu0 %v9131_v34  ;;  %1187 = vmatpush.bf16.msra.mxu1 %v9134_v39 }
 0x213   :  { %1200 = vmatpush.bf16.msrb.mxu2 %v9159_v3  ;;  %1213 = vmatpush.bf16.msra.mxu3 %v9139_v44 }
 0x216   :  { %1175 = vmatpush.bf16.msra.mxu0 %v9141_v50  ;;  %1188 = vmatpush.bf16.msra.mxu1 %v9146_v51 }
 0x217   :  { %1201 = vmatpush.bf16.msrb.mxu2 %v9167_v19  ;;  %1214 = vmatpush.bf16.msra.mxu3 %v9162_v11 }
 0x21a   :  { %1176 = vmatpush.bf16.msra.mxu0 %v9164_v13  ;;  %1189 = vmatpush.bf16.msra.mxu1 %v9152_v61 }
 0x21b   :  { %1202 = vmatpush.bf16.msrb.mxu2 %v9189_v31  ;;  %1215 = vmatpush.bf16.msra.mxu3 %v9171_v22 }
 0x279   :  { %v930_v14 = vpop.f32.mrf.mxu0  ;;  %v943_v27 = vpop.f32.mrf.mxu1 }
 0x27a   :  { %v973_v37 = vadd.f32 %v930_v14, %v445_v60  ;;  %v974_v30 = vadd.f32 %v943_v27, %v478_v4 }
 0x27c   :  { %v6053_v15 = vmul.f32 -1.442695, %v973_v37  ;;  %v6054_v28 = vmul.f32 -1.442695, %v974_v30 }
 0x27e   :  { %8085 = vpow2.f32 %v6053_v15 }
 0x27f   :  { %8087 = vpow2.f32 %v6054_v28 }
 0x280   :  { %v956_v9 = vpop.f32.mrf.mxu2  ;;  %v969_v38 = vpop.f32.mrf.mxu3 }
 0x281   :  { %v976_v55 = vadd.f32 %v969_v38, %v544_v1  ;;  %v932_v35 = vpop.f32.mrf.mxu0  ;;  %v945_v49 = vpop.f32.mrf.mxu1  ;;  %v975_v16 = vadd.f32 %v956_v9, %v511_v54 }
 0x283   :  { %v6055_v43 = vmul.f32 -1.442695, %v976_v55 }
 0x284   :  { %v8086_v21 = vpop.eup %8085 }
 0x285   :  { %v8088_v2 = vpop.eup %8087  ;;  %v980_v47 = vadd.f32 1.0, %v8086_v21  ;;  %8089 = vpow2.f32 %v6055_v43 }
 0x286   :  { %v999_v42 = vadd.f32 1.0, %v8088_v2 }
 0x287   :  { %8091 = vrcp.f32 %v980_v47  ;;  %v992_v30 = vand.u32 2147483648, %v980_v47  ;;  %v990_v1 = vand.u32 2147483647, %v980_v47  ;;  %vm986_vm0 = vweird.f32 %v980_v47 }
 0x288   :  { %8093 = vrcp.f32 %v999_v42  ;;  %v958_v32 = vpop.f32.mrf.mxu2  ;;  %v971_v24 = vpop.f32.mrf.mxu3  ;;  %v1011_v15 = vand.u32 2147483648, %v999_v42  ;;  %v1009_v55 = vand.u32 2147483647, %v999_v42  ;;  %vm1005_vm1 = vweird.f32 %v999_v42 }
 0x289   :  { %v993_v9 = vor.u32 1.1754944e-38, %v992_v30  ;;  %vm991_vm4 = vcmp.eq.f32.partialorder %v990_v1, 8.507059e+37 }
 0x28a   :  { %v1012_v2 = vor.u32 1.1754944e-38, %v1011_v15  ;;  %vm1010_vm5 = vcmp.eq.f32.partialorder %v1009_v55, 8.507059e+37  ;;  %v10263_v55 = vld [vmem:[#allocation50_spill] sm:$0xff] }
 0x28b   :  { %v8090_v5 = vpop.eup %8089 }
 0x28c   :  { %v1019_v41 = vadd.f32 1.0, %v8090_v5 }
 0x28d   :  { %v8092_v62 = vpop.eup %8091 }
 0x28e   :  { %v8094_v60 = vpop.eup %8093  ;;  %v982_v4 = vmul.f32 %v8092_v62, %v980_v47  ;;  %8095 = vrcp.f32 %v1019_v41  ;;  %vm987_vm14 = vweird.f32 %v8092_v62  ;;  %vm1025_vm7 = vweird.f32 %v1019_v41 }
 0x28f   :  { %v1001_v14 = vmul.f32 %v8094_v60, %v999_v42  ;;  %8097 = vtanh.f32 %v975_v16  ;;  %vm1006_vm15 = vweird.f32 %v8094_v60  ;;  %vm988_vm2 = vmor %vm986_vm0, %vm987_vm14 }
 0x290   :  { %v983_v27 = vsub.f32 1.0, %v982_v4  ;;  %vm1007_vm3 = vmor %vm1005_vm1, %vm1006_vm15 }
 0x291   :  { %v1002_v37 = vsub.f32 1.0, %v1001_v14 }
 0x292   :  { %v984_v28 = vmul.f32 %v8092_v62, %v983_v27 }
 0x293   :  { %v1003_v38 = vmul.f32 %v8094_v60, %v1002_v37  ;;  %v1031_v37 = vand.u32 2147483648, %v1019_v41 }
 0x294   :  { %v8096_v35 = vpop.eup %8095  ;;  %v985_v49 = vadd.f32 %v8092_v62, %v984_v28 }
 0x295   :  { %v1004_v43 = vadd.f32 %v8094_v60, %v1003_v38  ;;  %v1021_v21 = vmul.f32 %v8096_v35, %v1019_v41  ;;  %v8098_v24 = vpop.eup %8097  ;;  %vm1026_vm6 = vweird.f32 %v8096_v35  ;;  %v1032_v15 = vor.u32 1.1754944e-38, %v1031_v37 }
 0x296   :  { %v989_v32 = vsel %vm988_vm2, %v8092_v62, %v985_v49  ;;  %v1029_v62 = vand.u32 2147483647, %v1019_v41  ;;  %vm1027_vm8 = vmor %vm1025_vm7, %vm1026_vm6  ;;  %v10264_v49 = vld [vmem:[#allocation51_spill] sm:$0xff] }
 0x297   :  { %v994_v5 = vsel %vm991_vm4, %v993_v9, %v989_v32  ;;  %v1008_v58 = vsel %vm1007_vm3, %v8094_v60, %v1004_v43  ;;  %v1022_v54 = vsub.f32 1.0, %v1021_v21 }
 0x298   :  { %v1013_v16 = vsel %vm1010_vm5, %v1012_v2, %v1008_v58  ;;  %v1036_v4 = vmul.f32 %v8098_v24, %v994_v5  ;;  %vm1030_vm9 = vcmp.eq.f32.partialorder %v1029_v62, 8.507059e+37  ;;  %v10265_v24 = vld [vmem:[#allocation52_spill] sm:$0xff] }
 0x299   :  { %v1035_v14 = vmul.f32 %v1013_v16, %v9366_v6  ;;  %v1023_v27 = vmul.f32 %v8096_v35, %v1022_v54 }
 0x29b   :  { %v9410_v47 = vadd.f32 %v1036_v4, %v1035_v14  ;;  %v1024_v42 = vadd.f32 %v8096_v35, %v1023_v27 }
 0x29d   :  { %8099 = vtanh.f32 %v9410_v47  ;;  %v1028_v30 = vsel %vm1027_vm8, %v8096_v35, %v1024_v42 }
 0x29e   :  { %v1033_v28 = vsel %vm1030_vm9, %v1032_v15, %v1028_v30 }
 0x2a3   :  { %v8100_v60 = vpop.eup %8099 }
 0x2a4   :  { %v1039_v1 = vmul.f32 %v8100_v60, %v1033_v28  ;;  %v10266_v28 = vld [vmem:[#allocation60_spill] sm:$0xff] }
 0x2a6   :  { %v1044_v38 = vpack.c.bf16 %v1039_v1, %v1039_v1 }
 0x2a8   :  { %1053 = vmatmul.bf16.vlgmr.msrb.gmra.mxu0 %v1044_v38  ;;  %1066 = vmatmul.bf16.vlgmr.msrb.gmra.mxu1 %v1044_v38 }
 0x2a9   :  { %1079 = vmatmul.bf16.vlgmr.msra.gmra.mxu2 %v1044_v38  ;;  %1092 = vmatmul.bf16.vlgmr.msrb.gmra.mxu3 %v1044_v38 }
 0x2aa   :  { %1293 = vmatpush.bf16.msrb.mxu0 %v9056_v33  ;;  %1306 = vmatpush.bf16.msrb.mxu1 %v9064_v46 }
 0x2ab   :  { %1319 = vmatpush.bf16.msra.mxu2 %v9073_v53  ;;  %1332 = vmatpush.bf16.msrb.mxu3 %v9062_v45 }
 0x2ae   :  { %1294 = vmatpush.bf16.msrb.mxu0 %v9067_v52  ;;  %1307 = vmatpush.bf16.msrb.mxu1 %v9083_v57 }
 0x2af   :  { %1320 = vmatpush.bf16.msra.mxu2 %v9089_v63  ;;  %1333 = vmatpush.bf16.msrb.mxu3 %v9080_v56 }
 0x2b2   :  { %1295 = vmatpush.bf16.msrb.mxu0 %v9086_v59  ;;  %1308 = vmatpush.bf16.msrb.mxu1 %v9095_v8 }
 0x2b3   :  { %1321 = vmatpush.bf16.msra.mxu2 %v9101_v12  ;;  %1334 = vmatpush.bf16.msrb.mxu3 %v9093_v7 }
 0x2b6   :  { %1296 = vmatpush.bf16.msrb.mxu0 %v9098_v10  ;;  %1309 = vmatpush.bf16.msrb.mxu1 %v9109_v18 }
 0x2b7   :  { %1322 = vmatpush.bf16.msra.mxu2 %v9117_v25  ;;  %1335 = vmatpush.bf16.msrb.mxu3 %v9107_v17 }
 0x2ba   :  { %1297 = vmatpush.bf16.msrb.mxu0 %v9112_v20  ;;  %1310 = vmatpush.bf16.msrb.mxu1 %v9124_v29 }
 0x2bb   :  { %1323 = vmatpush.bf16.msra.mxu2 %v9136_v40  ;;  %1336 = vmatpush.bf16.msrb.mxu3 %v9119_v26 }
 0x2be   :  { %1298 = vmatpush.bf16.msrb.mxu0 %v9131_v34  ;;  %1311 = vmatpush.bf16.msrb.mxu1 %v9134_v39 }
 0x2bf   :  { %1324 = vmatpush.bf16.msra.mxu2 %v9159_v3  ;;  %1337 = vmatpush.bf16.msrb.mxu3 %v9139_v44 }
 0x2c2   :  { %1299 = vmatpush.bf16.msrb.mxu0 %v9141_v50  ;;  %1312 = vmatpush.bf16.msrb.mxu1 %v9146_v51 }
 0x2c3   :  { %1325 = vmatpush.bf16.msra.mxu2 %v9167_v19  ;;  %1338 = vmatpush.bf16.msrb.mxu3 %v9162_v11 }
 0x2c6   :  { %1300 = vmatpush.bf16.msrb.mxu0 %v9164_v13  ;;  %1313 = vmatpush.bf16.msrb.mxu1 %v9152_v61 }
 0x2c7   :  { %1326 = vmatpush.bf16.msra.mxu2 %v9189_v31  ;;  %1339 = vmatpush.bf16.msrb.mxu3 %v9171_v22 }
 0x325   :  { %v1054_v6 = vpop.f32.mrf.mxu0  ;;  %v1067_v41 = vpop.f32.mrf.mxu1 }
 0x326   :  { %v1097_v35 = vadd.f32 %v1054_v6, %v10263_v55  ;;  %v1098_v9 = vadd.f32 %v1067_v41, %v10264_v49 }
 0x328   :  { %v6056_v43 = vmul.f32 -1.442695, %v1097_v35  ;;  %v6057_v21 = vmul.f32 -1.442695, %v1098_v9 }
 0x32a   :  { %8101 = vpow2.f32 %v6056_v43 }
 0x32b   :  { %8103 = vpow2.f32 %v6057_v21 }
 0x32c   :  { %v1080_v2 = vpop.f32.mrf.mxu2  ;;  %v1093_v32 = vpop.f32.mrf.mxu3 }
 0x32d   :  { %v1100_v5 = vadd.f32 %v1093_v32, %v10265_v24  ;;  %v1056_v58 = vpop.f32.mrf.mxu0  ;;  %v1069_v54 = vpop.f32.mrf.mxu1  ;;  %v1099_v1 = vadd.f32 %v1080_v2, %v10266_v28 }
 0x32f   :  { %v6058_v16 = vmul.f32 -1.442695, %v1100_v5 }
 0x330   :  { %v8102_v4 = vpop.eup %8101 }
 0x331   :  { %v8104_v14 = vpop.eup %8103  ;;  %v1104_v27 = vadd.f32 1.0, %v8102_v4  ;;  %8105 = vpow2.f32 %v6058_v16 }
 0x332   :  { %v1123_v42 = vadd.f32 1.0, %v8104_v14 }
 0x333   :  { %8107 = vrcp.f32 %v1104_v27  ;;  %v1116_v49 = vand.u32 2147483648, %v1104_v27  ;;  %v1114_v21 = vand.u32 2147483647, %v1104_v27  ;;  %vm1110_vm12 = vweird.f32 %v1104_v27 }
 0x334   :  { %8109 = vrcp.f32 %v1123_v42  ;;  %v1082_v37 = vpop.f32.mrf.mxu2  ;;  %v1095_v62 = vpop.f32.mrf.mxu3  ;;  %v1135_v9 = vand.u32 2147483648, %v1123_v42  ;;  %v1133_v24 = vand.u32 2147483647, %v1123_v42  ;;  %vm1129_vm13 = vweird.f32 %v1123_v42 }
 0x335   :  { %v1117_v2 = vor.u32 1.1754944e-38, %v1116_v49  ;;  %vm1115_vm0 = vcmp.eq.f32.partialorder %v1114_v21, 8.507059e+37 }
 0x336   :  { %v1136_v4 = vor.u32 1.1754944e-38, %v1135_v9  ;;  %vm1134_vm1 = vcmp.eq.f32.partialorder %v1133_v24, 8.507059e+37  ;;  %v10268_v24 = vld [vmem:[#allocation54_spill] sm:$0xff] }
 0x337   :  { %v8106_v30 = vpop.eup %8105 }
 0x338   :  { %v1143_v15 = vadd.f32 1.0, %v8106_v30 }
 0x339   :  { %v8108_v60 = vpop.eup %8107 }
 0x33a   :  { %v8110_v38 = vpop.eup %8109  ;;  %v1106_v6 = vmul.f32 %v8108_v60, %v1104_v27  ;;  %8111 = vrcp.f32 %v1143_v15  ;;  %vm1111_vm10 = vweird.f32 %v8108_v60  ;;  %vm1149_vm3 = vweird.f32 %v1143_v15 }
 0x33b   :  { %v1125_v41 = vmul.f32 %v8110_v38, %v1123_v42  ;;  %8113 = vtanh.f32 %v1099_v1  ;;  %vm1130_vm11 = vweird.f32 %v8110_v38  ;;  %vm1112_vm14 = vmor %vm1110_vm12, %vm1111_vm10 }
 0x33c   :  { %v1107_v55 = vsub.f32 1.0, %v1106_v6  ;;  %vm1131_vm15 = vmor %vm1129_vm13, %vm1130_vm11 }
 0x33d   :  { %v1126_v35 = vsub.f32 1.0, %v1125_v41 }
 0x33e   :  { %v1108_v43 = vmul.f32 %v8108_v60, %v1107_v55 }
 0x33f   :  { %v1127_v32 = vmul.f32 %v8110_v38, %v1126_v35  ;;  %v1155_v35 = vand.u32 2147483648, %v1143_v15 }
 0x340   :  { %v8112_v5 = vpop.eup %8111  ;;  %v1109_v58 = vadd.f32 %v8108_v60, %v1108_v43 }
 0x341   :  { %v1128_v54 = vadd.f32 %v8110_v38, %v1127_v32  ;;  %v1145_v16 = vmul.f32 %v8112_v5, %v1143_v15  ;;  %v8114_v37 = vpop.eup %8113  ;;  %vm1150_vm2 = vweird.f32 %v8112_v5  ;;  %v1156_v9 = vor.u32 1.1754944e-38, %v1155_v35 }
 0x342   :  { %v1113_v14 = vsel %vm1112_vm14, %v8108_v60, %v1109_v58  ;;  %v1153_v60 = vand.u32 2147483647, %v1143_v15  ;;  %vm1151_vm4 = vmor %vm1149_vm3, %vm1150_vm2 }
 0x343   :  { %v1118_v62 = vsel %vm1115_vm0, %v1117_v2, %v1113_v14  ;;  %v1132_v30 = vsel %vm1131_vm15, %v8110_v38, %v1128_v54  ;;  %v1146_v28 = vsub.f32 1.0, %v1145_v16 }
 0x344   :  { %v1137_v1 = vsel %vm1134_vm1, %v1136_v4, %v1132_v30  ;;  %v1160_v6 = vmul.f32 %v8114_v37, %v1118_v62  ;;  %vm1154_vm5 = vcmp.eq.f32.partialorder %v1153_v60, 8.507059e+37  ;;  %v10269_v37 = vld [vmem:[#allocation56_spill] sm:$0xff] }
 0x345   :  { %v1159_v41 = vmul.f32 %v1137_v1, %v9410_v47  ;;  %v1147_v55 = vmul.f32 %v8112_v5, %v1146_v28  ;;  %v10267_v47 = vld [vmem:[#allocation53_spill] sm:$0xff]  ;;  %v549_v62 = vadd.f32 %v10269_v37, %v9282_v0 }
 0x346   :  { %v450_v15 = vadd.f32 %v10267_v47, %v9272_v48 }
 0x347   :  { %v9450_v27 = vadd.f32 %v1160_v6, %v1159_v41  ;;  %v1148_v42 = vadd.f32 %v8112_v5, %v1147_v55 }
 0x349   :  { %8115 = vtanh.f32 %v9450_v27  ;;  %v1152_v49 = vsel %vm1151_vm4, %v8112_v5, %v1148_v42  ;;  %v483_v5 = vadd.f32 %v10268_v24, %v9261_v36 }
 0x34a   :  { %v1157_v43 = vsel %vm1154_vm5, %v1156_v9, %v1152_v49 }
 0x34f   :  { %v8116_v38 = vpop.eup %8115 }
 0x350   :  { %v1163_v21 = vmul.f32 %v8116_v38, %v1157_v43 }
 0x352   :  { %v1168_v32 = vpack.c.bf16 %v1163_v21, %v1163_v21  ;;  %v10270_v21 = vld [vmem:[#allocation64_spill] sm:$0xff] }
 0x354   :  { %1177 = vmatmul.bf16.vlgmr.msra.gmra.mxu0 %v1168_v32  ;;  %1190 = vmatmul.bf16.vlgmr.msra.gmra.mxu1 %v1168_v32 }
 0x355   :  { %1203 = vmatmul.bf16.vlgmr.msrb.gmra.mxu2 %v1168_v32  ;;  %1216 = vmatmul.bf16.vlgmr.msra.gmra.mxu3 %v1168_v32  ;;  %v516_v32 = vadd.f32 %v10270_v21, %v10261_v23 }
 0x356   :  { %1417 = vmatpush.bf16.msra.mxu0 %v9056_v33  ;;  %1430 = vmatpush.bf16.msra.mxu1 %v9064_v46 }
 0x357   :  { %1443 = vmatpush.bf16.msrb.mxu2 %v9073_v53  ;;  %1456 = vmatpush.bf16.msra.mxu3 %v9062_v45 }
 0x35a   :  { %1418 = vmatpush.bf16.msra.mxu0 %v9067_v52  ;;  %1431 = vmatpush.bf16.msra.mxu1 %v9083_v57 }
 0x35b   :  { %1444 = vmatpush.bf16.msrb.mxu2 %v9089_v63  ;;  %1457 = vmatpush.bf16.msra.mxu3 %v9080_v56 }
 0x35e   :  { %1419 = vmatpush.bf16.msra.mxu0 %v9086_v59  ;;  %1432 = vmatpush.bf16.msra.mxu1 %v9095_v8 }
 0x35f   :  { %1445 = vmatpush.bf16.msrb.mxu2 %v9101_v12  ;;  %1458 = vmatpush.bf16.msra.mxu3 %v9093_v7 }
 0x362   :  { %1420 = vmatpush.bf16.msra.mxu0 %v9098_v10  ;;  %1433 = vmatpush.bf16.msra.mxu1 %v9109_v18 }
 0x363   :  { %1446 = vmatpush.bf16.msrb.mxu2 %v9117_v25  ;;  %1459 = vmatpush.bf16.msra.mxu3 %v9107_v17 }
 0x366   :  { %1421 = vmatpush.bf16.msra.mxu0 %v9112_v20  ;;  %1434 = vmatpush.bf16.msra.mxu1 %v9124_v29 }
 0x367   :  { %1447 = vmatpush.bf16.msrb.mxu2 %v9136_v40  ;;  %1460 = vmatpush.bf16.msra.mxu3 %v9119_v26 }
 0x36a   :  { %1422 = vmatpush.bf16.msra.mxu0 %v9131_v34  ;;  %1435 = vmatpush.bf16.msra.mxu1 %v9134_v39 }
 0x36b   :  { %1448 = vmatpush.bf16.msrb.mxu2 %v9159_v3  ;;  %1461 = vmatpush.bf16.msra.mxu3 %v9139_v44 }
 0x36e   :  { %1423 = vmatpush.bf16.msra.mxu0 %v9141_v50  ;;  %1436 = vmatpush.bf16.msra.mxu1 %v9146_v51 }
 0x36f   :  { %1449 = vmatpush.bf16.msrb.mxu2 %v9167_v19  ;;  %1462 = vmatpush.bf16.msra.mxu3 %v9162_v11 }
 0x372   :  { %1424 = vmatpush.bf16.msra.mxu0 %v9164_v13  ;;  %1437 = vmatpush.bf16.msra.mxu1 %v9152_v61 }
 0x373   :  { %1450 = vmatpush.bf16.msrb.mxu2 %v9189_v31  ;;  %1463 = vmatpush.bf16.msra.mxu3 %v9171_v22 }
 0x3d1   :  { %v1178_v58 = vpop.f32.mrf.mxu0  ;;  %v1191_v2 = vpop.f32.mrf.mxu1 }
 0x3d2   :  { %v1221_v54 = vadd.f32 %v1178_v58, %v450_v15  ;;  %v1222_v16 = vadd.f32 %v1191_v2, %v483_v5 }
 0x3d4   :  { %v6059_v4 = vmul.f32 -1.442695, %v1221_v54  ;;  %v6060_v14 = vmul.f32 -1.442695, %v1222_v16 }
 0x3d6   :  { %8117 = vpow2.f32 %v6059_v4 }
 0x3d7   :  { %8119 = vpow2.f32 %v6060_v14 }
 0x3d8   :  { %v1204_v30 = vpop.f32.mrf.mxu2  ;;  %v1217_v28 = vpop.f32.mrf.mxu3 }
 0x3d9   :  { %v1224_v1 = vadd.f32 %v1217_v28, %v549_v62  ;;  %v1180_v6 = vpop.f32.mrf.mxu0  ;;  %v1193_v41 = vpop.f32.mrf.mxu1  ;;  %v1223_v24 = vadd.f32 %v1204_v30, %v516_v32 }
 0x3db   :  { %v6061_v55 = vmul.f32 -1.442695, %v1224_v1 }
 0x3dc   :  { %v8118_v42 = vpop.eup %8117 }
 0x3dd   :  { %v8120_v35 = vpop.eup %8119  ;;  %v1228_v60 = vadd.f32 1.0, %v8118_v42  ;;  %8121 = vpow2.f32 %v6061_v55 }
 0x3de   :  { %v1247_v49 = vadd.f32 1.0, %v8120_v35 }
 0x3df   :  { %8123 = vrcp.f32 %v1228_v60  ;;  %v1240_v4 = vand.u32 2147483648, %v1228_v60  ;;  %v1238_v62 = vand.u32 2147483647, %v1228_v60  ;;  %vm1234_vm8 = vweird.f32 %v1228_v60 }
 0x3e0   :  { %8125 = vrcp.f32 %v1247_v49  ;;  %v1206_v9 = vpop.f32.mrf.mxu2  ;;  %v1219_v38 = vpop.f32.mrf.mxu3  ;;  %v1259_v14 = vand.u32 2147483648, %v1247_v49  ;;  %v1257_v1 = vand.u32 2147483647, %v1247_v49  ;;  %vm1253_vm9 = vweird.f32 %v1247_v49 }
 0x3e1   :  { %v1241_v30 = vor.u32 1.1754944e-38, %v1240_v4  ;;  %vm1239_vm12 = vcmp.eq.f32.partialorder %v1238_v62, 8.507059e+37 }
 0x3e2   :  { %v1260_v35 = vor.u32 1.1754944e-38, %v1259_v14  ;;  %vm1258_vm13 = vcmp.eq.f32.partialorder %v1257_v1, 8.507059e+37  ;;  %v10271_v1 = vld [vmem:[#allocation57_spill] sm:$0xff] }
 0x3e3   :  { %v8122_v43 = vpop.eup %8121 }
 0x3e4   :  { %v1267_v47 = vadd.f32 1.0, %v8122_v43 }
 0x3e5   :  { %v8124_v15 = vpop.eup %8123 }
 0x3e6   :  { %v8126_v5 = vpop.eup %8125  ;;  %v1230_v58 = vmul.f32 %v8124_v15, %v1228_v60  ;;  %8127 = vrcp.f32 %v1267_v47  ;;  %vm1235_vm6 = vweird.f32 %v8124_v15  ;;  %vm1273_vm15 = vweird.f32 %v1267_v47 }
 0x3e7   :  { %v1249_v2 = vmul.f32 %v8126_v5, %v1247_v49  ;;  %8129 = vtanh.f32 %v1223_v24  ;;  %vm1254_vm7 = vweird.f32 %v8126_v5  ;;  %vm1236_vm10 = vmor %vm1234_vm8, %vm1235_vm6 }
 0x3e8   :  { %v1231_v54 = vsub.f32 1.0, %v1230_v58  ;;  %vm1255_vm11 = vmor %vm1253_vm9, %vm1254_vm7 }
 0x3e9   :  { %v1250_v16 = vsub.f32 1.0, %v1249_v2 }
 0x3ea   :  { %v1232_v37 = vmul.f32 %v8124_v15, %v1231_v54 }
 0x3eb   :  { %v1251_v28 = vmul.f32 %v8126_v5, %v1250_v16  ;;  %v1279_v16 = vand.u32 2147483648, %v1267_v47 }
 0x3ec   :  { %v8128_v6 = vpop.eup %8127  ;;  %v1233_v41 = vadd.f32 %v8124_v15, %v1232_v37 }
 0x3ed   :  { %v1252_v55 = vadd.f32 %v8126_v5, %v1251_v28  ;;  %v1269_v42 = vmul.f32 %v8128_v6, %v1267_v47  ;;  %v8130_v38 = vpop.eup %8129  ;;  %vm1274_vm14 = vweird.f32 %v8128_v6  ;;  %v1280_v14 = vor.u32 1.1754944e-38, %v1279_v16 }
 0x3ee   :  { %v1237_v9 = vsel %vm1236_vm10, %v8124_v15, %v1233_v41  ;;  %v1277_v15 = vand.u32 2147483647, %v1267_v47  ;;  %vm1275_vm0 = vmor %vm1273_vm15, %vm1274_vm14  ;;  %v10272_v41 = vld [vmem:[#allocation58_spill] sm:$0xff] }
 0x3ef   :  { %v1242_v43 = vsel %vm1239_vm12, %v1241_v30, %v1237_v9  ;;  %v1256_v21 = vsel %vm1255_vm11, %v8126_v5, %v1252_v55  ;;  %v1270_v32 = vsub.f32 1.0, %v1269_v42 }
 0x3f0   :  { %v1261_v24 = vsel %vm1258_vm13, %v1260_v35, %v1256_v21  ;;  %v1284_v58 = vmul.f32 %v8130_v38, %v1242_v43  ;;  %vm1278_vm1 = vcmp.eq.f32.partialorder %v1277_v15, 8.507059e+37  ;;  %v10273_v38 = vld [vmem:[#allocation61_spill] sm:$0xff] }
 0x3f1   :  { %v1283_v2 = vmul.f32 %v1261_v24, %v9450_v27  ;;  %v1271_v54 = vmul.f32 %v8128_v6, %v1270_v32 }
 0x3f3   :  { %v9494_v60 = vadd.f32 %v1284_v58, %v1283_v2  ;;  %v1272_v49 = vadd.f32 %v8128_v6, %v1271_v54 }
 0x3f5   :  { %8131 = vtanh.f32 %v9494_v60  ;;  %v1276_v4 = vsel %vm1275_vm0, %v8128_v6, %v1272_v49 }
 0x3f6   :  { %v1281_v37 = vsel %vm1278_vm1, %v1280_v14, %v1276_v4 }
 0x3fb   :  { %v8132_v5 = vpop.eup %8131 }
 0x3fc   :  { %v1287_v62 = vmul.f32 %v8132_v5, %v1281_v37  ;;  %v10274_v37 = vld [vmem:[#allocation68_spill] sm:$0xff] }
 0x3fe   :  { %v1292_v28 = vpack.c.bf16 %v1287_v62, %v1287_v62 }
 0x400   :  { %1301 = vmatmul.bf16.vlgmr.msrb.gmra.mxu0 %v1292_v28  ;;  %1314 = vmatmul.bf16.vlgmr.msrb.gmra.mxu1 %v1292_v28 }
 0x401   :  { %1327 = vmatmul.bf16.vlgmr.msra.gmra.mxu2 %v1292_v28  ;;  %1340 = vmatmul.bf16.vlgmr.msrb.gmra.mxu3 %v1292_v28 }
 0x402   :  { %1541 = vmatpush.bf16.msrb.mxu0 %v9056_v33  ;;  %1554 = vmatpush.bf16.msrb.mxu1 %v9064_v46 }
 0x403   :  { %1567 = vmatpush.bf16.msra.mxu2 %v9073_v53  ;;  %1580 = vmatpush.bf16.msrb.mxu3 %v9062_v45 }
 0x406   :  { %1542 = vmatpush.bf16.msrb.mxu0 %v9067_v52  ;;  %1555 = vmatpush.bf16.msrb.mxu1 %v9083_v57 }
 0x407   :  { %1568 = vmatpush.bf16.msra.mxu2 %v9089_v63  ;;  %1581 = vmatpush.bf16.msrb.mxu3 %v9080_v56 }
 0x40a   :  { %1543 = vmatpush.bf16.msrb.mxu0 %v9086_v59  ;;  %1556 = vmatpush.bf16.msrb.mxu1 %v9095_v8 }
 0x40b   :  { %1569 = vmatpush.bf16.msra.mxu2 %v9101_v12  ;;  %1582 = vmatpush.bf16.msrb.mxu3 %v9093_v7 }
 0x40e   :  { %1544 = vmatpush.bf16.msrb.mxu0 %v9098_v10  ;;  %1557 = vmatpush.bf16.msrb.mxu1 %v9109_v18 }
 0x40f   :  { %1570 = vmatpush.bf16.msra.mxu2 %v9117_v25  ;;  %1583 = vmatpush.bf16.msrb.mxu3 %v9107_v17 }
 0x412   :  { %1545 = vmatpush.bf16.msrb.mxu0 %v9112_v20  ;;  %1558 = vmatpush.bf16.msrb.mxu1 %v9124_v29 }
 0x413   :  { %1571 = vmatpush.bf16.msra.mxu2 %v9136_v40  ;;  %1584 = vmatpush.bf16.msrb.mxu3 %v9119_v26 }
 0x416   :  { %1546 = vmatpush.bf16.msrb.mxu0 %v9131_v34  ;;  %1559 = vmatpush.bf16.msrb.mxu1 %v9134_v39 }
 0x417   :  { %1572 = vmatpush.bf16.msra.mxu2 %v9159_v3  ;;  %1585 = vmatpush.bf16.msrb.mxu3 %v9139_v44 }
 0x41a   :  { %1547 = vmatpush.bf16.msrb.mxu0 %v9141_v50  ;;  %1560 = vmatpush.bf16.msrb.mxu1 %v9146_v51 }
 0x41b   :  { %1573 = vmatpush.bf16.msra.mxu2 %v9167_v19  ;;  %1586 = vmatpush.bf16.msrb.mxu3 %v9162_v11 }
 0x41e   :  { %1548 = vmatpush.bf16.msrb.mxu0 %v9164_v13  ;;  %1561 = vmatpush.bf16.msrb.mxu1 %v9152_v61 }
 0x41f   :  { %1574 = vmatpush.bf16.msra.mxu2 %v9189_v31  ;;  %1587 = vmatpush.bf16.msrb.mxu3 %v9171_v22 }
 0x47d   :  { %v1302_v27 = vpop.f32.mrf.mxu0  ;;  %v1315_v47 = vpop.f32.mrf.mxu1 }
 0x47e   :  { %v1345_v6 = vadd.f32 %v1302_v27, %v10271_v1  ;;  %v1346_v30 = vadd.f32 %v1315_v47, %v10272_v41 }
 0x480   :  { %v6062_v55 = vmul.f32 -1.442695, %v1345_v6  ;;  %v6063_v42 = vmul.f32 -1.442695, %v1346_v30 }
 0x482   :  { %8133 = vpow2.f32 %v6062_v55 }
 0x483   :  { %8135 = vpow2.f32 %v6063_v42 }
 0x484   :  { %v1328_v35 = vpop.f32.mrf.mxu2  ;;  %v1341_v9 = vpop.f32.mrf.mxu3 }
 0x485   :  { %v1348_v43 = vadd.f32 %v1341_v9, %v10273_v38  ;;  %v1304_v21 = vpop.f32.mrf.mxu0  ;;  %v1317_v32 = vpop.f32.mrf.mxu1  ;;  %v1347_v62 = vadd.f32 %v1328_v35, %v10274_v37 }
 0x487   :  { %v6064_v24 = vmul.f32 -1.442695, %v1348_v43 }
 0x488   :  { %v8134_v58 = vpop.eup %8133 }
 0x489   :  { %v8136_v2 = vpop.eup %8135  ;;  %v1352_v54 = vadd.f32 1.0, %v8134_v58  ;;  %8137 = vpow2.f32 %v6064_v24 }
 0x48a   :  { %v1371_v49 = vadd.f32 1.0, %v8136_v2 }
 0x48b   :  { %8139 = vrcp.f32 %v1352_v54  ;;  %v1364_v41 = vand.u32 2147483648, %v1352_v54  ;;  %v1362_v42 = vand.u32 2147483647, %v1352_v54  ;;  %vm1358_vm4 = vweird.f32 %v1352_v54 }
 0x48c   :  { %8141 = vrcp.f32 %v1371_v49  ;;  %v1330_v16 = vpop.f32.mrf.mxu2  ;;  %v1343_v15 = vpop.f32.mrf.mxu3  ;;  %v1383_v30 = vand.u32 2147483648, %v1371_v49  ;;  %v1381_v38 = vand.u32 2147483647, %v1371_v49  ;;  %vm1377_vm5 = vweird.f32 %v1371_v49 }
 0x48d   :  { %v1365_v35 = vor.u32 1.1754944e-38, %v1364_v41  ;;  %vm1363_vm8 = vcmp.eq.f32.partialorder %v1362_v42, 8.507059e+37 }
 0x48e   :  { %v1384_v58 = vor.u32 1.1754944e-38, %v1383_v30  ;;  %vm1382_vm9 = vcmp.eq.f32.partialorder %v1381_v38, 8.507059e+37  ;;  %v10276_v38 = vld [vmem:[#allocation63_spill] sm:$0xff] }
 0x48f   :  { %v8138_v4 = vpop.eup %8137 }
 0x490   :  { %v1391_v14 = vadd.f32 1.0, %v8138_v4 }
 0x491   :  { %v8140_v5 = vpop.eup %8139 }
 0x492   :  { %v8142_v28 = vpop.eup %8141  ;;  %v1354_v27 = vmul.f32 %v8140_v5, %v1352_v54  ;;  %8143 = vrcp.f32 %v1391_v14  ;;  %vm1359_vm2 = vweird.f32 %v8140_v5  ;;  %vm1397_vm11 = vweird.f32 %v1391_v14 }
 0x493   :  { %v1373_v47 = vmul.f32 %v8142_v28, %v1371_v49  ;;  %8145 = vtanh.f32 %v1347_v62  ;;  %vm1378_vm3 = vweird.f32 %v8142_v28  ;;  %vm1360_vm6 = vmor %vm1358_vm4, %vm1359_vm2 }
 0x494   :  { %v1355_v1 = vsub.f32 1.0, %v1354_v27  ;;  %vm1379_vm7 = vmor %vm1377_vm5, %vm1378_vm3 }
 0x495   :  { %v1374_v6 = vsub.f32 1.0, %v1373_v47 }
 0x496   :  { %v1356_v55 = vmul.f32 %v8140_v5, %v1355_v1 }
 0x497   :  { %v1375_v9 = vmul.f32 %v8142_v28, %v1374_v6  ;;  %v1403_v6 = vand.u32 2147483648, %v1391_v14 }
 0x498   :  { %v8144_v43 = vpop.eup %8143  ;;  %v1357_v21 = vadd.f32 %v8140_v5, %v1356_v55 }
 0x499   :  { %v1376_v32 = vadd.f32 %v8142_v28, %v1375_v9  ;;  %v1393_v24 = vmul.f32 %v8144_v43, %v1391_v14  ;;  %v8146_v16 = vpop.eup %8145  ;;  %vm1398_vm10 = vweird.f32 %v8144_v43  ;;  %v1404_v30 = vor.u32 1.1754944e-38, %v1403_v6 }
 0x49a   :  { %v1361_v2 = vsel %vm1360_vm6, %v8140_v5, %v1357_v21  ;;  %v1401_v5 = vand.u32 2147483647, %v1391_v14  ;;  %vm1399_vm12 = vmor %vm1397_vm11, %vm1398_vm10 }
 0x49b   :  { %v1366_v15 = vsel %vm1363_vm8, %v1365_v35, %v1361_v2  ;;  %v1380_v4 = vsel %vm1379_vm7, %v8142_v28, %v1376_v32  ;;  %v1394_v37 = vsub.f32 1.0, %v1393_v24 }
 0x49c   :  { %v1385_v62 = vsel %vm1382_vm9, %v1384_v58, %v1380_v4  ;;  %v1408_v27 = vmul.f32 %v8146_v16, %v1366_v15  ;;  %vm1402_vm13 = vcmp.eq.f32.partialorder %v1401_v5, 8.507059e+37  ;;  %v10277_v16 = vld [vmem:[#allocation65_spill] sm:$0xff] }
 0x49d   :  { %v1407_v47 = vmul.f32 %v1385_v62, %v9494_v60  ;;  %v1395_v1 = vmul.f32 %v8144_v43, %v1394_v37  ;;  %v10275_v60 = vld [vmem:[#allocation62_spill] sm:$0xff]  ;;  %v554_v15 = vadd.f32 %v10277_v16, %v9282_v0 }
 0x49e   :  { %v455_v14 = vadd.f32 %v10275_v60, %v9272_v48 }
 0x49f   :  { %v9534_v54 = vadd.f32 %v1408_v27, %v1407_v47  ;;  %v1396_v49 = vadd.f32 %v8144_v43, %v1395_v1 }
 0x4a1   :  { %8147 = vtanh.f32 %v9534_v54  ;;  %v1400_v41 = vsel %vm1399_vm12, %v8144_v43, %v1396_v49  ;;  %v488_v43 = vadd.f32 %v10276_v38, %v9261_v36 }
 0x4a2   :  { %v1405_v55 = vsel %vm1402_vm13, %v1404_v30, %v1400_v41 }
 0x4a7   :  { %v8148_v28 = vpop.eup %8147 }
 0x4a8   :  { %v1411_v42 = vmul.f32 %v8148_v28, %v1405_v55 }
 0x4aa   :  { %v1416_v9 = vpack.c.bf16 %v1411_v42, %v1411_v42  ;;  %v10278_v42 = vld [vmem:[#allocation72_spill] sm:$0xff] }
 0x4ac   :  { %1425 = vmatmul.bf16.vlgmr.msra.gmra.mxu0 %v1416_v9  ;;  %1438 = vmatmul.bf16.vlgmr.msra.gmra.mxu1 %v1416_v9 }
 0x4ad   :  { %1451 = vmatmul.bf16.vlgmr.msrb.gmra.mxu2 %v1416_v9  ;;  %1464 = vmatmul.bf16.vlgmr.msra.gmra.mxu3 %v1416_v9  ;;  %v521_v9 = vadd.f32 %v10278_v42, %v10261_v23 }
 0x4ae   :  { %1665 = vmatpush.bf16.msra.mxu0 %v9056_v33  ;;  %1678 = vmatpush.bf16.msra.mxu1 %v9064_v46 }
 0x4af   :  { %1691 = vmatpush.bf16.msrb.mxu2 %v9073_v53  ;;  %1704 = vmatpush.bf16.msra.mxu3 %v9062_v45 }
 0x4b2   :  { %1666 = vmatpush.bf16.msra.mxu0 %v9067_v52  ;;  %1679 = vmatpush.bf16.msra.mxu1 %v9083_v57 }
 0x4b3   :  { %1692 = vmatpush.bf16.msrb.mxu2 %v9089_v63  ;;  %1705 = vmatpush.bf16.msra.mxu3 %v9080_v56 }
 0x4b6   :  { %1667 = vmatpush.bf16.msra.mxu0 %v9086_v59  ;;  %1680 = vmatpush.bf16.msra.mxu1 %v9095_v8 }
 0x4b7   :  { %1693 = vmatpush.bf16.msrb.mxu2 %v9101_v12  ;;  %1706 = vmatpush.bf16.msra.mxu3 %v9093_v7 }
 0x4ba   :  { %1668 = vmatpush.bf16.msra.mxu0 %v9098_v10  ;;  %1681 = vmatpush.bf16.msra.mxu1 %v9109_v18 }
 0x4bb   :  { %1694 = vmatpush.bf16.msrb.mxu2 %v9117_v25  ;;  %1707 = vmatpush.bf16.msra.mxu3 %v9107_v17 }
 0x4be   :  { %1669 = vmatpush.bf16.msra.mxu0 %v9112_v20  ;;  %1682 = vmatpush.bf16.msra.mxu1 %v9124_v29 }
 0x4bf   :  { %1695 = vmatpush.bf16.msrb.mxu2 %v9136_v40  ;;  %1708 = vmatpush.bf16.msra.mxu3 %v9119_v26 }
 0x4c2   :  { %1670 = vmatpush.bf16.msra.mxu0 %v9131_v34  ;;  %1683 = vmatpush.bf16.msra.mxu1 %v9134_v39 }
 0x4c3   :  { %1696 = vmatpush.bf16.msrb.mxu2 %v9159_v3  ;;  %1709 = vmatpush.bf16.msra.mxu3 %v9139_v44 }
 0x4c6   :  { %1671 = vmatpush.bf16.msra.mxu0 %v9141_v50  ;;  %1684 = vmatpush.bf16.msra.mxu1 %v9146_v51 }
 0x4c7   :  { %1697 = vmatpush.bf16.msrb.mxu2 %v9167_v19  ;;  %1710 = vmatpush.bf16.msra.mxu3 %v9162_v11 }
 0x4ca   :  { %1672 = vmatpush.bf16.msra.mxu0 %v9164_v13  ;;  %1685 = vmatpush.bf16.msra.mxu1 %v9152_v61 }
 0x4cb   :  { %1698 = vmatpush.bf16.msrb.mxu2 %v9189_v31  ;;  %1711 = vmatpush.bf16.msra.mxu3 %v9171_v22 }
 0x529   :  { %v1426_v21 = vpop.f32.mrf.mxu0  ;;  %v1439_v35 = vpop.f32.mrf.mxu1 }
 0x52a   :  { %v1469_v32 = vadd.f32 %v1426_v21, %v455_v14  ;;  %v1470_v24 = vadd.f32 %v1439_v35, %v488_v43 }
 0x52c   :  { %v6065_v58 = vmul.f32 -1.442695, %v1469_v32  ;;  %v6066_v2 = vmul.f32 -1.442695, %v1470_v24 }
 0x52e   :  { %8149 = vpow2.f32 %v6065_v58 }
 0x52f   :  { %8151 = vpow2.f32 %v6066_v2 }
 0x530   :  { %v1452_v4 = vpop.f32.mrf.mxu2  ;;  %v1465_v37 = vpop.f32.mrf.mxu3 }
 0x531   :  { %v1472_v62 = vadd.f32 %v1465_v37, %v554_v15  ;;  %v1428_v27 = vpop.f32.mrf.mxu0  ;;  %v1441_v47 = vpop.f32.mrf.mxu1  ;;  %v1471_v38 = vadd.f32 %v1452_v4, %v521_v9 }
 0x533   :  { %v6067_v1 = vmul.f32 -1.442695, %v1472_v62 }
 0x534   :  { %v8150_v49 = vpop.eup %8149 }
 0x535   :  { %v8152_v6 = vpop.eup %8151  ;;  %v1476_v5 = vadd.f32 1.0, %v8150_v49  ;;  %8153 = vpow2.f32 %v6067_v1 }
 0x536   :  { %v1495_v41 = vadd.f32 1.0, %v8152_v6 }
 0x537   :  { %8155 = vrcp.f32 %v1476_v5  ;;  %v1488_v58 = vand.u32 2147483648, %v1476_v5  ;;  %v1486_v15 = vand.u32 2147483647, %v1476_v5  ;;  %vm1482_vm0 = vweird.f32 %v1476_v5 }
 0x538   :  { %8157 = vrcp.f32 %v1495_v41  ;;  %v1454_v30 = vpop.f32.mrf.mxu2  ;;  %v1467_v28 = vpop.f32.mrf.mxu3  ;;  %v1507_v2 = vand.u32 2147483648, %v1495_v41  ;;  %v1505_v62 = vand.u32 2147483647, %v1495_v41  ;;  %vm1501_vm1 = vweird.f32 %v1495_v41 }
 0x539   :  { %v1489_v4 = vor.u32 1.1754944e-38, %v1488_v58  ;;  %vm1487_vm4 = vcmp.eq.f32.partialorder %v1486_v15, 8.507059e+37 }
 0x53a   :  { %v1508_v6 = vor.u32 1.1754944e-38, %v1507_v2  ;;  %vm1506_vm5 = vcmp.eq.f32.partialorder %v1505_v62, 8.507059e+37 }
 0x53b   :  { %v8154_v55 = vpop.eup %8153 }
 0x53c   :  { %v1515_v60 = vadd.f32 1.0, %v8154_v55 }
 0x53d   :  { %v8156_v14 = vpop.eup %8155 }
 0x53e   :  { %v8158_v43 = vpop.eup %8157  ;;  %v1478_v21 = vmul.f32 %v8156_v14, %v1476_v5  ;;  %8159 = vrcp.f32 %v1515_v60  ;;  %vm1483_vm14 = vweird.f32 %v8156_v14  ;;  %vm1521_vm7 = vweird.f32 %v1515_v60 }
 0x53f   :  { %v1497_v35 = vmul.f32 %v8158_v43, %v1495_v41  ;;  %8161 = vtanh.f32 %v1471_v38  ;;  %vm1502_vm15 = vweird.f32 %v8158_v43  ;;  %vm1484_vm2 = vmor %vm1482_vm0, %vm1483_vm14 }
 0x540   :  { %v1479_v32 = vsub.f32 1.0, %v1478_v21  ;;  %vm1503_vm3 = vmor %vm1501_vm1, %vm1502_vm15 }
 0x541   :  { %v1498_v24 = vsub.f32 1.0, %v1497_v35 }
 0x542   :  { %v1480_v16 = vmul.f32 %v8156_v14, %v1479_v32 }
 0x543   :  { %v1499_v37 = vmul.f32 %v8158_v43, %v1498_v24  ;;  %v1527_v24 = vand.u32 2147483648, %v1515_v60 }
 0x544   :  { %v8160_v27 = vpop.eup %8159  ;;  %v1481_v47 = vadd.f32 %v8156_v14, %v1480_v16 }
 0x545   :  { %v1500_v1 = vadd.f32 %v8158_v43, %v1499_v37  ;;  %v1517_v49 = vmul.f32 %v8160_v27, %v1515_v60  ;;  %v8162_v28 = vpop.eup %8161  ;;  %vm1522_vm6 = vweird.f32 %v8160_v27  ;;  %v1528_v2 = vor.u32 1.1754944e-38, %v1527_v24 }
 0x546   :  { %v1485_v30 = vsel %vm1484_vm2, %v8156_v14, %v1481_v47  ;;  %v1525_v14 = vand.u32 2147483647, %v1515_v60  ;;  %vm1523_vm8 = vmor %vm1521_vm7, %vm1522_vm6  ;;  %vm2024_vm6 = vcmask 1046528   ;;  %vm2025_vm7 = vcmask 1047552  }
 0x547   :  { %v1490_v55 = vsel %vm1487_vm4, %v1489_v4, %v1485_v30  ;;  %v1504_v42 = vsel %vm1503_vm3, %v8158_v43, %v1500_v1  ;;  %v1518_v9 = vsub.f32 1.0, %v1517_v49 }
 0x548   :  { %v1509_v38 = vsel %vm1506_vm5, %v1508_v6, %v1504_v42  ;;  %v1532_v21 = vmul.f32 %v8162_v28, %v1490_v55  ;;  %vm1526_vm9 = vcmp.eq.f32.partialorder %v1525_v14, 8.507059e+37 }
 0x549   :  { %v1531_v35 = vmul.f32 %v1509_v38, %v9534_v54  ;;  %v1519_v32 = vmul.f32 %v8160_v27, %v1518_v9 }
 0x54b   :  { %v9578_v5 = vadd.f32 %v1532_v21, %v1531_v35  ;;  %v1520_v41 = vadd.f32 %v8160_v27, %v1519_v32 }
 0x54d   :  { %8163 = vtanh.f32 %v9578_v5  ;;  %v1524_v58 = vsel %vm1523_vm8, %v8160_v27, %v1520_v41 }
 0x54e   :  { %v1529_v16 = vsel %vm1526_vm9, %v1528_v2, %v1524_v58 }
 0x553   :  { %v8164_v43 = vpop.eup %8163 }
 0x554   :  { %v1535_v15 = vmul.f32 %v8164_v43, %v1529_v16 }
 0x556   :  { %v1540_v37 = vpack.c.bf16 %v1535_v15, %v1535_v15 }
 0x558   :  { %1549 = vmatmul.bf16.vlgmr.msrb.gmra.mxu0 %v1540_v37  ;;  %1562 = vmatmul.bf16.vlgmr.msrb.gmra.mxu1 %v1540_v37 }
 0x559   :  { %1575 = vmatmul.bf16.vlgmr.msra.gmra.mxu2 %v1540_v37  ;;  %1588 = vmatmul.bf16.vlgmr.msrb.gmra.mxu3 %v1540_v37 }
 0x55a   :  { %1789 = vmatpush.bf16.msrb.mxu0 %v9056_v33  ;;  %1802 = vmatpush.bf16.msrb.mxu1 %v9064_v46  ;;  %v10279_v46 = vld [vmem:[#allocation66_spill] sm:$0xff] }
 0x55b   :  { %1815 = vmatpush.bf16.msra.mxu2 %v9073_v53  ;;  %1828 = vmatpush.bf16.msrb.mxu3 %v9062_v45  ;;  %v10280_v53 = vld [vmem:[#allocation67_spill] sm:$0xff] }
 0x55e   :  { %1790 = vmatpush.bf16.msrb.mxu0 %v9067_v52  ;;  %1803 = vmatpush.bf16.msrb.mxu1 %v9083_v57 }
 0x55f   :  { %1816 = vmatpush.bf16.msra.mxu2 %v9089_v63  ;;  %1829 = vmatpush.bf16.msrb.mxu3 %v9080_v56 }
 0x562   :  { %1791 = vmatpush.bf16.msrb.mxu0 %v9086_v59  ;;  %1804 = vmatpush.bf16.msrb.mxu1 %v9095_v8  ;;  %v10281_v8 = vld [vmem:[#allocation69_spill] sm:$0xff] }
 0x563   :  { %1817 = vmatpush.bf16.msra.mxu2 %v9101_v12  ;;  %1830 = vmatpush.bf16.msrb.mxu3 %v9093_v7 }
 0x566   :  { %1792 = vmatpush.bf16.msrb.mxu0 %v9098_v10  ;;  %1805 = vmatpush.bf16.msrb.mxu1 %v9109_v18 }
 0x567   :  { %1818 = vmatpush.bf16.msra.mxu2 %v9117_v25  ;;  %1831 = vmatpush.bf16.msrb.mxu3 %v9107_v17 }
 0x56a   :  { %1793 = vmatpush.bf16.msrb.mxu0 %v9112_v20  ;;  %1806 = vmatpush.bf16.msrb.mxu1 %v9124_v29 }
 0x56b   :  { %1819 = vmatpush.bf16.msra.mxu2 %v9136_v40  ;;  %1832 = vmatpush.bf16.msrb.mxu3 %v9119_v26 }
 0x56e   :  { %1794 = vmatpush.bf16.msrb.mxu0 %v9131_v34  ;;  %1807 = vmatpush.bf16.msrb.mxu1 %v9134_v39 }
 0x56f   :  { %1820 = vmatpush.bf16.msra.mxu2 %v9159_v3  ;;  %1833 = vmatpush.bf16.msrb.mxu3 %v9139_v44 }
 0x572   :  { %1795 = vmatpush.bf16.msrb.mxu0 %v9141_v50  ;;  %1808 = vmatpush.bf16.msrb.mxu1 %v9146_v51  ;;  %v10282_v51 = vld [vmem:[#allocation75_spill] sm:$0xff] }
 0x573   :  { %1821 = vmatpush.bf16.msra.mxu2 %v9167_v19  ;;  %1834 = vmatpush.bf16.msrb.mxu3 %v9162_v11 }
 0x576   :  { %1796 = vmatpush.bf16.msrb.mxu0 %v9164_v13  ;;  %1809 = vmatpush.bf16.msrb.mxu1 %v9152_v61 }
 0x577   :  { %1822 = vmatpush.bf16.msra.mxu2 %v9189_v31  ;;  %1835 = vmatpush.bf16.msrb.mxu3 %v9171_v22 }
 0x5d5   :  { %v1550_v33 = vpop.f32.mrf.mxu0  ;;  %v1563_v45 = vpop.f32.mrf.mxu1 }
 0x5d6   :  { %v1593_v52 = vadd.f32 %v1550_v33, %v10279_v46  ;;  %v1594_v56 = vadd.f32 %v1563_v45, %v10280_v53  ;;  %v10284_v53 = vld [vmem:[#allocation71_spill] sm:$0xff] }
 0x5d8   :  { %v6068_v57 = vmul.f32 -1.442695, %v1593_v52  ;;  %v6069_v59 = vmul.f32 -1.442695, %v1594_v56  ;;  %v493_v56 = vadd.f32 %v10284_v53, %v9261_v36 }
 0x5da   :  { %8165 = vpow2.f32 %v6068_v57 }
 0x5db   :  { %8167 = vpow2.f32 %v6069_v59 }
 0x5dc   :  { %v1576_v63 = vpop.f32.mrf.mxu2  ;;  %v1589_v7 = vpop.f32.mrf.mxu3 }
 0x5dd   :  { %v1596_v10 = vadd.f32 %v1589_v7, %v10281_v8  ;;  %v1552_v12 = vpop.f32.mrf.mxu0  ;;  %v1565_v17 = vpop.f32.mrf.mxu1  ;;  %v1595_v61 = vadd.f32 %v1576_v63, %v10282_v51  ;;  %v7641_v51 = vld [vmem:[%s10286_s18] sm:$0xff] }
 0x5de   :  { %v10285_v12 = vld [vmem:[#allocation73_spill] sm:$0xff] }
 0x5df   :  { %v6070_v18 = vmul.f32 -1.442695, %v1596_v10  ;;  %v559_v17 = vadd.f32 %v10285_v12, %v9282_v0 }
 0x5e0   :  { %v8166_v20 = vpop.eup %8165 }
 0x5e1   :  { %v8168_v25 = vpop.eup %8167  ;;  %v1600_v26 = vadd.f32 1.0, %v8166_v20  ;;  %8169 = vpow2.f32 %v6070_v18 }
 0x5e2   :  { %v1619_v29 = vadd.f32 1.0, %v8168_v25 }
 0x5e3   :  { %8171 = vrcp.f32 %v1600_v26  ;;  %v1612_v31 = vand.u32 2147483648, %v1600_v26  ;;  %v1610_v62 = vand.u32 2147483647, %v1600_v26  ;;  %vm1606_vm12 = vweird.f32 %v1600_v26 }
 0x5e4   :  { %8173 = vrcp.f32 %v1619_v29  ;;  %v1578_v34 = vpop.f32.mrf.mxu2  ;;  %v1591_v39 = vpop.f32.mrf.mxu3  ;;  %v1631_v54 = vand.u32 2147483648, %v1619_v29  ;;  %v1629_v47 = vand.u32 2147483647, %v1619_v29  ;;  %vm1625_vm13 = vweird.f32 %v1619_v29 }
 0x5e5   :  { %v1613_v49 = vor.u32 1.1754944e-38, %v1612_v31  ;;  %vm1611_vm0 = vcmp.eq.f32.partialorder %v1610_v62, 8.507059e+37 }
 0x5e6   :  { %v1632_v28 = vor.u32 1.1754944e-38, %v1631_v54  ;;  %vm1630_vm1 = vcmp.eq.f32.partialorder %v1629_v47, 8.507059e+37 }
 0x5e7   :  { %v8170_v40 = vpop.eup %8169 }
 0x5e8   :  { %v1639_v44 = vadd.f32 1.0, %v8170_v40 }
 0x5e9   :  { %v8172_v50 = vpop.eup %8171 }
 0x5ea   :  { %v8174_v3 = vpop.eup %8173  ;;  %v1602_v11 = vmul.f32 %v8172_v50, %v1600_v26  ;;  %8175 = vrcp.f32 %v1639_v44  ;;  %vm1607_vm10 = vweird.f32 %v8172_v50  ;;  %v1651_v2 = vand.u32 2147483648, %v1639_v44 }
 0x5eb   :  { %v1621_v13 = vmul.f32 %v8174_v3, %v1619_v29  ;;  %8177 = vtanh.f32 %v1595_v61  ;;  %vm1626_vm11 = vweird.f32 %v8174_v3  ;;  %vm1608_vm14 = vmor %vm1606_vm12, %vm1607_vm10  ;;  %vm1645_vm3 = vweird.f32 %v1639_v44  ;;  %v10287_v61 = vld [vmem:[#allocation77_spill] sm:$0xff] }
 0x5ec   :  { %v1603_v19 = vsub.f32 1.0, %v1602_v11  ;;  %vm1627_vm15 = vmor %vm1625_vm13, %vm1626_vm11  ;;  %v1649_v43 = vand.u32 2147483647, %v1639_v44  ;;  %v1652_v15 = vor.u32 1.1754944e-38, %v1651_v2  ;;  %v8781_v11 = vmov 65535  }
 0x5ed   :  { %v1622_v22 = vsub.f32 1.0, %v1621_v13  ;;  %v2026_v13 = vsel %vm2024_vm6, 4294967295, %v8781_v11 }
 0x5ee   :  { %v1604_v60 = vmul.f32 %v8172_v50, %v1603_v19  ;;  %vm1650_vm5 = vcmp.eq.f32.partialorder %v1649_v43, 8.507059e+37 }
 0x5ef   :  { %v1623_v27 = vmul.f32 %v8174_v3, %v1622_v22  ;;  %v9630_v22 = vsel %vm2025_vm7, %v2026_v13, 0 }
 0x5f0   :  { %v8176_v4 = vpop.eup %8175  ;;  %v1605_v1 = vadd.f32 %v8172_v50, %v1604_v60  ;;  %v2029_v60 = vand.u32 %v7641_v51, %v9630_v22  ;;  %v10291_v51 = vld [vmem:[#allocation74_spill] sm:$0xff] }
 0x5f1   :  { %v1624_v6 = vadd.f32 %v8174_v3, %v1623_v27  ;;  %v1641_v30 = vmul.f32 %v8176_v4, %v1639_v44  ;;  %v8178_v42 = vpop.eup %8177  ;;  %vm1646_vm2 = vweird.f32 %v8176_v4 }
 0x5f2   :  { %v1609_v55 = vsel %vm1608_vm14, %v8172_v50, %v1605_v1  ;;  %vm1647_vm4 = vmor %vm1645_vm3, %vm1646_vm2 }
 0x5f3   :  { %v1614_v9 = vsel %vm1611_vm0, %v1613_v49, %v1609_v55  ;;  %v1628_v38 = vsel %vm1627_vm15, %v8174_v3, %v1624_v6  ;;  %v1642_v21 = vsub.f32 1.0, %v1641_v30  ;;  %v526_v3 = vadd.f32 %v10287_v61, %v10261_v23  ;;  %v10292_v61 = vld [vmem:[#allocation49_spill] sm:$0xff] }
 0x5f4   :  { %v1633_v35 = vsel %vm1630_vm1, %v1632_v28, %v1628_v38  ;;  %v1656_v32 = vmul.f32 %v8178_v42, %v1614_v9 }
 0x5f5   :  { %v1655_v41 = vmul.f32 %v1633_v35, %v9578_v5  ;;  %v1643_v24 = vmul.f32 %v8176_v4, %v1642_v21  ;;  %v10283_v5 = vld [vmem:[#allocation70_spill] sm:$0xff] }
 0x5f6   :  { %v460_v52 = vadd.f32 %v10283_v5, %v9272_v48 }
 0x5f7   :  { %v9618_v14 = vadd.f32 %v1656_v32, %v1655_v41  ;;  %v1644_v58 = vadd.f32 %v8176_v4, %v1643_v24 }
 0x5f9   :  { %8179 = vtanh.f32 %v9618_v14  ;;  %v1648_v16 = vsel %vm1647_vm4, %v8176_v4, %v1644_v58  ;;  %vm2020_vm4 = vcmask 121856  }
 0x5fa   :  { %v1653_v33 = vsel %vm1650_vm5, %v1652_v15, %v1648_v16 }
 0x5ff   :  { %v8180_v37 = vpop.eup %8179 }
 0x600   :  { %v1659_v45 = vmul.f32 %v8180_v37, %v1653_v33  ;;  %v7649_v37 = vld [vmem:[%s10288_s12 + $0x38] sm:$0xff] }
 0x602   :  { %v1664_v46 = vpack.c.bf16 %v1659_v45, %v1659_v45 }
 0x604   :  { %1673 = vmatmul.bf16.vlgmr.msra.gmra.mxu0 %v1664_v46  ;;  %1686 = vmatmul.bf16.vlgmr.msra.gmra.mxu1 %v1664_v46 }
 0x605   :  { %1699 = vmatmul.bf16.vlgmr.msrb.gmra.mxu2 %v1664_v46  ;;  %1712 = vmatmul.bf16.vlgmr.msra.gmra.mxu3 %v1664_v46  ;;  %v7648_v46 = vld [vmem:[%s10288_s12 + $0x30] sm:$0xff] }
 0x606   :  { %2038 = vmatpush.bf16.msra.mxu1 %v2029_v60  ;;  %2114 = vmatpush.bf16.msrb.mxu2 %v7649_v37 }
 0x60a   :  { %2115 = vmatpush.bf16.msrb.mxu2 %v7648_v46 }
 0x681   :  { %v1674_v57 = vpop.f32.mrf.mxu0  ;;  %v1687_v59 = vpop.f32.mrf.mxu1 }
 0x682   :  { %v1717_v63 = vadd.f32 %v1674_v57, %v460_v52  ;;  %v1718_v7 = vadd.f32 %v1687_v59, %v493_v56 }
 0x684   :  { %v6071_v8 = vmul.f32 -1.442695, %v1717_v63  ;;  %v6072_v10 = vmul.f32 -1.442695, %v1718_v7 }
 0x686   :  { %8181 = vpow2.f32 %v6071_v8 }
 0x687   :  { %8183 = vpow2.f32 %v6072_v10  ;;  %v2007_v10 = vld [vmem:[%s10289_s4] sm:$0xff] }
 0x688   :  { %v1700_v18 = vpop.f32.mrf.mxu2  ;;  %v1713_v20 = vpop.f32.mrf.mxu3  ;;  %v9640_v12 = vpack.c.bf16 %v2007_v10, %v2007_v10 }
 0x689   :  { %v1720_v25 = vadd.f32 %v1713_v20, %v559_v17  ;;  %v1676_v26 = vpop.f32.mrf.mxu0  ;;  %v1689_v48 = vpop.f32.mrf.mxu1  ;;  %v1719_v54 = vadd.f32 %v1700_v18, %v526_v3  ;;  %v7647_v17 = vld [vmem:[%s10288_s12 + $0x28] sm:$0xff]  ;;  %v7646_v18 = vld [vmem:[%s10288_s12 + $0x20] sm:$0xff]  ;;  %v7645_v20 = vld [vmem:[%s10288_s12 + $0x18] sm:$0xff] }
 0x68a   :  { %2116 = vmatpush.bf16.msrb.mxu2 %v7647_v17  ;;  %v7640_v26 = vld [vmem:[%s10290_s11 + $0x38] sm:$0xff]  ;;  %v7643_v48 = vld [vmem:[%s10288_s12 + $0x8] sm:$0xff] }
 0x68b   :  { %v6073_v29 = vmul.f32 -1.442695, %v1720_v25  ;;  %v7644_v25 = vld [vmem:[%s10288_s12 + $0x10] sm:$0xff]  ;;  %1977 = vmatpush.bf16.msra.mxu0 %v7640_v26 }
 0x68c   :  { %v8182_v34 = vpop.eup %8181 }
 0x68d   :  { %v8184_v36 = vpop.eup %8183  ;;  %v1724_v39 = vadd.f32 1.0, %v8182_v34  ;;  %8185 = vpow2.f32 %v6073_v29  ;;  %v7639_v29 = vld [vmem:[%s10290_s11 + $0x30] sm:$0xff]  ;;  %v7642_v34 = vld [vmem:[%s10288_s12] sm:$0xff] }
 0x68e   :  { %v1743_v40 = vadd.f32 1.0, %v8184_v36  ;;  %2117 = vmatpush.bf16.msrb.mxu2 %v7646_v18  ;;  %v7638_v36 = vld [vmem:[%s10290_s11 + $0x28] sm:$0xff] }
 0x68f   :  { %8187 = vrcp.f32 %v1724_v39  ;;  %v1736_v49 = vand.u32 2147483648, %v1724_v39  ;;  %v1734_v30 = vand.u32 2147483647, %v1724_v39  ;;  %vm1730_vm10 = vweird.f32 %v1724_v39  ;;  %1978 = vmatpush.bf16.msra.mxu0 %v7639_v29 }
 0x690   :  { %8189 = vrcp.f32 %v1743_v40  ;;  %v1702_v44 = vpop.f32.mrf.mxu2  ;;  %v1715_v50 = vpop.f32.mrf.mxu3  ;;  %v1755_v6 = vand.u32 2147483648, %v1743_v40  ;;  %v1753_v55 = vand.u32 2147483647, %v1743_v40  ;;  %vm1749_vm11 = vweird.f32 %v1743_v40 }
 0x691   :  { %v1737_v38 = vor.u32 1.1754944e-38, %v1736_v49  ;;  %vm1735_vm14 = vcmp.eq.f32.partialorder %v1734_v30, 8.507059e+37 }
 0x692   :  { %v1756_v32 = vor.u32 1.1754944e-38, %v1755_v6  ;;  %vm1754_vm15 = vcmp.eq.f32.partialorder %v1753_v55, 8.507059e+37  ;;  %2118 = vmatpush.bf16.msrb.mxu2 %v7645_v20  ;;  %v8059_v55 = vld [vmem:[%s10293_s0] ss:$0 sm:$0xff] }
 0x693   :  { %v8186_v0 = vpop.eup %8185  ;;  %1979 = vmatpush.bf16.msra.mxu0 %v7638_v36  ;;  %v7653_v36 = vld [vmem:[%s10296_s3 + $0x18] sm:$0xff] }
 0x694   :  { %v1763_v19 = vadd.f32 1.0, %v8186_v0 }
 0x695   :  { %v8188_v31 = vpop.eup %8187 }
 0x696   :  { %v8190_v62 = vpop.eup %8189  ;;  %v1726_v27 = vmul.f32 %v8188_v31, %v1724_v39  ;;  %8191 = vrcp.f32 %v1763_v19  ;;  %vm1731_vm8 = vweird.f32 %v8188_v31  ;;  %v1775_v53 = vand.u32 2147483648, %v1763_v19  ;;  %2119 = vmatpush.bf16.msrb.mxu2 %v7644_v25  ;;  %v7637_v39 = vld [vmem:[%s10290_s11 + $0x20] sm:$0xff] }
 0x697   :  { %v1745_v47 = vmul.f32 %v8190_v62, %v1743_v40  ;;  %8193 = vtanh.f32 %v1719_v54  ;;  %vm1750_vm9 = vweird.f32 %v8190_v62  ;;  %vm1732_vm12 = vmor %vm1730_vm10, %vm1731_vm8  ;;  %vm1769_vm1 = vweird.f32 %v1763_v19  ;;  %1980 = vmatpush.bf16.msra.mxu0 %v7637_v39  ;;  %v7636_v40 = vld [vmem:[%s10290_s11 + $0x18] sm:$0xff] }
 0x698   :  { %v1727_v4 = vsub.f32 1.0, %v1726_v27  ;;  %vm1751_vm13 = vmor %vm1749_vm11, %vm1750_vm9  ;;  %v1773_v56 = vand.u32 2147483647, %v1763_v19  ;;  %v1776_v59 = vor.u32 1.1754944e-38, %v1775_v53 }
 0x699   :  { %v1746_v1 = vsub.f32 1.0, %v1745_v47 }
 0x69a   :  { %v1728_v23 = vmul.f32 %v8188_v31, %v1727_v4  ;;  %vm1774_vm3 = vcmp.eq.f32.partialorder %v1773_v56, 8.507059e+37  ;;  %2120 = vmatpush.bf16.msrb.mxu2 %v7643_v48 }
 0x69b   :  { %v1747_v28 = vmul.f32 %v8190_v62, %v1746_v1  ;;  %1981 = vmatpush.bf16.msra.mxu0 %v7636_v40  ;;  %v7633_v1 = vld [vmem:[%s10290_s11] sm:$0xff] }
 0x69c   :  { %v8192_v42 = vpop.eup %8191  ;;  %v1729_v9 = vadd.f32 %v8188_v31, %v1728_v23 }
 0x69d   :  { %v1748_v21 = vadd.f32 %v8190_v62, %v1747_v28  ;;  %v1765_v35 = vmul.f32 %v8192_v42, %v1763_v19  ;;  %v8194_v24 = vpop.eup %8193  ;;  %vm1770_vm0 = vweird.f32 %v8192_v42  ;;  %v7635_v19 = vld [vmem:[%s10290_s11 + $0x10] sm:$0xff] }
 0x69e   :  { %v1733_v41 = vsel %vm1732_vm12, %v8188_v31, %v1729_v9  ;;  %vm1771_vm2 = vmor %vm1769_vm1, %vm1770_vm0  ;;  %2121 = vmatpush.bf16.msrb.mxu2 %v7642_v34  ;;  %v7634_v31 = vld [vmem:[%s10290_s11 + $0x8] sm:$0xff]  ;;  %vm1990_vm1 = vcmask 162816  }
 0x69f   :  { %v1738_v58 = vsel %vm1735_vm14, %v1737_v38, %v1733_v41  ;;  %v1752_v2 = vsel %vm1751_vm13, %v8190_v62, %v1748_v21  ;;  %v1766_v43 = vsub.f32 1.0, %v1765_v35  ;;  %1982 = vmatpush.bf16.msra.mxu0 %v7635_v19  ;;  %v10294_v62 = vld [vmem:[#allocation76_spill] sm:$0xff]  ;;  %v1994_v38 = vld [vmem:[%s10295_s16] sm:$0xff] }
 0x6a0   :  { %v1757_v16 = vsel %vm1754_vm15, %v1756_v32, %v1752_v2  ;;  %v1780_v15 = vmul.f32 %v8194_v24, %v1738_v58  ;;  %v7657_v21 = vld [vmem:[%s10296_s3 + $0x38] sm:$0xff]  ;;  %1996 = vrot.lane.b32.xlu0 %v1994_v38, %s8782_s17  ;;  %v7656_v41 = vld [vmem:[%s10296_s3 + $0x30] sm:$0xff] }
 0x6a1   :  { %v1779_v33 = vmul.f32 %v1757_v16, %v9618_v14  ;;  %v1767_v45 = vmul.f32 %v8192_v42, %v1766_v43  ;;  %2197 = vmatpush.bf16.msra.mxu3 %v7657_v21  ;;  %v10297_v16 = vld [vmem:[#allocation78_spill] sm:$0xff] }
 0x6a3   :  { %v9636_v5 = vadd.f32 %v1780_v15, %v1779_v33  ;;  %v1768_v52 = vadd.f32 %v8192_v42, %v1767_v45  ;;  %1983 = vmatpush.bf16.msra.mxu0 %v7634_v31  ;;  %v7655_v45 = vld [vmem:[%s10296_s3 + $0x28] sm:$0xff] }
 0x6a5   :  { %8195 = vtanh.f32 %v9636_v5  ;;  %v1772_v57 = vsel %vm1771_vm2, %v8192_v42, %v1768_v52  ;;  %2198 = vmatpush.bf16.msra.mxu3 %v7656_v41  ;;  %v8061_v41 = vld [vmem:[%s10300_s20] ss:$0 sm:$0xff]  ;;  %vm2005_vm2 = vcmask 80896  }
 0x6a6   :  { %v1777_v63 = vsel %vm1774_vm3, %v1776_v59, %v1772_v57  ;;  %vm2656_vm3 = vcmask 1044480  }
 0x6a7   :  { %1984 = vmatpush.bf16.msra.mxu0 %v7633_v1  ;;  %v7651_v1 = vld [vmem:[%s10296_s3 + $0x8] sm:$0xff] }
 0x6a9   :  { %2199 = vmatpush.bf16.msra.mxu3 %v7655_v45  ;;  %v7659_v45 = vld [vmem:[%s10299_s26 + $0x8] sm:$0xff] }
 0x6ab   :  { %v8196_v14 = vpop.eup %8195 }
 0x6ac   :  { %v1783_v7 = vmul.f32 %v8196_v14, %v1777_v63 }
 0x6ae   :  { %v1788_v8 = vpack.c.bf16 %v1783_v7, %v1783_v7 }
 0x6b0   :  { %1797 = vmatmul.bf16.vlgmr.msrb.gmra.mxu0 %v1788_v8  ;;  %1810 = vmatmul.bf16.vlgmr.msrb.gmra.mxu1 %v1788_v8 }
 0x6b1   :  { %1823 = vmatmul.bf16.vlgmr.msra.gmra.mxu2 %v1788_v8  ;;  %1836 = vmatmul.bf16.vlgmr.msrb.gmra.mxu3 %v1788_v8  ;;  %v7654_v8 = vld [vmem:[%s10296_s3 + $0x20] sm:$0xff] }
 0x6b2   :  { %2200 = vmatpush.bf16.msra.mxu3 %v7654_v8 }
 0x6b6   :  { %2201 = vmatpush.bf16.msra.mxu3 %v7653_v36 }
 0x6c0   :  { %6113 = vmatmul.msk.bf16.vlgmr.msra.gmra.mxu1 %vm2020_vm4, %v9640_v12 }
 0x72d   :  { %v1798_v44 = vpop.f32.mrf.mxu0  ;;  %v1811_v50 = vpop.f32.mrf.mxu1 }
 0x72e   :  { %v1841_v0 = vadd.f32 %v1798_v44, %v10291_v51  ;;  %v1842_v3 = vadd.f32 %v1811_v50, %v10292_v61 }
 0x730   :  { %v6074_v11 = vmul.f32 -1.442695, %v1841_v0  ;;  %v6075_v13 = vmul.f32 -1.442695, %v1842_v3 }
 0x732   :  { %8197 = vpow2.f32 %v6074_v11  ;;  %v7652_v11 = vld [vmem:[%s10296_s3 + $0x10] sm:$0xff] }
 0x733   :  { %8199 = vpow2.f32 %v6075_v13  ;;  %2202 = vmatpush.bf16.msra.mxu3 %v7652_v11 }
 0x734   :  { %v1824_v54 = vpop.f32.mrf.mxu2  ;;  %v1837_v60 = vpop.f32.mrf.mxu3 }
 0x735   :  { %v1844_v27 = vadd.f32 %v1837_v60, %v10294_v62  ;;  %v1800_v47 = vpop.f32.mrf.mxu0  ;;  %v1813_v4 = vpop.f32.mrf.mxu1  ;;  %v1843_v15 = vadd.f32 %v1824_v54, %v10297_v16 }
 0x737   :  { %v6076_v49 = vmul.f32 -1.442695, %v1844_v27  ;;  %2203 = vmatpush.bf16.msra.mxu3 %v7651_v1  ;;  %v7739_v1 = vld [vmem:[#allocation19 + $0xcc] sm:$0xf] }
 0x738   :  { %v8198_v6 = vpop.eup %8197 }
 0x739   :  { %v8200_v23 = vpop.eup %8199  ;;  %v1848_v30 = vadd.f32 1.0, %v8198_v6  ;;  %8201 = vpow2.f32 %v6076_v49  ;;  %v7650_v49 = vld [vmem:[%s10296_s3] sm:$0xff] }
 0x73a   :  { %v1867_v28 = vadd.f32 1.0, %v8200_v23  ;;  %v8060_v6 = vld [vmem:[%s10298_s7] ss:$0 sm:$0xff]  ;;  %v7665_v23 = vld [vmem:[%s10299_s26 + $0x38] sm:$0xff] }
 0x73b   :  { %8203 = vrcp.f32 %v1848_v30  ;;  %v1860_v57 = vand.u32 2147483648, %v1848_v30  ;;  %v1858_v7 = vand.u32 2147483647, %v1848_v30  ;;  %vm1854_vm7 = vweird.f32 %v1848_v30  ;;  %2204 = vmatpush.bf16.msra.mxu3 %v7650_v49  ;;  %2280 = vmatpush.bf16.msrb.mxu1 %v7665_v23  ;;  %v6486_v49 = vld [vmem:[#allocation19 + $0xd8] sm:$0xf0] }
 0x73c   :  { %8205 = vrcp.f32 %v1867_v28  ;;  %v1826_v42 = vpop.f32.mrf.mxu2  ;;  %v1839_v9 = vpop.f32.mrf.mxu3  ;;  %v1879_v14 = vand.u32 2147483648, %v1867_v28  ;;  %v1877_v17 = vand.u32 2147483647, %v1867_v28  ;;  %vm1873_vm8 = vweird.f32 %v1867_v28 }
 0x73d   :  { %v2040_v35 = vpop.f32.mrf.mxu1  ;;  %v1861_v25 = vor.u32 1.1754944e-38, %v1860_v57  ;;  %vm1859_vm11 = vcmp.eq.f32.partialorder %v1858_v7, 8.507059e+37  ;;  %v7663_v9 = vld [vmem:[%s10299_s26 + $0x28] sm:$0xff]  ;;  %v7670_v57 = vld [vmem:[%s10301_s24 + $0x20] sm:$0xff]  ;;  %v6489_v23 = vor.u32 %v7739_v1, %v6486_v49  ;;  %v7722_v49 = vld [vmem:[#allocation19 + $0x44] sm:$0xf] }
 0x73e   :  { %v2041_v32 = vadd.f32 %v8059_v55, %v2040_v35  ;;  %v1880_v29 = vor.u32 1.1754944e-38, %v1879_v14  ;;  %vm1878_vm12 = vcmp.eq.f32.partialorder %v1877_v17, 8.507059e+37  ;;  %v7662_v35 = vld [vmem:[%s10299_s26 + $0x20] sm:$0xff]  ;;  %v7668_v14 = vld [vmem:[%s10301_s24 + $0x10] sm:$0xff] }
 0x73f   :  { %v8202_v24 = vpop.eup %8201 }
 0x740   :  { %v1887_v58 = vadd.f32 1.0, %v8202_v24  ;;  %v2044_v2 = vmax.f32 %v2041_v32, 0.0  ;;  %v7661_v32 = vld [vmem:[%s10299_s26 + $0x18] sm:$0xff] }
 0x741   :  { %v8204_v43 = vpop.eup %8203 }
 0x742   :  { %v8206_v37 = vpop.eup %8205  ;;  %v1850_v33 = vmul.f32 %v8204_v43, %v1848_v30  ;;  %8207 = vrcp.f32 %v1887_v58  ;;  %v2045_v53 = vpack.c.bf16 %v2044_v2, %v2044_v2  ;;  %vm1855_vm5 = vweird.f32 %v8204_v43 }
 0x743   :  { %v1869_v46 = vmul.f32 %v8206_v37, %v1867_v28  ;;  %8209 = vtanh.f32 %v1843_v15  ;;  %vm1874_vm6 = vweird.f32 %v8206_v37  ;;  %vm1856_vm9 = vmor %vm1854_vm7, %vm1855_vm5  ;;  %v1899_v31 = vand.u32 2147483648, %v1887_v58  ;;  %v7664_v28 = vld [vmem:[%s10299_s26 + $0x30] sm:$0xff]  ;;  %v1997_v15 = vpop.permute.xlu0 %1996 }
 0x744   :  { %v1851_v52 = vsub.f32 1.0, %v1850_v33  ;;  %2122 = vmatmul.bf16.vlgmr.msrb.gmra.mxu2 %v2045_v53  ;;  %vm1875_vm10 = vmor %vm1873_vm8, %vm1874_vm6  ;;  %vm1893_vm14 = vweird.f32 %v1887_v58  ;;  %v1897_v54 = vand.u32 2147483647, %v1887_v58  ;;  %2281 = vmatpush.bf16.msrb.mxu1 %v7664_v28  ;;  %v7672_v53 = vld [vmem:[%s10301_s24 + $0x30] sm:$0xff] }
 0x745   :  { %v1870_v56 = vsub.f32 1.0, %v1869_v46  ;;  %v2042_v59 = vpop.f32.mrf.mxu1  ;;  %v1900_v62 = vor.u32 1.1754944e-38, %v1899_v31  ;;  %v7658_v46 = vld [vmem:[%s10299_s26] sm:$0xff]  ;;  %v6470_v28 = vld [vmem:[#allocation19 + $0xb8] sm:$0xf0] }
 0x746   :  { %v1852_v63 = vmul.f32 %v8204_v43, %v1851_v52  ;;  %vm1898_vm0 = vcmp.eq.f32.partialorder %v1897_v54, 8.507059e+37  ;;  %v7673_v52 = vld [vmem:[%s10301_s24 + $0x38] sm:$0xff]  ;;  %v7699_v31 = vld [vmem:[#allocation16 + $0xc] sm:$0xf]  ;;  %v6370_v54 = vld [vmem:[#allocation16 + $0x18] sm:$0xf0] }
 0x747   :  { %v1871_v10 = vmul.f32 %v8206_v37, %v1870_v56  ;;  %2363 = vmatpush.bf16.msrb.mxu0 %v7673_v52  ;;  %v7671_v56 = vld [vmem:[%s10301_s24 + $0x28] sm:$0xff]  ;;  %v7669_v59 = vld [vmem:[%s10301_s24 + $0x18] sm:$0xff]  ;;  %v7715_v52 = vld [vmem:[#allocation19 + $0xc] sm:$0xf] }
 0x748   :  { %v8208_v18 = vpop.eup %8207  ;;  %v1853_v20 = vadd.f32 %v8204_v43, %v1852_v63  ;;  %2282 = vmatpush.bf16.msrb.mxu1 %v7663_v9  ;;  %v8062_v63 = vld [vmem:[%s10302_s30] ss:$0 sm:$0xff]  ;;  %v7731_v9 = vld [vmem:[#allocation19 + $0x8c] sm:$0xf] }
 0x749   :  { %v1872_v26 = vadd.f32 %v8206_v37, %v1871_v10  ;;  %v1889_v48 = vmul.f32 %v8208_v18, %v1887_v58  ;;  %v8210_v39 = vpop.eup %8209  ;;  %vm1894_vm13 = vweird.f32 %v8208_v18  ;;  %v7660_v58 = vld [vmem:[%s10299_s26 + $0x10] sm:$0xff] }
 0x74a   :  { %v1857_v34 = vsel %vm1856_vm9, %v8204_v43, %v1853_v20  ;;  %vm1895_vm15 = vmor %vm1893_vm14, %vm1894_vm13 }
 0x74b   :  { %v1862_v40 = vsel %vm1859_vm11, %v1861_v25, %v1857_v34  ;;  %v1876_v44 = vsel %vm1875_vm10, %v8206_v37, %v1872_v26  ;;  %v1890_v50 = vsub.f32 1.0, %v1889_v48  ;;  %2364 = vmatpush.bf16.msrb.mxu0 %v7672_v53  ;;  %v7667_v26 = vld [vmem:[%s10301_s24 + $0x8] sm:$0xff]  ;;  %v7666_v48 = vld [vmem:[%s10301_s24] sm:$0xff]  ;;  %v6390_v53 = vld [vmem:[#allocation19 + $0x18] sm:$0xf0] }
 0x74c   :  { %v1881_v51 = vsel %vm1878_vm12, %v1880_v29, %v1876_v44  ;;  %v1904_v0 = vmul.f32 %v8210_v39, %v1862_v40  ;;  %2283 = vmatpush.bf16.msrb.mxu1 %v7662_v35  ;;  %v6340_v29 = vld [vmem:[#allocation17] sm:$0xf]  ;;  %v7704_v34 = vld [vmem:[#allocation17 + $0xc] sm:$0x10]  ;;  %v7703_v44 = vld [vmem:[#allocation17 + $0xc] sm:$0xf] }
 0x74d   :  { %v1903_v61 = vmul.f32 %v1881_v51, %v9636_v5  ;;  %v1891_v3 = vmul.f32 %v8208_v18, %v1890_v50  ;;  %v6341_v36 = vor.u32 %v7704_v34, %v6340_v29  ;;  %v6350_v50 = vld [vmem:[#allocation17 + $0x18] sm:$0x10] }
 0x74f   :  { %v1905_v13 = vadd.f32 %v1904_v0, %v1903_v61  ;;  %v1892_v19 = vadd.f32 %v8208_v18, %v1891_v3  ;;  %2365 = vmatpush.bf16.msrb.mxu0 %v7671_v56  ;;  %v2658_v39 = vsel %vm2656_vm3, %v6341_v36, 0  ;;  %v6353_v61 = vor.u32 %v7703_v44, %v6350_v50  ;;  %v7742_v44 = vld [vmem:[#allocation19 + $0xe4] sm:$0xf]  ;;  %v6494_v50 = vld [vmem:[#allocation19 + $0xf0] sm:$0xf0] }
 0x750   :  { %2284 = vmatpush.bf16.msrb.mxu1 %v7661_v32  ;;  %v7727_v32 = vld [vmem:[#allocation19 + $0x6c] sm:$0xf]  ;;  %v6393_v56 = vor.u32 %v7715_v52, %v6390_v53  ;;  %v6348_v52 = vld [vmem:[#allocation17 + $0x8] sm:$0xf]  ;;  %v7705_v53 = vld [vmem:[#allocation17 + $0x14] sm:$0x10] }
 0x751   :  { %8211 = vtanh.f32 %v1905_v13  ;;  %v1896_v60 = vsel %vm1895_vm15, %v8208_v18, %v1892_v19  ;;  %v2667_v13 = vsel %vm2656_vm3, %v6353_v61, 0  ;;  %v6478_v61 = vld [vmem:[#allocation19 + $0xd0] sm:$0xf0] }
 0x752   :  { %v1901_v27 = vsel %vm1898_vm0, %v1900_v62, %v1896_v60  ;;  %v6373_v60 = vor.u32 %v7699_v31, %v6370_v54  ;;  %v7730_v54 = vld [vmem:[#allocation19 + $0x84] sm:$0xf]  ;;  %vm3211_vm0 = vcmask 15360  }
 0x753   :  { %2366 = vmatpush.bf16.msrb.mxu0 %v7670_v57  ;;  %v10305_v57 = vmov 0  }
 0x754   :  { %2285 = vmatpush.bf16.msrb.mxu1 %v7660_v58  ;;  %v2750_v62 = vand.u32 %v6373_v60, %v9630_v22  ;;  %v6446_v60 = vld [vmem:[#allocation19 + $0x90] sm:$0xf0] }
 0x757   :  { %v8212_v5 = vpop.eup %8211  ;;  %2367 = vmatpush.bf16.msrb.mxu0 %v7669_v59  ;;  %v7675_v59 = vld [vmem:[#allocation7 + $0x8] sm:$0xff] }
 0x758   :  { %v1907_v47 = vmul.f32 %v8212_v5, %v1901_v27  ;;  %2286 = vmatpush.bf16.msrb.mxu1 %v7659_v45  ;;  %v7743_v27 = vld [vmem:[#allocation19 + $0xec] sm:$0xf] }
 0x759   :  { %v7676_v45 = vld [vmem:[#allocation7 + $0x10] sm:$0xff] }
 0x75a   :  { %v1908_v4 = vpack.c.bf16 %v1907_v47, %v1907_v47  ;;  %v6502_v47 = vld [vmem:[#allocation19 + $0xf8] sm:$0xf0] }
 0x75b   :  { %2368 = vmatpush.bf16.msrb.mxu0 %v7668_v14  ;;  %v7674_v14 = vld [vmem:[#allocation7] sm:$0xff] }
 0x75c   :  { %1985 = vmatmul.bf16.vlgmr.msra.gmra.mxu0 %v1908_v4  ;;  %2287 = vmatpush.bf16.msrb.mxu1 %v7658_v46  ;;  %v6505_v4 = vor.u32 %v7743_v27, %v6502_v47  ;;  %v6449_v27 = vor.u32 %v7730_v54, %v6446_v60  ;;  %v7726_v47 = vld [vmem:[#allocation19 + $0x64] sm:$0xf]  ;;  %v6436_v60 = vld [vmem:[#allocation19 + $0x68] sm:$0xf] }
 0x75f   :  { %2369 = vmatpush.bf16.msrb.mxu0 %v7667_v26 }
 0x763   :  { %2370 = vmatpush.bf16.msrb.mxu0 %v7666_v48 }
 0x767   :  { %2676 = vmatpush.bf16.msra.mxu0 %v2658_v39 }
 0x7c7   :  { %v2123_v30 = vpop.f32.mrf.mxu2 }
 0x7c8   :  { %v2124_v55 = vadd.f32 %v8060_v6, %v2123_v30  ;;  %v7681_v6 = vld [vmem:[#allocation7 + $0x38] sm:$0xff]  ;;  %v7735_v30 = vld [vmem:[#allocation19 + $0xac] sm:$0xf] }
 0x7c9   :  { %2446 = vmatpush.bf16.msra.mxu2 %v7681_v6  ;;  %v6414_v6 = vld [vmem:[#allocation19 + $0x50] sm:$0xf0] }
 0x7ca   :  { %v2127_v42 = vmax.f32 %v2124_v55, 0.0  ;;  %v7680_v55 = vld [vmem:[#allocation7 + $0x30] sm:$0xff] }
 0x7cc   :  { %v2128_v38 = vpack.c.bf16 %v2127_v42, %v2127_v42  ;;  %v6473_v42 = vor.u32 %v7735_v30, %v6470_v28  ;;  %v6417_v30 = vor.u32 %v7722_v49, %v6414_v6  ;;  %v7718_v28 = vld [vmem:[#allocation19 + $0x24] sm:$0xf]  ;;  %v6404_v49 = vld [vmem:[#allocation19 + $0x28] sm:$0xf]  ;;  %v7721_v6 = vld [vmem:[#allocation19 + $0x34] sm:$0xf0] }
 0x7cd   :  { %2447 = vmatpush.bf16.msra.mxu2 %v7680_v55  ;;  %v6398_v55 = vld [vmem:[#allocation19 + $0x30] sm:$0xf0] }
 0x7ce   :  { %2205 = vmatmul.bf16.vlgmr.msra.gmra.mxu3 %v2128_v38  ;;  %v6454_v38 = vld [vmem:[#allocation19 + $0x98] sm:$0xf0] }
 0x7cf   :  { %v2125_v21 = vpop.f32.mrf.mxu2  ;;  %v6457_v35 = vor.u32 %v7731_v9, %v6454_v38  ;;  %v7714_v9 = vld [vmem:[#allocation19 + $0x4] sm:$0xf]  ;;  %v6382_v38 = vld [vmem:[#allocation19 + $0x10] sm:$0xf0] }
 0x7d0   :  { %v7679_v21 = vld [vmem:[#allocation7 + $0x28] sm:$0xff] }
 0x7d1   :  { %2448 = vmatpush.bf16.msra.mxu2 %v7679_v21 }
 0x7d9   :  { %v1986_v24 = vpop.f32.mrf.mxu0 }
 0x7da   :  { %v1987_v2 = vadd.f32 %v8061_v41, %v1986_v24  ;;  %v6438_v41 = vld [vmem:[#allocation19 + $0x78] sm:$0xf0] }
 0x7db   :  { %v7678_v24 = vld [vmem:[#allocation7 + $0x20] sm:$0xff]  ;;  %v6441_v58 = vor.u32 %v7727_v32, %v6438_v41 }
 0x7dc   :  { %1991 = vst.msk [vmem:[%s8942_s19] sm:$0xff] %vm1990_vm1, %v1987_v2  ;;  %v1992_v43 = vmul.f32 1.442695, %v1987_v2  ;;  %s10303_s19 = sld [smem:[#allocation46_spill]]  ;;  %2449 = vmatpush.bf16.msra.mxu2 %v7678_v24  ;;  %v7689_v24 = vld [vmem:[#allocation10 + $0x38] sm:$0xff] }
 0x7dd   :  { %2529 = vmatpush.bf16.msrb.mxu3 %v7689_v24  ;;  %v7693_v24 = vld [vmem:[#allocation13 + $0x18] sm:$0xff] }
 0x7de   :  { %8213 = vpow2.f32 %v1992_v43  ;;  %v6422_v43 = vld [vmem:[#allocation19 + $0x58] sm:$0xf0] }
 0x7e1   :  { %v1988_v16 = vpop.f32.mrf.mxu0 }
 0x7e2   :  { %v8063_v40 = vld [vmem:[%s10303_s19] ss:$0 sm:$0xff]  ;;  %v7677_v16 = vld [vmem:[#allocation7 + $0x18] sm:$0xff] }
 0x7e3   :  { %2450 = vmatpush.bf16.msra.mxu2 %v7677_v16  ;;  %v7686_v16 = vld [vmem:[#allocation10 + $0x20] sm:$0xff] }
 0x7e4   :  { %v8214_v37 = vpop.eup %8213 }
 0x7e5   :  { %v1999_v33 = vmul.f32 %v8214_v37, %v1997_v15  ;;  %v7719_v37 = vld [vmem:[#allocation19 + $0x2c] sm:$0xf] }
 0x7e7   :  { %2001 = vrot.lane.b32.xlu0 %v1999_v33, %s8783_s6  ;;  %v6406_v33 = vld [vmem:[#allocation19 + $0x38] sm:$0xf0]  ;;  %2451 = vmatpush.bf16.msra.mxu2 %v7676_v45  ;;  %v7683_v45 = vld [vmem:[#allocation10 + $0x8] sm:$0xff] }
 0x7e8   :  { %v6409_v46 = vor.u32 %v7719_v37, %v6406_v33  ;;  %v7684_v33 = vld [vmem:[#allocation10 + $0x10] sm:$0xff] }
 0x7eb   :  { %2452 = vmatpush.bf16.msra.mxu2 %v7675_v59 }
 0x7ef   :  { %2453 = vmatpush.bf16.msra.mxu2 %v7674_v14  ;;  %v8065_v14 = vld [vmem:[#allocation8] ss:$0 sm:$0xff] }
 0x851   :  { %v2206_v7 = vpop.f32.mrf.mxu3 }
 0x852   :  { %v2207_v8 = vadd.f32 %v8062_v63, %v2206_v7  ;;  %v7702_v63 = vld [vmem:[#allocation17 + $0x4] sm:$0xf]  ;;  %v6342_v7 = vld [vmem:[#allocation17 + $0x10] sm:$0x10] }
 0x854   :  { %v2210_v10 = vmax.f32 %v2207_v8, 0.0  ;;  %v6345_v8 = vor.u32 %v7702_v63, %v6342_v7  ;;  %v6368_v63 = vld [vmem:[#allocation16 + $0x8] sm:$0xf]  ;;  %v7701_v7 = vld [vmem:[#allocation16 + $0x14] sm:$0xf0] }
 0x856   :  { %v2211_v17 = vpack.c.bf16 %v2210_v10, %v2210_v10  ;;  %v2661_v10 = vsel %vm2656_vm3, %v6345_v8, 0 }
 0x857   :  { %2689 = vmatpush.bf16.msrb.mxu2 %v2661_v10  ;;  %v6369_v10 = vor.u32 %v7701_v7, %v6368_v63 }
 0x858   :  { %2288 = vmatmul.bf16.vlgmr.msrb.gmra.mxu1 %v2211_v17 }
 0x859   :  { %v2002_v18 = vpop.permute.xlu0 %2001  ;;  %v2208_v25 = vpop.f32.mrf.mxu3 }
 0x85a   :  { %v2004_v20 = vadd.f32 %v2002_v18, %v1987_v2  ;;  %v7723_v2 = vld [vmem:[#allocation19 + $0x4c] sm:$0xf]  ;;  %v7698_v18 = vld [vmem:[#allocation16 + $0x4] sm:$0xf] }
 0x85b   :  { %v6425_v15 = vor.u32 %v7723_v2, %v6422_v43  ;;  %v7687_v2 = vld [vmem:[#allocation10 + $0x28] sm:$0xff] }
 0x85c   :  { %2006 = vst.msk [vmem:[%s8952_s25] sm:$0xff] %vm2005_vm2, %v2004_v20  ;;  %v9700_v5 = vpack.c.bf16 %v2004_v20, %v2004_v20  ;;  %s10304_s25 = sld [smem:[#allocation48_spill]]  ;;  %v6362_v20 = vld [vmem:[#allocation16 + $0x10] sm:$0xf0] }
 0x85d   :  { %v6365_v26 = vor.u32 %v7698_v18, %v6362_v20  ;;  %v2747_v20 = vand.u32 %v6369_v10, %v9630_v22  ;;  %v7740_v10 = vld [vmem:[#allocation19 + $0xcc] sm:$0xf0] }
 0x85f   :  { %v2744_v34 = vand.u32 %v6365_v26, %v9630_v22 }
 0x862   :  { %v8064_v17 = vld [vmem:[%s10304_s25] ss:$0 sm:$0xff] }
 0x8d5   :  { %v2289_v51 = vpop.f32.mrf.mxu1 }
 0x8d6   :  { %v2290_v0 = vadd.f32 %v8063_v40, %v2289_v51  ;;  %v6497_v51 = vor.u32 %v7742_v44, %v6494_v50  ;;  %v7741_v44 = vld [vmem:[#allocation19 + $0xd4] sm:$0xf0] }
 0x8d8   :  { %v2293_v3 = vmax.f32 %v2290_v0, 0.0  ;;  %v7738_v0 = vld [vmem:[#allocation19 + $0xc4] sm:$0xf] }
 0x8da   :  { %v2294_v11 = vpack.c.bf16 %v2293_v3, %v2293_v3 }
 0x8dc   :  { %2371 = vmatmul.bf16.vlgmr.msrb.gmra.mxu0 %v2294_v11  ;;  %v6481_v11 = vor.u32 %v7738_v0, %v6478_v61  ;;  %v6468_v0 = vld [vmem:[#allocation19 + $0xa8] sm:$0xf]  ;;  %v7737_v61 = vld [vmem:[#allocation19 + $0xb4] sm:$0xf0] }
 0x8dd   :  { %v2291_v19 = vpop.f32.mrf.mxu1  ;;  %2715 = vmatpush.bf16.msrb.mxu0 %v2667_v13  ;;  %v7734_v13 = vld [vmem:[#allocation19 + $0xa4] sm:$0xf] }
 0x8de   :  { %v6462_v19 = vld [vmem:[#allocation19 + $0xb0] sm:$0xf0] }
 0x8df   :  { %v6465_v31 = vor.u32 %v7734_v13, %v6462_v19  ;;  %v7733_v13 = vld [vmem:[#allocation19 + $0x94] sm:$0xf0] }
 0x8ec   :  { %6354 = vmatmul.msk.bf16.vlgmr.msra.gmra.mxu0 %vm2005_vm2, %v9700_v5 }
 0x8ed   :  { %2798 = vmatpush.bf16.msra.mxu0 %v2750_v62 }
 0x8fc   :  { %6357 = vmatmul.msk.bf16.vlgmr.msrb.gmra.mxu0 %vm2005_vm2, %v9700_v5 }
 0x8fd   :  { %3066 = vmatpush.bf16.msrb.mxu0 %v6505_v4  ;;  %v6430_v4 = vld [vmem:[#allocation19 + $0x70] sm:$0xf0] }
 0x8fe   :  { %v6433_v1 = vor.u32 %v7726_v47, %v6430_v4  ;;  %v6420_v47 = vld [vmem:[#allocation19 + $0x48] sm:$0xf] }
 0x901   :  { %3067 = vmatpush.bf16.msrb.mxu0 %v6489_v23 }
 0x905   :  { %3068 = vmatpush.bf16.msrb.mxu0 %v6473_v42  ;;  %v6401_v42 = vor.u32 %v7718_v28, %v6398_v55  ;;  %v7717_v28 = vld [vmem:[#allocation19 + $0x14] sm:$0xf0] }
 0x906   :  { %v7697_v55 = vld [vmem:[#allocation13 + $0x38] sm:$0xff] }
 0x907   :  { %2612 = vmatpush.bf16.msra.mxu1 %v7697_v55 }
 0x909   :  { %3069 = vmatpush.bf16.msrb.mxu0 %v6457_v35  ;;  %v6385_v35 = vor.u32 %v7714_v9, %v6382_v38  ;;  %v7696_v38 = vld [vmem:[#allocation13 + $0x30] sm:$0xff] }
 0x90b   :  { %2613 = vmatpush.bf16.msra.mxu1 %v7696_v38 }
 0x90c   :  { %6377 = vmatmul.msk.bf16.vlgmr.msra.gmra.mxu0 %vm2020_vm4, %v9640_v12 }
 0x90d   :  { %3070 = vmatpush.bf16.msrb.mxu0 %v6441_v58  ;;  %v7688_v58 = vld [vmem:[#allocation10 + $0x30] sm:$0xff] }
 0x90e   :  { %2530 = vmatpush.bf16.msrb.mxu3 %v7688_v58  ;;  %v7692_v58 = vld [vmem:[#allocation13 + $0x10] sm:$0xff] }
 0x911   :  { %3071 = vmatpush.bf16.msrb.mxu0 %v6425_v15  ;;  %v7685_v15 = vld [vmem:[#allocation10 + $0x18] sm:$0xff] }
 0x912   :  { %2531 = vmatpush.bf16.msrb.mxu3 %v7687_v2  ;;  %v7691_v2 = vld [vmem:[#allocation13 + $0x8] sm:$0xff] }
 0x915   :  { %3072 = vmatpush.bf16.msrb.mxu0 %v6409_v46  ;;  %v7682_v46 = vld [vmem:[#allocation10] sm:$0xff] }
 0x916   :  { %2532 = vmatpush.bf16.msrb.mxu3 %v7686_v16  ;;  %v7690_v16 = vld [vmem:[#allocation13] sm:$0xff] }
 0x919   :  { %3073 = vmatpush.bf16.msrb.mxu0 %v6393_v56  ;;  %v6349_v56 = vor.u32 %v7705_v53, %v6348_v52 }
 0x91a   :  { %2533 = vmatpush.bf16.msrb.mxu3 %v7685_v15  ;;  %v6360_v15 = vld [vmem:[#allocation16] sm:$0xf] }
 0x91b   :  { %v2664_v59 = vsel %vm2656_vm3, %v6349_v56, 0  ;;  %v6492_v56 = vld [vmem:[#allocation19 + $0xe0] sm:$0xf] }
 0x91c   :  { %3074 = vmatmul.bf16.vlgmr.msrb.gmra.mxu0 %v10305_v57 }
 0x91e   :  { %2534 = vmatpush.bf16.msrb.mxu3 %v7684_v33 }
 0x922   :  { %2535 = vmatpush.bf16.msrb.mxu3 %v7683_v45 }
 0x926   :  { %2536 = vmatpush.bf16.msrb.mxu3 %v7682_v46  ;;  %v8066_v46 = vld [vmem:[#allocation11] ss:$0 sm:$0xff] }
 0x92a   :  { %2702 = vmatpush.bf16.msra.mxu3 %v2664_v59  ;;  %v7744_v59 = vld [vmem:[#allocation19 + $0xec] sm:$0xf0] }
 0x92b   :  { %v6493_v63 = vor.u32 %v7744_v59, %v6492_v56  ;;  %v7770_v59 = vld [vmem:[#allocation19 + $0xc4] sm:$0xf] }
 0x959   :  { %v2372_v25 = vpop.f32.mrf.mxu0 }
 0x95a   :  { %v2373_v48 = vadd.f32 %v8064_v17, %v2372_v25 }
 0x95c   :  { %v2376_v29 = vmax.f32 %v2373_v48, 0.0 }
 0x95e   :  { %v2377_v36 = vpack.c.bf16 %v2376_v29, %v2376_v29  ;;  %v6500_v29 = vld [vmem:[#allocation19 + $0xe8] sm:$0xf] }
 0x960   :  { %2454 = vmatmul.bf16.vlgmr.msra.gmra.mxu2 %v2377_v36 }
 0x961   :  { %v2374_v39 = vpop.f32.mrf.mxu0  ;;  %2772 = vmatpush.bf16.msra.mxu2 %v2744_v34  ;;  %v7745_v34 = vld [vmem:[#allocation19 + $0xf4] sm:$0xf0] }
 0x962   :  { %v6501_v36 = vor.u32 %v7745_v34, %v6500_v29  ;;  %v6484_v39 = vld [vmem:[#allocation19 + $0xc8] sm:$0xf] }
 0x969   :  { %v9712_v40 = vpop.f32.mrf.mxu0 }
 0x970   :  { %6355 = vmatmul.msk.bf16.vlgmr.msrb.gmra.mxu2 %vm2005_vm2, %v9700_v5 }
 0x971   :  { %v2680_v3 = vpop.f32.mrf.mxu0  ;;  %3040 = vmatpush.bf16.msrb.mxu2 %v6497_v51  ;;  %v6485_v51 = vor.u32 %v7741_v44, %v6484_v39  ;;  %v7728_v39 = vld [vmem:[#allocation19 + $0x6c] sm:$0xf0] }
 0x972   :  { %v6469_v3 = vor.u32 %v7737_v61, %v6468_v0 }
 0x975   :  { %3041 = vmatpush.bf16.msrb.mxu2 %v6481_v11  ;;  %v6452_v11 = vld [vmem:[#allocation19 + $0x88] sm:$0xf] }
 0x979   :  { %v2717_v62 = vpop.f32.mrf.mxu0  ;;  %3042 = vmatpush.bf16.msrb.mxu2 %v6465_v31  ;;  %v6453_v31 = vor.u32 %v7733_v13, %v6452_v11  ;;  %v7720_v11 = vld [vmem:[#allocation19 + $0x2c] sm:$0xf0] }
 0x97d   :  { %3043 = vmatpush.bf16.msrb.mxu2 %v6449_v27 }
 0x980   :  { %6375 = vmatmul.msk.bf16.vlgmr.msra.gmra.mxu2 %vm2020_vm4, %v9640_v12 }
 0x981   :  { %v2719_v23 = vpop.f32.mrf.mxu0  ;;  %3044 = vmatpush.bf16.msrb.mxu2 %v6433_v1 }
 0x982   :  { %v6405_v23 = vor.u32 %v7721_v6, %v6404_v49  ;;  %v9742_v49 = vld [vmem:[#allocation22 + $0x38] sm:$0xff] }
 0x985   :  { %3045 = vmatpush.bf16.msrb.mxu2 %v6417_v30  ;;  %v6388_v30 = vld [vmem:[#allocation19 + $0x8] sm:$0xf] }
 0x986   :  { %v6389_v9 = vor.u32 %v7717_v28, %v6388_v30  ;;  %v9750_v28 = vld [vmem:[#allocation22 + $0x30] sm:$0xff] }
 0x989   :  { %v2800_v21 = vpop.f32.mrf.mxu0  ;;  %3046 = vmatpush.bf16.msrb.mxu2 %v6401_v42 }
 0x98a   :  { %v9718_v32 = vadd.f32 %v2800_v21, %v2717_v62  ;;  %v7729_v62 = vld [vmem:[#allocation19 + $0x74] sm:$0xf0]  ;;  %v7695_v21 = vld [vmem:[#allocation13 + $0x28] sm:$0xff] }
 0x98b   :  { %v6437_v27 = vor.u32 %v7729_v62, %v6436_v60  ;;  %2614 = vmatpush.bf16.msra.mxu1 %v7695_v21  ;;  %v9761_v21 = vld [vmem:[#allocation22 + $0x20] sm:$0xff] }
 0x98d   :  { %3047 = vmatpush.bf16.msrb.mxu2 %v6385_v35 }
 0x990   :  { %3048 = vmatmul.bf16.vlgmr.msrb.gmra.mxu2 %v10305_v57 }
 0x991   :  { %v2802_v41 = vpop.f32.mrf.mxu0 }
 0x992   :  { %v7694_v41 = vld [vmem:[#allocation13 + $0x20] sm:$0xff] }
 0x993   :  { %2615 = vmatpush.bf16.msra.mxu1 %v7694_v41  ;;  %v7776_v41 = vld [vmem:[#allocation19 + $0xec] sm:$0xf0] }
 0x997   :  { %2616 = vmatpush.bf16.msra.mxu1 %v7693_v24 }
 0x999   :  { %v9721_v43 = vpop.f32.mrf.mxu0 }
 0x99b   :  { %2617 = vmatpush.bf16.msra.mxu1 %v7692_v58  ;;  %v7774_v58 = vld [vmem:[#allocation19 + $0xe4] sm:$0xf] }
 0x99f   :  { %2618 = vmatpush.bf16.msra.mxu1 %v7691_v2  ;;  %v6657_v2 = vld [vmem:[#allocation19 + $0xf0] sm:$0xf0] }
 0x9a1   :  { %v3077_v37 = vpop.f32.mrf.mxu0 }
 0x9a2   :  { %v7700_v37 = vld [vmem:[#allocation16 + $0xc] sm:$0xf0] }
 0x9a3   :  { %v6361_v33 = vor.u32 %v7700_v37, %v6360_v15  ;;  %2619 = vmatpush.bf16.msra.mxu1 %v7690_v16  ;;  %v6663_v16 = vld [vmem:[#allocation19 + $0xe8] sm:$0xf]  ;;  %v7777_v37 = vld [vmem:[#allocation19 + $0xf4] sm:$0xf0] }
 0x9a5   :  { %v2741_v45 = vand.u32 %v6361_v33, %v9630_v22  ;;  %v6444_v22 = vld [vmem:[#allocation19 + $0x80] sm:$0xf]  ;;  %v6664_v33 = vor.u32 %v7777_v37, %v6663_v16 }
 0x9a6   :  { %v6575_v37 = vld [vmem:[#allocation19 + $0x40] sm:$0xf] }
 0x9a7   :  { %2759 = vmatpush.bf16.msrb.mxu1 %v2741_v45  ;;  %3431 = vmatpush.bf16.msra.mxu0 %v6664_v33  ;;  %v7756_v33 = vld [vmem:[#allocation19 + $0x4c] sm:$0xf0] }
 0x9e3   :  { %v2455_v8 = vpop.f32.mrf.mxu2 }
 0x9e4   :  { %v2456_v17 = vadd.f32 %v8065_v14, %v2455_v8  ;;  %v6476_v8 = vld [vmem:[#allocation19 + $0xc0] sm:$0xf] }
 0x9e6   :  { %v2459_v18 = vmax.f32 %v2456_v17, 0.0 }
 0x9e8   :  { %v2460_v25 = vpack.c.bf16 %v2459_v18, %v2459_v18  ;;  %v6477_v18 = vor.u32 %v7740_v10, %v6476_v8  ;;  %v7773_v8 = vld [vmem:[#allocation19 + $0xd4] sm:$0xf0] }
 0x9ea   :  { %2537 = vmatmul.bf16.vlgmr.msrb.gmra.mxu3 %v2460_v25  ;;  %v7736_v25 = vld [vmem:[#allocation19 + $0xac] sm:$0xf0] }
 0x9eb   :  { %v2457_v26 = vpop.f32.mrf.mxu2  ;;  %2785 = vmatpush.bf16.msrb.mxu3 %v2747_v20  ;;  %v6460_v20 = vld [vmem:[#allocation19 + $0xa0] sm:$0xf] }
 0x9ec   :  { %v6461_v26 = vor.u32 %v7736_v25, %v6460_v20  ;;  %v6623_v20 = vld [vmem:[#allocation19 + $0xa0] sm:$0xf]  ;;  %v7768_v25 = vld [vmem:[#allocation19 + $0xac] sm:$0xf0] }
 0x9f3   :  { %v2691_v48 = vpop.f32.mrf.mxu2 }
 0x9fa   :  { %6356 = vmatmul.msk.bf16.vlgmr.msra.gmra.mxu3 %vm2005_vm2, %v9700_v5  ;;  %v7725_v5 = vld [vmem:[#allocation19 + $0x54] sm:$0xf0] }
 0x9fb   :  { %v2693_v50 = vpop.f32.mrf.mxu2  ;;  %3053 = vmatpush.bf16.msra.mxu3 %v6501_v36  ;;  %v6421_v1 = vor.u32 %v7725_v5, %v6420_v47  ;;  %v6428_v36 = vld [vmem:[#allocation19 + $0x60] sm:$0xf] }
 0x9fc   :  { %v6429_v44 = vor.u32 %v7728_v39, %v6428_v36  ;;  %v6412_v50 = vld [vmem:[#allocation19 + $0x40] sm:$0xf]  ;;  %v7769_v39 = vld [vmem:[#allocation19 + $0xb4] sm:$0xf0] }
 0x9ff   :  { %3054 = vmatpush.bf16.msra.mxu3 %v6485_v51  ;;  %v7724_v51 = vld [vmem:[#allocation19 + $0x4c] sm:$0xf0] }
 0xa00   :  { %v6413_v61 = vor.u32 %v7724_v51, %v6412_v50  ;;  %v9776_v51 = vld [vmem:[#allocation22 + $0x8] sm:$0xff] }
 0xa03   :  { %v2774_v19 = vpop.f32.mrf.mxu2  ;;  %3055 = vmatpush.bf16.msra.mxu3 %v6469_v3  ;;  %v6396_v3 = vld [vmem:[#allocation19 + $0x20] sm:$0xf] }
 0xa04   :  { %v9727_v54 = vadd.f32 %v2774_v19, %v2691_v48  ;;  %v7732_v48 = vld [vmem:[#allocation19 + $0x8c] sm:$0xf0]  ;;  %v6397_v13 = vor.u32 %v7720_v11, %v6396_v3  ;;  %v6380_v19 = vld [vmem:[#allocation19] sm:$0xf]  ;;  %v7762_v11 = vld [vmem:[#allocation19 + $0x84] sm:$0xf] }
 0xa05   :  { %v6445_v34 = vor.u32 %v7732_v48, %v6444_v22  ;;  %v7766_v22 = vld [vmem:[#allocation19 + $0xa4] sm:$0xf]  ;;  %v6625_v48 = vld [vmem:[#allocation19 + $0xb0] sm:$0xf0] }
 0xa06   :  { %v6628_v36 = vor.u32 %v7766_v22, %v6625_v48  ;;  %v7750_v22 = vld [vmem:[#allocation19 + $0x24] sm:$0xf]  ;;  %v6561_v48 = vld [vmem:[#allocation19 + $0x30] sm:$0xf0] }
 0xa07   :  { %3056 = vmatpush.bf16.msra.mxu3 %v6453_v31  ;;  %v7716_v31 = vld [vmem:[#allocation19 + $0xc] sm:$0xf0] }
 0xa08   :  { %v6381_v62 = vor.u32 %v7716_v31, %v6380_v19  ;;  %v6615_v19 = vld [vmem:[#allocation19 + $0x88] sm:$0xf] }
 0xa0a   :  { %6376 = vmatmul.msk.bf16.vlgmr.msrb.gmra.mxu3 %vm2020_vm4, %v9640_v12 }
 0xa0b   :  { %v2776_v4 = vpop.f32.mrf.mxu2  ;;  %3057 = vmatpush.bf16.msra.mxu3 %v6437_v27 }
 0xa0c   :  { %v8067_v4 = vld [vmem:[#allocation14] ss:$0 sm:$0xff] }
 0xa0f   :  { %3058 = vmatpush.bf16.msra.mxu3 %v6421_v1 }
 0xa13   :  { %v9731_v42 = vpop.f32.mrf.mxu2  ;;  %3059 = vmatpush.bf16.msra.mxu3 %v6405_v23  ;;  %v9745_v23 = vld [vmem:[#allocation20] sm:$0xf] }
 0xa14   :  { %v2807_v30 = vperm.slane %v9745_v23, 1  ;;  %v2809_v45 = vperm.slane %v9745_v23, 3 }
 0xa17   :  { %3060 = vmatpush.bf16.msra.mxu3 %v6389_v9  ;;  %v9756_v9 = vld [vmem:[#allocation22 + $0x28] sm:$0xff] }
 0xa1a   :  { %3061 = vmatmul.bf16.vlgmr.msra.gmra.mxu3 %v10305_v57 }
 0xa1b   :  { %v3051_v35 = vpop.f32.mrf.mxu2 }
 0xa1c   :  { %v6655_v35 = vld [vmem:[#allocation19 + $0xe0] sm:$0xf] }
 0xa1d   :  { %v6656_v24 = vor.u32 %v7776_v41, %v6655_v35  ;;  %v6593_v35 = vld [vmem:[#allocation19 + $0x70] sm:$0xf0]  ;;  %v6599_v41 = vld [vmem:[#allocation19 + $0x68] sm:$0xf] }
 0xa1f   :  { %3405 = vmatpush.bf16.msra.mxu2 %v6656_v24 }
 0xa6d   :  { %v2538_v52 = vpop.f32.mrf.mxu3 }
 0xa6e   :  { %v2539_v53 = vadd.f32 %v8066_v46, %v2538_v52  ;;  %v9765_v46 = vld [vmem:[#allocation22 + $0x18] sm:$0xff] }
 0xa6f   :  { %v6639_v52 = vld [vmem:[#allocation19 + $0xc0] sm:$0xf] }
 0xa70   :  { %v2542_v14 = vmax.f32 %v2539_v53, 0.0  ;;  %v7772_v53 = vld [vmem:[#allocation19 + $0xcc] sm:$0xf0] }
 0xa71   :  { %v6640_v56 = vor.u32 %v7772_v53, %v6639_v52  ;;  %v6576_v52 = vor.u32 %v7756_v33, %v6575_v37  ;;  %v6577_v53 = vld [vmem:[#allocation19 + $0x50] sm:$0xf0]  ;;  %v2808_v37 = vperm.slane %v9745_v23, 2 }
 0xa72   :  { %v2543_v7 = vpack.c.bf16 %v2542_v14, %v2542_v14  ;;  %v6641_v14 = vld [vmem:[#allocation19 + $0xd0] sm:$0xf0] }
 0xa73   :  { %3406 = vmatpush.bf16.msra.mxu2 %v6640_v56  ;;  %v6583_v56 = vld [vmem:[#allocation19 + $0x48] sm:$0xf] }
 0xa74   :  { %2620 = vmatmul.bf16.vlgmr.msra.gmra.mxu1 %v2543_v7  ;;  %v6644_v7 = vor.u32 %v7770_v59, %v6641_v14  ;;  %v7757_v59 = vld [vmem:[#allocation19 + $0x54] sm:$0xf0] }
 0xa75   :  { %v2540_v17 = vpop.f32.mrf.mxu3  ;;  %3027 = vmatpush.bf16.msra.mxu1 %v6493_v63  ;;  %v6647_v63 = vld [vmem:[#allocation19 + $0xc8] sm:$0xf] }
 0xa76   :  { %v6648_v10 = vor.u32 %v7773_v8, %v6647_v63  ;;  %v9769_v17 = vadd.f32 %v2809_v45, %v9718_v32  ;;  %v7754_v45 = vld [vmem:[#allocation19 + $0x44] sm:$0xf]  ;;  %v7771_v8 = vld [vmem:[#allocation19 + $0xcc] sm:$0xf] }
 0xa77   :  { %v6580_v63 = vor.u32 %v7754_v45, %v6577_v53  ;;  %v7755_v45 = vld [vmem:[#allocation19 + $0x4c] sm:$0xf] }
 0xa78   :  { %3432 = vmatpush.bf16.msra.mxu0 %v6648_v10  ;;  %v6649_v10 = vld [vmem:[#allocation19 + $0xd8] sm:$0xf0] }
 0xa79   :  { %3028 = vmatpush.bf16.msra.mxu1 %v6477_v18  ;;  %v9771_v18 = vld [vmem:[#allocation22 + $0x10] sm:$0xff] }
 0xa7d   :  { %v2704_v29 = vpop.f32.mrf.mxu3  ;;  %3029 = vmatpush.bf16.msra.mxu1 %v6461_v26  ;;  %v6624_v26 = vor.u32 %v7768_v25, %v6623_v20  ;;  %v6559_v20 = vld [vmem:[#allocation19 + $0x20] sm:$0xf]  ;;  %v6652_v25 = vor.u32 %v7771_v8, %v6649_v10 }
 0xa7f   :  { %3407 = vmatpush.bf16.msra.mxu2 %v6624_v26  ;;  %v7752_v26 = vld [vmem:[#allocation19 + $0x2c] sm:$0xf0] }
 0xa81   :  { %3030 = vmatpush.bf16.msra.mxu1 %v6445_v34  ;;  %v3082_v34 = vadd.f32 %v9721_v43, %v9769_v17 }
 0xa83   :  { %v6508_v31 = vmul.f32 -1.442695, %v3082_v34  ;;  %v6560_v34 = vor.u32 %v7752_v26, %v6559_v20  ;;  %v7747_v26 = vld [vmem:[#allocation19 + $0xc] sm:$0xf] }
 0xa84   :  { %6374 = vmatmul.msk.bf16.vlgmr.msrb.gmra.mxu1 %vm2020_vm4, %v9640_v12 }
 0xa85   :  { %v2706_v0 = vpop.f32.mrf.mxu3  ;;  %3031 = vmatpush.bf16.msra.mxu1 %v6429_v44 }
 0xa86   :  { %v6607_v0 = vld [vmem:[#allocation19 + $0x80] sm:$0xf] }
 0xa89   :  { %3032 = vmatpush.bf16.msra.mxu1 %v6413_v61  ;;  %v7764_v61 = vld [vmem:[#allocation19 + $0x8c] sm:$0xf0] }
 0xa8a   :  { %v6608_v3 = vor.u32 %v7764_v61, %v6607_v0  ;;  %v6543_v0 = vld [vmem:[#allocation19] sm:$0xf] }
 0xa8c   :  { %3408 = vmatpush.bf16.msra.mxu2 %v6608_v3 }
 0xa8d   :  { %v2787_v60 = vpop.f32.mrf.mxu3  ;;  %3033 = vmatpush.bf16.msra.mxu1 %v6397_v13  ;;  %v6609_v13 = vld [vmem:[#allocation19 + $0x90] sm:$0xf0] }
 0xa8e   :  { %v9737_v27 = vadd.f32 %v2787_v60, %v2704_v29  ;;  %v6631_v29 = vld [vmem:[#allocation19 + $0xa8] sm:$0xf]  ;;  %v6612_v43 = vor.u32 %v7762_v11, %v6609_v13  ;;  %v7765_v60 = vld [vmem:[#allocation19 + $0x94] sm:$0xf0]  ;;  %v7748_v13 = vld [vmem:[#allocation19 + $0xc] sm:$0xf0] }
 0xa8f   :  { %v6632_v32 = vor.u32 %v7769_v39, %v6631_v29  ;;  %v7753_v39 = vld [vmem:[#allocation19 + $0x34] sm:$0xf0] }
 0xa91   :  { %3034 = vmatpush.bf16.msra.mxu1 %v6381_v62  ;;  %3433 = vmatpush.bf16.msra.mxu0 %v6632_v32  ;;  %v6564_v32 = vor.u32 %v7750_v22, %v6561_v48  ;;  %v6553_v22 = vld [vmem:[#allocation19 + $0x18] sm:$0xf0]  ;;  %v6757_v48 = vld [vmem:[#allocation19 + $0xb0] sm:$0xf0] }
 0xa94   :  { %3035 = vmatmul.bf16.vlgmr.msra.gmra.mxu1 %v10305_v57  ;;  %v9754_v57 = vadd.f32 %v2807_v30, %v9727_v54  ;;  %v6660_v54 = vor.u32 %v7774_v58, %v6657_v2  ;;  %v7760_v30 = vld [vmem:[#allocation19 + $0x6c] sm:$0xf0]  ;;  %v7761_v58 = vld [vmem:[#allocation19 + $0x74] sm:$0xf0]  ;;  %v7775_v2 = vld [vmem:[#allocation19 + $0xec] sm:$0xf] }
 0xa95   :  { %v2789_v47 = vpop.f32.mrf.mxu3  ;;  %3198 = vmatpush.bf16.msrb.mxu1 %v9742_v49 }
 0xa96   :  { %v3080_v38 = vadd.f32 %v9731_v42, %v9754_v57  ;;  %3418 = vmatpush.bf16.msrb.mxu3 %v6660_v54 }
 0xa98   :  { %v6507_v15 = vmul.f32 -1.442695, %v3080_v38  ;;  %v7758_v38 = vld [vmem:[#allocation19 + $0x64] sm:$0xf] }
 0xa99   :  { %3199 = vmatpush.bf16.msrb.mxu1 %v9750_v28  ;;  %v6596_v24 = vor.u32 %v7758_v38, %v6593_v35 }
 0xa9a   :  { %8215 = vpow2.f32 %v6507_v15  ;;  %3419 = vmatpush.bf16.msrb.mxu3 %v6644_v7  ;;  %v6600_v15 = vor.u32 %v7761_v58, %v6599_v41  ;;  %v6584_v7 = vor.u32 %v7757_v59, %v6583_v56  ;;  %v9802_v56 = vadd.f32 %v2808_v37, %v9737_v27  ;;  %v7751_v59 = vld [vmem:[#allocation19 + $0x2c] sm:$0xf]  ;;  %v6795_v37 = vld [vmem:[#allocation19 + $0xe8] sm:$0xf] }
 0xa9d   :  { %v9740_v12 = vpop.f32.mrf.mxu3  ;;  %3200 = vmatpush.bf16.msrb.mxu1 %v9756_v9 }
 0xa9e   :  { %3420 = vmatpush.bf16.msrb.mxu3 %v6628_v36  ;;  %v6567_v36 = vld [vmem:[#allocation19 + $0x28] sm:$0xf] }
 0xa9f   :  { %v6568_v3 = vor.u32 %v7753_v39, %v6567_v36 }
 0xaa0   :  { %v8216_v44 = vpop.eup %8215 }
 0xaa1   :  { %3201 = vmatpush.bf16.msrb.mxu1 %v9761_v21  ;;  %v9779_v62 = vadd.f32 1.0, %v8216_v44  ;;  %v7767_v44 = vld [vmem:[#allocation19 + $0xac] sm:$0xf] }
 0xaa2   :  { %3421 = vmatpush.bf16.msrb.mxu3 %v6612_v43 }
 0xaa3   :  { %8217 = vrcp.f32 %v9779_v62  ;;  %vm3111_vm5 = vweird.f32 %v9779_v62  ;;  %v3117_v27 = vand.u32 2147483648, %v9779_v62 }
 0xaa4   :  { %8219 = vpow2.f32 %v6508_v31  ;;  %v6545_v31 = vld [vmem:[#allocation19 + $0x10] sm:$0xf0] }
 0xaa5   :  { %v3064_v5 = vpop.f32.mrf.mxu3  ;;  %3202 = vmatpush.bf16.msrb.mxu1 %v9765_v46 }
 0xaa6   :  { %v2806_v5 = vperm.slane %v9745_v23, 0  ;;  %3422 = vmatpush.bf16.msrb.mxu3 %v6596_v24  ;;  %v3081_v23 = vadd.f32 %v9740_v12, %v9802_v56 }
 0xaa9   :  { %3203 = vmatpush.bf16.msrb.mxu1 %v9771_v18  ;;  %v9790_v61 = vpop.eup %8217 }
 0xaaa   :  { %3423 = vmatpush.bf16.msrb.mxu3 %v6580_v63  ;;  %v8220_v43 = vpop.eup %8219  ;;  %vm3112_vm4 = vweird.f32 %v9790_v61 }
 0xaab   :  { %v9794_v35 = vadd.f32 1.0, %v8220_v43  ;;  %vm9812_vm6 = vmor %vm3111_vm5, %vm3112_vm4 }
 0xaad   :  { %3204 = vmatpush.bf16.msrb.mxu1 %v9776_v51  ;;  %vm3131_vm13 = vweird.f32 %v9794_v35 }
 0xaae   :  { %3424 = vmatpush.bf16.msrb.mxu3 %v6564_v32 }
 0xaf1   :  { %v2621_v1 = vpop.f32.mrf.mxu1 }
 0xaf2   :  { %v2622_v6 = vadd.f32 %v8067_v4, %v2621_v1  ;;  %v6616_v4 = vor.u32 %v7765_v60, %v6615_v19  ;;  %v9783_v1 = vld [vmem:[#allocation22] sm:$0xff] }
 0xaf3   :  { %3205 = vmatpush.bf16.msrb.mxu1 %v9783_v1  ;;  %v7746_v19 = vld [vmem:[#allocation19 + $0x4] sm:$0xf]  ;;  %v6551_v60 = vld [vmem:[#allocation19 + $0x8] sm:$0xf] }
 0xaf4   :  { %2625 = vst.msk [vmem:[%s8947_s8] sm:$0xff] %vm1990_vm1, %v2622_v6  ;;  %v6591_v6 = vld [vmem:[#allocation19 + $0x60] sm:$0xf]  ;;  %3434 = vmatpush.bf16.msra.mxu0 %v6616_v4  ;;  %v6544_v4 = vor.u32 %v7748_v13, %v6543_v0  ;;  %v6548_v38 = vor.u32 %v7746_v19, %v6545_v31  ;;  %v3118_v0 = vor.u32 1.1754944e-38, %v3117_v27  ;;  %v7800_v27 = vld [vmem:[#allocation19 + $0xac] sm:$0xf0] }
 0xaf6   :  { %3425 = vmatpush.bf16.msrb.mxu3 %v6548_v38 }
 0xaf8   :  { %3435 = vmatpush.bf16.msra.mxu0 %v6600_v15  ;;  %v7759_v15 = vld [vmem:[#allocation19 + $0x6c] sm:$0xf] }
 0xaf9   :  { %v2623_v55 = vpop.f32.mrf.mxu1 }
 0xafa   :  { %v6592_v55 = vor.u32 %v7760_v30, %v6591_v6  ;;  %v6617_v6 = vld [vmem:[#allocation19 + $0x98] sm:$0xf0]  ;;  %v3107_v30 = vmul.f32 %v9790_v61, %v9779_v62 }
 0xafc   :  { %3409 = vmatpush.bf16.msra.mxu2 %v6592_v55  ;;  %3436 = vmatpush.bf16.msra.mxu0 %v6584_v7 }
 0xb00   :  { %3410 = vmatpush.bf16.msra.mxu2 %v6576_v52  ;;  %3437 = vmatpush.bf16.msra.mxu0 %v6568_v3 }
 0xb01   :  { %v2761_v42 = vpop.f32.mrf.mxu1 }
 0xb02   :  { %v2762_v47 = vadd.f32 %v2761_v42, %v9712_v40  ;;  %v6665_v40 = vld [vmem:[#allocation19 + $0xf8] sm:$0xf0] }
 0xb03   :  { %v6668_v54 = vor.u32 %v7775_v2, %v6665_v40  ;;  %v3108_v2 = vsub.f32 1.0, %v3107_v30 }
 0xb04   :  { %v9787_v16 = vadd.f32 %v2806_v5, %v2762_v47  ;;  %v7749_v47 = vld [vmem:[#allocation19 + $0x14] sm:$0xf0]  ;;  %v7763_v5 = vld [vmem:[#allocation19 + $0x8c] sm:$0xf]  ;;  %3411 = vmatpush.bf16.msra.mxu2 %v6560_v34 }
 0xb05   :  { %3444 = vmatpush.bf16.msra.mxu1 %v6668_v54  ;;  %v6552_v41 = vor.u32 %v7749_v47, %v6551_v60  ;;  %v6620_v24 = vor.u32 %v7763_v5, %v6617_v6  ;;  %v6601_v54 = vld [vmem:[#allocation19 + $0x78] sm:$0xf0]  ;;  %v3109_v52 = vmul.f32 %v9790_v61, %v3108_v2  ;;  %v3135_v6 = vand.u32 2147483647, %v9794_v35  ;;  %v6787_v2 = vld [vmem:[#allocation19 + $0xe0] sm:$0xf] }
 0xb06   :  { %v6604_v33 = vor.u32 %v7759_v15, %v6601_v54  ;;  %v6789_v54 = vld [vmem:[#allocation19 + $0xf0] sm:$0xf0] }
 0xb07   :  { %3438 = vmatpush.bf16.msra.mxu0 %v6552_v41  ;;  %v3110_v8 = vadd.f32 %v9790_v61, %v3109_v52  ;;  %vm3136_vm15 = vcmp.eq.f32.partialorder %v3135_v6, 8.507059e+37  ;;  %v6771_v52 = vld [vmem:[#allocation19 + $0xc0] sm:$0xf]  ;;  %v6725_v6 = vld [vmem:[#allocation19 + $0x70] sm:$0xf0] }
 0xb08   :  { %3412 = vmatpush.bf16.msra.mxu2 %v6544_v4  ;;  %v3137_v4 = vand.u32 2147483648, %v9794_v35 }
 0xb09   :  { %v2763_v50 = vpop.f32.mrf.mxu1  ;;  %3445 = vmatpush.bf16.msra.mxu1 %v6652_v25  ;;  %v3114_v34 = vsel %vm9812_vm6, %v9790_v61, %v3110_v8  ;;  %v7805_v8 = vld [vmem:[#allocation19 + $0xd4] sm:$0xf0] }
 0xb0a   :  { %v6633_v50 = vld [vmem:[#allocation19 + $0xb8] sm:$0xf0] }
 0xb0b   :  { %v6636_v11 = vor.u32 %v7767_v44, %v6633_v50  ;;  %v6556_v44 = vor.u32 %v7747_v26, %v6553_v22  ;;  %v7798_v26 = vld [vmem:[#allocation19 + $0xa4] sm:$0xf] }
 0xb0c   :  { %3525 = vmatpush.bf16.msrb.mxu2 %v9742_v49 }
 0xb0d   :  { %3446 = vmatpush.bf16.msra.mxu1 %v6636_v11 }
 0xb10   :  { %3526 = vmatpush.bf16.msrb.mxu2 %v9750_v28 }
 0xb11   :  { %v3036_v42 = vpop.f32.mrf.mxu1  ;;  %3447 = vmatpush.bf16.msra.mxu1 %v6620_v24 }
 0xb12   :  { %v3079_v14 = vadd.f32 %v3036_v42, %v9787_v16  ;;  %v6585_v42 = vld [vmem:[#allocation19 + $0x58] sm:$0xf0] }
 0xb13   :  { %v6588_v53 = vor.u32 %v7755_v45, %v6585_v42 }
 0xb14   :  { %v6506_v29 = vmul.f32 -1.442695, %v3079_v14  ;;  %v6569_v14 = vld [vmem:[#allocation19 + $0x38] sm:$0xf0]  ;;  %3527 = vmatpush.bf16.msrb.mxu2 %v9756_v9 }
 0xb15   :  { %3448 = vmatpush.bf16.msra.mxu1 %v6604_v33  ;;  %v6572_v20 = vor.u32 %v7751_v59, %v6569_v14  ;;  %v7809_v33 = vld [vmem:[#allocation19 + $0xf4] sm:$0xf0]  ;;  %v7802_v59 = vld [vmem:[#allocation19 + $0xc4] sm:$0xf] }
 0xb16   :  { %8221 = vpow2.f32 %v6506_v29  ;;  %v3115_v29 = vand.u32 2147483647, %v9779_v62  ;;  %v6796_v42 = vor.u32 %v7809_v33, %v6795_v37  ;;  %v6707_v33 = vld [vmem:[#allocation19 + $0x40] sm:$0xf] }
 0xb17   :  { %8223 = vrcp.f32 %v9794_v35 }
 0xb18   :  { %3528 = vmatpush.bf16.msrb.mxu2 %v9761_v21  ;;  %vm3116_vm8 = vcmp.eq.f32.partialorder %v3115_v29, 8.507059e+37  ;;  %v6763_v29 = vld [vmem:[#allocation19 + $0xa8] sm:$0xf] }
 0xb19   :  { %v3038_v55 = vpop.f32.mrf.mxu1  ;;  %3449 = vmatpush.bf16.msra.mxu1 %v6588_v53  ;;  %v3119_v62 = vsel %vm3116_vm8, %v3118_v0, %v3114_v34  ;;  %v7804_v53 = vld [vmem:[#allocation19 + $0xcc] sm:$0xf0]  ;;  %v6760_v34 = vor.u32 %v7798_v26, %v6757_v48  ;;  %v6691_v26 = vld [vmem:[#allocation19 + $0x20] sm:$0xf] }
 0xb1a   :  { %v3141_v43 = vmul.f32 0.0, %v3119_v62  ;;  %v3138_v55 = vor.u32 1.1754944e-38, %v3137_v4  ;;  %v6772_v14 = vor.u32 %v7804_v53, %v6771_v52 }
 0xb1c   :  { %v8222_v58 = vpop.eup %8221  ;;  %3529 = vmatpush.bf16.msrb.mxu2 %v9765_v46 }
 0xb1d   :  { %v3086_v40 = vadd.f32 1.0, %v8222_v58  ;;  %v8224_v63 = vpop.eup %8223  ;;  %3450 = vmatpush.bf16.msra.mxu1 %v6572_v20  ;;  %v9831_v20 = vld [vmem:[#allocation23] ss:$0 sm:$0xff] }
 0xb1e   :  { %v3127_v25 = vmul.f32 %v8224_v63, %v9794_v35  ;;  %vm3132_vm12 = vweird.f32 %v8224_v63  ;;  %v7806_v35 = vld [vmem:[#allocation19 + $0xe4] sm:$0xf] }
 0xb1f   :  { %8225 = vrcp.f32 %v3086_v40  ;;  %v3098_v36 = vand.u32 2147483648, %v3086_v40  ;;  %v3096_v32 = vand.u32 2147483647, %v3086_v40  ;;  %vm3092_vm9 = vweird.f32 %v3086_v40  ;;  %vm3133_vm14 = vmor %vm3131_vm13, %vm3132_vm12 }
 0xb20   :  { %8227 = vtanh.f32 %v3081_v23  ;;  %v3128_v50 = vsub.f32 1.0, %v3127_v25  ;;  %3530 = vmatpush.bf16.msrb.mxu2 %v9771_v18  ;;  %v6792_v45 = vor.u32 %v7806_v35, %v6789_v54  ;;  %v6755_v25 = vld [vmem:[#allocation19 + $0xa0] sm:$0xf] }
 0xb21   :  { %v3099_v11 = vor.u32 1.1754944e-38, %v3098_v36  ;;  %vm3097_vm11 = vcmp.eq.f32.partialorder %v3096_v32, 8.507059e+37  ;;  %3451 = vmatpush.bf16.msra.mxu1 %v6556_v44  ;;  %v6756_v22 = vor.u32 %v7800_v27, %v6755_v25  ;;  %v6739_v32 = vld [vmem:[#allocation19 + $0x80] sm:$0xf]  ;;  %v7796_v44 = vld [vmem:[#allocation19 + $0x8c] sm:$0xf0] }
 0xb22   :  { %v3129_v19 = vmul.f32 %v8224_v63, %v3128_v50  ;;  %3745 = vmatpush.bf16.msrb.mxu0 %v6792_v45  ;;  %v7794_v50 = vld [vmem:[#allocation19 + $0x84] sm:$0xf]  ;;  %v6740_v62 = vor.u32 %v7796_v44, %v6739_v32  ;;  %v7788_v45 = vld [vmem:[#allocation19 + $0x4c] sm:$0xf0]  ;;  %v6781_v27 = vld [vmem:[#allocation19 + $0xd8] sm:$0xf0] }
 0xb23   :  { %v7785_v32 = vld [vmem:[#allocation19 + $0x34] sm:$0xf0]  ;;  %v7799_v44 = vld [vmem:[#allocation19 + $0xac] sm:$0xf] }
 0xb24   :  { %v3130_v5 = vadd.f32 %v8224_v63, %v3129_v19  ;;  %3531 = vmatpush.bf16.msrb.mxu2 %v9776_v51 }
 0xb25   :  { %v8226_v7 = vpop.eup %8225 }
 0xb26   :  { %v3088_v10 = vmul.f32 %v8226_v7, %v3086_v40  ;;  %vm3093_vm7 = vweird.f32 %v8226_v7  ;;  %v8228_v13 = vpop.eup %8227  ;;  %v3134_v30 = vsel %vm3133_vm14, %v8224_v63, %v3130_v5  ;;  %v7808_v40 = vld [vmem:[#allocation19 + $0xec] sm:$0xf0]  ;;  %v6773_v63 = vld [vmem:[#allocation19 + $0xd0] sm:$0xf0]  ;;  %v7790_v5 = vld [vmem:[#allocation19 + $0x64] sm:$0xf] }
 0xb27   :  { %vm3094_vm10 = vmor %vm3092_vm9, %vm3093_vm7  ;;  %v3139_v41 = vsel %vm3136_vm15, %v3138_v55, %v3134_v30  ;;  %v6788_v15 = vor.u32 %v7808_v40, %v6787_v2  ;;  %v6776_v23 = vor.u32 %v7802_v59, %v6773_v63  ;;  %v6731_v30 = vld [vmem:[#allocation19 + $0x68] sm:$0xf]  ;;  %v7793_v55 = vld [vmem:[#allocation19 + $0x74] sm:$0xf0]  ;;  %v6708_v59 = vor.u32 %v7788_v45, %v6707_v33 }
 0xb28   :  { %v3089_v12 = vsub.f32 1.0, %v3088_v10  ;;  %3532 = vmatpush.bf16.msrb.mxu2 %v9783_v1  ;;  %v6797_v2 = vld [vmem:[#allocation19 + $0xf8] sm:$0xf0]  ;;  %v6715_v63 = vld [vmem:[#allocation19 + $0x48] sm:$0xf] }
 0xb29   :  { %3732 = vmatpush.bf16.msra.mxu3 %v6788_v15  ;;  %3746 = vmatpush.bf16.msrb.mxu0 %v6776_v23  ;;  %v7789_v23 = vld [vmem:[#allocation19 + $0x54] sm:$0xf0]  ;;  %v6733_v33 = vld [vmem:[#allocation19 + $0x78] sm:$0xf0] }
 0xb2a   :  { %v3090_v39 = vmul.f32 %v8226_v7, %v3089_v12  ;;  %v7801_v12 = vld [vmem:[#allocation19 + $0xb4] sm:$0xf0]  ;;  %v6716_v25 = vor.u32 %v7789_v23, %v6715_v63  ;;  %v6701_v23 = vld [vmem:[#allocation19 + $0x38] sm:$0xf0] }
 0xb2b   :  { %v6764_v36 = vor.u32 %v7801_v12, %v6763_v29  ;;  %v7782_v12 = vld [vmem:[#allocation19 + $0x24] sm:$0xf] }
 0xb2c   :  { %v3091_v3 = vadd.f32 %v8226_v7, %v3090_v39 }
 0xb2d   :  { %3733 = vmatpush.bf16.msra.mxu3 %v6772_v14  ;;  %3747 = vmatpush.bf16.msrb.mxu0 %v6760_v34  ;;  %v6709_v14 = vld [vmem:[#allocation19 + $0x50] sm:$0xf0] }
 0xb2e   :  { %v3095_v61 = vsel %vm3094_vm10, %v8226_v7, %v3091_v3  ;;  %v6779_v7 = vld [vmem:[#allocation19 + $0xc8] sm:$0xf]  ;;  %v6693_v34 = vld [vmem:[#allocation19 + $0x30] sm:$0xf0] }
 0xb2f   :  { %v3100_v31 = vsel %vm3097_vm11, %v3099_v11, %v3095_v61  ;;  %v6780_v10 = vor.u32 %v7805_v8, %v6779_v7  ;;  %v6741_v11 = vld [vmem:[#allocation19 + $0x90] sm:$0xf0]  ;;  %v6747_v61 = vld [vmem:[#allocation19 + $0x88] sm:$0xf] }
 0xb30   :  { %v3142_v60 = vmul.f32 %v8228_v13, %v3100_v31  ;;  %v7797_v13 = vld [vmem:[#allocation19 + $0x94] sm:$0xf0]  ;;  %v6744_v19 = vor.u32 %v7794_v50, %v6741_v11  ;;  %v6765_v50 = vld [vmem:[#allocation19 + $0xb8] sm:$0xf0] }
 0xb31   :  { %3734 = vmatpush.bf16.msra.mxu3 %v6756_v22  ;;  %v6748_v31 = vor.u32 %v7797_v13, %v6747_v61  ;;  %v7784_v22 = vld [vmem:[#allocation19 + $0x2c] sm:$0xf0]  ;;  %v6768_v11 = vor.u32 %v7799_v44, %v6765_v50  ;;  %v6675_v61 = vld [vmem:[#allocation19] sm:$0xf] }
 0xb32   :  { %v9823_v47 = vadd.f32 %v3142_v60, %v3141_v43  ;;  %3748 = vmatpush.bf16.msrb.mxu0 %v6744_v19  ;;  %v6723_v43 = vld [vmem:[#allocation19 + $0x60] sm:$0xf]  ;;  %v7792_v60 = vld [vmem:[#allocation19 + $0x6c] sm:$0xf0]  ;;  %v6692_v29 = vor.u32 %v7784_v22, %v6691_v26  ;;  %v7778_v19 = vld [vmem:[#allocation19 + $0x4] sm:$0xf] }
 0xb33   :  { %v6724_v4 = vor.u32 %v7792_v60, %v6723_v43  ;;  %v7780_v13 = vld [vmem:[#allocation19 + $0xc] sm:$0xf0]  ;;  %v6677_v60 = vld [vmem:[#allocation19 + $0x10] sm:$0xf0] }
 0xb34   :  { %8229 = vtanh.f32 %v9823_v47  ;;  %v6676_v43 = vor.u32 %v7780_v13, %v6675_v61 }
 0xb35   :  { %3735 = vmatpush.bf16.msra.mxu3 %v6740_v62 }
 0xb39   :  { %3736 = vmatpush.bf16.msra.mxu3 %v6724_v4  ;;  %v7781_v4 = vld [vmem:[#allocation19 + $0x14] sm:$0xf0] }
 0xb3a   :  { %v8230_v38 = vpop.eup %8229 }
 0xb3b   :  { %v3145_v24 = vmul.f32 %v8230_v38, %v3139_v41  ;;  %v6728_v41 = vor.u32 %v7790_v5, %v6725_v6  ;;  %v6683_v5 = vld [vmem:[#allocation19 + $0x8] sm:$0xf] }
 0xb3d   :  { %v3146_v58 = vpack.c.bf16 %v3145_v24, %v3145_v24  ;;  %v6732_v24 = vor.u32 %v7793_v55, %v6731_v30  ;;  %3749 = vmatpush.bf16.msrb.mxu0 %v6728_v41  ;;  %3737 = vmatpush.bf16.msra.mxu3 %v6708_v59  ;;  %v6680_v30 = vor.u32 %v7778_v19, %v6677_v60  ;;  %v7795_v55 = vld [vmem:[#allocation19 + $0x8c] sm:$0xf] }
 0xb3f   :  { %3206 = vmatmul.bf16.vlgmr.msrb.gmra.mxu1 %v3146_v58  ;;  %3413 = vmatmul.bf16.vlgmr.msra.gmra.mxu2 %v3146_v58 }
 0xb40   :  { %3426 = vmatmul.bf16.vlgmr.msrb.gmra.mxu3 %v3146_v58  ;;  %3439 = vmatmul.bf16.vlgmr.msra.gmra.mxu0 %v3146_v58 }
 0xb41   :  { %3758 = vmatpush.bf16.msrb.mxu1 %v6796_v42  ;;  %v7786_v42 = vld [vmem:[#allocation19 + $0x44] sm:$0xf]  ;;  %3738 = vmatpush.bf16.msra.mxu3 %v6692_v29 }
 0xb42   :  { %v6712_v8 = vor.u32 %v7786_v42, %v6709_v14  ;;  %v7787_v42 = vld [vmem:[#allocation19 + $0x4c] sm:$0xf] }
 0xb44   :  { %3750 = vmatpush.bf16.msrb.mxu0 %v6712_v8 }
 0xb45   :  { %3759 = vmatpush.bf16.msrb.mxu1 %v6780_v10  ;;  %v7803_v10 = vld [vmem:[#allocation19 + $0xcc] sm:$0xf]  ;;  %3739 = vmatpush.bf16.msra.mxu3 %v6676_v43 }
 0xb46   :  { %v6784_v48 = vor.u32 %v7803_v10, %v6781_v27 }
 0xb49   :  { %3760 = vmatpush.bf16.msrb.mxu1 %v6764_v36  ;;  %v6699_v36 = vld [vmem:[#allocation19 + $0x28] sm:$0xf]  ;;  %3852 = vmatpush.bf16.msrb.mxu3 %v9742_v49  ;;  %v7783_v49 = vld [vmem:[#allocation19 + $0x2c] sm:$0xf] }
 0xb4a   :  { %v6700_v62 = vor.u32 %v7785_v32, %v6699_v36  ;;  %v6704_v29 = vor.u32 %v7783_v49, %v6701_v23  ;;  %v6685_v36 = vld [vmem:[#allocation19 + $0x18] sm:$0xf0]  ;;  %v6887_v23 = vld [vmem:[#allocation19 + $0xa0] sm:$0xf] }
 0xb4d   :  { %3761 = vmatpush.bf16.msrb.mxu1 %v6748_v31  ;;  %3853 = vmatpush.bf16.msrb.mxu3 %v9750_v28 }
 0xb4f   :  { %3452 = vmatmul.bf16.vlgmr.msra.gmra.mxu1 %v3146_v58  ;;  %v7807_v58 = vld [vmem:[#allocation19 + $0xec] sm:$0xf] }
 0xb50   :  { %v6800_v15 = vor.u32 %v7807_v58, %v6797_v2  ;;  %v6684_v58 = vor.u32 %v7781_v4, %v6683_v5 }
 0xb51   :  { %3762 = vmatpush.bf16.msrb.mxu1 %v6732_v24  ;;  %3854 = vmatpush.bf16.msrb.mxu3 %v9756_v9 }
 0xb52   :  { %3771 = vmatpush.bf16.msra.mxu2 %v6800_v15 }
 0xb55   :  { %3763 = vmatpush.bf16.msrb.mxu1 %v6716_v25  ;;  %3855 = vmatpush.bf16.msrb.mxu3 %v9761_v21 }
 0xb56   :  { %3772 = vmatpush.bf16.msra.mxu2 %v6784_v48 }
 0xb59   :  { %3764 = vmatpush.bf16.msrb.mxu1 %v6700_v62  ;;  %3856 = vmatpush.bf16.msrb.mxu3 %v9765_v46 }
 0xb5a   :  { %3773 = vmatpush.bf16.msra.mxu2 %v6768_v11 }
 0xb5d   :  { %3765 = vmatpush.bf16.msrb.mxu1 %v6684_v58  ;;  %3857 = vmatpush.bf16.msrb.mxu3 %v9771_v18 }
 0xb61   :  { %3858 = vmatpush.bf16.msrb.mxu3 %v9776_v51  ;;  %v6921_v51 = vld [vmem:[#allocation19 + $0xf0] sm:$0xf0] }
 0xb65   :  { %3859 = vmatpush.bf16.msrb.mxu3 %v9783_v1  ;;  %v6903_v1 = vld [vmem:[#allocation19 + $0xc0] sm:$0xf] }
 0xbbc   :  { %v3207_v39 = vpop.f32.mrf.mxu1 }
 0xbbd   :  { %v3208_v0 = vadd.f32 %v9831_v20, %v3207_v39  ;;  %v9834_v3 = vpop.f32.mrf.mxu0  ;;  %v6696_v39 = vor.u32 %v7782_v12, %v6693_v34  ;;  %v7779_v34 = vld [vmem:[#allocation19 + $0xc] sm:$0xf] }
 0xbbe   :  { %v3459_v59 = vadd.f32 %v9834_v3, %v9802_v56 }
 0xbbf   :  { %3212 = vst.msk [vmem:[%s8957_s5] sm:$0xff] %vm3211_vm0, %v3208_v0  ;;  %3751 = vmatpush.bf16.msrb.mxu0 %v6696_v39 }
 0xbc2   :  { %v3414_v38 = vpop.f32.mrf.mxu2 }
 0xbc3   :  { %v3457_v40 = vadd.f32 %v3414_v38, %v9787_v16  ;;  %v3427_v35 = vpop.f32.mrf.mxu3  ;;  %v6749_v38 = vld [vmem:[#allocation19 + $0x98] sm:$0xf0]  ;;  %3752 = vmatpush.bf16.msrb.mxu0 %v6680_v30 }
 0xbc4   :  { %v3458_v54 = vadd.f32 %v3427_v35, %v9754_v57  ;;  %v3209_v37 = vpop.f32.mrf.mxu1  ;;  %v6752_v35 = vor.u32 %v7795_v55, %v6749_v38 }
 0xbc5   :  { %v6669_v52 = vmul.f32 -1.442695, %v3457_v40  ;;  %v3442_v53 = vpop.f32.mrf.mxu0  ;;  %v7791_v37 = vld [vmem:[#allocation19 + $0x6c] sm:$0xf] }
 0xbc6   :  { %v6670_v7 = vmul.f32 -1.442695, %v3458_v54  ;;  %3774 = vmatpush.bf16.msra.mxu2 %v6752_v35  ;;  %v6736_v45 = vor.u32 %v7791_v37, %v6733_v33  ;;  %v7840_v35 = vld [vmem:[#allocation19 + $0xec] sm:$0xf0]  ;;  %v6927_v37 = vld [vmem:[#allocation19 + $0xe8] sm:$0xf] }
 0xbc7   :  { %8231 = vpow2.f32 %v6669_v52  ;;  %v6717_v52 = vld [vmem:[#allocation19 + $0x58] sm:$0xf0]  ;;  %v7841_v33 = vld [vmem:[#allocation19 + $0xf4] sm:$0xf0] }
 0xbc8   :  { %8233 = vpow2.f32 %v6670_v7  ;;  %v6720_v63 = vor.u32 %v7787_v42, %v6717_v52  ;;  %v6928_v42 = vor.u32 %v7841_v33, %v6927_v37  ;;  %v7836_v52 = vld [vmem:[#allocation19 + $0xcc] sm:$0xf0] }
 0xbca   :  { %v3416_v0 = vpop.f32.mrf.mxu2  ;;  %3775 = vmatpush.bf16.msra.mxu2 %v6736_v45 }
 0xbcb   :  { %v3429_v31 = vpop.f32.mrf.mxu3  ;;  %v6688_v0 = vor.u32 %v7779_v34, %v6685_v36 }
 0xbcc   :  { %v3453_v6 = vpop.f32.mrf.mxu1 }
 0xbcd   :  { %v8232_v41 = vpop.eup %8231  ;;  %v3460_v24 = vadd.f32 %v3453_v6, %v9769_v17 }
 0xbce   :  { %v8234_v2 = vpop.eup %8233  ;;  %v3464_v40 = vadd.f32 1.0, %v8232_v41  ;;  %3776 = vmatpush.bf16.msra.mxu2 %v6720_v63  ;;  %v6911_v63 = vld [vmem:[#allocation19 + $0xc8] sm:$0xf] }
 0xbcf   :  { %v3483_v15 = vadd.f32 1.0, %v8234_v2  ;;  %v6671_v54 = vmul.f32 -1.442695, %v3460_v24 }
 0xbd0   :  { %8235 = vrcp.f32 %v3464_v40  ;;  %v3474_v22 = vand.u32 2147483647, %v3464_v40  ;;  %v3476_v48 = vand.u32 2147483648, %v3464_v40  ;;  %vm3470_vm3 = vweird.f32 %v3464_v40 }
 0xbd1   :  { %8237 = vrcp.f32 %v3483_v15  ;;  %v3495_v12 = vand.u32 2147483648, %v3483_v15  ;;  %v3493_v32 = vand.u32 2147483647, %v3483_v15  ;;  %vm3489_vm5 = vweird.f32 %v3483_v15 }
 0xbd2   :  { %8239 = vpow2.f32 %v6671_v54  ;;  %v3477_v44 = vor.u32 1.1754944e-38, %v3476_v48  ;;  %3777 = vmatpush.bf16.msra.mxu2 %v6704_v29  ;;  %vm3475_vm6 = vcmp.eq.f32.partialorder %v3474_v22, 8.507059e+37  ;;  %v6889_v48 = vld [vmem:[#allocation19 + $0xb0] sm:$0xf0]  ;;  %v7833_v29 = vld [vmem:[#allocation19 + $0xb4] sm:$0xf0] }
 0xbd3   :  { %8241 = vtanh.f32 %v3459_v59  ;;  %v3496_v61 = vor.u32 1.1754944e-38, %v3495_v12  ;;  %vm3494_vm8 = vcmp.eq.f32.partialorder %v3493_v32, 8.507059e+37  ;;  %v6904_v59 = vor.u32 %v7836_v52, %v6903_v1  ;;  %v7828_v32 = vld [vmem:[#allocation19 + $0x8c] sm:$0xf0] }
 0xbd4   :  { %v3455_v53 = vpop.f32.mrf.mxu1 }
 0xbd5   :  { %v7834_v53 = vld [vmem:[#allocation19 + $0xc4] sm:$0xf] }
 0xbd6   :  { %v8236_v14 = vpop.eup %8235  ;;  %3778 = vmatpush.bf16.msra.mxu2 %v6688_v0  ;;  %v6879_v0 = vld [vmem:[#allocation19 + $0x88] sm:$0xf] }
 0xbd7   :  { %v8238_v7 = vpop.eup %8237  ;;  %v3466_v8 = vmul.f32 %v8236_v14, %v3464_v40  ;;  %vm3471_vm1 = vweird.f32 %v8236_v14  ;;  %v6919_v40 = vld [vmem:[#allocation19 + $0xe0] sm:$0xf] }
 0xbd8   :  { %v8240_v10 = vpop.eup %8239  ;;  %v3485_v25 = vmul.f32 %v8238_v7, %v3483_v15  ;;  %vm3490_vm2 = vweird.f32 %v8238_v7  ;;  %vm3472_vm4 = vmor %vm3470_vm3, %vm3471_vm1  ;;  %v7838_v15 = vld [vmem:[#allocation19 + $0xe4] sm:$0xf]  ;;  %v6920_v54 = vor.u32 %v7840_v35, %v6919_v40 }
 0xbd9   :  { %v3467_v27 = vsub.f32 1.0, %v3466_v8  ;;  %v3503_v26 = vadd.f32 1.0, %v8240_v10  ;;  %v8242_v62 = vpop.eup %8241  ;;  %vm3491_vm7 = vmor %vm3489_vm5, %vm3490_vm2  ;;  %v6924_v45 = vor.u32 %v7838_v15, %v6921_v51  ;;  %v7832_v10 = vld [vmem:[#allocation19 + $0xac] sm:$0xf0]  ;;  %v6839_v15 = vld [vmem:[#allocation19 + $0x40] sm:$0xf] }
 0xbda   :  { %v3486_v28 = vsub.f32 1.0, %v3485_v25  ;;  %4059 = vmatpush.bf16.msra.mxu0 %v6920_v54  ;;  %v7830_v25 = vld [vmem:[#allocation19 + $0xa4] sm:$0xf]  ;;  %v6888_v22 = vor.u32 %v7832_v10, %v6887_v23  ;;  %v7820_v54 = vld [vmem:[#allocation19 + $0x4c] sm:$0xf0] }
 0xbdb   :  { %v3468_v3 = vmul.f32 %v8236_v14, %v3467_v27  ;;  %8243 = vrcp.f32 %v3503_v26  ;;  %v3515_v30 = vand.u32 2147483648, %v3503_v26  ;;  %v3513_v38 = vand.u32 2147483647, %v3503_v26  ;;  %4072 = vmatpush.bf16.msra.mxu1 %v6924_v45  ;;  %v7818_v51 = vld [vmem:[#allocation19 + $0x44] sm:$0xf] }
 0xbdc   :  { %v3487_v39 = vmul.f32 %v8238_v7, %v3486_v28  ;;  %vm3509_vm10 = vweird.f32 %v3503_v26  ;;  %v6895_v28 = vld [vmem:[#allocation19 + $0xa8] sm:$0xf]  ;;  %v6892_v12 = vor.u32 %v7830_v25, %v6889_v48  ;;  %v6840_v33 = vor.u32 %v7820_v54, %v6839_v15  ;;  %v6841_v45 = vld [vmem:[#allocation19 + $0x50] sm:$0xf0]  ;;  %v7816_v23 = vld [vmem:[#allocation19 + $0x2c] sm:$0xf0] }
 0xbdd   :  { %v3469_v9 = vadd.f32 %v8236_v14, %v3468_v3  ;;  %v3516_v41 = vor.u32 1.1754944e-38, %v3515_v30  ;;  %vm3514_vm12 = vcmp.eq.f32.partialorder %v3513_v38, 8.507059e+37  ;;  %v6896_v34 = vor.u32 %v7833_v29, %v6895_v28  ;;  %v7814_v10 = vld [vmem:[#allocation19 + $0x24] sm:$0xf]  ;;  %v6825_v25 = vld [vmem:[#allocation19 + $0x30] sm:$0xf0] }
 0xbde   :  { %v3488_v50 = vadd.f32 %v8238_v7, %v3487_v39  ;;  %4060 = vmatpush.bf16.msra.mxu0 %v6904_v59  ;;  %v6871_v39 = vld [vmem:[#allocation19 + $0x80] sm:$0xf]  ;;  %v7821_v59 = vld [vmem:[#allocation19 + $0x54] sm:$0xf0]  ;;  %v6828_v48 = vor.u32 %v7814_v10, %v6825_v25  ;;  %v6831_v28 = vld [vmem:[#allocation19 + $0x28] sm:$0xf] }
 0xbdf   :  { %v3473_v11 = vsel %vm3472_vm4, %v8236_v14, %v3469_v9  ;;  %v6905_v14 = vld [vmem:[#allocation19 + $0xd0] sm:$0xf0]  ;;  %v6872_v9 = vor.u32 %v7828_v32, %v6871_v39  ;;  %v7817_v29 = vld [vmem:[#allocation19 + $0x34] sm:$0xf0]  ;;  %v6807_v32 = vld [vmem:[#allocation19] sm:$0xf] }
 0xbe0   :  { %v3478_v13 = vsel %vm3475_vm6, %v3477_v44, %v3473_v11  ;;  %v3492_v19 = vsel %vm3491_vm7, %v8238_v7, %v3488_v50  ;;  %v7837_v7 = vld [vmem:[#allocation19 + $0xd4] sm:$0xf0]  ;;  %v6908_v8 = vor.u32 %v7834_v53, %v6905_v14  ;;  %v7826_v44 = vld [vmem:[#allocation19 + $0x84] sm:$0xf]  ;;  %v6873_v50 = vld [vmem:[#allocation19 + $0x90] sm:$0xf0]  ;;  %v6844_v53 = vor.u32 %v7818_v51, %v6841_v45 }
 0xbe1   :  { %v8244_v31 = vpop.eup %8243  ;;  %v3520_v21 = vmul.f32 %v8242_v62, %v3478_v13  ;;  %v3497_v43 = vsel %vm3494_vm8, %v3496_v61, %v3492_v19  ;;  %v6912_v49 = vor.u32 %v7837_v7, %v6911_v63  ;;  %v6876_v61 = vor.u32 %v7826_v44, %v6873_v50  ;;  %v7829_v13 = vld [vmem:[#allocation19 + $0x94] sm:$0xf0]  ;;  %v7835_v14 = vld [vmem:[#allocation19 + $0xcc] sm:$0xf]  ;;  %v6913_v63 = vld [vmem:[#allocation19 + $0xd8] sm:$0xf0] }
 0xbe2   :  { %v3519_v60 = vmul.f32 %v3497_v43, %v9823_v47  ;;  %v3505_v5 = vmul.f32 %v8244_v31, %v3503_v26  ;;  %vm3510_vm9 = vweird.f32 %v8244_v31  ;;  %4073 = vmatpush.bf16.msra.mxu1 %v6908_v8  ;;  %4061 = vmatpush.bf16.msra.mxu0 %v6888_v22  ;;  %v6855_v43 = vld [vmem:[#allocation19 + $0x60] sm:$0xf]  ;;  %v7810_v44 = vld [vmem:[#allocation19 + $0x4] sm:$0xf]  ;;  %v6809_v50 = vld [vmem:[#allocation19 + $0x10] sm:$0xf0] }
 0xbe3   :  { %vm3511_vm11 = vmor %vm3509_vm10, %vm3510_vm9  ;;  %v6823_v7 = vld [vmem:[#allocation19 + $0x20] sm:$0xf]  ;;  %v9880_v15 = vld [vmem:[#allocation22 + $0x30] sm:$0xff] }
 0xbe4   :  { %v3506_v4 = vsub.f32 1.0, %v3505_v5  ;;  %v9849_v6 = vadd.f32 %v3520_v21, %v3519_v60  ;;  %v6880_v21 = vor.u32 %v7829_v13, %v6879_v0  ;;  %v7824_v60 = vld [vmem:[#allocation19 + $0x6c] sm:$0xf0]  ;;  %v7822_v5 = vld [vmem:[#allocation19 + $0x64] sm:$0xf]  ;;  %v6824_v22 = vor.u32 %v7816_v23, %v6823_v7 }
 0xbe5   :  { %v6856_v38 = vor.u32 %v7824_v60, %v6855_v43  ;;  %v7813_v13 = vld [vmem:[#allocation19 + $0x14] sm:$0xf0]  ;;  %v6881_v43 = vld [vmem:[#allocation19 + $0x98] sm:$0xf0] }
 0xbe6   :  { %v3507_v55 = vmul.f32 %v8244_v31, %v3506_v4  ;;  %8245 = vtanh.f32 %v9849_v6  ;;  %4074 = vmatpush.bf16.msra.mxu1 %v6892_v12  ;;  %4062 = vmatpush.bf16.msra.mxu0 %v6872_v9  ;;  %v6832_v12 = vor.u32 %v7817_v29, %v6831_v28  ;;  %v7812_v9 = vld [vmem:[#allocation19 + $0xc] sm:$0xf0]  ;;  %v6817_v28 = vld [vmem:[#allocation19 + $0x18] sm:$0xf0] }
 0xbe8   :  { %v3508_v46 = vadd.f32 %v8244_v31, %v3507_v55 }
 0xbea   :  { %v3512_v47 = vsel %vm3511_vm11, %v8244_v31, %v3508_v46  ;;  %4075 = vmatpush.bf16.msra.mxu1 %v6876_v61  ;;  %v6857_v46 = vld [vmem:[#allocation19 + $0x70] sm:$0xf0]  ;;  %4063 = vmatpush.bf16.msra.mxu0 %v6856_v38  ;;  %v6815_v61 = vld [vmem:[#allocation19 + $0x8] sm:$0xf]  ;;  %v6865_v38 = vld [vmem:[#allocation19 + $0x78] sm:$0xf0] }
 0xbeb   :  { %v3517_v24 = vsel %vm3514_vm12, %v3516_v41, %v3512_v47  ;;  %v6860_v41 = vor.u32 %v7822_v5, %v6857_v46  ;;  %v6863_v47 = vld [vmem:[#allocation19 + $0x68] sm:$0xf]  ;;  %v6816_v5 = vor.u32 %v7813_v13, %v6815_v61  ;;  %v9873_v46 = vld [vmem:[#allocation22 + $0x38] sm:$0xff] }
 0xbec   :  { %v8246_v58 = vpop.eup %8245 }
 0xbed   :  { %v3523_v2 = vmul.f32 %v8246_v58, %v3517_v24  ;;  %v7825_v24 = vld [vmem:[#allocation19 + $0x74] sm:$0xf0]  ;;  %v7839_v58 = vld [vmem:[#allocation19 + $0xec] sm:$0xf] }
 0xbee   :  { %4076 = vmatpush.bf16.msra.mxu1 %v6860_v41  ;;  %4064 = vmatpush.bf16.msra.mxu0 %v6840_v33 }
 0xbef   :  { %v3524_v18 = vpack.c.bf16 %v3523_v2, %v3523_v2  ;;  %v6864_v2 = vor.u32 %v7825_v24, %v6863_v47 }
 0xbf1   :  { %3533 = vmatmul.bf16.vlgmr.msrb.gmra.mxu2 %v3524_v18  ;;  %3740 = vmatmul.bf16.vlgmr.msra.gmra.mxu3 %v3524_v18 }
 0xbf2   :  { %3753 = vmatmul.bf16.vlgmr.msrb.gmra.mxu0 %v3524_v18  ;;  %3766 = vmatmul.bf16.vlgmr.msrb.gmra.mxu1 %v3524_v18 }
 0xbf3   :  { %4085 = vmatpush.bf16.msrb.mxu2 %v6928_v42  ;;  %v6847_v42 = vld [vmem:[#allocation19 + $0x48] sm:$0xf]  ;;  %4077 = vmatpush.bf16.msra.mxu1 %v6844_v53  ;;  %v7815_v53 = vld [vmem:[#allocation19 + $0x2c] sm:$0xf] }
 0xbf4   :  { %v6848_v8 = vor.u32 %v7821_v59, %v6847_v42  ;;  %4065 = vmatpush.bf16.msra.mxu0 %v6824_v22  ;;  %v6833_v59 = vld [vmem:[#allocation19 + $0x38] sm:$0xf0] }
 0xbf5   :  { %v6836_v25 = vor.u32 %v7815_v53, %v6833_v59 }
 0xbf7   :  { %4086 = vmatpush.bf16.msrb.mxu2 %v6912_v49  ;;  %v6916_v49 = vor.u32 %v7835_v14, %v6913_v63  ;;  %4078 = vmatpush.bf16.msra.mxu1 %v6828_v48  ;;  %v9890_v63 = vld [vmem:[#allocation22 + $0x28] sm:$0xff] }
 0xbf8   :  { %v7811_v48 = vld [vmem:[#allocation19 + $0xc] sm:$0xf] }
 0xbfb   :  { %4087 = vmatpush.bf16.msrb.mxu2 %v6896_v34  ;;  %v7831_v34 = vld [vmem:[#allocation19 + $0xac] sm:$0xf] }
 0xbff   :  { %4088 = vmatpush.bf16.msrb.mxu2 %v6880_v21 }
 0xc01   :  { %3779 = vmatmul.bf16.vlgmr.msra.gmra.mxu2 %v3524_v18  ;;  %v6929_v18 = vld [vmem:[#allocation19 + $0xf8] sm:$0xf0] }
 0xc02   :  { %v6932_v35 = vor.u32 %v7839_v58, %v6929_v18 }
 0xc03   :  { %4089 = vmatpush.bf16.msrb.mxu2 %v6864_v2 }
 0xc04   :  { %4098 = vmatpush.bf16.msra.mxu3 %v6932_v35  ;;  %v6849_v35 = vld [vmem:[#allocation19 + $0x58] sm:$0xf0] }
 0xc07   :  { %4090 = vmatpush.bf16.msrb.mxu2 %v6848_v8  ;;  %v7862_v8 = vld [vmem:[#allocation19 + $0xa4] sm:$0xf] }
 0xc08   :  { %4099 = vmatpush.bf16.msra.mxu3 %v6916_v49 }
 0xc0b   :  { %4091 = vmatpush.bf16.msrb.mxu2 %v6832_v12  ;;  %v9903_v12 = vld [vmem:[#allocation22 + $0x20] sm:$0xff] }
 0xc0f   :  { %4092 = vmatpush.bf16.msrb.mxu2 %v6816_v5 }
 0xc6f   :  { %v3754_v27 = vpop.f32.mrf.mxu0  ;;  %v9855_v26 = vpop.f32.mrf.mxu1 }
 0xc70   :  { %v3785_v3 = vadd.f32 %v3754_v27, %v9754_v57  ;;  %v3786_v2 = vadd.f32 %v9855_v26, %v9802_v56 }
 0xc72   :  { %v6802_v36 = vmul.f32 -1.442695, %v3785_v3 }
 0xc74   :  { %8247 = vpow2.f32 %v6802_v36  ;;  %v3534_v62 = vpop.f32.mrf.mxu2  ;;  %v3741_v11 = vpop.f32.mrf.mxu3  ;;  %v6897_v36 = vld [vmem:[#allocation19 + $0xb8] sm:$0xf0] }
 0xc75   :  { %v3535_v19 = vadd.f32 %v9831_v20, %v3534_v62  ;;  %v3784_v31 = vadd.f32 %v3741_v11, %v9787_v16  ;;  %v6900_v39 = vor.u32 %v7831_v34, %v6897_v36  ;;  %v6808_v62 = vor.u32 %v7812_v9, %v6807_v32  ;;  %v9907_v9 = vld [vmem:[#allocation22 + $0x18] sm:$0xff] }
 0xc76   :  { %v6812_v11 = vor.u32 %v7810_v44, %v6809_v50 }
 0xc77   :  { %6672 = vst.msk [vmem:[%s8957_s5 + $0x8] sm:$0xff] %vm3211_vm0, %v3535_v19  ;;  %v6801_v4 = vmul.f32 -1.442695, %v3784_v31  ;;  %v3756_v30 = vpop.f32.mrf.mxu0  ;;  %v3769_v55 = vpop.f32.mrf.mxu1  ;;  %v7827_v19 = vld [vmem:[#allocation19 + $0x8c] sm:$0xf]  ;;  %4100 = vmatpush.bf16.msra.mxu3 %v6900_v39  ;;  %4066 = vmatpush.bf16.msra.mxu0 %v6808_v62  ;;  %v6820_v39 = vor.u32 %v7811_v48, %v6817_v28  ;;  %v9912_v62 = vld [vmem:[#allocation22 + $0x10] sm:$0xff] }
 0xc78   :  { %4079 = vmatpush.bf16.msra.mxu1 %v6812_v11  ;;  %v7823_v55 = vld [vmem:[#allocation19 + $0x6c] sm:$0xf] }
 0xc79   :  { %8249 = vpow2.f32 %v6801_v4  ;;  %v6884_v4 = vor.u32 %v7827_v19, %v6881_v43  ;;  %v6868_v58 = vor.u32 %v7823_v55, %v6865_v38  ;;  %v9916_v19 = vld [vmem:[#allocation22 + $0x8] sm:$0xff]  ;;  %v7051_v38 = vld [vmem:[#allocation19 + $0xe0] sm:$0xf] }
 0xc7a   :  { %v8248_v40 = vpop.eup %8247 }
 0xc7b   :  { %v9862_v37 = vadd.f32 1.0, %v8248_v40  ;;  %4179 = vmatpush.bf16.msrb.mxu0 %v9873_v46  ;;  %4101 = vmatpush.bf16.msra.mxu3 %v6884_v4  ;;  %v7819_v40 = vld [vmem:[#allocation19 + $0x4c] sm:$0xf]  ;;  %v9919_v4 = vld [vmem:[#allocation22] sm:$0xff] }
 0xc7c   :  { %v3536_v1 = vpop.f32.mrf.mxu2  ;;  %v3743_v52 = vpop.f32.mrf.mxu3  ;;  %v6852_v26 = vor.u32 %v7819_v40, %v6849_v35 }
 0xc7d   :  { %8251 = vrcp.f32 %v9862_v37  ;;  %v3822_v54 = vand.u32 2147483648, %v9862_v37  ;;  %vm3816_vm15 = vweird.f32 %v9862_v37  ;;  %v3820_v14 = vand.u32 2147483647, %v9862_v37 }
 0xc7f   :  { %v8250_v27 = vpop.eup %8249  ;;  %4180 = vmatpush.bf16.msrb.mxu0 %v9880_v15  ;;  %4102 = vmatpush.bf16.msra.mxu3 %v6868_v58  ;;  %vm3821_vm5 = vcmp.eq.f32.partialorder %v3820_v14, 8.507059e+37  ;;  %v7053_v58 = vld [vmem:[#allocation19 + $0xf0] sm:$0xf0]  ;;  %v7019_v14 = vld [vmem:[#allocation19 + $0xa0] sm:$0xf] }
 0xc80   :  { %v9865_v3 = vadd.f32 1.0, %v8250_v27  ;;  %v3823_v27 = vor.u32 1.1754944e-38, %v3822_v54  ;;  %v7035_v54 = vld [vmem:[#allocation19 + $0xc0] sm:$0xf] }
 0xc82   :  { %8253 = vrcp.f32 %v9865_v3  ;;  %v3803_v45 = vand.u32 2147483648, %v9865_v3  ;;  %v3801_v52 = vand.u32 2147483647, %v9865_v3  ;;  %vm3797_vm2 = vweird.f32 %v9865_v3 }
 0xc83   :  { %v9868_v0 = vpop.eup %8251  ;;  %4181 = vmatpush.bf16.msrb.mxu0 %v9890_v63  ;;  %4103 = vmatpush.bf16.msra.mxu3 %v6852_v26  ;;  %v7043_v26 = vld [vmem:[#allocation19 + $0xc8] sm:$0xf] }
 0xc84   :  { %v3812_v31 = vmul.f32 %v9868_v0, %v9862_v37  ;;  %v3780_v21 = vpop.f32.mrf.mxu2  ;;  %vm3817_vm13 = vweird.f32 %v9868_v0  ;;  %v3804_v37 = vor.u32 1.1754944e-38, %v3803_v45  ;;  %vm3802_vm4 = vcmp.eq.f32.partialorder %v3801_v52, 8.507059e+37 }
 0xc85   :  { %v3787_v60 = vadd.f32 %v3780_v21, %v9769_v17  ;;  %vm9895_vm1 = vmor %vm3816_vm15, %vm3817_vm13 }
 0xc86   :  { %v3813_v30 = vsub.f32 1.0, %v3812_v31 }
 0xc87   :  { %v6803_v41 = vmul.f32 -1.442695, %v3787_v60  ;;  %4182 = vmatpush.bf16.msrb.mxu0 %v9903_v12  ;;  %4104 = vmatpush.bf16.msra.mxu3 %v6836_v25  ;;  %v7027_v25 = vld [vmem:[#allocation19 + $0xa8] sm:$0xf] }
 0xc88   :  { %v8254_v47 = vpop.eup %8253  ;;  %v3814_v24 = vmul.f32 %v9868_v0, %v3813_v30 }
 0xc89   :  { %v3793_v18 = vmul.f32 %v8254_v47, %v9865_v3  ;;  %8255 = vpow2.f32 %v6803_v41  ;;  %vm3798_vm14 = vweird.f32 %v8254_v47  ;;  %v7872_v41 = vld [vmem:[#allocation19 + $0xec] sm:$0xf0] }
 0xc8a   :  { %v3815_v33 = vadd.f32 %v9868_v0, %v3814_v24  ;;  %8257 = vtanh.f32 %v3786_v2  ;;  %vm3799_vm3 = vmor %vm3797_vm2, %vm3798_vm14  ;;  %v7052_v24 = vor.u32 %v7872_v41, %v7051_v38  ;;  %v7059_v2 = vld [vmem:[#allocation19 + $0xe8] sm:$0xf]  ;;  %v6989_v41 = vld [vmem:[#allocation19 + $0x70] sm:$0xf0] }
 0xc8b   :  { %v3794_v51 = vsub.f32 1.0, %v3793_v18  ;;  %4183 = vmatpush.bf16.msrb.mxu0 %v9907_v9  ;;  %4105 = vmatpush.bf16.msra.mxu3 %v6820_v39  ;;  %v7873_v18 = vld [vmem:[#allocation19 + $0xf4] sm:$0xf0] }
 0xc8c   :  { %v3782_v42 = vpop.f32.mrf.mxu2  ;;  %v3819_v23 = vsel %vm9895_vm1, %v9868_v0, %v3815_v33  ;;  %v7060_v35 = vor.u32 %v7873_v18, %v7059_v2  ;;  %4386 = vmatpush.bf16.msrb.mxu1 %v7052_v24  ;;  %v7866_v33 = vld [vmem:[#allocation19 + $0xc4] sm:$0xf]  ;;  %v7871_v2 = vld [vmem:[#allocation19 + $0xec] sm:$0xf] }
 0xc8d   :  { %v3795_v1 = vmul.f32 %v8254_v47, %v3794_v51  ;;  %v3824_v34 = vsel %vm3821_vm5, %v3823_v27, %v3819_v23  ;;  %v7868_v51 = vld [vmem:[#allocation19 + $0xcc] sm:$0xf0]  ;;  %v7037_v42 = vld [vmem:[#allocation19 + $0xd0] sm:$0xf0]  ;;  %v7865_v27 = vld [vmem:[#allocation19 + $0xb4] sm:$0xf0] }
 0xc8e   :  { %v3846_v32 = vmul.f32 %v3824_v34, %v9849_v6  ;;  %v7036_v45 = vor.u32 %v7868_v51, %v7035_v54  ;;  %v7040_v52 = vor.u32 %v7866_v33, %v7037_v42  ;;  %v7028_v28 = vor.u32 %v7865_v27, %v7027_v25  ;;  %v7003_v34 = vld [vmem:[#allocation19 + $0x80] sm:$0xf]  ;;  %v7848_v27 = vld [vmem:[#allocation19 + $0x2c] sm:$0xf0] }
 0xc8f   :  { %v8256_v7 = vpop.eup %8255  ;;  %v3796_v49 = vadd.f32 %v8254_v47, %v3795_v1  ;;  %4184 = vmatpush.bf16.msrb.mxu0 %v9912_v62  ;;  %v7869_v1 = vld [vmem:[#allocation19 + $0xd4] sm:$0xf0]  ;;  %v6971_v33 = vld [vmem:[#allocation19 + $0x40] sm:$0xf] }
 0xc90   :  { %v3830_v10 = vadd.f32 1.0, %v8256_v7  ;;  %v8258_v3 = vpop.eup %8257  ;;  %v7044_v53 = vor.u32 %v7869_v1, %v7043_v26  ;;  %4387 = vmatpush.bf16.msrb.mxu1 %v7036_v45  ;;  %v7864_v7 = vld [vmem:[#allocation19 + $0xac] sm:$0xf0]  ;;  %v7850_v1 = vld [vmem:[#allocation19 + $0x44] sm:$0xf] }
 0xc91   :  { %v3800_v22 = vsel %vm3799_vm3, %v8254_v47, %v3796_v49  ;;  %v7870_v47 = vld [vmem:[#allocation19 + $0xe4] sm:$0xf]  ;;  %v7852_v45 = vld [vmem:[#allocation19 + $0x4c] sm:$0xf0]  ;;  %v6955_v25 = vld [vmem:[#allocation19 + $0x20] sm:$0xf] }
 0xc92   :  { %v3805_v29 = vsel %vm3802_vm4, %v3804_v37, %v3800_v22  ;;  %8259 = vrcp.f32 %v3830_v10  ;;  %v3842_v61 = vand.u32 2147483648, %v3830_v10  ;;  %v3840_v6 = vand.u32 2147483647, %v3830_v10 }
 0xc93   :  { %v3847_v36 = vmul.f32 %v8258_v3, %v3805_v29  ;;  %4185 = vmatpush.bf16.msrb.mxu0 %v9916_v19  ;;  %vm3836_vm7 = vweird.f32 %v3830_v10  ;;  %v7056_v40 = vor.u32 %v7870_v47, %v7053_v58  ;;  %v7020_v37 = vor.u32 %v7864_v7, %v7019_v14  ;;  %v6995_v47 = vld [vmem:[#allocation19 + $0x68] sm:$0xf]  ;;  %v7857_v58 = vld [vmem:[#allocation19 + $0x74] sm:$0xf0] }
 0xc94   :  { %v3843_v21 = vor.u32 1.1754944e-38, %v3842_v61  ;;  %vm3841_vm9 = vcmp.eq.f32.partialorder %v3840_v6, 8.507059e+37  ;;  %v6972_v26 = vor.u32 %v7852_v45, %v6971_v33  ;;  %v7853_v7 = vld [vmem:[#allocation19 + $0x54] sm:$0xf0]  ;;  %v7855_v33 = vld [vmem:[#allocation19 + $0x6c] sm:$0xf] }
 0xc95   :  { %v9910_v50 = vadd.f32 %v3847_v36, %v3846_v32  ;;  %4399 = vmatpush.bf16.msra.mxu2 %v7056_v40  ;;  %4388 = vmatpush.bf16.msrb.mxu1 %v7020_v37  ;;  %v7860_v36 = vld [vmem:[#allocation19 + $0x8c] sm:$0xf0]  ;;  %v7858_v32 = vld [vmem:[#allocation19 + $0x84] sm:$0xf]  ;;  %v6996_v40 = vor.u32 %v7857_v58, %v6995_v47  ;;  %v7045_v37 = vld [vmem:[#allocation19 + $0xd8] sm:$0xf0] }
 0xc96   :  { %v7004_v39 = vor.u32 %v7860_v36, %v7003_v34  ;;  %v7849_v34 = vld [vmem:[#allocation19 + $0x34] sm:$0xf0]  ;;  %v7863_v36 = vld [vmem:[#allocation19 + $0xac] sm:$0xf]  ;;  %v7013_v58 = vld [vmem:[#allocation19 + $0x98] sm:$0xf0] }
 0xc97   :  { %8261 = vtanh.f32 %v9910_v50  ;;  %4186 = vmatpush.bf16.msrb.mxu0 %v9919_v4  ;;  %v6997_v45 = vld [vmem:[#allocation19 + $0x78] sm:$0xf0] }
 0xc98   :  { %v8260_v44 = vpop.eup %8259 }
 0xc99   :  { %v3832_v0 = vmul.f32 %v8260_v44, %v3830_v10  ;;  %vm3837_vm6 = vweird.f32 %v8260_v44  ;;  %4400 = vmatpush.bf16.msra.mxu2 %v7040_v52  ;;  %v7021_v10 = vld [vmem:[#allocation19 + $0xb0] sm:$0xf0]  ;;  %4389 = vmatpush.bf16.msrb.mxu1 %v7004_v39  ;;  %v7029_v39 = vld [vmem:[#allocation19 + $0xb8] sm:$0xf0] }
 0xc9a   :  { %vm3838_vm8 = vmor %vm3836_vm7, %vm3837_vm6  ;;  %v7024_v48 = vor.u32 %v7862_v8, %v7021_v10  ;;  %v6973_v52 = vld [vmem:[#allocation19 + $0x50] sm:$0xf0] }
 0xc9b   :  { %v3833_v11 = vsub.f32 1.0, %v3832_v0  ;;  %v7011_v0 = vld [vmem:[#allocation19 + $0x88] sm:$0xf]  ;;  %v6976_v8 = vor.u32 %v7850_v1, %v6973_v52  ;;  %v7000_v1 = vor.u32 %v7855_v33, %v6997_v45  ;;  %v7185_v33 = vld [vmem:[#allocation19 + $0xf0] sm:$0xf0] }
 0xc9c   :  { %v7191_v45 = vld [vmem:[#allocation19 + $0xe8] sm:$0xf] }
 0xc9d   :  { %v3834_v13 = vmul.f32 %v8260_v44, %v3833_v11  ;;  %v8262_v60 = vpop.eup %8261  ;;  %4401 = vmatpush.bf16.msra.mxu2 %v7024_v48  ;;  %v7846_v48 = vld [vmem:[#allocation19 + $0x24] sm:$0xf] }
 0xc9f   :  { %v3835_v31 = vadd.f32 %v8260_v44, %v3834_v13  ;;  %v7861_v13 = vld [vmem:[#allocation19 + $0x94] sm:$0xf0] }
 0xca1   :  { %v3839_v43 = vsel %vm3838_vm8, %v8260_v44, %v3835_v31  ;;  %v7005_v44 = vld [vmem:[#allocation19 + $0x90] sm:$0xf0] }
 0xca2   :  { %v3844_v5 = vsel %vm3841_vm9, %v3843_v21, %v3839_v43  ;;  %v7008_v61 = vor.u32 %v7858_v32, %v7005_v44  ;;  %v7012_v21 = vor.u32 %v7861_v13, %v7011_v0  ;;  %v7032_v0 = vor.u32 %v7863_v36, %v7029_v39  ;;  %v7842_v13 = vld [vmem:[#allocation19 + $0x4] sm:$0xf] }
 0xca3   :  { %v3850_v30 = vmul.f32 %v8262_v60, %v3844_v5  ;;  %v6987_v60 = vld [vmem:[#allocation19 + $0x60] sm:$0xf]  ;;  %v7856_v5 = vld [vmem:[#allocation19 + $0x6c] sm:$0xf0] }
 0xca4   :  { %4402 = vmatpush.bf16.msra.mxu2 %v7008_v61  ;;  %v6988_v38 = vor.u32 %v7856_v5, %v6987_v60  ;;  %v7844_v61 = vld [vmem:[#allocation19 + $0xc] sm:$0xf0]  ;;  %v6941_v60 = vld [vmem:[#allocation19 + $0x10] sm:$0xf0]  ;;  %v6947_v5 = vld [vmem:[#allocation19 + $0x8] sm:$0xf] }
 0xca5   :  { %v3851_v55 = vpack.c.bf16 %v3850_v30, %v3850_v30  ;;  %v7854_v30 = vld [vmem:[#allocation19 + $0x64] sm:$0xf] }
 0xca6   :  { %v6992_v24 = vor.u32 %v7854_v30, %v6989_v41  ;;  %4390 = vmatpush.bf16.msrb.mxu1 %v6988_v38  ;;  %v7845_v30 = vld [vmem:[#allocation19 + $0x14] sm:$0xf0]  ;;  %v6944_v41 = vor.u32 %v7842_v13, %v6941_v60 }
 0xca7   :  { %3860 = vmatmul.bf16.vlgmr.msrb.gmra.mxu3 %v3851_v55  ;;  %4067 = vmatmul.bf16.vlgmr.msra.gmra.mxu0 %v3851_v55  ;;  %v6948_v47 = vor.u32 %v7845_v30, %v6947_v5 }
 0xca8   :  { %4080 = vmatmul.bf16.vlgmr.msra.gmra.mxu1 %v3851_v55  ;;  %4093 = vmatmul.bf16.vlgmr.msrb.gmra.mxu2 %v3851_v55 }
 0xca9   :  { %4412 = vmatpush.bf16.msrb.mxu3 %v7060_v35  ;;  %4403 = vmatpush.bf16.msra.mxu2 %v6992_v24  ;;  %v7859_v24 = vld [vmem:[#allocation19 + $0x8c] sm:$0xf] }
 0xcaa   :  { %4391 = vmatpush.bf16.msrb.mxu1 %v6972_v26 }
 0xcad   :  { %4413 = vmatpush.bf16.msrb.mxu3 %v7044_v53  ;;  %4404 = vmatpush.bf16.msra.mxu2 %v6976_v8 }
 0xcb1   :  { %4414 = vmatpush.bf16.msrb.mxu3 %v7028_v28  ;;  %v6957_v28 = vld [vmem:[#allocation19 + $0x30] sm:$0xf0] }
 0xcb5   :  { %4415 = vmatpush.bf16.msrb.mxu3 %v7012_v21 }
 0xcb7   :  { %4106 = vmatmul.bf16.vlgmr.msra.gmra.mxu3 %v3851_v55 }
 0xcb9   :  { %4416 = vmatpush.bf16.msrb.mxu3 %v6996_v40 }
 0xd24   :  { %v4068_v59 = vpop.f32.mrf.mxu0 }
 0xd25   :  { %v4111_v49 = vadd.f32 %v4068_v59, %v9787_v16  ;;  %v4081_v23 = vpop.f32.mrf.mxu1  ;;  %v6979_v59 = vld [vmem:[#allocation19 + $0x48] sm:$0xf] }
 0xd26   :  { %v4112_v22 = vadd.f32 %v4081_v23, %v9754_v57  ;;  %v7867_v23 = vld [vmem:[#allocation19 + $0xcc] sm:$0xf] }
 0xd27   :  { %v6933_v29 = vmul.f32 -1.442695, %v4111_v49  ;;  %v6980_v49 = vor.u32 %v7853_v7, %v6979_v59  ;;  %v7048_v10 = vor.u32 %v7867_v23, %v7045_v37  ;;  %v6981_v59 = vld [vmem:[#allocation19 + $0x58] sm:$0xf0] }
 0xd28   :  { %v6934_v3 = vmul.f32 -1.442695, %v4112_v22  ;;  %v6956_v22 = vor.u32 %v7848_v27, %v6955_v25  ;;  %v7894_v27 = vld [vmem:[#allocation19 + $0xa4] sm:$0xf] }
 0xd29   :  { %8263 = vpow2.f32 %v6933_v29  ;;  %4417 = vmatpush.bf16.msrb.mxu3 %v6980_v49  ;;  %v6963_v29 = vld [vmem:[#allocation19 + $0x28] sm:$0xf] }
 0xd2a   :  { %8265 = vpow2.f32 %v6934_v3  ;;  %v3861_v11 = vpop.f32.mrf.mxu3  ;;  %v6960_v3 = vor.u32 %v7846_v48, %v6957_v28  ;;  %4392 = vmatpush.bf16.msrb.mxu1 %v6956_v22  ;;  %v6964_v44 = vor.u32 %v7849_v34, %v6963_v29  ;;  %v7847_v22 = vld [vmem:[#allocation19 + $0x2c] sm:$0xf]  ;;  %v6965_v48 = vld [vmem:[#allocation19 + $0x38] sm:$0xf0] }
 0xd2b   :  { %v3862_v6 = vadd.f32 %v9831_v20, %v3861_v11  ;;  %v9925_v31 = vpop.f32.mrf.mxu2  ;;  %v7061_v20 = vld [vmem:[#allocation19 + $0xf8] sm:$0xf0]  ;;  %v6939_v11 = vld [vmem:[#allocation19] sm:$0xf]  ;;  %v6968_v36 = vor.u32 %v7847_v22, %v6965_v48  ;;  %v7153_v48 = vld [vmem:[#allocation19 + $0xb0] sm:$0xf0] }
 0xd2c   :  { %v4070_v43 = vpop.f32.mrf.mxu0  ;;  %v7064_v35 = vor.u32 %v7871_v2, %v7061_v20  ;;  %4405 = vmatpush.bf16.msra.mxu2 %v6960_v3  ;;  %v4113_v52 = vadd.f32 %v9925_v31, %v9802_v56 }
 0xd2d   :  { %6804 = vst.msk [vmem:[%s8957_s5 + $0x10] sm:$0xff] %vm3211_vm0, %v3862_v6  ;;  %v4083_v55 = vpop.f32.mrf.mxu1  ;;  %v6940_v43 = vor.u32 %v7844_v61, %v6939_v11  ;;  %4418 = vmatpush.bf16.msrb.mxu3 %v6964_v44  ;;  %v6949_v11 = vld [vmem:[#allocation19 + $0x18] sm:$0xf0] }
 0xd2e   :  { %4425 = vmatpush.bf16.msra.mxu0 %v7064_v35 }
 0xd2f   :  { %v8264_v18 = vpop.eup %8263  ;;  %4393 = vmatpush.bf16.msrb.mxu1 %v6940_v43 }
 0xd30   :  { %v8266_v54 = vpop.eup %8265  ;;  %v9929_v51 = vadd.f32 1.0, %v8264_v18  ;;  %v7016_v18 = vor.u32 %v7859_v24, %v7013_v58  ;;  %4406 = vmatpush.bf16.msra.mxu2 %v6944_v41 }
 0xd31   :  { %v9931_v42 = vadd.f32 1.0, %v8266_v54  ;;  %4419 = vmatpush.bf16.msrb.mxu3 %v6948_v47 }
 0xd32   :  { %8267 = vrcp.f32 %v9929_v51  ;;  %v3863_v53 = vpop.f32.mrf.mxu3  ;;  %4426 = vmatpush.bf16.msra.mxu0 %v7048_v10  ;;  %vm4124_vm12 = vweird.f32 %v9929_v51  ;;  %v4130_v49 = vand.u32 2147483648, %v9929_v51  ;;  %v4128_v37 = vand.u32 2147483647, %v9929_v51 }
 0xd33   :  { %8269 = vrcp.f32 %v9931_v42  ;;  %v4096_v14 = vpop.f32.mrf.mxu2  ;;  %4506 = vmatpush.bf16.msra.mxu1 %v9873_v46  ;;  %v7851_v53 = vld [vmem:[#allocation19 + $0x4c] sm:$0xf]  ;;  %v4149_v8 = vand.u32 2147483648, %v9931_v42  ;;  %vm4143_vm13 = vweird.f32 %v9931_v42  ;;  %v4147_v10 = vand.u32 2147483647, %v9931_v42 }
 0xd34   :  { %v6984_v25 = vor.u32 %v7851_v53, %v6981_v59  ;;  %v4131_v3 = vor.u32 1.1754944e-38, %v4130_v49  ;;  %vm4129_vm1 = vcmp.eq.f32.partialorder %v4128_v37, 8.507059e+37  ;;  %v7167_v53 = vld [vmem:[#allocation19 + $0xc0] sm:$0xf]  ;;  %v7900_v59 = vld [vmem:[#allocation19 + $0xcc] sm:$0xf0] }
 0xd35   :  { %vm4148_vm2 = vcmp.eq.f32.partialorder %v4147_v10, 8.507059e+37  ;;  %v7175_v49 = vld [vmem:[#allocation19 + $0xc8] sm:$0xf]  ;;  %v7151_v10 = vld [vmem:[#allocation19 + $0xa0] sm:$0xf] }
 0xd36   :  { %4427 = vmatpush.bf16.msra.mxu0 %v7032_v0  ;;  %v7843_v0 = vld [vmem:[#allocation19 + $0xc] sm:$0xf] }
 0xd37   :  { %4507 = vmatpush.bf16.msra.mxu1 %v9880_v15 }
 0xd38   :  { %v9935_v32 = vpop.eup %8267 }
 0xd39   :  { %v9937_v6 = vpop.eup %8269  ;;  %v4120_v21 = vmul.f32 %v9935_v32, %v9929_v51  ;;  %vm4125_vm10 = vweird.f32 %v9935_v32 }
 0xd3a   :  { %v4139_v55 = vmul.f32 %v9937_v6, %v9931_v42  ;;  %v4107_v38 = vpop.f32.mrf.mxu3  ;;  %4428 = vmatpush.bf16.msra.mxu0 %v7016_v18  ;;  %vm4144_vm11 = vweird.f32 %v9937_v6  ;;  %vm9958_vm14 = vmor %vm4124_vm12, %vm4125_vm10  ;;  %v4150_v42 = vor.u32 1.1754944e-38, %v4149_v8  ;;  %v7183_v18 = vld [vmem:[#allocation19 + $0xe0] sm:$0xf]  ;;  %v7169_v8 = vld [vmem:[#allocation19 + $0xd0] sm:$0xf0] }
 0xd3b   :  { %v4121_v2 = vsub.f32 1.0, %v4120_v21  ;;  %v4114_v20 = vadd.f32 %v4107_v38, %v9769_v17  ;;  %vm9964_vm15 = vmor %vm4143_vm13, %vm4144_vm11  ;;  %4508 = vmatpush.bf16.msra.mxu1 %v9890_v63 }
 0xd3c   :  { %v4140_v40 = vsub.f32 1.0, %v4139_v55 }
 0xd3d   :  { %v4122_v35 = vmul.f32 %v9935_v32, %v4121_v2  ;;  %v6935_v54 = vmul.f32 -1.442695, %v4114_v20 }
 0xd3e   :  { %v4141_v26 = vmul.f32 %v9937_v6, %v4140_v40  ;;  %4429 = vmatpush.bf16.msra.mxu0 %v7000_v1  ;;  %v7904_v40 = vld [vmem:[#allocation19 + $0xec] sm:$0xf0] }
 0xd3f   :  { %8271 = vpow2.f32 %v6935_v54  ;;  %v4123_v14 = vadd.f32 %v9935_v32, %v4122_v35  ;;  %4509 = vmatpush.bf16.msra.mxu1 %v9903_v12  ;;  %v7902_v35 = vld [vmem:[#allocation19 + $0xe4] sm:$0xf]  ;;  %v7184_v54 = vor.u32 %v7904_v40, %v7183_v18  ;;  %v7903_v18 = vld [vmem:[#allocation19 + $0xec] sm:$0xf]  ;;  %v7193_v40 = vld [vmem:[#allocation19 + $0xf8] sm:$0xf0] }
 0xd40   :  { %v4142_v7 = vadd.f32 %v9937_v6, %v4141_v26  ;;  %8273 = vtanh.f32 %v4113_v52  ;;  %v7905_v26 = vld [vmem:[#allocation19 + $0xf4] sm:$0xf0]  ;;  %v7188_v1 = vor.u32 %v7902_v35, %v7185_v33  ;;  %v7196_v33 = vor.u32 %v7903_v18, %v7193_v40 }
 0xd41   :  { %v4127_v29 = vsel %vm9958_vm14, %v9935_v32, %v4123_v14  ;;  %v7192_v52 = vor.u32 %v7905_v26, %v7191_v45  ;;  %4713 = vmatpush.bf16.msrb.mxu2 %v7184_v54  ;;  %v7898_v14 = vld [vmem:[#allocation19 + $0xc4] sm:$0xf] }
 0xd42   :  { %v4109_v23 = vpop.f32.mrf.mxu3  ;;  %v4146_v51 = vsel %vm9964_vm15, %v9937_v6, %v4142_v7  ;;  %4430 = vmatpush.bf16.msra.mxu0 %v6984_v25  ;;  %v4132_v39 = vsel %vm4129_vm1, %v4131_v3, %v4127_v29  ;;  %v6952_v6 = vor.u32 %v7843_v0, %v6949_v11  ;;  %4726 = vmatpush.bf16.msra.mxu3 %v7188_v1  ;;  %v7896_v25 = vld [vmem:[#allocation19 + $0xac] sm:$0xf0]  ;;  %v7897_v29 = vld [vmem:[#allocation19 + $0xb4] sm:$0xf0]  ;;  %v9984_v0 = vld [vmem:[#allocation23] ss:$0 sm:$0xff] }
 0xd43   :  { %v4151_v44 = vsel %vm4148_vm2, %v4150_v42, %v4146_v51  ;;  %4510 = vmatpush.bf16.msra.mxu1 %v9907_v9  ;;  %v7168_v7 = vor.u32 %v7900_v59, %v7167_v53  ;;  %v7901_v23 = vld [vmem:[#allocation19 + $0xd4] sm:$0xf0]  ;;  %v7172_v31 = vor.u32 %v7898_v14, %v7169_v8  ;;  %v7152_v22 = vor.u32 %v7896_v25, %v7151_v10  ;;  %v7884_v53 = vld [vmem:[#allocation19 + $0x4c] sm:$0xf0]  ;;  %v7882_v59 = vld [vmem:[#allocation19 + $0x44] sm:$0xf] }
 0xd44   :  { %v4173_v61 = vmul.f32 %v4151_v44, %v9910_v50  ;;  %v7176_v37 = vor.u32 %v7901_v23, %v7175_v49  ;;  %v7156_v51 = vor.u32 %v7894_v27, %v7153_v48  ;;  %v7890_v44 = vld [vmem:[#allocation19 + $0x84] sm:$0xf]  ;;  %v7111_v8 = vld [vmem:[#allocation19 + $0x48] sm:$0xf]  ;;  %v7885_v49 = vld [vmem:[#allocation19 + $0x54] sm:$0xf0] }
 0xd45   :  { %v8272_v28 = vpop.eup %8271  ;;  %4714 = vmatpush.bf16.msrb.mxu2 %v7168_v7  ;;  %v7105_v7 = vld [vmem:[#allocation19 + $0x50] sm:$0xf0]  ;;  %v7899_v10 = vld [vmem:[#allocation19 + $0xcc] sm:$0xf]  ;;  %v7177_v25 = vld [vmem:[#allocation19 + $0xd8] sm:$0xf0] }
 0xd46   :  { %v4157_v34 = vadd.f32 1.0, %v8272_v28  ;;  %v8274_v32 = vpop.eup %8273  ;;  %4431 = vmatpush.bf16.msra.mxu0 %v6968_v36  ;;  %4727 = vmatpush.bf16.msra.mxu3 %v7172_v31  ;;  %v7159_v28 = vld [vmem:[#allocation19 + $0xa8] sm:$0xf]  ;;  %v7135_v36 = vld [vmem:[#allocation19 + $0x80] sm:$0xf]  ;;  %v7108_v31 = vor.u32 %v7882_v59, %v7105_v7 }
 0xd47   :  { %v4174_v13 = vmul.f32 %v8274_v32, %v4132_v39  ;;  %4511 = vmatpush.bf16.msra.mxu1 %v9912_v62  ;;  %v7160_v42 = vor.u32 %v7897_v29, %v7159_v28  ;;  %v7892_v39 = vld [vmem:[#allocation19 + $0x8c] sm:$0xf0]  ;;  %v7087_v48 = vld [vmem:[#allocation19 + $0x20] sm:$0xf]  ;;  %v7878_v29 = vld [vmem:[#allocation19 + $0x24] sm:$0xf] }
 0xd48   :  { %8275 = vrcp.f32 %v4157_v34  ;;  %v4169_v30 = vand.u32 2147483648, %v4157_v34  ;;  %v4167_v38 = vand.u32 2147483647, %v4157_v34  ;;  %vm4163_vm4 = vweird.f32 %v4157_v34  ;;  %v7880_v28 = vld [vmem:[#allocation19 + $0x2c] sm:$0xf0] }
 0xd49   :  { %v9978_v43 = vadd.f32 %v4174_v13, %v4173_v61  ;;  %4715 = vmatpush.bf16.msrb.mxu2 %v7152_v22  ;;  %v7136_v61 = vor.u32 %v7892_v39, %v7135_v36  ;;  %v7137_v13 = vld [vmem:[#allocation19 + $0x90] sm:$0xf0]  ;;  %v7180_v22 = vor.u32 %v7899_v10, %v7177_v25  ;;  %v7881_v39 = vld [vmem:[#allocation19 + $0x34] sm:$0xf0]  ;;  %v7883_v59 = vld [vmem:[#allocation19 + $0x4c] sm:$0xf] }
 0xd4a   :  { %4432 = vmatpush.bf16.msra.mxu0 %v6952_v6  ;;  %v4170_v41 = vor.u32 1.1754944e-38, %v4169_v30  ;;  %vm4168_vm6 = vcmp.eq.f32.partialorder %v4167_v38, 8.507059e+37  ;;  %4728 = vmatpush.bf16.msra.mxu3 %v7156_v51  ;;  %v7143_v6 = vld [vmem:[#allocation19 + $0x88] sm:$0xf]  ;;  %v7888_v38 = vld [vmem:[#allocation19 + $0x6c] sm:$0xf0] }
 0xd4b   :  { %8277 = vtanh.f32 %v9978_v43  ;;  %4512 = vmatpush.bf16.msra.mxu1 %v9916_v19 }
 0xd4d   :  { %4716 = vmatpush.bf16.msrb.mxu2 %v7136_v61 }
 0xd4e   :  { %v8276_v21 = vpop.eup %8275 }
 0xd4f   :  { %v4159_v60 = vmul.f32 %v8276_v21, %v4157_v34  ;;  %vm4164_vm3 = vweird.f32 %v8276_v21  ;;  %4513 = vmatpush.bf16.msra.mxu1 %v9919_v4 }
 0xd50   :  { %vm4165_vm5 = vmor %vm4163_vm4, %vm4164_vm3 }
 0xd51   :  { %v4160_v5 = vsub.f32 1.0, %v4159_v60  ;;  %v8278_v24 = vpop.eup %8277  ;;  %v7140_v60 = vor.u32 %v7890_v44, %v7137_v13  ;;  %v7895_v44 = vld [vmem:[#allocation19 + $0xac] sm:$0xf] }
 0xd53   :  { %v4161_v55 = vmul.f32 %v8276_v21, %v4160_v5  ;;  %4729 = vmatpush.bf16.msra.mxu3 %v7140_v60  ;;  %v7876_v60 = vld [vmem:[#allocation19 + $0xc] sm:$0xf0] }
 0xd55   :  { %v4162_v50 = vadd.f32 %v8276_v21, %v4161_v55  ;;  %v7119_v55 = vld [vmem:[#allocation19 + $0x60] sm:$0xf] }
 0xd57   :  { %v4166_v47 = vsel %vm4165_vm5, %v8276_v21, %v4162_v50  ;;  %v7893_v21 = vld [vmem:[#allocation19 + $0x94] sm:$0xf0]  ;;  %v7886_v50 = vld [vmem:[#allocation19 + $0x64] sm:$0xf] }
 0xd58   :  { %v4171_v58 = vsel %vm4168_vm6, %v4170_v41, %v4166_v47  ;;  %v7144_v5 = vor.u32 %v7893_v21, %v7143_v6  ;;  %v7120_v41 = vor.u32 %v7888_v38, %v7119_v55  ;;  %v7121_v47 = vld [vmem:[#allocation19 + $0x70] sm:$0xf0] }
 0xd59   :  { %v4177_v2 = vmul.f32 %v8278_v24, %v4171_v58  ;;  %v7127_v24 = vld [vmem:[#allocation19 + $0x68] sm:$0xf]  ;;  %v7889_v58 = vld [vmem:[#allocation19 + $0x74] sm:$0xf0] }
 0xd5a   :  { %4717 = vmatpush.bf16.msrb.mxu2 %v7120_v41  ;;  %v7079_v41 = vld [vmem:[#allocation19 + $0x8] sm:$0xf] }
 0xd5b   :  { %v4178_v20 = vpack.c.bf16 %v4177_v2, %v4177_v2  ;;  %v7124_v2 = vor.u32 %v7886_v50, %v7121_v47  ;;  %v7877_v47 = vld [vmem:[#allocation19 + $0x14] sm:$0xf0] }
 0xd5d   :  { %4187 = vmatmul.bf16.vlgmr.msrb.gmra.mxu0 %v4178_v20  ;;  %4394 = vmatmul.bf16.vlgmr.msrb.gmra.mxu1 %v4178_v20 }
 0xd5e   :  { %4407 = vmatmul.bf16.vlgmr.msra.gmra.mxu2 %v4178_v20  ;;  %4420 = vmatmul.bf16.vlgmr.msrb.gmra.mxu3 %v4178_v20 }
 0xd5f   :  { %4739 = vmatpush.bf16.msrb.mxu0 %v7192_v52  ;;  %4730 = vmatpush.bf16.msra.mxu3 %v7124_v2  ;;  %v7103_v52 = vld [vmem:[#allocation19 + $0x40] sm:$0xf]  ;;  %v7891_v2 = vld [vmem:[#allocation19 + $0x8c] sm:$0xf] }
 0xd60   :  { %4752 = vmatpush.bf16.msrb.mxu1 %v7196_v33  ;;  %v7104_v14 = vor.u32 %v7884_v53, %v7103_v52 }
 0xd62   :  { %4718 = vmatpush.bf16.msrb.mxu2 %v7104_v14  ;;  %v7113_v14 = vld [vmem:[#allocation19 + $0x58] sm:$0xf0] }
 0xd63   :  { %4740 = vmatpush.bf16.msrb.mxu0 %v7176_v37  ;;  %v7112_v37 = vor.u32 %v7885_v49, %v7111_v8  ;;  %4731 = vmatpush.bf16.msra.mxu3 %v7108_v31 }
 0xd64   :  { %4753 = vmatpush.bf16.msrb.mxu1 %v7180_v22 }
 0xd67   :  { %4741 = vmatpush.bf16.msrb.mxu0 %v7160_v42  ;;  %v7088_v42 = vor.u32 %v7880_v28, %v7087_v48 }
 0xd69   :  { %4719 = vmatpush.bf16.msrb.mxu2 %v7088_v42 }
 0xd6b   :  { %4742 = vmatpush.bf16.msrb.mxu0 %v7144_v5  ;;  %v7874_v5 = vld [vmem:[#allocation19 + $0x4] sm:$0xf] }
 0xd6d   :  { %4433 = vmatmul.bf16.vlgmr.msra.gmra.mxu0 %v4178_v20  ;;  %v7128_v20 = vor.u32 %v7889_v58, %v7127_v24  ;;  %v7080_v58 = vor.u32 %v7877_v47, %v7079_v41 }
 0xd6f   :  { %4743 = vmatpush.bf16.msrb.mxu0 %v7128_v20  ;;  %v7145_v20 = vld [vmem:[#allocation19 + $0x98] sm:$0xf0] }
 0xd70   :  { %v7148_v40 = vor.u32 %v7891_v2, %v7145_v20 }
 0xd73   :  { %4744 = vmatpush.bf16.msrb.mxu0 %v7112_v37  ;;  %v7097_v37 = vld [vmem:[#allocation19 + $0x38] sm:$0xf0] }
 0xdda   :  { %v4188_v3 = vpop.f32.mrf.mxu0  ;;  %v4395_v34 = vpop.f32.mrf.mxu1 }
 0xddb   :  { %v4189_v11 = vadd.f32 %v9984_v0, %v4188_v3  ;;  %v4438_v32 = vadd.f32 %v4395_v34, %v9787_v16  ;;  %v7089_v3 = vld [vmem:[#allocation19 + $0x30] sm:$0xf0]  ;;  %v7095_v34 = vld [vmem:[#allocation19 + $0x28] sm:$0xf] }
 0xddc   :  { %v7092_v36 = vor.u32 %v7878_v29, %v7089_v3  ;;  %v7096_v6 = vor.u32 %v7881_v39, %v7095_v34  ;;  %v7081_v3 = vld [vmem:[#allocation19 + $0x18] sm:$0xf0] }
 0xddd   :  { %6936 = vst.msk [vmem:[%s8957_s5 + $0x18] sm:$0xff] %vm3211_vm0, %v4189_v11  ;;  %v7065_v30 = vmul.f32 -1.442695, %v4438_v32  ;;  %v7161_v11 = vld [vmem:[#allocation19 + $0xb8] sm:$0xf0] }
 0xdde   :  { %v7071_v32 = vld [vmem:[#allocation19] sm:$0xf]  ;;  %v7164_v21 = vor.u32 %v7895_v44, %v7161_v11  ;;  %4732 = vmatpush.bf16.msra.mxu3 %v7092_v36  ;;  %4745 = vmatpush.bf16.msrb.mxu0 %v7096_v6 }
 0xddf   :  { %8279 = vpow2.f32 %v7065_v30  ;;  %v7073_v30 = vld [vmem:[#allocation19 + $0x10] sm:$0xf0]  ;;  %v7072_v38 = vor.u32 %v7876_v60, %v7071_v32 }
 0xde0   :  { %v7076_v50 = vor.u32 %v7874_v5, %v7073_v30  ;;  %4754 = vmatpush.bf16.msrb.mxu1 %v7164_v21 }
 0xde1   :  { %v4408_v35 = vpop.f32.mrf.mxu2  ;;  %v9990_v54 = vpop.f32.mrf.mxu3  ;;  %4720 = vmatpush.bf16.msrb.mxu2 %v7072_v38 }
 0xde2   :  { %v4439_v45 = vadd.f32 %v4408_v35, %v9754_v57  ;;  %v4190_v26 = vpop.f32.mrf.mxu0  ;;  %v4397_v1 = vpop.f32.mrf.mxu1  ;;  %4733 = vmatpush.bf16.msra.mxu3 %v7076_v50  ;;  %4746 = vmatpush.bf16.msrb.mxu0 %v7080_v58  ;;  %v4440_v31 = vadd.f32 %v9990_v54, %v9802_v56  ;;  %v7875_v54 = vld [vmem:[#allocation19 + $0xc] sm:$0xf] }
 0xde3   :  { %v7887_v26 = vld [vmem:[#allocation19 + $0x6c] sm:$0xf]  ;;  %v7129_v1 = vld [vmem:[#allocation19 + $0x78] sm:$0xf0] }
 0xde4   :  { %v7066_v23 = vmul.f32 -1.442695, %v4439_v45  ;;  %4755 = vmatpush.bf16.msrb.mxu1 %v7148_v40  ;;  %v7132_v53 = vor.u32 %v7887_v26, %v7129_v1  ;;  %v7315_v40 = vld [vmem:[#allocation19 + $0xe0] sm:$0xf]  ;;  %v7323_v26 = vld [vmem:[#allocation19 + $0xe8] sm:$0xf] }
 0xde5   :  { %v8280_v27 = vpop.eup %8279  ;;  %4833 = vmatpush.bf16.msra.mxu2 %v9873_v46  ;;  %v7879_v46 = vld [vmem:[#allocation19 + $0x2c] sm:$0xf]  ;;  %v7937_v1 = vld [vmem:[#allocation19 + $0xf4] sm:$0xf0] }
 0xde6   :  { %v9993_v51 = vadd.f32 1.0, %v8280_v27  ;;  %8281 = vpow2.f32 %v7066_v23  ;;  %v7116_v23 = vor.u32 %v7883_v59, %v7113_v14  ;;  %v7100_v29 = vor.u32 %v7879_v46, %v7097_v37  ;;  %v7932_v59 = vld [vmem:[#allocation19 + $0xcc] sm:$0xf0]  ;;  %v7930_v14 = vld [vmem:[#allocation19 + $0xc4] sm:$0xf] }
 0xde7   :  { %v7283_v37 = vld [vmem:[#allocation19 + $0xa0] sm:$0xf] }
 0xde8   :  { %8283 = vrcp.f32 %v9993_v51  ;;  %4756 = vmatpush.bf16.msrb.mxu1 %v7132_v53  ;;  %v4455_v48 = vand.u32 2147483647, %v9993_v51  ;;  %v4457_v28 = vand.u32 2147483648, %v9993_v51  ;;  %vm4451_vm8 = vweird.f32 %v9993_v51 }
 0xde9   :  { %v4410_v61 = vpop.f32.mrf.mxu2  ;;  %v4423_v13 = vpop.f32.mrf.mxu3  ;;  %4834 = vmatpush.bf16.msra.mxu2 %v9880_v15  ;;  %v7324_v53 = vor.u32 %v7937_v1, %v7323_v26  ;;  %v7243_v26 = vld [vmem:[#allocation19 + $0x48] sm:$0xf] }
 0xdea   :  { %v4434_v55 = vpop.f32.mrf.mxu0  ;;  %v4458_v11 = vor.u32 1.1754944e-38, %v4457_v28  ;;  %vm4456_vm12 = vcmp.eq.f32.partialorder %v4455_v48, 8.507059e+37  ;;  %v7291_v48 = vld [vmem:[#allocation19 + $0xa8] sm:$0xf]  ;;  %v7929_v28 = vld [vmem:[#allocation19 + $0xb4] sm:$0xf0] }
 0xdeb   :  { %v4441_v24 = vadd.f32 %v4434_v55, %v9769_v17 }
 0xdec   :  { %v8282_v18 = vpop.eup %8281  ;;  %4757 = vmatpush.bf16.msrb.mxu1 %v7116_v23  ;;  %v7933_v23 = vld [vmem:[#allocation19 + $0xd4] sm:$0xf0] }
 0xded   :  { %v4464_v35 = vadd.f32 1.0, %v8282_v18  ;;  %v7067_v33 = vmul.f32 -1.442695, %v4441_v24  ;;  %4835 = vmatpush.bf16.msra.mxu2 %v9890_v63 }
 0xdee   :  { %v8284_v45 = vpop.eup %8283 }
 0xdef   :  { %v4447_v52 = vmul.f32 %v8284_v45, %v9993_v51  ;;  %8285 = vrcp.f32 %v4464_v35  ;;  %vm4452_vm7 = vweird.f32 %v8284_v45  ;;  %v4476_v34 = vand.u32 2147483648, %v4464_v35 }
 0xdf0   :  { %8287 = vpow2.f32 %v7067_v33  ;;  %vm10006_vm9 = vmor %vm4451_vm8, %vm4452_vm7  ;;  %v4474_v44 = vand.u32 2147483647, %v4464_v35  ;;  %4758 = vmatpush.bf16.msrb.mxu1 %v7100_v29  ;;  %v7084_v51 = vor.u32 %v7875_v54, %v7081_v3  ;;  %vm4470_vm11 = vweird.f32 %v4464_v35  ;;  %v7934_v33 = vld [vmem:[#allocation19 + $0xe4] sm:$0xf]  ;;  %v7267_v54 = vld [vmem:[#allocation19 + $0x80] sm:$0xf] }
 0xdf1   :  { %v4448_v7 = vsub.f32 1.0, %v4447_v52  ;;  %8289 = vtanh.f32 %v4440_v31  ;;  %4836 = vmatpush.bf16.msra.mxu2 %v9903_v12  ;;  %v4477_v61 = vor.u32 1.1754944e-38, %v4476_v34  ;;  %v7292_v29 = vor.u32 %v7929_v28, %v7291_v48  ;;  %v7924_v3 = vld [vmem:[#allocation19 + $0x8c] sm:$0xf0]  ;;  %v7922_v34 = vld [vmem:[#allocation19 + $0x84] sm:$0xf] }
 0xdf2   :  { %v4436_v8 = vpop.f32.mrf.mxu0  ;;  %vm4475_vm14 = vcmp.eq.f32.partialorder %v4474_v44, 8.507059e+37  ;;  %v7269_v44 = vld [vmem:[#allocation19 + $0x90] sm:$0xf0] }
 0xdf3   :  { %v4449_v49 = vmul.f32 %v8284_v45, %v4448_v7  ;;  %v7301_v8 = vld [vmem:[#allocation19 + $0xd0] sm:$0xf0] }
 0xdf4   :  { %4759 = vmatpush.bf16.msrb.mxu1 %v7084_v51  ;;  %v7304_v31 = vor.u32 %v7930_v14, %v7301_v8  ;;  %v7925_v51 = vld [vmem:[#allocation19 + $0x94] sm:$0xf0]  ;;  %v7309_v14 = vld [vmem:[#allocation19 + $0xd8] sm:$0xf0]  ;;  %v7912_v8 = vld [vmem:[#allocation19 + $0x2c] sm:$0xf0] }
 0xdf5   :  { %v8286_v10 = vpop.eup %8285  ;;  %v4450_v22 = vadd.f32 %v8284_v45, %v4449_v49  ;;  %4837 = vmatpush.bf16.msra.mxu2 %v9907_v9  ;;  %v7307_v49 = vld [vmem:[#allocation19 + $0xc8] sm:$0xf] }
 0xdf6   :  { %v8288_v25 = vpop.eup %8287  ;;  %v4466_v27 = vmul.f32 %v8286_v10, %v4464_v35  ;;  %vm4471_vm10 = vweird.f32 %v8286_v10  ;;  %v7936_v35 = vld [vmem:[#allocation19 + $0xec] sm:$0xf0]  ;;  %v7308_v46 = vor.u32 %v7933_v23, %v7307_v49 }
 0xdf7   :  { %v4484_v15 = vadd.f32 1.0, %v8288_v25  ;;  %v4454_v39 = vsel %vm10006_vm9, %v8284_v45, %v4450_v22  ;;  %vm4472_vm13 = vmor %vm4470_vm11, %vm4471_vm10  ;;  %v8290_v6 = vpop.eup %8289  ;;  %v7316_v45 = vor.u32 %v7936_v35, %v7315_v40  ;;  %v7926_v25 = vld [vmem:[#allocation19 + $0xa4] sm:$0xf]  ;;  %v7285_v22 = vld [vmem:[#allocation19 + $0xb0] sm:$0xf0] }
 0xdf8   :  { %v4467_v42 = vsub.f32 1.0, %v4466_v27  ;;  %v4459_v13 = vsel %vm4456_vm12, %v4458_v11, %v4454_v39  ;;  %v7268_v39 = vor.u32 %v7924_v3, %v7267_v54  ;;  %v7275_v11 = vld [vmem:[#allocation19 + $0x88] sm:$0xf]  ;;  %v7914_v40 = vld [vmem:[#allocation19 + $0x44] sm:$0xf] }
 0xdf9   :  { %8291 = vrcp.f32 %v4484_v15  ;;  %v4501_v12 = vmul.f32 %v8290_v6, %v4459_v13  ;;  %4838 = vmatpush.bf16.msra.mxu2 %v9912_v62  ;;  %v4496_v41 = vand.u32 2147483648, %v4484_v15  ;;  %v4494_v24 = vand.u32 2147483647, %v4484_v15  ;;  %5040 = vmatpush.bf16.msrb.mxu3 %v7316_v45  ;;  %v7251_v13 = vld [vmem:[#allocation19 + $0x60] sm:$0xf] }
 0xdfa   :  { %v4468_v63 = vmul.f32 %v8286_v10, %v4467_v42  ;;  %vm4490_vm1 = vweird.f32 %v4484_v15  ;;  %v7920_v6 = vld [vmem:[#allocation19 + $0x6c] sm:$0xf0]  ;;  %v7906_v54 = vld [vmem:[#allocation19 + $0x4] sm:$0xf] }
 0xdfb   :  { %v4497_v58 = vor.u32 1.1754944e-38, %v4496_v41  ;;  %vm4495_vm3 = vcmp.eq.f32.partialorder %v4494_v24, 8.507059e+37  ;;  %v7325_v24 = vld [vmem:[#allocation19 + $0xf8] sm:$0xf0] }
 0xdfc   :  { %v4469_v32 = vadd.f32 %v8286_v10, %v4468_v63 }
 0xdfd   :  { %4839 = vmatpush.bf16.msra.mxu2 %v9916_v19  ;;  %v7317_v19 = vld [vmem:[#allocation19 + $0xf0] sm:$0xf0] }
 0xdfe   :  { %v4473_v21 = vsel %vm4472_vm13, %v8286_v10, %v4469_v32  ;;  %v7320_v52 = vor.u32 %v7934_v33, %v7317_v19  ;;  %v7928_v10 = vld [vmem:[#allocation19 + $0xac] sm:$0xf0]  ;;  %v7272_v32 = vor.u32 %v7922_v34, %v7269_v44  ;;  %v7237_v19 = vld [vmem:[#allocation19 + $0x50] sm:$0xf0]  ;;  %v7909_v44 = vld [vmem:[#allocation19 + $0x14] sm:$0xf0] }
 0xdff   :  { %v8292_v60 = vpop.eup %8291  ;;  %v4478_v5 = vsel %vm4475_vm14, %v4477_v61, %v4473_v21  ;;  %v7284_v27 = vor.u32 %v7928_v10, %v7283_v37  ;;  %v7276_v61 = vor.u32 %v7925_v51, %v7275_v11  ;;  %v7918_v21 = vld [vmem:[#allocation19 + $0x64] sm:$0xf]  ;;  %v7227_v37 = vld [vmem:[#allocation19 + $0x28] sm:$0xf] }
 0xe00   :  { %v4500_v30 = vmul.f32 %v4478_v5, %v9978_v43  ;;  %v4486_v55 = vmul.f32 %v8292_v60, %v4484_v15  ;;  %vm4491_vm15 = vweird.f32 %v8292_v60  ;;  %5053 = vmatpush.bf16.msra.mxu0 %v7320_v52  ;;  %v7288_v15 = vor.u32 %v7926_v25, %v7285_v22  ;;  %v7253_v5 = vld [vmem:[#allocation19 + $0x70] sm:$0xf0]  ;;  %v7913_v25 = vld [vmem:[#allocation19 + $0x34] sm:$0xf0]  ;;  %v7293_v22 = vld [vmem:[#allocation19 + $0xb8] sm:$0xf0] }
 0xe01   :  { %vm4492_vm2 = vmor %vm4490_vm1, %vm4491_vm15  ;;  %4840 = vmatpush.bf16.msra.mxu2 %v9919_v4  ;;  %v7299_v4 = vld [vmem:[#allocation19 + $0xc0] sm:$0xf]  ;;  %v7240_v52 = vor.u32 %v7914_v40, %v7237_v19  ;;  %v7228_v28 = vor.u32 %v7913_v25, %v7227_v37  ;;  %v10052_v37 = vld [vmem:[#allocation22 + $0x20] sm:$0xff] }
 0xe02   :  { %v10015_v38 = vadd.f32 %v4501_v12, %v4500_v30  ;;  %v4487_v50 = vsub.f32 1.0, %v4486_v55  ;;  %v7300_v7 = vor.u32 %v7932_v59, %v7299_v4  ;;  %v7259_v30 = vld [vmem:[#allocation19 + $0x68] sm:$0xf]  ;;  %v7921_v12 = vld [vmem:[#allocation19 + $0x74] sm:$0xf0] }
 0xe03   :  { %v7260_v41 = vor.u32 %v7921_v12, %v7259_v30  ;;  %v7931_v4 = vld [vmem:[#allocation19 + $0xcc] sm:$0xf] }
 0xe04   :  { %8293 = vtanh.f32 %v10015_v38  ;;  %v4488_v47 = vmul.f32 %v8292_v60, %v4487_v50  ;;  %5041 = vmatpush.bf16.msrb.mxu3 %v7300_v7  ;;  %5054 = vmatpush.bf16.msra.mxu0 %v7304_v31  ;;  %v7256_v50 = vor.u32 %v7918_v21, %v7253_v5  ;;  %v7219_v7 = vld [vmem:[#allocation19 + $0x20] sm:$0xf]  ;;  %v7312_v49 = vor.u32 %v7931_v4, %v7309_v14  ;;  %v7910_v31 = vld [vmem:[#allocation19 + $0x24] sm:$0xf] }
 0xe05   :  { %v7220_v23 = vor.u32 %v7912_v8, %v7219_v7 }
 0xe06   :  { %v4489_v9 = vadd.f32 %v8292_v60, %v4488_v47  ;;  %v7935_v47 = vld [vmem:[#allocation19 + $0xec] sm:$0xf] }
 0xe08   :  { %v4493_v43 = vsel %vm4492_vm2, %v8292_v60, %v4489_v9  ;;  %5042 = vmatpush.bf16.msrb.mxu3 %v7284_v27  ;;  %5055 = vmatpush.bf16.msra.mxu0 %v7288_v15  ;;  %v7252_v60 = vor.u32 %v7920_v6, %v7251_v13  ;;  %v7927_v27 = vld [vmem:[#allocation19 + $0xac] sm:$0xf] }
 0xe09   :  { %v4498_v2 = vsel %vm4495_vm3, %v4497_v58, %v4493_v43  ;;  %v7328_v43 = vor.u32 %v7935_v47, %v7325_v24  ;;  %v7296_v15 = vor.u32 %v7927_v27, %v7293_v22  ;;  %v7261_v47 = vld [vmem:[#allocation19 + $0x78] sm:$0xf0] }
 0xe0a   :  { %v8294_v20 = vpop.eup %8293 }
 0xe0b   :  { %v4504_v18 = vmul.f32 %v8294_v20, %v4498_v2 }
 0xe0c   :  { %5043 = vmatpush.bf16.msrb.mxu3 %v7268_v39  ;;  %5056 = vmatpush.bf16.msra.mxu0 %v7272_v32  ;;  %v7211_v39 = vld [vmem:[#allocation19 + $0x8] sm:$0xf]  ;;  %v7923_v32 = vld [vmem:[#allocation19 + $0x8c] sm:$0xf] }
 0xe0d   :  { %v4505_v62 = vpack.c.bf16 %v4504_v18, %v4504_v18  ;;  %v7235_v18 = vld [vmem:[#allocation19 + $0x40] sm:$0xf]  ;;  %v7212_v21 = vor.u32 %v7909_v44, %v7211_v39 }
 0xe0f   :  { %4514 = vmatmul.bf16.vlgmr.msra.gmra.mxu1 %v4505_v62  ;;  %4721 = vmatmul.bf16.vlgmr.msrb.gmra.mxu2 %v4505_v62 }
 0xe10   :  { %4734 = vmatmul.bf16.vlgmr.msra.gmra.mxu3 %v4505_v62  ;;  %4747 = vmatmul.bf16.vlgmr.msrb.gmra.mxu0 %v4505_v62 }
 0xe11   :  { %5066 = vmatpush.bf16.msra.mxu1 %v7324_v53  ;;  %5044 = vmatpush.bf16.msrb.mxu3 %v7252_v60  ;;  %v7917_v53 = vld [vmem:[#allocation19 + $0x54] sm:$0xf0] }
 0xe12   :  { %5057 = vmatpush.bf16.msra.mxu0 %v7256_v50  ;;  %5079 = vmatpush.bf16.msrb.mxu2 %v7328_v43  ;;  %v7244_v59 = vor.u32 %v7917_v53, %v7243_v26  ;;  %v7919_v50 = vld [vmem:[#allocation19 + $0x6c] sm:$0xf] }
 0xe13   :  { %v7264_v24 = vor.u32 %v7919_v50, %v7261_v47 }
 0xe15   :  { %5067 = vmatpush.bf16.msra.mxu1 %v7308_v46  ;;  %v7221_v46 = vld [vmem:[#allocation19 + $0x30] sm:$0xf0] }
 0xe16   :  { %5058 = vmatpush.bf16.msra.mxu0 %v7240_v52  ;;  %v7224_v10 = vor.u32 %v7910_v31, %v7221_v46  ;;  %5080 = vmatpush.bf16.msrb.mxu2 %v7312_v49  ;;  %v7907_v49 = vld [vmem:[#allocation19 + $0xc] sm:$0xf] }
 0xe19   :  { %5068 = vmatpush.bf16.msra.mxu1 %v7292_v29  ;;  %v7203_v29 = vld [vmem:[#allocation19] sm:$0xf] }
 0xe1a   :  { %5059 = vmatpush.bf16.msra.mxu0 %v7224_v10  ;;  %5081 = vmatpush.bf16.msrb.mxu2 %v7296_v15 }
 0xe1d   :  { %5069 = vmatpush.bf16.msra.mxu1 %v7276_v61  ;;  %v7277_v61 = vld [vmem:[#allocation19 + $0x98] sm:$0xf0] }
 0xe1e   :  { %v7280_v30 = vor.u32 %v7923_v32, %v7277_v61  ;;  %v10064_v32 = vld [vmem:[#allocation22 + $0x10] sm:$0xff] }
 0xe1f   :  { %4760 = vmatmul.bf16.vlgmr.msrb.gmra.mxu1 %v4505_v62  ;;  %v7916_v62 = vld [vmem:[#allocation19 + $0x4c] sm:$0xf0] }
 0xe20   :  { %v7236_v45 = vor.u32 %v7916_v62, %v7235_v18  ;;  %5082 = vmatpush.bf16.msrb.mxu2 %v7280_v30 }
 0xe21   :  { %5070 = vmatpush.bf16.msra.mxu1 %v7260_v41  ;;  %v10034_v41 = vld [vmem:[#allocation22 + $0x38] sm:$0xff] }
 0xe22   :  { %5045 = vmatpush.bf16.msrb.mxu3 %v7236_v45  ;;  %v7229_v45 = vld [vmem:[#allocation19 + $0x38] sm:$0xf0] }
 0xe24   :  { %5083 = vmatpush.bf16.msrb.mxu2 %v7264_v24  ;;  %v7447_v24 = vld [vmem:[#allocation19 + $0xe0] sm:$0xf] }
 0xe25   :  { %5071 = vmatpush.bf16.msra.mxu1 %v7244_v59 }
 0xe26   :  { %5046 = vmatpush.bf16.msrb.mxu3 %v7220_v23  ;;  %v7213_v23 = vld [vmem:[#allocation19 + $0x18] sm:$0xf0] }
 0xe27   :  { %v7216_v22 = vor.u32 %v7907_v49, %v7213_v23 }
 0xe29   :  { %5072 = vmatpush.bf16.msra.mxu1 %v7228_v28 }
 0xe2d   :  { %5073 = vmatpush.bf16.msra.mxu1 %v7212_v21 }
 0xe8c   :  { %v4515_v42 = vpop.f32.mrf.mxu1 }
 0xe8d   :  { %v4516_v36 = vadd.f32 %v9984_v0, %v4515_v42  ;;  %v10022_v63 = vpop.f32.mrf.mxu0  ;;  %v7908_v42 = vld [vmem:[#allocation19 + $0xc] sm:$0xf0] }
 0xe8e   :  { %v7204_v34 = vor.u32 %v7908_v42, %v7203_v29 }
 0xe8f   :  { %7068 = vst.msk [vmem:[%s8957_s5 + $0x20] sm:$0xff] %vm3211_vm0, %v4516_v36  ;;  %v7205_v36 = vld [vmem:[#allocation19 + $0x10] sm:$0xf0] }
 0xe90   :  { %v7208_v51 = vor.u32 %v7906_v54, %v7205_v36  ;;  %5047 = vmatpush.bf16.msrb.mxu3 %v7204_v34  ;;  %v10058_v54 = vld [vmem:[#allocation22 + $0x18] sm:$0xff] }
 0xe92   :  { %v4722_v55 = vpop.f32.mrf.mxu2  ;;  %5060 = vmatpush.bf16.msra.mxu0 %v7208_v51 }
 0xe93   :  { %v4765_v9 = vadd.f32 %v4722_v55, %v9787_v16  ;;  %v4735_v58 = vpop.f32.mrf.mxu3 }
 0xe94   :  { %v4766_v2 = vadd.f32 %v4735_v58, %v9754_v57  ;;  %v4517_v20 = vpop.f32.mrf.mxu1  ;;  %5160 = vmatpush.bf16.msra.mxu3 %v10034_v41  ;;  %v7245_v58 = vld [vmem:[#allocation19 + $0x58] sm:$0xf0] }
 0xe95   :  { %v7197_v35 = vmul.f32 -1.442695, %v4765_v9  ;;  %v4750_v33 = vpop.f32.mrf.mxu0  ;;  %v7915_v9 = vld [vmem:[#allocation19 + $0x4c] sm:$0xf]  ;;  %v4767_v20 = vadd.f32 %v10022_v63, %v9802_v56 }
 0xe96   :  { %v7198_v1 = vmul.f32 -1.442695, %v4766_v2  ;;  %v10038_v2 = vld [vmem:[#allocation22 + $0x30] sm:$0xff]  ;;  %v7248_v62 = vor.u32 %v7915_v9, %v7245_v58  ;;  %v7911_v33 = vld [vmem:[#allocation19 + $0x2c] sm:$0xf] }
 0xe97   :  { %8295 = vpow2.f32 %v7197_v35  ;;  %v7232_v14 = vor.u32 %v7911_v33, %v7229_v45  ;;  %v7968_v9 = vld [vmem:[#allocation19 + $0xec] sm:$0xf0]  ;;  %v7966_v58 = vld [vmem:[#allocation19 + $0xe4] sm:$0xf]  ;;  %v7431_v33 = vld [vmem:[#allocation19 + $0xc0] sm:$0xf] }
 0xe98   :  { %8297 = vpow2.f32 %v7198_v1  ;;  %5161 = vmatpush.bf16.msra.mxu3 %v10038_v2  ;;  %v10045_v1 = vld [vmem:[#allocation22 + $0x28] sm:$0xff]  ;;  %5084 = vmatpush.bf16.msrb.mxu2 %v7248_v62  ;;  %v7969_v62 = vld [vmem:[#allocation19 + $0xf4] sm:$0xf0] }
 0xe99   :  { %v7964_v45 = vld [vmem:[#allocation19 + $0xcc] sm:$0xf0] }
 0xe9a   :  { %v4724_v48 = vpop.f32.mrf.mxu2 }
 0xe9b   :  { %v4737_v3 = vpop.f32.mrf.mxu3 }
 0xe9c   :  { %v4761_v11 = vpop.f32.mrf.mxu1  ;;  %5162 = vmatpush.bf16.msra.mxu3 %v10045_v1  ;;  %5085 = vmatpush.bf16.msrb.mxu2 %v7232_v14  ;;  %v7415_v14 = vld [vmem:[#allocation19 + $0xa0] sm:$0xf] }
 0xe9d   :  { %v8296_v13 = vpop.eup %8295  ;;  %v4768_v6 = vadd.f32 %v4761_v11, %v9769_v17 }
 0xe9e   :  { %v8298_v60 = vpop.eup %8297  ;;  %v10029_v5 = vadd.f32 1.0, %v8296_v13 }
 0xe9f   :  { %v10031_v12 = vadd.f32 1.0, %v8298_v60  ;;  %v7199_v55 = vmul.f32 -1.442695, %v4768_v6  ;;  %v10068_v60 = vld [vmem:[#allocation22 + $0x8] sm:$0xff] }
 0xea0   :  { %8299 = vrcp.f32 %v10029_v5  ;;  %v4782_v63 = vand.u32 2147483647, %v10029_v5  ;;  %v4784_v4 = vand.u32 2147483648, %v10029_v5  ;;  %5163 = vmatpush.bf16.msra.mxu3 %v10052_v37  ;;  %vm4778_vm6 = vweird.f32 %v10029_v5  ;;  %5086 = vmatpush.bf16.msrb.mxu2 %v7216_v22 }
 0xea1   :  { %8301 = vrcp.f32 %v10031_v12  ;;  %v4803_v8 = vand.u32 2147483648, %v10031_v12  ;;  %v4801_v46 = vand.u32 2147483647, %v10031_v12  ;;  %vm4797_vm8 = vweird.f32 %v10031_v12 }
 0xea2   :  { %8303 = vpow2.f32 %v7199_v55  ;;  %v4785_v25 = vor.u32 1.1754944e-38, %v4784_v4  ;;  %vm4783_vm9 = vcmp.eq.f32.partialorder %v4782_v63, 8.507059e+37  ;;  %v10071_v55 = vld [vmem:[#allocation22] sm:$0xff]  ;;  %v7965_v63 = vld [vmem:[#allocation19 + $0xd4] sm:$0xf0] }
 0xea3   :  { %8305 = vtanh.f32 %v4767_v20  ;;  %v4804_v15 = vor.u32 1.1754944e-38, %v4803_v8  ;;  %vm4802_vm11 = vcmp.eq.f32.partialorder %v4801_v46, 8.507059e+37  ;;  %v7449_v20 = vld [vmem:[#allocation19 + $0xf0] sm:$0xf0]  ;;  %v7958_v8 = vld [vmem:[#allocation19 + $0xa4] sm:$0xf] }
 0xea4   :  { %v4763_v43 = vpop.f32.mrf.mxu1  ;;  %5164 = vmatpush.bf16.msra.mxu3 %v10058_v54  ;;  %v7417_v46 = vld [vmem:[#allocation19 + $0xb0] sm:$0xf0] }
 0xea5   :  { %v7448_v43 = vor.u32 %v7968_v9, %v7447_v24  ;;  %v7420_v22 = vor.u32 %v7958_v8, %v7417_v46  ;;  %v7385_v9 = vld [vmem:[#allocation19 + $0x70] sm:$0xf0]  ;;  %v7963_v8 = vld [vmem:[#allocation19 + $0xcc] sm:$0xf] }
 0xea6   :  { %v8300_v18 = vpop.eup %8299 }
 0xea7   :  { %v8302_v40 = vpop.eup %8301  ;;  %v4774_v35 = vmul.f32 %v8300_v18, %v10029_v5  ;;  %vm4779_vm4 = vweird.f32 %v8300_v18  ;;  %5367 = vmatpush.bf16.msrb.mxu0 %v7448_v43  ;;  %v7391_v43 = vld [vmem:[#allocation19 + $0x68] sm:$0xf] }
 0xea8   :  { %v8304_v19 = vpop.eup %8303  ;;  %v4793_v26 = vmul.f32 %v8302_v40, %v10031_v12  ;;  %vm4798_vm5 = vweird.f32 %v8302_v40  ;;  %vm4780_vm7 = vmor %vm4778_vm6, %vm4779_vm4  ;;  %5165 = vmatpush.bf16.msra.mxu3 %v10064_v32 }
 0xea9   :  { %v4775_v52 = vsub.f32 1.0, %v4774_v35  ;;  %v4811_v53 = vadd.f32 1.0, %v8304_v19  ;;  %v8306_v48 = vpop.eup %8305  ;;  %vm4799_vm10 = vmor %vm4797_vm8, %vm4798_vm5  ;;  %v7962_v19 = vld [vmem:[#allocation19 + $0xc4] sm:$0xf] }
 0xeaa   :  { %v4794_v59 = vsub.f32 1.0, %v4793_v26  ;;  %v7432_v26 = vor.u32 %v7964_v45, %v7431_v33  ;;  %v7367_v33 = vld [vmem:[#allocation19 + $0x40] sm:$0xf]  ;;  %v7948_v45 = vld [vmem:[#allocation19 + $0x4c] sm:$0xf0] }
 0xeab   :  { %v4776_v7 = vmul.f32 %v8300_v18, %v4775_v52  ;;  %8307 = vrcp.f32 %v4811_v53  ;;  %v4823_v61 = vand.u32 2147483648, %v4811_v53  ;;  %v4821_v6 = vand.u32 2147483647, %v4811_v53  ;;  %v7433_v52 = vld [vmem:[#allocation19 + $0xd0] sm:$0xf0] }
 0xeac   :  { %v4795_v31 = vmul.f32 %v8302_v40, %v4794_v59  ;;  %vm4817_vm13 = vweird.f32 %v4811_v53  ;;  %5166 = vmatpush.bf16.msra.mxu3 %v10068_v60  ;;  %v7436_v4 = vor.u32 %v7962_v19, %v7433_v52  ;;  %5368 = vmatpush.bf16.msrb.mxu0 %v7432_v26  ;;  %v7946_v19 = vld [vmem:[#allocation19 + $0x44] sm:$0xf]  ;;  %v7368_v52 = vor.u32 %v7948_v45, %v7367_v33 }
 0xead   :  { %v4777_v10 = vadd.f32 %v8300_v18, %v4776_v7  ;;  %vm4822_vm15 = vcmp.eq.f32.partialorder %v4821_v6, 8.507059e+37  ;;  %v7960_v7 = vld [vmem:[#allocation19 + $0xac] sm:$0xf0] }
 0xeae   :  { %v4796_v27 = vadd.f32 %v8302_v40, %v4795_v31  ;;  %v7416_v31 = vor.u32 %v7960_v7, %v7415_v14  ;;  %v7949_v7 = vld [vmem:[#allocation19 + $0x54] sm:$0xf0] }
 0xeaf   :  { %v4781_v28 = vsel %vm4780_vm7, %v8300_v18, %v4777_v10  ;;  %v7455_v18 = vld [vmem:[#allocation19 + $0xe8] sm:$0xf] }
 0xeb0   :  { %v4786_v29 = vsel %vm4783_vm9, %v4785_v25, %v4781_v28  ;;  %v4800_v42 = vsel %vm4799_vm10, %v8302_v40, %v4796_v27  ;;  %5167 = vmatpush.bf16.msra.mxu3 %v10071_v55  ;;  %v7452_v40 = vor.u32 %v7966_v58, %v7449_v20  ;;  %v7456_v35 = vor.u32 %v7969_v62, %v7455_v18  ;;  %v7423_v10 = vld [vmem:[#allocation19 + $0xa8] sm:$0xf]  ;;  %v7961_v25 = vld [vmem:[#allocation19 + $0xb4] sm:$0xf0]  ;;  %v7457_v62 = vld [vmem:[#allocation19 + $0xf8] sm:$0xf0] }
 0xeb1   :  { %v8308_v3 = vpop.eup %8307  ;;  %v4828_v34 = vmul.f32 %v8306_v48, %v4786_v29  ;;  %v4805_v36 = vsel %vm4802_vm11, %v4804_v15, %v4800_v42  ;;  %v7424_v48 = vor.u32 %v7961_v25, %v7423_v10  ;;  %5369 = vmatpush.bf16.msrb.mxu0 %v7416_v31  ;;  %v7399_v15 = vld [vmem:[#allocation19 + $0x80] sm:$0xf]  ;;  %v7956_v29 = vld [vmem:[#allocation19 + $0x8c] sm:$0xf0]  ;;  %v7953_v20 = vld [vmem:[#allocation19 + $0x74] sm:$0xf0] }
 0xeb2   :  { %v4827_v39 = vmul.f32 %v4805_v36, %v10015_v38  ;;  %v4813_v44 = vmul.f32 %v8308_v3, %v4811_v53  ;;  %vm4818_vm12 = vweird.f32 %v8308_v3  ;;  %v4824_v38 = vor.u32 1.1754944e-38, %v4823_v61  ;;  %5380 = vmatpush.bf16.msrb.mxu1 %v7452_v40  ;;  %v7439_v53 = vld [vmem:[#allocation19 + $0xc8] sm:$0xf]  ;;  %v7957_v61 = vld [vmem:[#allocation19 + $0x94] sm:$0xf0] }
 0xeb3   :  { %vm4819_vm14 = vmor %vm4817_vm13, %vm4818_vm12  ;;  %v7440_v59 = vor.u32 %v7965_v63, %v7439_v53  ;;  %v7400_v42 = vor.u32 %v7956_v29, %v7399_v15  ;;  %v7407_v36 = vld [vmem:[#allocation19 + $0x88] sm:$0xf]  ;;  %v7392_v18 = vor.u32 %v7953_v20, %v7391_v43  ;;  %v7369_v53 = vld [vmem:[#allocation19 + $0x50] sm:$0xf0] }
 0xeb4   :  { %v4814_v11 = vsub.f32 1.0, %v4813_v44  ;;  %v10062_v51 = vadd.f32 %v4828_v34, %v4827_v39  ;;  %v7401_v34 = vld [vmem:[#allocation19 + $0x90] sm:$0xf0]  ;;  %v7375_v63 = vld [vmem:[#allocation19 + $0x48] sm:$0xf]  ;;  %v7372_v14 = vor.u32 %v7946_v19, %v7369_v53 }
 0xeb5   :  { %5370 = vmatpush.bf16.msrb.mxu0 %v7400_v42  ;;  %v7351_v31 = vld [vmem:[#allocation19 + $0x20] sm:$0xf]  ;;  %v7376_v46 = vor.u32 %v7949_v7, %v7375_v63  ;;  %v7944_v25 = vld [vmem:[#allocation19 + $0x2c] sm:$0xf0]  ;;  %v7359_v29 = vld [vmem:[#allocation19 + $0x28] sm:$0xf] }
 0xeb6   :  { %v4815_v13 = vmul.f32 %v8308_v3, %v4814_v11  ;;  %8309 = vtanh.f32 %v10062_v51  ;;  %5381 = vmatpush.bf16.msrb.mxu1 %v7436_v4  ;;  %v7945_v42 = vld [vmem:[#allocation19 + $0x34] sm:$0xf0]  ;;  %v7947_v53 = vld [vmem:[#allocation19 + $0x4c] sm:$0xf]  ;;  %v7377_v63 = vld [vmem:[#allocation19 + $0x58] sm:$0xf0] }
 0xeb8   :  { %v4816_v21 = vadd.f32 %v8308_v3, %v4815_v13 }
 0xeba   :  { %v4820_v5 = vsel %vm4819_vm14, %v8308_v3, %v4816_v21  ;;  %5382 = vmatpush.bf16.msrb.mxu1 %v7420_v22  ;;  %v7954_v3 = vld [vmem:[#allocation19 + $0x84] sm:$0xf]  ;;  %v7408_v21 = vor.u32 %v7957_v61, %v7407_v36  ;;  %v7353_v22 = vld [vmem:[#allocation19 + $0x30] sm:$0xf0]  ;;  %v7959_v36 = vld [vmem:[#allocation19 + $0xac] sm:$0xf] }
 0xebb   :  { %v4825_v30 = vsel %vm4822_vm15, %v4824_v38, %v4820_v5  ;;  %v7404_v11 = vor.u32 %v7954_v3, %v7401_v34  ;;  %v7383_v38 = vld [vmem:[#allocation19 + $0x60] sm:$0xf]  ;;  %v7952_v5 = vld [vmem:[#allocation19 + $0x6c] sm:$0xf0]  ;;  %v7360_v34 = vor.u32 %v7945_v42, %v7359_v29 }
 0xebc   :  { %v8310_v12 = vpop.eup %8309  ;;  %v7384_v24 = vor.u32 %v7952_v5, %v7383_v38  ;;  %v7940_v61 = vld [vmem:[#allocation19 + $0xc] sm:$0xf0] }
 0xebd   :  { %v4831_v50 = vmul.f32 %v8310_v12, %v4825_v30  ;;  %v7950_v30 = vld [vmem:[#allocation19 + $0x64] sm:$0xf] }
 0xebe   :  { %5383 = vmatpush.bf16.msrb.mxu1 %v7404_v11  ;;  %v7388_v58 = vor.u32 %v7950_v30, %v7385_v9  ;;  %5371 = vmatpush.bf16.msrb.mxu0 %v7384_v24  ;;  %v7335_v11 = vld [vmem:[#allocation19] sm:$0xf]  ;;  %v7343_v30 = vld [vmem:[#allocation19 + $0x8] sm:$0xf]  ;;  %v7409_v9 = vld [vmem:[#allocation19 + $0x98] sm:$0xf0] }
 0xebf   :  { %v4832_v47 = vpack.c.bf16 %v4831_v50, %v4831_v50  ;;  %v7336_v38 = vor.u32 %v7940_v61, %v7335_v11 }
 0xec1   :  { %4841 = vmatmul.bf16.vlgmr.msra.gmra.mxu2 %v4832_v47  ;;  %5048 = vmatmul.bf16.vlgmr.msrb.gmra.mxu3 %v4832_v47 }
 0xec2   :  { %5061 = vmatmul.bf16.vlgmr.msra.gmra.mxu0 %v4832_v47  ;;  %5074 = vmatmul.bf16.vlgmr.msra.gmra.mxu1 %v4832_v47 }
 0xec3   :  { %5393 = vmatpush.bf16.msra.mxu2 %v7456_v35  ;;  %5384 = vmatpush.bf16.msrb.mxu1 %v7388_v58 }
 0xec4   :  { %5372 = vmatpush.bf16.msrb.mxu0 %v7368_v52 }
 0xec7   :  { %5394 = vmatpush.bf16.msra.mxu2 %v7440_v59  ;;  %5385 = vmatpush.bf16.msrb.mxu1 %v7372_v14 }
 0xecb   :  { %5395 = vmatpush.bf16.msra.mxu2 %v7424_v48 }
 0xecf   :  { %5396 = vmatpush.bf16.msra.mxu2 %v7408_v21 }
 0xed1   :  { %5087 = vmatmul.bf16.vlgmr.msrb.gmra.mxu2 %v4832_v47 }
 0xed3   :  { %5397 = vmatpush.bf16.msra.mxu2 %v7392_v18  ;;  %v7951_v18 = vld [vmem:[#allocation19 + $0x6c] sm:$0xf] }
 0xed7   :  { %5398 = vmatpush.bf16.msra.mxu2 %v7376_v46  ;;  %v7943_v46 = vld [vmem:[#allocation19 + $0x2c] sm:$0xf] }
 0xedb   :  { %5399 = vmatpush.bf16.msra.mxu2 %v7360_v34 }
 0xf3f   :  { %v5062_v49 = vpop.f32.mrf.mxu0  ;;  %v10074_v23 = vpop.f32.mrf.mxu1 }
 0xf40   :  { %v5093_v27 = vadd.f32 %v5062_v49, %v9754_v57  ;;  %v7441_v49 = vld [vmem:[#allocation19 + $0xd8] sm:$0xf0]  ;;  %v5094_v19 = vadd.f32 %v10074_v23, %v9802_v56 }
 0xf41   :  { %v7444_v10 = vor.u32 %v7963_v8, %v7441_v49  ;;  %v7380_v49 = vor.u32 %v7947_v53, %v7377_v63  ;;  %v7563_v63 = vld [vmem:[#allocation19 + $0xc0] sm:$0xf] }
 0xf42   :  { %v7330_v28 = vmul.f32 -1.442695, %v5093_v27  ;;  %v7942_v27 = vld [vmem:[#allocation19 + $0x24] sm:$0xf] }
 0xf43   :  { %v7356_v15 = vor.u32 %v7942_v27, %v7353_v22 }
 0xf44   :  { %8311 = vpow2.f32 %v7330_v28  ;;  %v4842_v39 = vpop.f32.mrf.mxu2  ;;  %v5049_v44 = vpop.f32.mrf.mxu3  ;;  %v7352_v28 = vor.u32 %v7944_v25, %v7351_v31 }
 0xf45   :  { %v4843_v13 = vadd.f32 %v9984_v0, %v4842_v39  ;;  %v5092_v6 = vadd.f32 %v5049_v44, %v9787_v16  ;;  %v7967_v0 = vld [vmem:[#allocation19 + $0xec] sm:$0xf]  ;;  %v7425_v39 = vld [vmem:[#allocation19 + $0xb8] sm:$0xf0]  ;;  %5386 = vmatpush.bf16.msrb.mxu1 %v7356_v15 }
 0xf46   :  { %v7460_v35 = vor.u32 %v7967_v0, %v7457_v62  ;;  %5373 = vmatpush.bf16.msrb.mxu0 %v7352_v28  ;;  %v7428_v44 = vor.u32 %v7959_v36, %v7425_v39  ;;  %v7393_v62 = vld [vmem:[#allocation19 + $0x78] sm:$0xf0]  ;;  %v7939_v36 = vld [vmem:[#allocation19 + $0xc] sm:$0xf] }
 0xf47   :  { %7200 = vst.msk [vmem:[%s8957_s5 + $0x28] sm:$0xff] %vm3211_vm0, %v4843_v13  ;;  %v7329_v12 = vmul.f32 -1.442695, %v5092_v6  ;;  %v5064_v50 = vpop.f32.mrf.mxu0  ;;  %v5077_v47 = vpop.f32.mrf.mxu1  ;;  %v7938_v13 = vld [vmem:[#allocation19 + $0x4] sm:$0xf]  ;;  %v7396_v45 = vor.u32 %v7951_v18, %v7393_v62 }
 0xf48   :  { %5406 = vmatpush.bf16.msrb.mxu3 %v7460_v35  ;;  %v7337_v6 = vld [vmem:[#allocation19 + $0x10] sm:$0xf0]  ;;  %v7955_v50 = vld [vmem:[#allocation19 + $0x8c] sm:$0xf]  ;;  %v7345_v39 = vld [vmem:[#allocation19 + $0x18] sm:$0xf0] }
 0xf49   :  { %8313 = vpow2.f32 %v7329_v12  ;;  %v7340_v5 = vor.u32 %v7938_v13, %v7337_v6  ;;  %v7941_v12 = vld [vmem:[#allocation19 + $0x14] sm:$0xf0]  ;;  %v7412_v20 = vor.u32 %v7955_v50, %v7409_v9  ;;  %v7348_v13 = vor.u32 %v7939_v36, %v7345_v39  ;;  %v7579_v18 = vld [vmem:[#allocation19 + $0xe0] sm:$0xf]  ;;  %v8000_v62 = vld [vmem:[#allocation19 + $0xec] sm:$0xf0] }
 0xf4a   :  { %v8312_v40 = vpop.eup %8311  ;;  %5374 = vmatpush.bf16.msrb.mxu0 %v7336_v38  ;;  %v7344_v43 = vor.u32 %v7941_v12, %v7343_v30 }
 0xf4b   :  { %v10081_v26 = vadd.f32 1.0, %v8312_v40  ;;  %5387 = vmatpush.bf16.msrb.mxu1 %v7340_v5 }
 0xf4c   :  { %v4844_v4 = vpop.f32.mrf.mxu2  ;;  %v5051_v59 = vpop.f32.mrf.mxu3  ;;  %5407 = vmatpush.bf16.msrb.mxu3 %v7444_v10  ;;  %5400 = vmatpush.bf16.msra.mxu2 %v7344_v43  ;;  %v7361_v10 = vld [vmem:[#allocation19 + $0x38] sm:$0xf0] }
 0xf4d   :  { %8315 = vrcp.f32 %v10081_v26  ;;  %v5130_v4 = vand.u32 2147483648, %v10081_v26  ;;  %vm5124_vm3 = vweird.f32 %v10081_v26  ;;  %v5128_v25 = vand.u32 2147483647, %v10081_v26 }
 0xf4e   :  { %5487 = vmatpush.bf16.msra.mxu0 %v10034_v41 }
 0xf4f   :  { %v8314_v48 = vpop.eup %8313  ;;  %v5131_v42 = vor.u32 1.1754944e-38, %v5130_v4  ;;  %vm5129_vm8 = vcmp.eq.f32.partialorder %v5128_v25, 8.507059e+37  ;;  %v7996_v4 = vld [vmem:[#allocation19 + $0xcc] sm:$0xf0] }
 0xf50   :  { %v10084_v3 = vadd.f32 1.0, %v8314_v48  ;;  %5408 = vmatpush.bf16.msrb.mxu3 %v7428_v44  ;;  %v7992_v25 = vld [vmem:[#allocation19 + $0xac] sm:$0xf0] }
 0xf52   :  { %8317 = vrcp.f32 %v10084_v3  ;;  %5488 = vmatpush.bf16.msra.mxu0 %v10038_v2  ;;  %v5111_v7 = vand.u32 2147483648, %v10084_v3  ;;  %v5109_v31 = vand.u32 2147483647, %v10084_v3  ;;  %vm5105_vm5 = vweird.f32 %v10084_v3 }
 0xf53   :  { %v10087_v21 = vpop.eup %8315 }
 0xf54   :  { %v5120_v47 = vmul.f32 %v10087_v21, %v10081_v26  ;;  %v5088_v24 = vpop.f32.mrf.mxu2  ;;  %5409 = vmatpush.bf16.msrb.mxu3 %v7412_v20  ;;  %vm5125_vm1 = vweird.f32 %v10087_v21  ;;  %v5112_v15 = vor.u32 1.1754944e-38, %v5111_v7  ;;  %v7364_v26 = vor.u32 %v7943_v46, %v7361_v10  ;;  %v7565_v7 = vld [vmem:[#allocation19 + $0xd0] sm:$0xf0]  ;;  %v7547_v10 = vld [vmem:[#allocation19 + $0xa0] sm:$0xf] }
 0xf55   :  { %v5095_v58 = vadd.f32 %v5088_v24, %v9769_v17  ;;  %vm10108_vm4 = vmor %vm5124_vm3, %vm5125_vm1  ;;  %vm5110_vm7 = vcmp.eq.f32.partialorder %v5109_v31, 8.507059e+37 }
 0xf56   :  { %v5121_v0 = vsub.f32 1.0, %v5120_v47  ;;  %5489 = vmatpush.bf16.msra.mxu0 %v10045_v1 }
 0xf57   :  { %v7331_v40 = vmul.f32 -1.442695, %v5095_v58 }
 0xf58   :  { %v8318_v35 = vpop.eup %8317  ;;  %v5122_v33 = vmul.f32 %v10087_v21, %v5121_v0  ;;  %5410 = vmatpush.bf16.msrb.mxu3 %v7396_v45  ;;  %v7587_v45 = vld [vmem:[#allocation19 + $0xe8] sm:$0xf] }
 0xf59   :  { %v5101_v52 = vmul.f32 %v8318_v35, %v10084_v3  ;;  %8319 = vpow2.f32 %v7331_v40  ;;  %vm5106_vm2 = vweird.f32 %v8318_v35  ;;  %v7998_v40 = vld [vmem:[#allocation19 + $0xe4] sm:$0xf] }
 0xf5a   :  { %v5123_v14 = vadd.f32 %v10087_v21, %v5122_v33  ;;  %8321 = vtanh.f32 %v5094_v19  ;;  %vm5107_vm6 = vmor %vm5105_vm5, %vm5106_vm2  ;;  %5490 = vmatpush.bf16.msra.mxu0 %v10052_v37  ;;  %v7581_v33 = vld [vmem:[#allocation19 + $0xf0] sm:$0xf0]  ;;  %v8001_v19 = vld [vmem:[#allocation19 + $0xf4] sm:$0xf0] }
 0xf5b   :  { %v5102_v59 = vsub.f32 1.0, %v5101_v52  ;;  %v7584_v52 = vor.u32 %v7998_v40, %v7581_v33  ;;  %v7588_v53 = vor.u32 %v8001_v19, %v7587_v45  ;;  %v7523_v40 = vld [vmem:[#allocation19 + $0x68] sm:$0xf]  ;;  %v7985_v33 = vld [vmem:[#allocation19 + $0x74] sm:$0xf0] }
 0xf5c   :  { %v5090_v8 = vpop.f32.mrf.mxu2  ;;  %v5127_v28 = vsel %vm10108_vm4, %v10087_v21, %v5123_v14  ;;  %5411 = vmatpush.bf16.msrb.mxu3 %v7380_v49  ;;  %v7564_v14 = vor.u32 %v7996_v4, %v7563_v63  ;;  %v7997_v49 = vld [vmem:[#allocation19 + $0xd4] sm:$0xf0]  ;;  %v7999_v45 = vld [vmem:[#allocation19 + $0xec] sm:$0xf]  ;;  %v7589_v19 = vld [vmem:[#allocation19 + $0xf8] sm:$0xf0] }
 0xf5d   :  { %v5103_v23 = vmul.f32 %v8318_v35, %v5102_v59  ;;  %v5132_v11 = vsel %vm5129_vm8, %v5131_v42, %v5127_v28  ;;  %5707 = vmatpush.bf16.msrb.mxu2 %v7584_v52  ;;  %v7994_v59 = vld [vmem:[#allocation19 + $0xc4] sm:$0xf]  ;;  %v7571_v8 = vld [vmem:[#allocation19 + $0xc8] sm:$0xf]  ;;  %v7548_v28 = vor.u32 %v7992_v25, %v7547_v10  ;;  %v7592_v63 = vor.u32 %v7999_v45, %v7589_v19  ;;  %v7541_v45 = vld [vmem:[#allocation19 + $0x98] sm:$0xf0] }
 0xf5e   :  { %v5154_v6 = vmul.f32 %v5132_v11, %v10062_v51  ;;  %5491 = vmatpush.bf16.msra.mxu0 %v10058_v54  ;;  %v7572_v31 = vor.u32 %v7997_v49, %v7571_v8  ;;  %v7988_v11 = vld [vmem:[#allocation19 + $0x8c] sm:$0xf0]  ;;  %v7507_v10 = vld [vmem:[#allocation19 + $0x48] sm:$0xf] }
 0xf5f   :  { %v8320_v27 = vpop.eup %8319  ;;  %v5104_v48 = vadd.f32 %v8318_v35, %v5103_v23  ;;  %v7568_v23 = vor.u32 %v7994_v59, %v7565_v7  ;;  %v7980_v7 = vld [vmem:[#allocation19 + $0x4c] sm:$0xf0] }
 0xf60   :  { %v5138_v29 = vadd.f32 1.0, %v8320_v27  ;;  %v8322_v3 = vpop.eup %8321  ;;  %5412 = vmatpush.bf16.msrb.mxu3 %v7364_v26  ;;  %v7990_v27 = vld [vmem:[#allocation19 + $0xa4] sm:$0xf]  ;;  %v7993_v26 = vld [vmem:[#allocation19 + $0xb4] sm:$0xf0] }
 0xf61   :  { %v5108_v34 = vsel %vm5107_vm6, %v8318_v35, %v5104_v48  ;;  %v7580_v35 = vor.u32 %v8000_v62, %v7579_v18  ;;  %5708 = vmatpush.bf16.msrb.mxu2 %v7568_v23  ;;  %v7517_v62 = vld [vmem:[#allocation19 + $0x70] sm:$0xf0]  ;;  %v7978_v23 = vld [vmem:[#allocation19 + $0x44] sm:$0xf] }
 0xf62   :  { %v5113_v44 = vsel %vm5110_vm7, %v5112_v15, %v5108_v34  ;;  %8323 = vrcp.f32 %v5138_v29  ;;  %5492 = vmatpush.bf16.msra.mxu0 %v10064_v32  ;;  %v5150_v12 = vand.u32 2147483648, %v5138_v29  ;;  %v5148_v47 = vand.u32 2147483647, %v5138_v29  ;;  %v7549_v15 = vld [vmem:[#allocation19 + $0xb0] sm:$0xf0] }
 0xf63   :  { %v5155_v61 = vmul.f32 %v8322_v3, %v5113_v44  ;;  %vm5144_vm10 = vweird.f32 %v5138_v29  ;;  %5694 = vmatpush.bf16.msra.mxu1 %v7580_v35  ;;  %v7552_v34 = vor.u32 %v7990_v27, %v7549_v15  ;;  %v7531_v3 = vld [vmem:[#allocation19 + $0x80] sm:$0xf]  ;;  %v7981_v27 = vld [vmem:[#allocation19 + $0x54] sm:$0xf0]  ;;  %v7573_v15 = vld [vmem:[#allocation19 + $0xd8] sm:$0xf0] }
 0xf64   :  { %5413 = vmatpush.bf16.msrb.mxu3 %v7348_v13  ;;  %v5151_v24 = vor.u32 1.1754944e-38, %v5150_v12  ;;  %vm5149_vm12 = vcmp.eq.f32.partialorder %v5148_v47, 8.507059e+37  ;;  %v7986_v13 = vld [vmem:[#allocation19 + $0x84] sm:$0xf]  ;;  %v7989_v12 = vld [vmem:[#allocation19 + $0x94] sm:$0xf0] }
 0xf65   :  { %v10119_v38 = vadd.f32 %v5155_v61, %v5154_v6  ;;  %5709 = vmatpush.bf16.msrb.mxu2 %v7552_v34  ;;  %v7532_v61 = vor.u32 %v7988_v11, %v7531_v3  ;;  %v7533_v6 = vld [vmem:[#allocation19 + $0x90] sm:$0xf0]  ;;  %v7977_v11 = vld [vmem:[#allocation19 + $0x34] sm:$0xf0] }
 0xf66   :  { %5493 = vmatpush.bf16.msra.mxu0 %v10068_v60 }
 0xf67   :  { %8325 = vtanh.f32 %v10119_v38  ;;  %5695 = vmatpush.bf16.msra.mxu1 %v7564_v14  ;;  %v7499_v14 = vld [vmem:[#allocation19 + $0x40] sm:$0xf] }
 0xf68   :  { %v8324_v21 = vpop.eup %8323  ;;  %v7500_v49 = vor.u32 %v7980_v7, %v7499_v14  ;;  %v7983_v7 = vld [vmem:[#allocation19 + $0x6c] sm:$0xf] }
 0xf69   :  { %v5140_v5 = vmul.f32 %v8324_v21, %v5138_v29  ;;  %vm5145_vm9 = vweird.f32 %v8324_v21  ;;  %v7555_v29 = vld [vmem:[#allocation19 + $0xa8] sm:$0xf] }
 0xf6a   :  { %vm5146_vm11 = vmor %vm5144_vm10, %vm5145_vm9  ;;  %5494 = vmatpush.bf16.msra.mxu0 %v10071_v55  ;;  %v7556_v36 = vor.u32 %v7993_v26, %v7555_v29  ;;  %v7483_v26 = vld [vmem:[#allocation19 + $0x20] sm:$0xf] }
 0xf6b   :  { %v5141_v30 = vsub.f32 1.0, %v5140_v5  ;;  %5696 = vmatpush.bf16.msra.mxu1 %v7548_v28  ;;  %v7995_v28 = vld [vmem:[#allocation19 + $0xcc] sm:$0xf] }
 0xf6c   :  { %v7576_v29 = vor.u32 %v7995_v28, %v7573_v15 }
 0xf6d   :  { %v5142_v50 = vmul.f32 %v8324_v21, %v5141_v30  ;;  %v8326_v58 = vpop.eup %8325  ;;  %v7536_v30 = vor.u32 %v7986_v13, %v7533_v6  ;;  %v7557_v13 = vld [vmem:[#allocation19 + $0xb8] sm:$0xf0] }
 0xf6f   :  { %v5143_v51 = vadd.f32 %v8324_v21, %v5142_v50  ;;  %v10127_v50 = vld [vmem:[#allocation23] ss:$0 sm:$0xff]  ;;  %5697 = vmatpush.bf16.msra.mxu1 %v7532_v61  ;;  %5710 = vmatpush.bf16.msrb.mxu2 %v7536_v30  ;;  %v7991_v61 = vld [vmem:[#allocation19 + $0xac] sm:$0xf]  ;;  %v7467_v30 = vld [vmem:[#allocation19] sm:$0xf] }
 0xf71   :  { %v5147_v9 = vsel %vm5146_vm11, %v8324_v21, %v5143_v51  ;;  %v7539_v21 = vld [vmem:[#allocation19 + $0x88] sm:$0xf] }
 0xf72   :  { %v5152_v43 = vsel %vm5149_vm12, %v5151_v24, %v5147_v9  ;;  %v7540_v24 = vor.u32 %v7989_v12, %v7539_v21  ;;  %v7972_v12 = vld [vmem:[#allocation19 + $0xc] sm:$0xf0] }
 0xf73   :  { %v5158_v20 = vmul.f32 %v8326_v58, %v5152_v43  ;;  %v7515_v58 = vld [vmem:[#allocation19 + $0x60] sm:$0xf]  ;;  %v7984_v43 = vld [vmem:[#allocation19 + $0x6c] sm:$0xf0] }
 0xf74   :  { %v7516_v18 = vor.u32 %v7984_v43, %v7515_v58  ;;  %v7468_v58 = vor.u32 %v7972_v12, %v7467_v30  ;;  %v7469_v43 = vld [vmem:[#allocation19 + $0x10] sm:$0xf0] }
 0xf75   :  { %v5159_v0 = vpack.c.bf16 %v5158_v20, %v5158_v20  ;;  %v7982_v20 = vld [vmem:[#allocation19 + $0x64] sm:$0xf] }
 0xf76   :  { %v7520_v35 = vor.u32 %v7982_v20, %v7517_v62  ;;  %5698 = vmatpush.bf16.msra.mxu1 %v7516_v18  ;;  %v7475_v20 = vld [vmem:[#allocation19 + $0x8] sm:$0xf] }
 0xf77   :  { %5168 = vmatmul.bf16.vlgmr.msra.gmra.mxu3 %v5159_v0  ;;  %5375 = vmatmul.bf16.vlgmr.msrb.gmra.mxu0 %v5159_v0 }
 0xf78   :  { %5388 = vmatmul.bf16.vlgmr.msrb.gmra.mxu1 %v5159_v0  ;;  %5401 = vmatmul.bf16.vlgmr.msra.gmra.mxu2 %v5159_v0 }
 0xf79   :  { %5720 = vmatpush.bf16.msra.mxu3 %v7588_v53  ;;  %v7524_v53 = vor.u32 %v7985_v33, %v7523_v40  ;;  %5711 = vmatpush.bf16.msrb.mxu2 %v7520_v35  ;;  %v7987_v33 = vld [vmem:[#allocation19 + $0x8c] sm:$0xf] }
 0xf7a   :  { %5733 = vmatpush.bf16.msrb.mxu0 %v7592_v63  ;;  %5699 = vmatpush.bf16.msra.mxu1 %v7500_v49  ;;  %v7525_v49 = vld [vmem:[#allocation19 + $0x78] sm:$0xf0] }
 0xf7d   :  { %5721 = vmatpush.bf16.msra.mxu3 %v7572_v31  ;;  %v7501_v31 = vld [vmem:[#allocation19 + $0x50] sm:$0xf0] }
 0xf7e   :  { %5734 = vmatpush.bf16.msrb.mxu0 %v7576_v29 }
 0xf81   :  { %5722 = vmatpush.bf16.msra.mxu3 %v7556_v36  ;;  %v7974_v36 = vld [vmem:[#allocation19 + $0x24] sm:$0xf] }
 0xf85   :  { %5723 = vmatpush.bf16.msra.mxu3 %v7540_v24 }
 0xf87   :  { %5414 = vmatmul.bf16.vlgmr.msrb.gmra.mxu3 %v5159_v0 }
 0xf89   :  { %5724 = vmatpush.bf16.msra.mxu3 %v7524_v53  ;;  %v7544_v53 = vor.u32 %v7987_v33, %v7541_v45 }
 0xff4   :  { %v5376_v46 = vpop.f32.mrf.mxu0 }
 0xff5   :  { %v5419_v22 = vadd.f32 %v5376_v46, %v9787_v16  ;;  %v5389_v48 = vpop.f32.mrf.mxu1 }
 0xff6   :  { %v5420_v42 = vadd.f32 %v5389_v48, %v9754_v57  ;;  %v7508_v48 = vor.u32 %v7981_v27, %v7507_v10  ;;  %v7979_v10 = vld [vmem:[#allocation19 + $0x4c] sm:$0xf] }
 0xff7   :  { %v7461_v39 = vmul.f32 -1.442695, %v5419_v22  ;;  %v7504_v22 = vor.u32 %v7978_v23, %v7501_v31  ;;  %v7528_v31 = vor.u32 %v7983_v7, %v7525_v49 }
 0xff8   :  { %v7462_v44 = vmul.f32 -1.442695, %v5420_v42  ;;  %v7976_v42 = vld [vmem:[#allocation19 + $0x2c] sm:$0xf0]  ;;  %5725 = vmatpush.bf16.msra.mxu3 %v7508_v48 }
 0xff9   :  { %8327 = vpow2.f32 %v7461_v39  ;;  %5712 = vmatpush.bf16.msrb.mxu2 %v7504_v22  ;;  %v7484_v34 = vor.u32 %v7976_v42, %v7483_v26  ;;  %v7485_v39 = vld [vmem:[#allocation19 + $0x30] sm:$0xf0]  ;;  %v7975_v42 = vld [vmem:[#allocation19 + $0x2c] sm:$0xf] }
 0xffa   :  { %8329 = vpow2.f32 %v7462_v44  ;;  %v5169_v5 = vpop.f32.mrf.mxu3  ;;  %v7491_v44 = vld [vmem:[#allocation19 + $0x28] sm:$0xf]  ;;  %v7488_v3 = vor.u32 %v7974_v36, %v7485_v39 }
 0xffb   :  { %v5170_v47 = vadd.f32 %v10127_v50, %v5169_v5  ;;  %v10130_v51 = vpop.f32.mrf.mxu2  ;;  %5700 = vmatpush.bf16.msra.mxu1 %v7484_v34  ;;  %v7492_v21 = vor.u32 %v7977_v11, %v7491_v44  ;;  %v7560_v5 = vor.u32 %v7991_v61, %v7557_v13  ;;  %v7493_v34 = vld [vmem:[#allocation19 + $0x38] sm:$0xf0] }
 0xffc   :  { %v5378_v9 = vpop.f32.mrf.mxu0  ;;  %v7496_v11 = vor.u32 %v7975_v42, %v7493_v34 }
 0xffd   :  { %7332 = vst.msk [vmem:[%s8957_s5 + $0x30] sm:$0xff] %vm3211_vm0, %v5170_v47  ;;  %v5391_v0 = vpop.f32.mrf.mxu1  ;;  %v7970_v47 = vld [vmem:[#allocation19 + $0x4] sm:$0xf]  ;;  %5713 = vmatpush.bf16.msrb.mxu2 %v7488_v3  ;;  %5726 = vmatpush.bf16.msra.mxu3 %v7492_v21  ;;  %v7971_v21 = vld [vmem:[#allocation19 + $0xc] sm:$0xf] }
 0xffe   :  { %v7973_v0 = vld [vmem:[#allocation19 + $0x14] sm:$0xf0]  ;;  %v7472_v40 = vor.u32 %v7970_v47, %v7469_v43  ;;  %5735 = vmatpush.bf16.msrb.mxu0 %v7560_v5  ;;  %v7477_v5 = vld [vmem:[#allocation19 + $0x18] sm:$0xf0] }
 0xfff   :  { %v8328_v52 = vpop.eup %8327  ;;  %v7476_v35 = vor.u32 %v7973_v0, %v7475_v20  ;;  %5701 = vmatpush.bf16.msra.mxu1 %v7468_v58 }
0x1000   :  { %v8330_v4 = vpop.eup %8329  ;;  %v10134_v59 = vadd.f32 1.0, %v8328_v52 }
0x1001   :  { %v10136_v8 = vadd.f32 1.0, %v8330_v4  ;;  %5714 = vmatpush.bf16.msrb.mxu2 %v7472_v40  ;;  %5727 = vmatpush.bf16.msra.mxu3 %v7476_v35 }
0x1002   :  { %8331 = vrcp.f32 %v10134_v59  ;;  %v5171_v46 = vpop.f32.mrf.mxu3  ;;  %5736 = vmatpush.bf16.msrb.mxu0 %v7544_v53  ;;  %vm5432_vm15 = vweird.f32 %v10134_v59  ;;  %v5438_v48 = vand.u32 2147483648, %v10134_v59  ;;  %v5436_v15 = vand.u32 2147483647, %v10134_v59 }
0x1003   :  { %8333 = vrcp.f32 %v10136_v8  ;;  %v5404_v25 = vpop.f32.mrf.mxu2  ;;  %5814 = vmatpush.bf16.msrb.mxu1 %v10034_v41  ;;  %v5421_v46 = vadd.f32 %v10130_v51, %v9802_v56  ;;  %v5457_v22 = vand.u32 2147483648, %v10136_v8  ;;  %vm5451_vm1 = vweird.f32 %v10136_v8 }
0x1004   :  { %v7509_v25 = vld [vmem:[#allocation19 + $0x58] sm:$0xf0]  ;;  %v5455_v29 = vand.u32 2147483647, %v10136_v8  ;;  %v5439_v44 = vor.u32 1.1754944e-38, %v5438_v48  ;;  %vm5437_vm4 = vcmp.eq.f32.partialorder %v5436_v15, 8.507059e+37 }
0x1005   :  { %v7512_v26 = vor.u32 %v7979_v10, %v7509_v25 }
0x1006   :  { %5737 = vmatpush.bf16.msrb.mxu0 %v7528_v31  ;;  %vm5456_vm5 = vcmp.eq.f32.partialorder %v5455_v29, 8.507059e+37 }
0x1007   :  { %5815 = vmatpush.bf16.msrb.mxu1 %v10038_v2 }
0x1008   :  { %v10140_v6 = vpop.eup %8331 }
0x1009   :  { %v10142_v24 = vpop.eup %8333  ;;  %v5428_v9 = vmul.f32 %v10140_v6, %v10134_v59  ;;  %vm5433_vm13 = vweird.f32 %v10140_v6 }
0x100a   :  { %v5447_v18 = vmul.f32 %v10142_v24, %v10136_v8  ;;  %v5415_v62 = vpop.f32.mrf.mxu3  ;;  %vm5452_vm14 = vweird.f32 %v10142_v24  ;;  %vm10163_vm2 = vmor %vm5432_vm15, %vm5433_vm13  ;;  %v5458_v8 = vor.u32 1.1754944e-38, %v5457_v22  ;;  %5738 = vmatpush.bf16.msrb.mxu0 %v7512_v26 }
0x100b   :  { %v5429_v19 = vsub.f32 1.0, %v5428_v9  ;;  %v5422_v52 = vadd.f32 %v5415_v62, %v9769_v17  ;;  %vm10169_vm3 = vmor %vm5451_vm1, %vm5452_vm14  ;;  %5816 = vmatpush.bf16.msrb.mxu1 %v10045_v1  ;;  %v7480_v1 = vor.u32 %v7971_v21, %v7477_v5 }
0x100c   :  { %v5448_v63 = vsub.f32 1.0, %v5447_v18 }
0x100d   :  { %v5430_v4 = vmul.f32 %v10140_v6, %v5429_v19  ;;  %v7463_v14 = vmul.f32 -1.442695, %v5422_v52 }
0x100e   :  { %v5449_v23 = vmul.f32 %v10142_v24, %v5448_v63  ;;  %5739 = vmatpush.bf16.msrb.mxu0 %v7496_v11 }
0x100f   :  { %8335 = vpow2.f32 %v7463_v14  ;;  %v5431_v27 = vadd.f32 %v10140_v6, %v5430_v4  ;;  %5817 = vmatpush.bf16.msrb.mxu1 %v10052_v37 }
0x1010   :  { %v5450_v41 = vadd.f32 %v10142_v24, %v5449_v23  ;;  %8337 = vtanh.f32 %v5421_v46 }
0x1011   :  { %v5435_v39 = vsel %vm10163_vm2, %v10140_v6, %v5431_v27 }
0x1012   :  { %v5417_v28 = vpop.f32.mrf.mxu3  ;;  %v5454_v59 = vsel %vm10169_vm3, %v10142_v24, %v5450_v41  ;;  %v5440_v61 = vsel %vm5437_vm4, %v5439_v44, %v5435_v39  ;;  %5740 = vmatpush.bf16.msrb.mxu0 %v7480_v1 }
0x1013   :  { %v5459_v13 = vsel %vm5456_vm5, %v5458_v8, %v5454_v59  ;;  %5818 = vmatpush.bf16.msrb.mxu1 %v10058_v54 }
0x1014   :  { %v5481_v30 = vmul.f32 %v5459_v13, %v10119_v38 }
0x1015   :  { %v8336_v36 = vpop.eup %8335 }
0x1016   :  { %v5465_v3 = vadd.f32 1.0, %v8336_v36  ;;  %v8338_v6 = vpop.eup %8337 }
0x1017   :  { %v5482_v12 = vmul.f32 %v8338_v6, %v5440_v61  ;;  %5819 = vmatpush.bf16.msrb.mxu1 %v10064_v32 }
0x1018   :  { %8339 = vrcp.f32 %v5465_v3  ;;  %v5477_v43 = vand.u32 2147483648, %v5465_v3  ;;  %v5475_v20 = vand.u32 2147483647, %v5465_v3  ;;  %vm5471_vm7 = vweird.f32 %v5465_v3 }
0x1019   :  { %v10183_v24 = vadd.f32 %v5482_v12, %v5481_v30 }
0x101a   :  { %v5478_v54 = vor.u32 1.1754944e-38, %v5477_v43  ;;  %vm5476_vm9 = vcmp.eq.f32.partialorder %v5475_v20, 8.507059e+37 }
0x101b   :  { %8341 = vtanh.f32 %v10183_v24  ;;  %5820 = vmatpush.bf16.msrb.mxu1 %v10068_v60 }
0x101e   :  { %v8340_v47 = vpop.eup %8339 }
0x101f   :  { %v5467_v9 = vmul.f32 %v8340_v47, %v5465_v3  ;;  %vm5472_vm6 = vweird.f32 %v8340_v47  ;;  %5821 = vmatpush.bf16.msrb.mxu1 %v10071_v55 }
0x1020   :  { %vm5473_vm8 = vmor %vm5471_vm7, %vm5472_vm6 }
0x1021   :  { %v5468_v58 = vsub.f32 1.0, %v5467_v9  ;;  %v8342_v18 = vpop.eup %8341 }
0x1023   :  { %v5469_v37 = vmul.f32 %v8340_v47, %v5468_v58 }
0x1025   :  { %v5470_v38 = vadd.f32 %v8340_v47, %v5469_v37 }
0x1027   :  { %v5474_v0 = vsel %vm5473_vm8, %v8340_v47, %v5470_v38 }
0x1028   :  { %v5479_v62 = vsel %vm5476_vm9, %v5478_v54, %v5474_v0 }
0x1029   :  { %v5485_v32 = vmul.f32 %v8342_v18, %v5479_v62 }
0x102b   :  { %v5486_v40 = vpack.c.bf16 %v5485_v32, %v5485_v32 }
0x102d   :  { %5495 = vmatmul.bf16.vlgmr.msra.gmra.mxu0 %v5486_v40  ;;  %5702 = vmatmul.bf16.vlgmr.msra.gmra.mxu1 %v5486_v40 }
0x102e   :  { %5715 = vmatmul.bf16.vlgmr.msrb.gmra.mxu2 %v5486_v40  ;;  %5728 = vmatmul.bf16.vlgmr.msra.gmra.mxu3 %v5486_v40 }
0x103d   :  { %5741 = vmatmul.bf16.vlgmr.msrb.gmra.mxu0 %v5486_v40 }
0x10aa   :  { %v5496_v35 = vpop.f32.mrf.mxu0  ;;  %v5703_v60 = vpop.f32.mrf.mxu1 }
0x10ab   :  { %v5497_v33 = vadd.f32 %v10127_v50, %v5496_v35  ;;  %v5746_v45 = vadd.f32 %v5703_v60, %v9787_v16 }
0x10ad   :  { %7464 = vst.msk [vmem:[%s8957_s5 + $0x38] sm:$0xff] %vm3211_vm0, %v5497_v33  ;;  %v7593_v19 = vmul.f32 -1.442695, %v5746_v45 }
0x10af   :  { %8343 = vpow2.f32 %v7593_v19 }
0x10b1   :  { %v5716_v52 = vpop.f32.mrf.mxu2  ;;  %v5729_v53 = vpop.f32.mrf.mxu3 }
0x10b2   :  { %v5747_v55 = vadd.f32 %v5716_v52, %v9754_v57  ;;  %v5498_v63 = vpop.f32.mrf.mxu0  ;;  %v5705_v4 = vpop.f32.mrf.mxu1  ;;  %v5748_v51 = vadd.f32 %v5729_v53, %v9802_v56 }
0x10b4   :  { %v7594_v14 = vmul.f32 -1.442695, %v5747_v55 }
0x10b5   :  { %v8344_v7 = vpop.eup %8343 }
0x10b6   :  { %v5753_v49 = vadd.f32 1.0, %v8344_v7  ;;  %8345 = vpow2.f32 %v7594_v14 }
0x10b8   :  { %8347 = vrcp.f32 %v5753_v49  ;;  %v5765_v42 = vand.u32 2147483648, %v5753_v49  ;;  %vm5759_vm11 = vweird.f32 %v5753_v49  ;;  %v5763_v36 = vand.u32 2147483647, %v5753_v49 }
0x10b9   :  { %v5718_v23 = vpop.f32.mrf.mxu2  ;;  %v5731_v31 = vpop.f32.mrf.mxu3 }
0x10ba   :  { %v5742_v46 = vpop.f32.mrf.mxu0  ;;  %v5766_v3 = vor.u32 1.1754944e-38, %v5765_v42  ;;  %vm5764_vm15 = vcmp.eq.f32.partialorder %v5763_v36, 8.507059e+37 }
0x10bb   :  { %v5749_v16 = vadd.f32 %v5742_v46, %v9769_v17 }
0x10bc   :  { %v8346_v10 = vpop.eup %8345 }
0x10bd   :  { %v5772_v25 = vadd.f32 1.0, %v8346_v10  ;;  %v7595_v27 = vmul.f32 -1.442695, %v5749_v16 }
0x10be   :  { %v8348_v41 = vpop.eup %8347 }
0x10bf   :  { %v5755_v22 = vmul.f32 %v8348_v41, %v5753_v49  ;;  %8349 = vrcp.f32 %v5772_v25  ;;  %vm5760_vm10 = vweird.f32 %v8348_v41  ;;  %v5784_v39 = vand.u32 2147483648, %v5772_v25 }
0x10c0   :  { %8351 = vpow2.f32 %v7595_v27  ;;  %vm5761_vm12 = vmor %vm5759_vm11, %vm5760_vm10  ;;  %v5782_v44 = vand.u32 2147483647, %v5772_v25  ;;  %vm5778_vm14 = vweird.f32 %v5772_v25 }
0x10c1   :  { %v5756_v57 = vsub.f32 1.0, %v5755_v22  ;;  %8353 = vtanh.f32 %v5748_v51  ;;  %v5785_v11 = vor.u32 1.1754944e-38, %v5784_v39 }
0x10c2   :  { %v5744_v48 = vpop.f32.mrf.mxu0  ;;  %vm5783_vm2 = vcmp.eq.f32.partialorder %v5782_v44, 8.507059e+37 }
0x10c3   :  { %v5757_v28 = vmul.f32 %v8348_v41, %v5756_v57 }
0x10c5   :  { %v8350_v15 = vpop.eup %8349  ;;  %v5758_v2 = vadd.f32 %v8348_v41, %v5757_v28 }
0x10c6   :  { %v8352_v29 = vpop.eup %8351  ;;  %v5774_v26 = vmul.f32 %v8350_v15, %v5772_v25  ;;  %vm5779_vm13 = vweird.f32 %v8350_v15 }
0x10c7   :  { %v5792_v34 = vadd.f32 1.0, %v8352_v29  ;;  %v5762_v8 = vsel %vm5761_vm12, %v8348_v41, %v5758_v2  ;;  %vm5780_vm1 = vmor %vm5778_vm14, %vm5779_vm13  ;;  %v8354_v13 = vpop.eup %8353 }
0x10c8   :  { %v5775_v17 = vsub.f32 1.0, %v5774_v26  ;;  %v5767_v61 = vsel %vm5764_vm15, %v5766_v3, %v5762_v8 }
0x10c9   :  { %8355 = vrcp.f32 %v5792_v34  ;;  %v5809_v12 = vmul.f32 %v8354_v13, %v5767_v61  ;;  %v5804_v58 = vand.u32 2147483648, %v5792_v34  ;;  %v5802_v37 = vand.u32 2147483647, %v5792_v34 }
0x10ca   :  { %v5776_v59 = vmul.f32 %v8350_v15, %v5775_v17  ;;  %vm5798_vm4 = vweird.f32 %v5792_v34 }
0x10cb   :  { %v5805_v38 = vor.u32 1.1754944e-38, %v5804_v58  ;;  %vm5803_vm6 = vcmp.eq.f32.partialorder %v5802_v37, 8.507059e+37 }
0x10cc   :  { %v5777_v56 = vadd.f32 %v8350_v15, %v5776_v59 }
0x10ce   :  { %v5781_v21 = vsel %vm5780_vm1, %v8350_v15, %v5777_v56 }
0x10cf   :  { %v8356_v5 = vpop.eup %8355  ;;  %v5786_v6 = vsel %vm5783_vm2, %v5785_v11, %v5781_v21 }
0x10d0   :  { %v5808_v30 = vmul.f32 %v5786_v6, %v10183_v24  ;;  %v5794_v1 = vmul.f32 %v8356_v5, %v5792_v34  ;;  %vm5799_vm3 = vweird.f32 %v8356_v5 }
0x10d1   :  { %vm5800_vm5 = vmor %vm5798_vm4, %vm5799_vm3 }
0x10d2   :  { %v5810_v47 = vadd.f32 %v5809_v12, %v5808_v30  ;;  %v5795_v9 = vsub.f32 1.0, %v5794_v1 }
0x10d4   :  { %8357 = vtanh.f32 %v5810_v47  ;;  %v5796_v43 = vmul.f32 %v8356_v5, %v5795_v9 }
0x10d6   :  { %v5797_v20 = vadd.f32 %v8356_v5, %v5796_v43 }
0x10d8   :  { %v5801_v54 = vsel %vm5800_vm5, %v8356_v5, %v5797_v20 }
0x10d9   :  { %v5806_v0 = vsel %vm5803_vm6, %v5805_v38, %v5801_v54 }
0x10da   :  { %v8358_v18 = vpop.eup %8357 }
0x10db   :  { %v5812_v62 = vmul.f32 %v8358_v18, %v5806_v0 }
0x10dd   :  { %v5813_v24 = vpack.c.bf16 %v5812_v62, %v5812_v62 }
0x10df   :  { %5822 = vmatmul.bf16.vlgmr.msrb.gmra.mxu1 %v5813_v24 }
0x115c   :  { %v5823_v32 = vpop.f32.mrf.mxu1 }
0x115d   :  { %v5824_v40 = vadd.f32 %v10127_v50, %v5823_v32 }
0x115f   :  { %7596 = vst.msk [vmem:[%s8957_s5 + $0x40] sm:$0xff] %vm3211_vm0, %v5824_v40 }
0x1164   :  { %v5825_v35 = vpop.f32.mrf.mxu1 }
0x1165   :  { %5845 = vsyncpa [#allocation4], 1 }
0x1166   :  { %5846 = vsyncpa [#allocation6], 1 }
0x1167   :  { %5847 = vsyncpa [#allocation9], 1 }
0x1168   :  { %5848 = vsyncpa [#allocation12], 1 }
0x1169   :  { %5849 = vsyncpa [#allocation15], 1 }
0x116a   :  { %5850 = vsyncpa [#allocation18], 1 }
0x116b   :  { %5851 = vsyncpa [#allocation21], 1 }
0x116c   :  { %5852 = vsyncpa [#allocation24], 1 }

</bundles_post_ra>
